<compile_context>
chip_gen: v5e
topology: v5e:2x2
jax: 0.10.0
libtpu: 0.0.40
codegen_flags: <defaults>
</compile_context>

<pallas_src>
import jax
import jax.numpy as jnp
from jax.experimental import pallas as pl
from jax.experimental.pallas import tpu as pltpu

# MLP dims: 768 -> 1024 -> 128 -> 64 -> 16 -> 1
DIMS = (768, 1024, 128, 64, 16, 1)
BM = 256        # batch tile (multiple of 256 for full MXU fill on v6e/v7x)
OUT_PAD = 128   # lane-dense output slab width; only column 0 is the real output


def _mlp_kernel(x_ref,
                w1_ref, b1_ref,
                w2_ref, b2_ref,
                wt_ref, bt_ref,
                o_ref):
    # x tile is already bf16 (cast in the wrapper) -> no per-tile VPU cast pass.
    x = x_ref[...]                                                   # (BM, 768) bf16
    # Linear(768 -> 1024)   (Dropout(0.2) is identity in eval mode)
    h1 = jnp.dot(x, w1_ref[...], preferred_element_type=jnp.float32) + b1_ref[...]
    # Linear(1024 -> 128)   (Dropout(0.2) is identity in eval mode)
    h2 = jnp.dot(h1.astype(jnp.bfloat16), w2_ref[...],
                 preferred_element_type=jnp.float32) + b2_ref[...]
    # Folded affine tail: Linear(128->64) -> Dropout(0.1) -> Linear(64->16)
    # -> Linear(16->1), pre-collapsed in the wrapper into a single f32
    # (128, OUT_PAD) weight (columns 1.. are zero padding for lane-dense stores).
    out = jnp.dot(h2, wt_ref[...], preferred_element_type=jnp.float32) + bt_ref[...]
    o_ref[...] = out.astype(o_ref.dtype)                             # (BM, 128) unmasked vst


def _prepare_params(params):
    """params: list of 5 (W_t[in,out] f32, b[1,out] f32) -> kernel operands."""
    (w1, b1), (w2, b2), (w3, b3), (w4, b4), (w5, b5) = params
    # Fold the affine tail 128 -> 64 -> 16 -> 1 into one 128 -> 1 affine map (f32).
    wt = w3 @ w4 @ w5                        # (128, 1)
    bt = (b3 @ w4 + b4) @ w5 + b5            # (1, 1)
    # Zero-pad to a lane-dense (128, OUT_PAD) slab; only column 0 is meaningful.
    wt = jnp.pad(wt, ((0, 0), (0, OUT_PAD - wt.shape[1])))
    bt = jnp.pad(bt, ((0, 0), (0, OUT_PAD - bt.shape[1])))
    return (w1.astype(jnp.bfloat16), b1.astype(jnp.float32),
            w2.astype(jnp.bfloat16), b2.astype(jnp.float32),
            wt.astype(jnp.float32), bt.astype(jnp.float32))


@jax.jit
def mlp_diff_forward(embed, params):
    """embed: [B, 768] float32. params: list of (W_t[in,out], b[1,out]) float32."""
    B, D = embed.shape
    assert D == DIMS[0]

    w1, b1, w2, b2, wt, bt = _prepare_params(params)

    # bf16 input halves HBM traffic; the MXU accumulates in f32.
    x = embed.astype(jnp.bfloat16)

    # Pad batch to a multiple of the batch tile.
    Bp = ((B + BM - 1) // BM) * BM
    if Bp != B:
        x = jnp.pad(x, ((0, Bp - B), (0, 0)))

    grid = (Bp // BM,)

    # Full-array (un-gridded) specs for every weight / bias (resident in VMEM).
    def full_spec(shape):
        return pl.BlockSpec(shape, lambda i: (0, 0))

    in_specs = [
        pl.BlockSpec((BM, DIMS[0]), lambda i: (i, 0)),
        full_spec(w1.shape), full_spec(b1.shape),
        full_spec(w2.shape), full_spec(b2.shape),
        full_spec(wt.shape), full_spec(bt.shape),
    ]

    out = pl.pallas_call(
        _mlp_kernel,
        out_shape=jax.ShapeDtypeStruct((Bp, OUT_PAD), jnp.float32),
        grid_spec=pltpu.PrefetchScalarGridSpec(
            num_scalar_prefetch=0,
            grid=grid,
            in_specs=in_specs,
            out_specs=pl.BlockSpec((BM, OUT_PAD), lambda i: (i, 0)),
        ),
        compiler_params=pltpu.CompilerParams(
            dimension_semantics=("parallel",),   # shards batch tiles across v7x's 2 TCs
        ),
    )(x, w1, b1, w2, b2, wt, bt)

    # Strip batch padding and the lane padding of the output slab.
    return out[:B, :DIMS[-1]]


def init_params(key):
    """Deterministic synthetic init matching nn.Linear shapes (out, in) / (out,).

    Returned pre-transposed: W_t has shape (in, out), bias shape (1, out), f32.
    """
    params = []
    for (fan_in, fan_out) in zip(DIMS[:-1], DIMS[1:]):
        kw, kb, key = jax.random.split(key, 3)
        bound = 1.0 / jnp.sqrt(fan_in)  # PyTorch default uniform bound
        w = jax.random.uniform(kw, (fan_out, fan_in), jnp.float32, -bound, bound)
        b = jax.random.uniform(kb, (fan_out,), jnp.float32, -bound, bound)
        params.append((jnp.transpose(w), b.reshape(1, fan_out)))
    return params


def mlp_diff_reference_f32(embed, params):
    """Pure-JAX f32 reference (exact module semantics)."""
    h = embed
    for (w_t, b) in params:
        h = h @ w_t + b
    return h


def mlp_diff_reference_bf16(embed, params):
    """Pure-JAX reference mirroring the kernel's bf16-weight / f32-accumulate path."""
    (w1, b1), (w2, b2), (w3, b3), (w4, b4), (w5, b5) = params
    wt = w3 @ w4 @ w5
    bt = (b3 @ w4 + b4) @ w5 + b5
    f32 = jnp.float32
    x = embed.astype(jnp.bfloat16).astype(f32)
    h1 = x @ w1.astype(jnp.bfloat16).astype(f32) + b1
    h2 = (h1.astype(jnp.bfloat16).astype(f32)
          @ w2.astype(jnp.bfloat16).astype(f32) + b2)
    return h2 @ wt + bt


if __name__ == "__main__":
    key = jax.random.PRNGKey(0)
    k_x, k_p = jax.random.split(key)

    B = 2
    embed = jax.random.normal(k_x, (B, 768), jnp.float32)
    params = init_params(k_p)

    out = jax.block_until_ready(mlp_diff_forward(embed, params))
    assert out.shape == (B, 1), out.shape

    # Tight check against a reference using identical bf16-weight numerics.
    ref_bf16 = mlp_diff_reference_bf16(embed, params)
    assert jnp.allclose(out, ref_bf16, atol=1e-3, rtol=1e-3), (out, ref_bf16)

    # Loose check against the exact f32 module semantics (bf16 weight rounding only).
    ref_f32 = mlp_diff_reference_f32(embed, params)
    assert jnp.allclose(out, ref_f32, atol=5e-2, rtol=5e-2), (out, ref_f32)

    print("KERNEL_OK")
</pallas_src>

<mosaic_0001>
module attributes {stable_mosaic.version = 11 : i64} {
  func.func @_mlp_kernel(%arg0: i32, %arg1: memref<256x768xbf16, #tpu.memory_space<vmem>>, %arg2: memref<768x1024xbf16, #tpu.memory_space<vmem>>, %arg3: memref<1x1024xf32, #tpu.memory_space<vmem>>, %arg4: memref<1024x128xbf16, #tpu.memory_space<vmem>>, %arg5: memref<1x128xf32, #tpu.memory_space<vmem>>, %arg6: memref<128x128xf32, #tpu.memory_space<vmem>>, %arg7: memref<1x128xf32, #tpu.memory_space<vmem>>, %arg8: memref<256x128xf32, #tpu.memory_space<vmem>>) attributes {dimension_semantics = [#tpu.dimension_semantics<parallel>], iteration_bounds = array<i64: 1>, scalar_prefetch = 0 : i64, scratch_operands = 0 : i64, tpu.core_type = #tpu.core_type<tc>, window_params = [{transform_indices = @transform_0, window_bounds = array<i64: 256, 768>}, {pipeline_mode = #tpu.pipeline_mode<synchronous>, transform_indices = @transform_1, window_bounds = array<i64: 768, 1024>}, {pipeline_mode = #tpu.pipeline_mode<synchronous>, transform_indices = @transform_2, window_bounds = array<i64: 1, 1024>}, {pipeline_mode = #tpu.pipeline_mode<synchronous>, transform_indices = @transform_3, window_bounds = array<i64: 1024, 128>}, {pipeline_mode = #tpu.pipeline_mode<synchronous>, transform_indices = @transform_4, window_bounds = array<i64: 1, 128>}, {pipeline_mode = #tpu.pipeline_mode<synchronous>, transform_indices = @transform_5, window_bounds = array<i64: 128, 128>}, {pipeline_mode = #tpu.pipeline_mode<synchronous>, transform_indices = @transform_6, window_bounds = array<i64: 1, 128>}, {transform_indices = @transform_7, window_bounds = array<i64: 256, 128>}]} {
    %c0 = arith.constant 0 : index
    %c0_0 = arith.constant 0 : index
    %0 = vector.load %arg1[%c0, %c0_0] : memref<256x768xbf16, #tpu.memory_space<vmem>>, vector<256x768xbf16>
    %c0_1 = arith.constant 0 : index
    %c0_2 = arith.constant 0 : index
    %1 = vector.load %arg2[%c0_1, %c0_2] : memref<768x1024xbf16, #tpu.memory_space<vmem>>, vector<768x1024xbf16>
    %cst = arith.constant dense<0.000000e+00> : vector<256x1024xf32>
    %2 = tpu.matmul %0, %1, %cst {dimension_numbers = #tpu.dot_dimension_numbers<[1], [0], [0], [1], [0, 0, 1, 1], [], []>} : vector<256x768xbf16>, vector<768x1024xbf16>, vector<256x1024xf32> -> vector<256x1024xf32>
    %c0_3 = arith.constant 0 : index
    %c0_4 = arith.constant 0 : index
    %3 = vector.load %arg3[%c0_3, %c0_4] : memref<1x1024xf32, #tpu.memory_space<vmem>>, vector<1x1024xf32>
    %4 = vector.broadcast %3 : vector<1x1024xf32> to vector<256x1024xf32>
    %5 = arith.addf %2, %4 : vector<256x1024xf32>
    %6 = arith.truncf %5 : vector<256x1024xf32> to vector<256x1024xbf16>
    %c0_5 = arith.constant 0 : index
    %c0_6 = arith.constant 0 : index
    %7 = vector.load %arg4[%c0_5, %c0_6] : memref<1024x128xbf16, #tpu.memory_space<vmem>>, vector<1024x128xbf16>
    %cst_7 = arith.constant dense<0.000000e+00> : vector<256x128xf32>
    %8 = tpu.matmul %6, %7, %cst_7 {dimension_numbers = #tpu.dot_dimension_numbers<[1], [0], [0], [1], [0, 0, 1, 1], [], []>} : vector<256x1024xbf16>, vector<1024x128xbf16>, vector<256x128xf32> -> vector<256x128xf32>
    %c0_8 = arith.constant 0 : index
    %c0_9 = arith.constant 0 : index
    %9 = vector.load %arg5[%c0_8, %c0_9] : memref<1x128xf32, #tpu.memory_space<vmem>>, vector<1x128xf32>
    %10 = vector.broadcast %9 : vector<1x128xf32> to vector<256x128xf32>
    %11 = arith.addf %8, %10 : vector<256x128xf32>
    %c0_10 = arith.constant 0 : index
    %c0_11 = arith.constant 0 : index
    %12 = vector.load %arg6[%c0_10, %c0_11] : memref<128x128xf32, #tpu.memory_space<vmem>>, vector<128x128xf32>
    %cst_12 = arith.constant dense<0.000000e+00> : vector<256x128xf32>
    %13 = tpu.matmul %11, %12, %cst_12 {dimension_numbers = #tpu.dot_dimension_numbers<[1], [0], [0], [1], [0, 0, 1, 1], [], []>} : vector<256x128xf32>, vector<128x128xf32>, vector<256x128xf32> -> vector<256x128xf32>
    %c0_13 = arith.constant 0 : index
    %c0_14 = arith.constant 0 : index
    %14 = vector.load %arg7[%c0_13, %c0_14] : memref<1x128xf32, #tpu.memory_space<vmem>>, vector<1x128xf32>
    %15 = vector.broadcast %14 : vector<1x128xf32> to vector<256x128xf32>
    %16 = arith.addf %13, %15 : vector<256x128xf32>
    %c0_15 = arith.constant 0 : index
    %c0_16 = arith.constant 0 : index
    %17 = vector.load %arg8[%c0_15, %c0_16] : memref<256x128xf32, #tpu.memory_space<vmem>>, vector<256x128xf32>
    tpu.vector_store %arg8[%c0_15, %c0_16], %16 {strides = array<i32>} : memref<256x128xf32, #tpu.memory_space<vmem>>, vector<256x128xf32>,
    return
  }
  func.func @transform_0(%arg0: i32) -> (i32, i32) {
    %c0_i32 = arith.constant 0 : i32
    %c0_i32_0 = arith.constant 0 : i32
    return %arg0, %c0_i32 : i32, i32
  }
  func.func @transform_1(%arg0: i32) -> (i32, i32) {
    %c0_i32 = arith.constant 0 : i32
    %c0_i32_0 = arith.constant 0 : i32
    %c0_i32_1 = arith.constant 0 : i32
    return %c0_i32, %c0_i32_0 : i32, i32
  }
  func.func @transform_2(%arg0: i32) -> (i32, i32) {
    %c0_i32 = arith.constant 0 : i32
    %c0_i32_0 = arith.constant 0 : i32
    %c0_i32_1 = arith.constant 0 : i32
    return %c0_i32, %c0_i32_0 : i32, i32
  }
  func.func @transform_3(%arg0: i32) -> (i32, i32) {
    %c0_i32 = arith.constant 0 : i32
    %c0_i32_0 = arith.constant 0 : i32
    %c0_i32_1 = arith.constant 0 : i32
    return %c0_i32, %c0_i32_0 : i32, i32
  }
  func.func @transform_4(%arg0: i32) -> (i32, i32) {
    %c0_i32 = arith.constant 0 : i32
    %c0_i32_0 = arith.constant 0 : i32
    %c0_i32_1 = arith.constant 0 : i32
    return %c0_i32, %c0_i32_0 : i32, i32
  }
  func.func @transform_5(%arg0: i32) -> (i32, i32) {
    %c0_i32 = arith.constant 0 : i32
    %c0_i32_0 = arith.constant 0 : i32
    %c0_i32_1 = arith.constant 0 : i32
    return %c0_i32, %c0_i32_0 : i32, i32
  }
  func.func @transform_6(%arg0: i32) -> (i32, i32) {
    %c0_i32 = arith.constant 0 : i32
    %c0_i32_0 = arith.constant 0 : i32
    %c0_i32_1 = arith.constant 0 : i32
    return %c0_i32, %c0_i32_0 : i32, i32
  }
  func.func @transform_7(%arg0: i32) -> (i32, i32) {
    %c0_i32 = arith.constant 0 : i32
    %c0_i32_0 = arith.constant 0 : i32
    return %arg0, %c0_i32 : i32, i32
  }
}

</mosaic_0001>

<bundles_post_ra>
// kernel: mlp_diff_forward.1
= control target key start
LH: loop header
LB: loop body
LE: loop exit
PB: predicated region body
PF: predicated region fallthrough
CT: control target
= control target key end

     0   :  { %s18628_s1 = inlined_call_operand.vmem [shape: bf16[768,1024], index: 1, kind: input, shape index: {}]   ;;  %s18629_s0 = inlined_call_operand.vmem [shape: bf16[256,768], index: 0, kind: input, shape index: {}]   ;;  %s18630_s2 = inlined_call_operand.vmem [shape: f32[1,1024], index: 2, kind: input, shape index: {}]   ;;  %s18631_s3 = inlined_call_operand.vmem [shape: bf16[1024,128], index: 3, kind: input, shape index: {}]   ;;  %s18632_s4 = inlined_call_operand.vmem [shape: f32[1,128], index: 4, kind: input, shape index: {}]   ;;  %s18633_s5 = inlined_call_operand.vmem [shape: f32[128,128], index: 5, kind: input, shape index: {}]   ;;  %s18634_s6 = inlined_call_operand.vmem [shape: f32[1,128], index: 6, kind: input, shape index: {}]   ;;  %s18635_s7 = inlined_call_operand.vmem [shape: f32[256,128], index: 7, kind: output, shape index: {}]  }
   0x1   :  { %v9331_v0 = vld [vmem:[%s18628_s1 + $0x1c0] sm:$0xf]  ;;  %v10900_v24 = vld [vmem:[%s18629_s0 + $0x14] sm:$0xf0] }
   0x2   :  { %v11053_v1 = vld [vmem:[%s18628_s1 + $0x1dc] sm:$0xf0]  ;;  %v10924_v31 = vld [vmem:[%s18629_s0 + $0xd4] sm:$0xf0] }
   0x3   :  { %v9299_v2 = vld [vmem:[%s18628_s1 + $0x180] sm:$0xf]  ;;  %v9332_v3 = vor.u32 %v11053_v1, %v9331_v0  ;;  %v10948_v33 = vld [vmem:[%s18629_s0 + $0x194] sm:$0xf0] }
   0x4   :  { %v11045_v4 = vld [vmem:[%s18628_s1 + $0x19c] sm:$0xf0]  ;;  %v10972_v35 = vld [vmem:[%s18629_s0 + $0x254] sm:$0xf0] }
   0x5   :  { %2924 = vmatpush.bf16.msra.mxu0 %v9332_v3  ;;  %11441 = vmatpush.bf16.msra.mxu1 %v9332_v3  ;;  %v9300_v5 = vor.u32 %v11045_v4, %v9299_v2  ;;  %v9267_v6 = vld [vmem:[%s18628_s1 + $0x140] sm:$0xf] }
   0x6   :  { %11442 = vmatpush.bf16.msra.mxu2 %v9332_v3  ;;  %11443 = vmatpush.bf16.msra.mxu3 %v9332_v3  ;;  %v11037_v7 = vld [vmem:[%s18628_s1 + $0x15c] sm:$0xf0] }
   0x7   :  { %v9268_v8 = vor.u32 %v11037_v7, %v9267_v6  ;;  %v9235_v9 = vld [vmem:[%s18628_s1 + $0x100] sm:$0xf] }
   0x8   :  { %v11029_v10 = vld [vmem:[%s18628_s1 + $0x11c] sm:$0xf0] }
   0x9   :  { %2925 = vmatpush.bf16.msra.mxu0 %v9300_v5  ;;  %11444 = vmatpush.bf16.msra.mxu1 %v9300_v5  ;;  %v9236_v11 = vor.u32 %v11029_v10, %v9235_v9  ;;  %v9203_v12 = vld [vmem:[%s18628_s1 + $0xc0] sm:$0xf] }
   0xa   :  { %11445 = vmatpush.bf16.msra.mxu2 %v9300_v5  ;;  %11446 = vmatpush.bf16.msra.mxu3 %v9300_v5  ;;  %v11021_v13 = vld [vmem:[%s18628_s1 + $0xdc] sm:$0xf0] }
   0xb   :  { %v9204_v14 = vor.u32 %v11021_v13, %v9203_v12  ;;  %v9171_v15 = vld [vmem:[%s18628_s1 + $0x80] sm:$0xf]  ;;  %v10906_v12 = vld [vmem:[%s18629_s0 + $0x44] sm:$0xf0]  ;;  %v8843_v13 = vld [vmem:[%s18629_s0 + $0xf0] sm:$0xf] }
   0xc   :  { %v11013_v16 = vld [vmem:[%s18628_s1 + $0x9c] sm:$0xf0] }
   0xd   :  { %2926 = vmatpush.bf16.msra.mxu0 %v9268_v8  ;;  %11447 = vmatpush.bf16.msra.mxu1 %v9268_v8  ;;  %v9172_v17 = vor.u32 %v11013_v16, %v9171_v15  ;;  %v9139_v18 = vld [vmem:[%s18628_s1 + $0x40] sm:$0xf] }
   0xe   :  { %11448 = vmatpush.bf16.msra.mxu2 %v9268_v8  ;;  %11449 = vmatpush.bf16.msra.mxu3 %v9268_v8  ;;  %v11005_v19 = vld [vmem:[%s18628_s1 + $0x5c] sm:$0xf0] }
   0xf   :  { %v9140_v20 = vor.u32 %v11005_v19, %v9139_v18  ;;  %v9107_v21 = vld [vmem:[%s18628_s1] sm:$0xf] }
  0x10   :  { %v10997_v22 = vld [vmem:[%s18628_s1 + $0x1c] sm:$0xf0] }
  0x11   :  { %2927 = vmatpush.bf16.msra.mxu0 %v9236_v11  ;;  %11450 = vmatpush.bf16.msra.mxu1 %v9236_v11  ;;  %v8723_v23 = vld [vmem:[%s18629_s0] sm:$0xf]  ;;  %v9108_v29 = vor.u32 %v10997_v22, %v9107_v21 }
  0x12   :  { %11451 = vmatpush.bf16.msra.mxu2 %v9236_v11  ;;  %11452 = vmatpush.bf16.msra.mxu3 %v9236_v11  ;;  %v9843_v25 = vld [vmem:[%s18628_s1 + $0x5c0] sm:$0xf]  ;;  %v11604_v41 = vor.u32 %v10900_v24, %v8723_v23  ;;  %v8747_v11 = vld [vmem:[%s18629_s0 + $0x30] sm:$0xf] }
  0x13   :  { %v11181_v26 = vld [vmem:[%s18628_s1 + $0x5dc] sm:$0xf0]  ;;  %v8939_v24 = vld [vmem:[%s18629_s0 + $0x1b0] sm:$0xf] }
  0x14   :  { %v10099_v27 = vld [vmem:[%s18628_s1 + $0x7c0] sm:$0xf]  ;;  %v9844_v36 = vor.u32 %v11181_v26, %v9843_v25  ;;  %19213 = vst [vmem:[#allocation2_spill] sm:$0xff] %v11604_v41  ;;  %v10954_v25 = vld [vmem:[%s18629_s0 + $0x1c4] sm:$0xf0] }
  0x15   :  { %2928 = vmatpush.bf16.msra.mxu0 %v9204_v14  ;;  %11453 = vmatpush.bf16.msra.mxu1 %v9204_v14  ;;  %v11245_v28 = vld [vmem:[%s18628_s1 + $0x7dc] sm:$0xf0]  ;;  %v9035_v26 = vld [vmem:[%s18629_s0 + $0x270] sm:$0xf] }
  0x16   :  { %11454 = vmatpush.bf16.msra.mxu2 %v9204_v14  ;;  %11455 = vmatpush.bf16.msra.mxu3 %v9204_v14  ;;  %v8819_v30 = vld [vmem:[%s18629_s0 + $0xc0] sm:$0xf]  ;;  %v10100_v37 = vor.u32 %v11245_v28, %v10099_v27  ;;  %v10930_v14 = vld [vmem:[%s18629_s0 + $0x104] sm:$0xf0] }
  0x17   :  { %v8915_v32 = vld [vmem:[%s18629_s0 + $0x180] sm:$0xf]  ;;  %v11606_v42 = vor.u32 %v10924_v31, %v8819_v30  ;;  %v10978_v27 = vld [vmem:[%s18629_s0 + $0x284] sm:$0xf0] }
  0x18   :  { %v9011_v34 = vld [vmem:[%s18629_s0 + $0x240] sm:$0xf]  ;;  %v11617_v46 = vor.u32 %v10948_v33, %v8915_v32 }
  0x19   :  { %2929 = vmatpush.bf16.msra.mxu0 %v9172_v17  ;;  %11456 = vmatpush.bf16.msra.mxu1 %v9172_v17  ;;  %v9587_v38 = vld [vmem:[%s18628_s1 + $0x3c0] sm:$0xf]  ;;  %19214 = vst [vmem:[#allocation3_spill] sm:$0xff] %v11606_v42  ;;  %v11619_v47 = vor.u32 %v10972_v35, %v9011_v34 }
  0x1a   :  { %11457 = vmatpush.bf16.msra.mxu2 %v9172_v17  ;;  %11458 = vmatpush.bf16.msra.mxu3 %v9172_v17  ;;  %v11117_v39 = vld [vmem:[%s18628_s1 + $0x3dc] sm:$0xf0]  ;;  %19215 = vst [vmem:[#allocation4_spill] sm:$0xff] %v11617_v46 }
  0x1b   :  { %v9811_v40 = vld [vmem:[%s18628_s1 + $0x580] sm:$0xf]  ;;  %19216 = vst [vmem:[#allocation5_spill] sm:$0xff] %v11619_v47  ;;  %v9588_v48 = vor.u32 %v11117_v39, %v9587_v38 }
  0x1c   :  { %v11173_v43 = vld [vmem:[%s18628_s1 + $0x59c] sm:$0xf0] }
  0x1d   :  { %2930 = vmatpush.bf16.msra.mxu0 %v9140_v20  ;;  %11459 = vmatpush.bf16.msra.mxu1 %v9140_v20  ;;  %v10067_v44 = vld [vmem:[%s18628_s1 + $0x780] sm:$0xf]  ;;  %v9812_v51 = vor.u32 %v11173_v43, %v9811_v40  ;;  %v11749_v43 = vor.u32 %v10954_v25, %v8939_v24 }
  0x1e   :  { %11460 = vmatpush.bf16.msra.mxu2 %v9140_v20  ;;  %11461 = vmatpush.bf16.msra.mxu3 %v9140_v20  ;;  %v11237_v45 = vld [vmem:[%s18628_s1 + $0x79c] sm:$0xf0] }
  0x1f   :  { %v9555_v49 = vld [vmem:[%s18628_s1 + $0x380] sm:$0xf]  ;;  %v10068_v52 = vor.u32 %v11237_v45, %v10067_v44  ;;  %19219 = vst [vmem:[#allocation8_spill] sm:$0xff] %v11749_v43  ;;  %v11751_v44 = vor.u32 %v10978_v27, %v9035_v26 }
  0x20   :  { %v11109_v50 = vld [vmem:[%s18628_s1 + $0x39c] sm:$0xf0] }
  0x21   :  { %2931 = vmatpush.bf16.msra.mxu0 %v9108_v29  ;;  %11462 = vmatpush.bf16.msra.mxu1 %v9108_v29  ;;  %v9779_v53 = vld [vmem:[%s18628_s1 + $0x540] sm:$0xf]  ;;  %v9556_v60 = vor.u32 %v11109_v50, %v9555_v49  ;;  %19220 = vst [vmem:[#allocation9_spill] sm:$0xff] %v11751_v44 }
  0x22   :  { %11463 = vmatpush.bf16.msra.mxu2 %v9108_v29  ;;  %11464 = vmatpush.bf16.msra.mxu3 %v9108_v29  ;;  %v11165_v54 = vld [vmem:[%s18628_s1 + $0x55c] sm:$0xf0] }
  0x23   :  { %v10035_v55 = vld [vmem:[%s18628_s1 + $0x740] sm:$0xf]  ;;  %v9780_v63 = vor.u32 %v11165_v54, %v9779_v53 }
  0x24   :  { %2932 = vmatmul.bf16.vlgmr.msra.gmra.mxu0 %v11604_v41  ;;  %2952 = vmatmul.bf16.vlgmr.msra.gmra.mxu1 %v11606_v42  ;;  %v11229_v56 = vld [vmem:[%s18628_s1 + $0x75c] sm:$0xf0] }
  0x25   :  { %v10355_v57 = vld [vmem:[%s18628_s1 + $0x9c0] sm:$0xf]  ;;  %2972 = vmatmul.bf16.vlgmr.msra.gmra.mxu2 %v11617_v46  ;;  %2992 = vmatmul.bf16.vlgmr.msra.gmra.mxu3 %v11619_v47  ;;  %v10036_v0 = vor.u32 %v11229_v56, %v10035_v55 }
  0x26   :  { %3102 = vmatpush.bf16.msrb.mxu2 %v9844_v36  ;;  %3191 = vmatpush.bf16.msrb.mxu3 %v10100_v37  ;;  %v11309_v58 = vld [vmem:[%s18628_s1 + $0x9dc] sm:$0xf0]  ;;  %v11736_v36 = vor.u32 %v10906_v12, %v8747_v11  ;;  %v11738_v37 = vor.u32 %v10930_v14, %v8843_v13 }
  0x27   :  { %v10356_v59 = vor.u32 %v11309_v58, %v10355_v57  ;;  %3013 = vmatpush.bf16.msrb.mxu1 %v9588_v48  ;;  %v9523_v61 = vld [vmem:[%s18628_s1 + $0x340] sm:$0xf] }
  0x28   :  { %v11101_v62 = vld [vmem:[%s18628_s1 + $0x35c] sm:$0xf0]  ;;  %19217 = vst [vmem:[#allocation6_spill] sm:$0xff] %v11736_v36 }
  0x29   :  { %v9747_v1 = vld [vmem:[%s18628_s1 + $0x500] sm:$0xf]  ;;  %3280 = vmatpush.bf16.msrb.mxu0 %v10356_v59  ;;  %v9524_v10 = vor.u32 %v11101_v62, %v9523_v61  ;;  %19218 = vst [vmem:[#allocation7_spill] sm:$0xff] %v11738_v37 }
  0x2a   :  { %3103 = vmatpush.bf16.msrb.mxu2 %v9812_v51  ;;  %3192 = vmatpush.bf16.msrb.mxu3 %v10068_v52  ;;  %v10323_v2 = vld [vmem:[%s18628_s1 + $0x980] sm:$0xf] }
  0x2b   :  { %v11301_v3 = vld [vmem:[%s18628_s1 + $0x99c] sm:$0xf0]  ;;  %3014 = vmatpush.bf16.msrb.mxu1 %v9556_v60 }
  0x2c   :  { %v11157_v4 = vld [vmem:[%s18628_s1 + $0x51c] sm:$0xf0]  ;;  %v10324_v7 = vor.u32 %v11301_v3, %v10323_v2 }
  0x2d   :  { %v10003_v5 = vld [vmem:[%s18628_s1 + $0x700] sm:$0xf]  ;;  %v9748_v15 = vor.u32 %v11157_v4, %v9747_v1 }
  0x2e   :  { %v11221_v6 = vld [vmem:[%s18628_s1 + $0x71c] sm:$0xf0]  ;;  %3104 = vmatpush.bf16.msrb.mxu2 %v9780_v63  ;;  %3193 = vmatpush.bf16.msrb.mxu3 %v10036_v0 }
  0x2f   :  { %v10291_v8 = vld [vmem:[%s18628_s1 + $0x940] sm:$0xf]  ;;  %v10004_v16 = vor.u32 %v11221_v6, %v10003_v5  ;;  %3281 = vmatpush.bf16.msrb.mxu0 %v10324_v7  ;;  %3015 = vmatpush.bf16.msrb.mxu1 %v9524_v10 }
  0x30   :  { %v11293_v9 = vld [vmem:[%s18628_s1 + $0x95c] sm:$0xf0] }
  0x31   :  { %v9491_v17 = vld [vmem:[%s18628_s1 + $0x300] sm:$0xf]  ;;  %v10292_v23 = vor.u32 %v11293_v9, %v10291_v8 }
  0x32   :  { %v11093_v18 = vld [vmem:[%s18628_s1 + $0x31c] sm:$0xf0]  ;;  %3105 = vmatpush.bf16.msrb.mxu2 %v9748_v15  ;;  %3194 = vmatpush.bf16.msrb.mxu3 %v10004_v16  ;;  %v10912_v16 = vld [vmem:[%s18629_s0 + $0x74] sm:$0xf0] }
  0x33   :  { %v9715_v19 = vld [vmem:[%s18628_s1 + $0x4c0] sm:$0xf]  ;;  %v9492_v28 = vor.u32 %v11093_v18, %v9491_v17  ;;  %3282 = vmatpush.bf16.msrb.mxu0 %v10292_v23  ;;  %v10936_v18 = vld [vmem:[%s18629_s0 + $0x134] sm:$0xf0] }
  0x34   :  { %v11149_v20 = vld [vmem:[%s18628_s1 + $0x4dc] sm:$0xf0]  ;;  %2937 = vmatmul.bf16.gmra.mxu0 %v11736_v36  ;;  %2957 = vmatmul.bf16.gmra.mxu1 %v11738_v37 }
  0x35   :  { %v9971_v21 = vld [vmem:[%s18628_s1 + $0x6c0] sm:$0xf]  ;;  %v9716_v31 = vor.u32 %v11149_v20, %v9715_v19  ;;  %3016 = vmatpush.bf16.msrb.mxu1 %v9492_v28  ;;  %2977 = vmatmul.bf16.gmra.mxu2 %v11749_v43  ;;  %v10960_v20 = vld [vmem:[%s18629_s0 + $0x1f4] sm:$0xf0] }
  0x36   :  { %v11213_v22 = vld [vmem:[%s18628_s1 + $0x6dc] sm:$0xf0]  ;;  %2997 = vmatmul.bf16.gmra.mxu3 %v11751_v44 }
  0x37   :  { %v9459_v29 = vld [vmem:[%s18628_s1 + $0x2c0] sm:$0xf]  ;;  %v9972_v32 = vor.u32 %v11213_v22, %v9971_v21  ;;  %3106 = vmatpush.bf16.msrb.mxu2 %v9716_v31  ;;  %v10984_v22 = vld [vmem:[%s18629_s0 + $0x2b4] sm:$0xf0] }
  0x38   :  { %v11085_v30 = vld [vmem:[%s18628_s1 + $0x2dc] sm:$0xf0] }
  0x39   :  { %v9683_v33 = vld [vmem:[%s18628_s1 + $0x480] sm:$0xf]  ;;  %v9460_v45 = vor.u32 %v11085_v30, %v9459_v29  ;;  %3195 = vmatpush.bf16.msrb.mxu3 %v9972_v32  ;;  %v11049_v32 = vld [vmem:[%s18628_s1 + $0x1c4] sm:$0xf] }
  0x3a   :  { %v10259_v34 = vld [vmem:[%s18628_s1 + $0x900] sm:$0xf] }
  0x3b   :  { %v11285_v35 = vld [vmem:[%s18628_s1 + $0x91c] sm:$0xf0]  ;;  %3017 = vmatpush.bf16.msrb.mxu1 %v9460_v45 }
  0x3c   :  { %v11141_v38 = vld [vmem:[%s18628_s1 + $0x49c] sm:$0xf0]  ;;  %v10260_v48 = vor.u32 %v11285_v35, %v10259_v34  ;;  %v11113_v34 = vld [vmem:[%s18628_s1 + $0x3c4] sm:$0xf] }
  0x3d   :  { %v9939_v39 = vld [vmem:[%s18628_s1 + $0x680] sm:$0xf]  ;;  %v9684_v49 = vor.u32 %v11141_v38, %v9683_v33  ;;  %v9333_v33 = vld [vmem:[%s18628_s1 + $0x1e0] sm:$0xf0] }
  0x3e   :  { %v11205_v40 = vld [vmem:[%s18628_s1 + $0x69c] sm:$0xf0]  ;;  %3283 = vmatpush.bf16.msrb.mxu0 %v10260_v48  ;;  %v9336_v35 = vor.u32 %v11049_v32, %v9333_v33  ;;  %v9589_v38 = vld [vmem:[%s18628_s1 + $0x3e0] sm:$0xf0] }
  0x3f   :  { %v9940_v50 = vor.u32 %v11205_v40, %v9939_v39  ;;  %v9427_v51 = vld [vmem:[%s18628_s1 + $0x280] sm:$0xf]  ;;  %3107 = vmatpush.bf16.msrb.mxu2 %v9684_v49  ;;  %v9592_v45 = vor.u32 %v11113_v34, %v9589_v38  ;;  %v8795_v49 = vld [vmem:[%s18629_s0 + $0x90] sm:$0xf]  ;;  %v10909_v34 = vld [vmem:[%s18629_s0 + $0x64] sm:$0xf] }
  0x40   :  { %v11077_v52 = vld [vmem:[%s18628_s1 + $0x29c] sm:$0xf0]  ;;  %v8779_v38 = vld [vmem:[%s18629_s0 + $0x68] sm:$0xf] }
  0x41   :  { %v10227_v53 = vld [vmem:[%s18628_s1 + $0x8c0] sm:$0xf]  ;;  %v9428_v58 = vor.u32 %v11077_v52, %v9427_v51  ;;  %3196 = vmatpush.bf16.msrb.mxu3 %v9940_v50  ;;  %v10918_v50 = vld [vmem:[%s18629_s0 + $0xa4] sm:$0xf0]  ;;  %v8891_v51 = vld [vmem:[%s18629_s0 + $0x150] sm:$0xf] }
  0x42   :  { %v11277_v54 = vld [vmem:[%s18628_s1 + $0x8dc] sm:$0xf0]  ;;  %v10942_v52 = vld [vmem:[%s18629_s0 + $0x164] sm:$0xf0] }
  0x43   :  { %v9651_v55 = vld [vmem:[%s18628_s1 + $0x440] sm:$0xf]  ;;  %v10228_v59 = vor.u32 %v11277_v54, %v10227_v53  ;;  %3018 = vmatpush.bf16.msrb.mxu1 %v9428_v58  ;;  %v8987_v53 = vld [vmem:[%s18629_s0 + $0x210] sm:$0xf]  ;;  %v10966_v54 = vld [vmem:[%s18629_s0 + $0x224] sm:$0xf0]  ;;  %v11903_v58 = vor.u32 %v10942_v52, %v8891_v51 }
  0x44   :  { %v11133_v56 = vld [vmem:[%s18628_s1 + $0x45c] sm:$0xf0] }
  0x45   :  { %v9907_v57 = vld [vmem:[%s18628_s1 + $0x640] sm:$0xf]  ;;  %v9652_v62 = vor.u32 %v11133_v56, %v9651_v55  ;;  %3284 = vmatpush.bf16.msrb.mxu0 %v10228_v59  ;;  %v9083_v55 = vld [vmem:[%s18629_s0 + $0x2d0] sm:$0xf]  ;;  %v10990_v56 = vld [vmem:[%s18629_s0 + $0x2e4] sm:$0xf0]  ;;  %v11905_v59 = vor.u32 %v10966_v54, %v8987_v53 }
  0x46   :  { %v11197_v60 = vld [vmem:[%s18628_s1 + $0x65c] sm:$0xf0]  ;;  %19226 = vst [vmem:[#allocation15_spill] sm:$0xff] %v11903_v58  ;;  %v11033_v54 = vld [vmem:[%s18628_s1 + $0x144] sm:$0xf] }
  0x47   :  { %v9395_v61 = vld [vmem:[%s18628_s1 + $0x240] sm:$0xf]  ;;  %v9908_v63 = vor.u32 %v11197_v60, %v9907_v57  ;;  %3108 = vmatpush.bf16.msrb.mxu2 %v9652_v62  ;;  %v11901_v57 = vor.u32 %v10918_v50, %v8795_v49  ;;  %19227 = vst [vmem:[#allocation16_spill] sm:$0xff] %v11905_v59  ;;  %v11907_v60 = vor.u32 %v10990_v56, %v9083_v55  ;;  %v8725_v62 = vld [vmem:[%s18629_s0 + $0x18] sm:$0xf0] }
  0x48   :  { %v11069_v0 = vld [vmem:[%s18628_s1 + $0x25c] sm:$0xf0]  ;;  %v8781_v49 = vld [vmem:[%s18629_s0 + $0x80] sm:$0xf0] }
  0x49   :  { %v10195_v1 = vld [vmem:[%s18628_s1 + $0x880] sm:$0xf]  ;;  %v9396_v7 = vor.u32 %v11069_v0, %v9395_v61  ;;  %3197 = vmatpush.bf16.msrb.mxu3 %v9908_v63  ;;  %19225 = vst [vmem:[#allocation14_spill] sm:$0xff] %v11901_v57  ;;  %v10897_v61 = vld [vmem:[%s18629_s0 + $0x4] sm:$0xf] }
  0x4a   :  { %v11269_v2 = vld [vmem:[%s18628_s1 + $0x89c] sm:$0xf0]  ;;  %19228 = vst [vmem:[#allocation17_spill] sm:$0xff] %v11907_v60  ;;  %v8731_v63 = vld [vmem:[%s18629_s0 + $0x8] sm:$0xf] }
  0x4b   :  { %v9619_v3 = vld [vmem:[%s18628_s1 + $0x400] sm:$0xf]  ;;  %v10196_v8 = vor.u32 %v11269_v2, %v10195_v1  ;;  %3019 = vmatpush.bf16.msrb.mxu1 %v9396_v7  ;;  %v8739_v0 = vld [vmem:[%s18629_s0 + $0x10] sm:$0xf]  ;;  %v10902_v1 = vld [vmem:[%s18629_s0 + $0x24] sm:$0xf0] }
  0x4c   :  { %v11125_v4 = vld [vmem:[%s18628_s1 + $0x41c] sm:$0xf0]  ;;  %v9269_v55 = vld [vmem:[%s18628_s1 + $0x160] sm:$0xf0] }
  0x4d   :  { %v9875_v5 = vld [vmem:[%s18628_s1 + $0x600] sm:$0xf]  ;;  %v9620_v10 = vor.u32 %v11125_v4, %v9619_v3  ;;  %3285 = vmatpush.bf16.msrb.mxu0 %v10196_v8  ;;  %v10898_v3 = vld [vmem:[%s18629_s0 + $0xc] sm:$0xf]  ;;  %v8733_v4 = vld [vmem:[%s18629_s0 + $0x20] sm:$0xf0] }
  0x4e   :  { %v11189_v6 = vld [vmem:[%s18628_s1 + $0x61c] sm:$0xf0]  ;;  %v11943_v8 = vor.u32 %v10898_v3, %v8733_v4  ;;  %v11097_v56 = vld [vmem:[%s18628_s1 + $0x344] sm:$0xf]  ;;  %v10915_v3 = vld [vmem:[%s18629_s0 + $0x94] sm:$0xf] }
  0x4f   :  { %v10163_v9 = vld [vmem:[%s18628_s1 + $0x840] sm:$0xf]  ;;  %v9876_v12 = vor.u32 %v11189_v6, %v9875_v5  ;;  %3109 = vmatpush.bf16.msrb.mxu2 %v9620_v10  ;;  %v11937_v5 = vor.u32 %v10897_v61, %v8725_v62  ;;  %v11939_v6 = vor.u32 %v10902_v1, %v8739_v0  ;;  %v9301_v10 = vld [vmem:[%s18628_s1 + $0x1a0] sm:$0xf0]  ;;  %v9272_v61 = vor.u32 %v11033_v54, %v9269_v55  ;;  %v8797_v4 = vld [vmem:[%s18629_s0 + $0xa8] sm:$0xf0] }
  0x50   :  { %v11261_v11 = vld [vmem:[%s18628_s1 + $0x85c] sm:$0xf0]  ;;  %19232 = vst [vmem:[#allocation21_spill] sm:$0xff] %v11943_v8  ;;  %v9525_v62 = vld [vmem:[%s18628_s1 + $0x360] sm:$0xf0] }
  0x51   :  { %v9363_v13 = vld [vmem:[%s18628_s1 + $0x200] sm:$0xf]  ;;  %v10164_v23 = vor.u32 %v11261_v11, %v10163_v9  ;;  %3198 = vmatpush.bf16.msrb.mxu3 %v9876_v12  ;;  %19229 = vst [vmem:[#allocation18_spill] sm:$0xff] %v11937_v5  ;;  %v11041_v9 = vld [vmem:[%s18628_s1 + $0x184] sm:$0xf] }
  0x52   :  { %v11061_v14 = vld [vmem:[%s18628_s1 + $0x21c] sm:$0xf0]  ;;  %19230 = vst [vmem:[#allocation19_spill] sm:$0xff] %v11939_v6  ;;  %v11105_v11 = vld [vmem:[%s18628_s1 + $0x384] sm:$0xf]  ;;  %v9304_v12 = vor.u32 %v11041_v9, %v9301_v10 }
  0x53   :  { %v8771_v15 = vld [vmem:[%s18629_s0 + $0x60] sm:$0xf]  ;;  %v9364_v24 = vor.u32 %v11061_v14, %v9363_v13  ;;  %3286 = vmatpush.bf16.msrb.mxu0 %v10164_v23  ;;  %3458 = vmatpush.bf16.msra.mxu2 %v9336_v35  ;;  %v9557_v13 = vld [vmem:[%s18628_s1 + $0x3a0] sm:$0xf0]  ;;  %v10907_v23 = vld [vmem:[%s18629_s0 + $0x4c] sm:$0xf0] }
  0x54   :  { %v8867_v17 = vld [vmem:[%s18629_s0 + $0x120] sm:$0xf]  ;;  %v11847_v27 = vor.u32 %v10912_v16, %v8771_v15  ;;  %v9560_v16 = vor.u32 %v11105_v11, %v9557_v13  ;;  %v8773_v35 = vld [vmem:[%s18629_s0 + $0x78] sm:$0xf0]  ;;  %v8803_v9 = vld [vmem:[%s18629_s0 + $0x98] sm:$0xf] }
  0x55   :  { %v8963_v19 = vld [vmem:[%s18629_s0 + $0x1e0] sm:$0xf]  ;;  %v11849_v28 = vor.u32 %v10936_v18, %v8867_v17  ;;  %3020 = vmatpush.bf16.msrb.mxu1 %v9364_v24  ;;  %3547 = vmatpush.bf16.msra.mxu3 %v9592_v45  ;;  %v10903_v18 = vld [vmem:[%s18629_s0 + $0x34] sm:$0xf]  ;;  %v10904_v24 = vld [vmem:[%s18629_s0 + $0x3c] sm:$0xf]  ;;  %v12027_v50 = vor.u32 %v10909_v34, %v8773_v35 }
  0x56   :  { %v9059_v21 = vld [vmem:[%s18629_s0 + $0x2a0] sm:$0xf]  ;;  %19221 = vst [vmem:[#allocation10_spill] sm:$0xff] %v11847_v27  ;;  %v11851_v29 = vor.u32 %v10960_v20, %v8963_v19  ;;  %2942 = vmatmul.bf16.gmra.mxu0 %v11847_v27  ;;  %v8749_v19 = vld [vmem:[%s18629_s0 + $0x48] sm:$0xf0] }
  0x57   :  { %v10131_v25 = vld [vmem:[%s18628_s1 + $0x800] sm:$0xf]  ;;  %19222 = vst [vmem:[#allocation11_spill] sm:$0xff] %v11849_v28  ;;  %v11853_v30 = vor.u32 %v10984_v22, %v9059_v21  ;;  %2962 = vmatmul.bf16.gmra.mxu1 %v11849_v28  ;;  %3459 = vmatpush.bf16.msra.mxu2 %v9304_v12  ;;  %v8755_v20 = vld [vmem:[%s18629_s0 + $0x38] sm:$0xf] }
  0x58   :  { %v11253_v26 = vld [vmem:[%s18628_s1 + $0x81c] sm:$0xf0]  ;;  %19223 = vst [vmem:[#allocation12_spill] sm:$0xff] %v11851_v29  ;;  %2982 = vmatmul.bf16.gmra.mxu2 %v11851_v29  ;;  %v10908_v22 = vld [vmem:[%s18629_s0 + $0x54] sm:$0xf0]  ;;  %v11995_v32 = vor.u32 %v10907_v23, %v8755_v20 }
  0x59   :  { %19224 = vst [vmem:[#allocation13_spill] sm:$0xff] %v11853_v30  ;;  %v10132_v31 = vor.u32 %v11253_v26, %v10131_v25  ;;  %3002 = vmatmul.bf16.gmra.mxu3 %v11853_v30  ;;  %v10611_v39 = vld [vmem:[%s18628_s1 + $0xbc0] sm:$0xf]  ;;  %v8757_v25 = vld [vmem:[%s18629_s0 + $0x50] sm:$0xf0]  ;;  %v11991_v26 = vor.u32 %v10903_v18, %v8749_v19 }
  0x5a   :  { %v11373_v40 = vld [vmem:[%s18628_s1 + $0xbdc] sm:$0xf0]  ;;  %3548 = vmatpush.bf16.msra.mxu3 %v9560_v16  ;;  %19235 = vst [vmem:[#allocation24_spill] sm:$0xff] %v11995_v32  ;;  %v11997_v33 = vor.u32 %v10904_v24, %v8757_v25  ;;  %v10920_v11 = vld [vmem:[%s18629_s0 + $0xb4] sm:$0xf0] }
  0x5b   :  { %3287 = vmatpush.bf16.msrb.mxu0 %v10132_v31  ;;  %v10612_v48 = vor.u32 %v11373_v40, %v10611_v39  ;;  %v10901_v2 = vld [vmem:[%s18629_s0 + $0x1c] sm:$0xf0]  ;;  %19233 = vst [vmem:[#allocation22_spill] sm:$0xff] %v11991_v26  ;;  %v8787_v39 = vld [vmem:[%s18629_s0 + $0x70] sm:$0xf]  ;;  %3460 = vmatpush.bf16.msra.mxu2 %v9272_v61 }
  0x5c   :  { %v11941_v7 = vor.u32 %v10901_v2, %v8731_v63  ;;  %v10579_v14 = vld [vmem:[%s18628_s1 + $0xb80] sm:$0xf]  ;;  %19236 = vst [vmem:[#allocation25_spill] sm:$0xff] %v11997_v33  ;;  %v10914_v40 = vld [vmem:[%s18629_s0 + $0x84] sm:$0xf0]  ;;  %v9528_v63 = vor.u32 %v11097_v56, %v9525_v62 }
  0x5d   :  { %3369 = vmatpush.bf16.msra.mxu1 %v10612_v48  ;;  %v11365_v15 = vld [vmem:[%s18628_s1 + $0xb9c] sm:$0xf0]  ;;  %v10910_v48 = vld [vmem:[%s18629_s0 + $0x6c] sm:$0xf]  ;;  %19237 = vst [vmem:[#allocation26_spill] sm:$0xff] %v12027_v50  ;;  %v12029_v51 = vor.u32 %v10914_v40, %v8787_v39 }
  0x5e   :  { %19231 = vst [vmem:[#allocation20_spill] sm:$0xff] %v11941_v7  ;;  %v10580_v17 = vor.u32 %v11365_v15, %v10579_v14  ;;  %v8763_v21 = vld [vmem:[%s18629_s0 + $0x40] sm:$0xf]  ;;  %v12033_v53 = vor.u32 %v10910_v48, %v8781_v49  ;;  %3549 = vmatpush.bf16.msra.mxu3 %v9528_v63  ;;  %v10919_v12 = vld [vmem:[%s18629_s0 + $0xac] sm:$0xf0]  ;;  %v12081_v15 = vor.u32 %v10915_v3, %v8797_v4 }
  0x5f   :  { %v11993_v31 = vor.u32 %v10908_v22, %v8763_v21  ;;  %v10913_v45 = vld [vmem:[%s18629_s0 + $0x7c] sm:$0xf0]  ;;  %19238 = vst [vmem:[#allocation27_spill] sm:$0xff] %v12029_v51  ;;  %v10916_v13 = vld [vmem:[%s18629_s0 + $0x9c] sm:$0xf] }
  0x60   :  { %v12031_v52 = vor.u32 %v10913_v45, %v8779_v38  ;;  %19240 = vst [vmem:[#allocation29_spill] sm:$0xff] %v12033_v53  ;;  %v10547_v0 = vld [vmem:[%s18628_s1 + $0xb40] sm:$0xf]  ;;  %v8805_v14 = vld [vmem:[%s18629_s0 + $0xb0] sm:$0xf0] }
  0x61   :  { %3370 = vmatpush.bf16.msra.mxu1 %v10580_v17  ;;  %19234 = vst [vmem:[#allocation23_spill] sm:$0xff] %v11993_v31  ;;  %v11357_v1 = vld [vmem:[%s18628_s1 + $0xb5c] sm:$0xf0]  ;;  %v12085_v17 = vor.u32 %v10919_v12, %v8803_v9  ;;  %v12087_v18 = vor.u32 %v10916_v13, %v8805_v14  ;;  %v10921_v21 = vld [vmem:[%s18629_s0 + $0xc4] sm:$0xf] }
  0x62   :  { %19239 = vst [vmem:[#allocation28_spill] sm:$0xff] %v12031_v52  ;;  %v10548_v2 = vor.u32 %v11357_v1, %v10547_v0  ;;  %v8811_v10 = vld [vmem:[%s18629_s0 + $0xa0] sm:$0xf]  ;;  %v8821_v22 = vld [vmem:[%s18629_s0 + $0xd8] sm:$0xf0] }
  0x63   :  { %19241 = vst [vmem:[#allocation30_spill] sm:$0xff] %v12081_v15  ;;  %v12083_v16 = vor.u32 %v10920_v11, %v8811_v10  ;;  %v506_v19 = vld [vmem:[%s18630_s2] sm:$0xff]  ;;  %v8827_v23 = vld [vmem:[%s18629_s0 + $0xc8] sm:$0xf]  ;;  %v8835_v24 = vld [vmem:[%s18629_s0 + $0xd0] sm:$0xf]  ;;  %v12122_v39 = vor.u32 %v10921_v21, %v8821_v22 }
  0x64   :  { %19243 = vst [vmem:[#allocation32_spill] sm:$0xff] %v12085_v17  ;;  %v12096_v20 = vperm.slane %v506_v19, 0  ;;  %v10926_v25 = vld [vmem:[%s18629_s0 + $0xe4] sm:$0xf0]  ;;  %v10925_v34 = vld [vmem:[%s18629_s0 + $0xdc] sm:$0xf0] }
  0x65   :  { %3371 = vmatpush.bf16.msra.mxu1 %v10548_v2  ;;  %19242 = vst [vmem:[#allocation31_spill] sm:$0xff] %v12083_v16  ;;  %v10922_v35 = vld [vmem:[%s18629_s0 + $0xcc] sm:$0xf]  ;;  %v8829_v38 = vld [vmem:[%s18629_s0 + $0xe0] sm:$0xf0]  ;;  %v12124_v40 = vor.u32 %v10926_v25, %v8835_v24  ;;  %v12128_v49 = vor.u32 %v10925_v34, %v8827_v23 }
  0x66   :  { %2947 = vmatmul.bf16.gmra.mxu0 %v11901_v57  ;;  %19244 = vst [vmem:[#allocation33_spill] sm:$0xff] %v12087_v18  ;;  %v12130_v54 = vor.u32 %v10922_v35, %v8829_v38  ;;  %v11025_v56 = vld [vmem:[%s18628_s1 + $0x104] sm:$0xf]  ;;  %v10515_v12 = vld [vmem:[%s18628_s1 + $0xb00] sm:$0xf] }
  0x67   :  { %2967 = vmatmul.bf16.gmra.mxu1 %v11903_v58  ;;  %19245 = vst [vmem:[#allocation34_spill] sm:$0xff] %v12122_v39  ;;  %v9237_v61 = vld [vmem:[%s18628_s1 + $0x120] sm:$0xf0]  ;;  %v11349_v13 = vld [vmem:[%s18628_s1 + $0xb1c] sm:$0xf0] }
  0x68   :  { %2987 = vmatmul.bf16.gmra.mxu2 %v11905_v59  ;;  %19246 = vst [vmem:[#allocation35_spill] sm:$0xff] %v12124_v40  ;;  %v11089_v62 = vld [vmem:[%s18628_s1 + $0x304] sm:$0xf]  ;;  %v9240_v63 = vor.u32 %v11025_v56, %v9237_v61  ;;  %v10516_v19 = vor.u32 %v11349_v13, %v10515_v12  ;;  %v10927_v21 = vld [vmem:[%s18629_s0 + $0xf4] sm:$0xf] }
  0x69   :  { %3007 = vmatmul.bf16.gmra.mxu3 %v11907_v60  ;;  %19247 = vst [vmem:[#allocation36_spill] sm:$0xff] %v12128_v49  ;;  %v9493_v0 = vld [vmem:[%s18628_s1 + $0x320] sm:$0xf0]  ;;  %v8845_v22 = vld [vmem:[%s18629_s0 + $0x108] sm:$0xf0] }
  0x6a   :  { %19248 = vst [vmem:[#allocation37_spill] sm:$0xff] %v12130_v54  ;;  %v9496_v1 = vor.u32 %v11089_v62, %v9493_v0  ;;  %3461 = vmatpush.bf16.msra.mxu2 %v9240_v63  ;;  %3372 = vmatpush.bf16.msra.mxu1 %v10516_v19  ;;  %v8851_v23 = vld [vmem:[%s18629_s0 + $0xf8] sm:$0xf]  ;;  %v8859_v24 = vld [vmem:[%s18629_s0 + $0x100] sm:$0xf]  ;;  %v12192_v61 = vor.u32 %v10927_v21, %v8845_v22 }
  0x6b   :  { %v10932_v25 = vld [vmem:[%s18629_s0 + $0x114] sm:$0xf0]  ;;  %v10931_v34 = vld [vmem:[%s18629_s0 + $0x10c] sm:$0xf0]  ;;  %v10928_v35 = vld [vmem:[%s18629_s0 + $0xfc] sm:$0xf] }
  0x6c   :  { %3550 = vmatpush.bf16.msra.mxu3 %v9496_v1  ;;  %v8853_v38 = vld [vmem:[%s18629_s0 + $0x110] sm:$0xf0]  ;;  %19249 = vst [vmem:[#allocation38_spill] sm:$0xff] %v12192_v61  ;;  %v12194_v62 = vor.u32 %v10932_v25, %v8859_v24 }
  0x6d   :  { %v8901_v60 = vld [vmem:[%s18629_s0 + $0x170] sm:$0xf0] }
  0x6e   :  { %19250 = vst [vmem:[#allocation39_spill] sm:$0xff] %v12194_v62 }
  0x76   :  { %3288 = vmatmul.bf16.vlgmr.msrb.gmra.mxu0 %v11939_v6  ;;  %v10944_v6 = vld [vmem:[%s18629_s0 + $0x174] sm:$0xf0] }
  0x77   :  { %3021 = vmatmul.bf16.vlgmr.msrb.gmra.mxu1 %v11937_v5 }
  0x78   :  { %3110 = vmatmul.bf16.vlgmr.msrb.gmra.mxu2 %v11941_v7 }
  0x79   :  { %3199 = vmatmul.bf16.vlgmr.msrb.gmra.mxu3 %v11943_v8 }
  0x86   :  { %3293 = vmatmul.bf16.gmra.mxu0 %v11993_v31 }
  0x87   :  { %3026 = vmatmul.bf16.gmra.mxu1 %v11991_v26 }
  0x88   :  { %3115 = vmatmul.bf16.gmra.mxu2 %v11995_v32 }
  0x89   :  { %3204 = vmatmul.bf16.gmra.mxu3 %v11997_v33 }
  0x96   :  { %3298 = vmatmul.bf16.gmra.mxu0 %v12029_v51 }
  0x97   :  { %3031 = vmatmul.bf16.gmra.mxu1 %v12027_v50 }
  0x98   :  { %3120 = vmatmul.bf16.gmra.mxu2 %v12031_v52 }
  0x99   :  { %3209 = vmatmul.bf16.gmra.mxu3 %v12033_v53 }
  0xa1   :  { %v12126_v45 = vpop.f32.mrf.mxu0  ;;  %v2953_v48 = vpop.f32.mrf.mxu1 }
  0xa2   :  { %v12133_v55 = vadd.f32 %v2953_v48, %v12096_v20 }
  0xa6   :  { %3303 = vmatmul.bf16.gmra.mxu0 %v12083_v16 }
  0xa7   :  { %3036 = vmatmul.bf16.gmra.mxu1 %v12081_v15 }
  0xa8   :  { %3125 = vmatmul.bf16.gmra.mxu2 %v12085_v17  ;;  %v2973_v2 = vpop.f32.mrf.mxu2  ;;  %v2993_v3 = vpop.f32.mrf.mxu3 }
  0xa9   :  { %3214 = vmatmul.bf16.gmra.mxu3 %v12087_v18  ;;  %v12152_v4 = vadd.f32 %v2973_v2, %v12096_v20  ;;  %v12155_v9 = vadd.f32 %v2993_v3, %v12096_v20  ;;  %v12157_v10 = vpop.f32.mrf.mxu0  ;;  %v2955_v11 = vpop.f32.mrf.mxu1  ;;  %v12204_v3 = vor.u32 %v10931_v34, %v8851_v23  ;;  %v10933_v34 = vld [vmem:[%s18629_s0 + $0x124] sm:$0xf] }
  0xaa   :  { %v12166_v14 = vadd.f32 %v2955_v11, %v12096_v20  ;;  %v12206_v11 = vor.u32 %v10928_v35, %v8853_v38  ;;  %v8869_v35 = vld [vmem:[%s18629_s0 + $0x138] sm:$0xf0]  ;;  %v8875_v38 = vld [vmem:[%s18629_s0 + $0x128] sm:$0xf] }
  0xab   :  { %19251 = vst [vmem:[#allocation40_spill] sm:$0xff] %v12204_v3 }
  0xac   :  { %19252 = vst [vmem:[#allocation41_spill] sm:$0xff] %v12206_v11 }
  0xb0   :  { %v2975_v48 = vpop.f32.mrf.mxu2  ;;  %v2995_v56 = vpop.f32.mrf.mxu3 }
  0xb1   :  { %v12197_v63 = vadd.f32 %v2975_v48, %v12096_v20  ;;  %v12200_v0 = vadd.f32 %v2995_v56, %v12096_v20  ;;  %v12202_v1 = vpop.f32.mrf.mxu0  ;;  %v2958_v2 = vpop.f32.mrf.mxu1  ;;  %v8883_v48 = vld [vmem:[%s18629_s0 + $0x130] sm:$0xf]  ;;  %v10938_v56 = vld [vmem:[%s18629_s0 + $0x144] sm:$0xf0] }
  0xb2   :  { %v12209_v12 = vadd.f32 %v2958_v2, %v12096_v20  ;;  %v10937_v2 = vld [vmem:[%s18629_s0 + $0x13c] sm:$0xf0] }
  0xb3   :  { %v12262_v53 = vor.u32 %v10937_v2, %v8875_v38  ;;  %v9461_v38 = vld [vmem:[%s18628_s1 + $0x2e0] sm:$0xf0] }
  0xb5   :  { %19256 = vst [vmem:[#allocation45_spill] sm:$0xff] %v12262_v53 }
  0xb6   :  { %3308 = vmatmul.bf16.gmra.mxu0 %v12124_v40  ;;  %v12252_v40 = vor.u32 %v10938_v56, %v8883_v48 }
  0xb7   :  { %3041 = vmatmul.bf16.gmra.mxu1 %v12122_v39 }
  0xb8   :  { %3130 = vmatmul.bf16.gmra.mxu2 %v12128_v49  ;;  %v2978_v13 = vpop.f32.mrf.mxu2  ;;  %19254 = vst [vmem:[#allocation43_spill] sm:$0xff] %v12252_v40 }
  0xb9   :  { %3219 = vmatmul.bf16.gmra.mxu3 %v12130_v54  ;;  %v2998_v19 = vpop.f32.mrf.mxu3  ;;  %v12216_v21 = vadd.f32 %v2978_v13, %v12096_v20  ;;  %v12221_v23 = vpop.f32.mrf.mxu0  ;;  %v10934_v13 = vld [vmem:[%s18629_s0 + $0x12c] sm:$0xf] }
  0xba   :  { %v12219_v22 = vadd.f32 %v2998_v19, %v12096_v20  ;;  %v2960_v24 = vpop.f32.mrf.mxu1  ;;  %v8877_v19 = vld [vmem:[%s18629_s0 + $0x140] sm:$0xf0] }
  0xbb   :  { %v12224_v25 = vadd.f32 %v2960_v24, %v12096_v20  ;;  %v12264_v31 = vor.u32 %v10934_v13, %v8877_v19 }
  0xbd   :  { %19257 = vst [vmem:[#allocation46_spill] sm:$0xff] %v12264_v31 }
  0xc0   :  { %v2980_v24 = vpop.f32.mrf.mxu2 }
  0xc1   :  { %v12255_v54 = vadd.f32 %v2980_v24, %v12096_v20 }
  0xc6   :  { %3313 = vmatmul.bf16.gmra.mxu0 %v12194_v62  ;;  %v3000_v62 = vpop.f32.mrf.mxu3 }
  0xc7   :  { %3046 = vmatmul.bf16.gmra.mxu1 %v12192_v61  ;;  %v12258_v16 = vadd.f32 %v3000_v62, %v12096_v20  ;;  %v11017_v62 = vld [vmem:[%s18628_s1 + $0xc4] sm:$0xf] }
  0xc8   :  { %3135 = vmatmul.bf16.gmra.mxu2 %v12204_v3 }
  0xc9   :  { %3224 = vmatmul.bf16.gmra.mxu3 %v12206_v11  ;;  %v12250_v11 = vor.u32 %v10933_v34, %v8869_v35  ;;  %19255 = vst [vmem:[#allocation44_spill] sm:$0xff] %v12258_v16  ;;  %v9205_v34 = vld [vmem:[%s18628_s1 + $0xe0] sm:$0xf0] }
  0xca   :  { %v9208_v35 = vor.u32 %v11017_v62, %v9205_v34  ;;  %v10483_v34 = vld [vmem:[%s18628_s1 + $0xac0] sm:$0xf] }
  0xcb   :  { %19253 = vst [vmem:[#allocation42_spill] sm:$0xff] %v12250_v11 }
  0xcc   :  { %3462 = vmatpush.bf16.msra.mxu2 %v9208_v35  ;;  %v11177_v35 = vld [vmem:[%s18628_s1 + $0x5c4] sm:$0xf] }
  0xd3   :  { %v12260_v18 = vpop.f32.mrf.mxu0 }
  0xd4   :  { %v2963_v51 = vpop.f32.mrf.mxu1 }
  0xd5   :  { %v12267_v33 = vadd.f32 %v2963_v51, %v12096_v20  ;;  %v11081_v51 = vld [vmem:[%s18628_s1 + $0x2c4] sm:$0xf] }
  0xd6   :  { %3318 = vmatmul.bf16.gmra.mxu0 %v12252_v40  ;;  %v9464_v48 = vor.u32 %v11081_v51, %v9461_v38  ;;  %v11341_v51 = vld [vmem:[%s18628_s1 + $0xadc] sm:$0xf0]  ;;  %v10939_v38 = vld [vmem:[%s18629_s0 + $0x154] sm:$0xf] }
  0xd7   :  { %3051 = vmatmul.bf16.gmra.mxu1 %v12250_v11 }
  0xd8   :  { %3140 = vmatmul.bf16.gmra.mxu2 %v12262_v53  ;;  %3551 = vmatpush.bf16.msra.mxu3 %v9464_v48  ;;  %v10484_v48 = vor.u32 %v11341_v51, %v10483_v34  ;;  %v10943_v34 = vld [vmem:[%s18629_s0 + $0x16c] sm:$0xf0]  ;;  %v10940_v51 = vld [vmem:[%s18629_s0 + $0x15c] sm:$0xf] }
  0xd9   :  { %3229 = vmatmul.bf16.gmra.mxu3 %v12264_v31  ;;  %v8907_v31 = vld [vmem:[%s18629_s0 + $0x160] sm:$0xf]  ;;  %v12346_v58 = vor.u32 %v10940_v51, %v8901_v60  ;;  %v10950_v51 = vld [vmem:[%s18629_s0 + $0x1a4] sm:$0xf0] }
  0xda   :  { %3373 = vmatpush.bf16.msra.mxu1 %v10484_v48  ;;  %v12334_v59 = vor.u32 %v10944_v6, %v8907_v31  ;;  %v8917_v48 = vld [vmem:[%s18629_s0 + $0x198] sm:$0xf0] }
  0xdb   :  { %v2983_v56 = vpop.f32.mrf.mxu2  ;;  %v12291_v24 = vpop.f32.mrf.mxu0  ;;  %19263 = vst [vmem:[#allocation52_spill] sm:$0xff] %v12346_v58 }
  0xdc   :  { %v3003_v2 = vpop.f32.mrf.mxu3  ;;  %v12286_v13 = vadd.f32 %v2983_v56, %v12096_v20  ;;  %v2965_v40 = vpop.f32.mrf.mxu1  ;;  %v9845_v56 = vld [vmem:[%s18628_s1 + $0x5e0] sm:$0xf0]  ;;  %19260 = vst [vmem:[#allocation49_spill] sm:$0xff] %v12334_v59 }
  0xdd   :  { %v12289_v19 = vadd.f32 %v3003_v2, %v12096_v20  ;;  %v12294_v62 = vadd.f32 %v2965_v40, %v12096_v20  ;;  %v8893_v40 = vld [vmem:[%s18629_s0 + $0x168] sm:$0xf0]  ;;  %v8899_v2 = vld [vmem:[%s18629_s0 + $0x158] sm:$0xf]  ;;  %v9848_v8 = vor.u32 %v11177_v35, %v9845_v56 }
  0xde   :  { %v12332_v47 = vor.u32 %v10939_v38, %v8893_v40  ;;  %v12344_v46 = vor.u32 %v10943_v34, %v8899_v2  ;;  %v10945_v40 = vld [vmem:[%s18629_s0 + $0x184] sm:$0xf]  ;;  %v8923_v2 = vld [vmem:[%s18629_s0 + $0x188] sm:$0xf]  ;;  %v8931_v34 = vld [vmem:[%s18629_s0 + $0x190] sm:$0xf] }
  0xdf   :  { %19258 = vst [vmem:[#allocation47_spill] sm:$0xff] %v12289_v19  ;;  %3636 = vmatpush.bf16.msra.mxu0 %v9848_v8 }
  0xe0   :  { %19259 = vst [vmem:[#allocation48_spill] sm:$0xff] %v12332_v47 }
  0xe1   :  { %19262 = vst [vmem:[#allocation51_spill] sm:$0xff] %v12344_v46 }
  0xe3   :  { %v2985_v30 = vpop.f32.mrf.mxu2  ;;  %v12342_v29 = vpop.f32.mrf.mxu0 }
  0xe4   :  { %v3005_v44 = vpop.f32.mrf.mxu3  ;;  %v12337_v35 = vadd.f32 %v2985_v30, %v12096_v20  ;;  %v2968_v43 = vpop.f32.mrf.mxu1 }
  0xe5   :  { %v12340_v56 = vadd.f32 %v3005_v44, %v12096_v20  ;;  %v12349_v8 = vadd.f32 %v2968_v43, %v12096_v20 }
  0xe6   :  { %3323 = vmatmul.bf16.gmra.mxu0 %v12334_v59  ;;  %v8925_v59 = vld [vmem:[%s18629_s0 + $0x1a0] sm:$0xf0] }
  0xe7   :  { %19261 = vst [vmem:[#allocation50_spill] sm:$0xff] %v12340_v56  ;;  %3056 = vmatmul.bf16.gmra.mxu1 %v12332_v47 }
  0xe8   :  { %3145 = vmatmul.bf16.gmra.mxu2 %v12344_v46  ;;  %v12392_v46 = vor.u32 %v10945_v40, %v8917_v48  ;;  %v9429_v48 = vld [vmem:[%s18628_s1 + $0x2a0] sm:$0xf0] }
  0xe9   :  { %3234 = vmatmul.bf16.gmra.mxu3 %v12346_v58 }
  0xea   :  { %19265 = vst [vmem:[#allocation54_spill] sm:$0xff] %v12392_v46 }
  0xeb   :  { %v2988_v44 = vpop.f32.mrf.mxu2  ;;  %v12361_v60 = vpop.f32.mrf.mxu0 }
  0xec   :  { %v3008_v30 = vpop.f32.mrf.mxu3  ;;  %v12356_v6 = vadd.f32 %v2988_v44, %v12096_v20  ;;  %v2970_v43 = vpop.f32.mrf.mxu1  ;;  %v2934_v44 = vadd.f32 %v12126_v45, %v12096_v20 }
  0xed   :  { %v12359_v31 = vadd.f32 %v3008_v30, %v12096_v20  ;;  %v12364_v38 = vadd.f32 %v2970_v43, %v12096_v20  ;;  %v10949_v30 = vld [vmem:[%s18629_s0 + $0x19c] sm:$0xf0]  ;;  %v10946_v43 = vld [vmem:[%s18629_s0 + $0x18c] sm:$0xf] }
  0xee   :  { %v12402_v53 = vor.u32 %v10949_v30, %v8923_v2  ;;  %v12404_v19 = vor.u32 %v10946_v43, %v8925_v59  ;;  %v11073_v59 = vld [vmem:[%s18628_s1 + $0x284] sm:$0xf] }
  0xef   :  { %19264 = vst [vmem:[#allocation53_spill] sm:$0xff] %v12359_v31  ;;  %v12394_v31 = vor.u32 %v10950_v51, %v8931_v34  ;;  %v9432_v2 = vor.u32 %v11073_v59, %v9429_v48  ;;  %v8955_v48 = vld [vmem:[%s18629_s0 + $0x1c0] sm:$0xf] }
  0xf0   :  { %19268 = vst [vmem:[#allocation57_spill] sm:$0xff] %v12402_v53 }
  0xf1   :  { %19266 = vst [vmem:[#allocation55_spill] sm:$0xff] %v12394_v31  ;;  %3552 = vmatpush.bf16.msra.mxu3 %v9432_v2  ;;  %v10956_v2 = vld [vmem:[%s18629_s0 + $0x1d4] sm:$0xf0] }
  0xf2   :  { %19269 = vst [vmem:[#allocation58_spill] sm:$0xff] %v12404_v19 }
  0xf3   :  { %v2990_v58 = vpop.f32.mrf.mxu2  ;;  %v3289_v28 = vpop.f32.mrf.mxu0 }
  0xf4   :  { %v3010_v47 = vpop.f32.mrf.mxu3  ;;  %v12397_v45 = vadd.f32 %v2990_v58, %v12096_v20  ;;  %v3022_v11 = vpop.f32.mrf.mxu1  ;;  %v9173_v58 = vld [vmem:[%s18628_s1 + $0xa0] sm:$0xf0] }
  0xf5   :  { %v12400_v56 = vadd.f32 %v3010_v47, %v12096_v20  ;;  %v3023_v16 = vadd.f32 %v3022_v11, %v2934_v44  ;;  %v11009_v47 = vld [vmem:[%s18628_s1 + $0x84] sm:$0xf]  ;;  %v2936_v11 = vadd.f32 %v12157_v10, %v12096_v20  ;;  %v11333_v10 = vld [vmem:[%s18628_s1 + $0xa9c] sm:$0xf0] }
  0xf6   :  { %3328 = vmatmul.bf16.gmra.mxu0 %v12394_v31  ;;  %v9176_v40 = vor.u32 %v11009_v47, %v9173_v58  ;;  %v11169_v47 = vld [vmem:[%s18628_s1 + $0x584] sm:$0xf]  ;;  %v8941_v58 = vld [vmem:[%s18629_s0 + $0x1c8] sm:$0xf0] }
  0xf7   :  { %19267 = vst [vmem:[#allocation56_spill] sm:$0xff] %v12400_v56  ;;  %3061 = vmatmul.bf16.gmra.mxu1 %v12392_v46  ;;  %v10451_v46 = vld [vmem:[%s18628_s1 + $0xa80] sm:$0xf] }
  0xf8   :  { %3150 = vmatmul.bf16.gmra.mxu2 %v12402_v53  ;;  %v10452_v59 = vor.u32 %v11333_v10, %v10451_v46  ;;  %v2939_v46 = vadd.f32 %v12202_v1, %v12096_v20  ;;  %v8949_v10 = vld [vmem:[%s18629_s0 + $0x1d0] sm:$0xf0] }
  0xf9   :  { %3239 = vmatmul.bf16.gmra.mxu3 %v12404_v19  ;;  %3463 = vmatpush.bf16.msra.mxu2 %v9176_v40  ;;  %v8947_v40 = vld [vmem:[%s18629_s0 + $0x1b8] sm:$0xf] }
  0xfa   :  { %3374 = vmatpush.bf16.msra.mxu1 %v10452_v59 }
  0xfb   :  { %v3111_v34 = vpop.f32.mrf.mxu2  ;;  %v3291_v43 = vpop.f32.mrf.mxu0 }
  0xfc   :  { %v3200_v51 = vpop.f32.mrf.mxu3  ;;  %v3112_v44 = vadd.f32 %v3111_v34, %v3023_v16  ;;  %v3024_v30 = vpop.f32.mrf.mxu1  ;;  %v10951_v16 = vld [vmem:[%s18629_s0 + $0x1b4] sm:$0xf] }
  0xfd   :  { %v3025_v31 = vadd.f32 %v3024_v30, %v2936_v11  ;;  %v9813_v11 = vld [vmem:[%s18628_s1 + $0x5a0] sm:$0xf0]  ;;  %v10952_v30 = vld [vmem:[%s18629_s0 + $0x1bc] sm:$0xf] }
  0xfe   :  { %v3201_v19 = vadd.f32 %v3200_v51, %v3112_v44  ;;  %v9816_v34 = vor.u32 %v11169_v47, %v9813_v11  ;;  %v10955_v44 = vld [vmem:[%s18629_s0 + $0x1cc] sm:$0xf0]  ;;  %v12466_v11 = vor.u32 %v10956_v2, %v8955_v48  ;;  %v12470_v61 = vor.u32 %v10952_v30, %v8949_v10  ;;  %v10961_v10 = vld [vmem:[%s18629_s0 + $0x1fc] sm:$0xf0] }
  0xff   :  { %v12468_v56 = vor.u32 %v10955_v44, %v8947_v40  ;;  %v8965_v44 = vld [vmem:[%s18629_s0 + $0x1f8] sm:$0xf0]  ;;  %v2944_v30 = vadd.f32 %v12260_v18, %v12096_v20 }
 0x100   :  { %v12451_v51 = vadd.f32 %v3289_v28, %v3201_v19  ;;  %3637 = vmatpush.bf16.msra.mxu0 %v9816_v34  ;;  %v12464_v19 = vor.u32 %v10951_v16, %v8941_v58  ;;  %19272 = vst [vmem:[#allocation61_spill] sm:$0xff] %v12466_v11 }
 0x101   :  { %19273 = vst [vmem:[#allocation62_spill] sm:$0xff] %v12468_v56 }
 0x102   :  { %19270 = vst [vmem:[#allocation59_spill] sm:$0xff] %v12451_v51 }
 0x103   :  { %v3113_v47 = vpop.f32.mrf.mxu2  ;;  %19271 = vst [vmem:[#allocation60_spill] sm:$0xff] %v12464_v19  ;;  %v3294_v51 = vpop.f32.mrf.mxu0 }
 0x104   :  { %v3202_v28 = vpop.f32.mrf.mxu3  ;;  %v3114_v1 = vadd.f32 %v3113_v47, %v3025_v31  ;;  %v3027_v53 = vpop.f32.mrf.mxu1  ;;  %19274 = vst [vmem:[#allocation63_spill] sm:$0xff] %v12470_v61  ;;  %v2941_v31 = vadd.f32 %v12221_v23, %v12096_v20  ;;  %v10962_v23 = vld [vmem:[%s18629_s0 + $0x204] sm:$0xf0]  ;;  %v10958_v47 = vld [vmem:[%s18629_s0 + $0x1ec] sm:$0xf] }
 0x105   :  { %v3028_v37 = vadd.f32 %v3027_v53, %v2939_v46  ;;  %v10957_v46 = vld [vmem:[%s18629_s0 + $0x1e4] sm:$0xf] }
 0x106   :  { %v3203_v3 = vadd.f32 %v3202_v28, %v3114_v1  ;;  %3333 = vmatmul.bf16.gmra.mxu0 %v12466_v11  ;;  %v8973_v28 = vld [vmem:[%s18629_s0 + $0x200] sm:$0xf0] }
 0x107   :  { %3066 = vmatmul.bf16.gmra.mxu1 %v12464_v19 }
 0x108   :  { %3155 = vmatmul.bf16.gmra.mxu2 %v12468_v56  ;;  %v12476_v16 = vadd.f32 %v3291_v43, %v3203_v3  ;;  %v8971_v3 = vld [vmem:[%s18629_s0 + $0x1e8] sm:$0xf] }
 0x109   :  { %3244 = vmatmul.bf16.gmra.mxu3 %v12470_v61 }
 0x10b   :  { %v3116_v58 = vpop.f32.mrf.mxu2  ;;  %v3296_v2 = vpop.f32.mrf.mxu0 }
 0x10c   :  { %v3205_v59 = vpop.f32.mrf.mxu3  ;;  %v3117_v40 = vadd.f32 %v3116_v58, %v3028_v37  ;;  %v3029_v48 = vpop.f32.mrf.mxu1  ;;  %v8979_v37 = vld [vmem:[%s18629_s0 + $0x1f0] sm:$0xf]  ;;  %v12508_v58 = vor.u32 %v10957_v46, %v8965_v44  ;;  %v9141_v46 = vld [vmem:[%s18628_s1 + $0x60] sm:$0xf0] }
 0x10d   :  { %v3030_v53 = vadd.f32 %v3029_v48, %v2941_v31  ;;  %v12512_v48 = vor.u32 %v10961_v10, %v8971_v3  ;;  %v11065_v44 = vld [vmem:[%s18628_s1 + $0x244] sm:$0xf] }
 0x10e   :  { %v3206_v34 = vadd.f32 %v3205_v59, %v3117_v40  ;;  %19275 = vst [vmem:[#allocation64_spill] sm:$0xff] %v12508_v58 }
 0x10f   :  { %19277 = vst [vmem:[#allocation66_spill] sm:$0xff] %v12512_v48 }
 0x110   :  { %v12495_v43 = vadd.f32 %v3294_v51, %v3206_v34  ;;  %v12510_v51 = vor.u32 %v10962_v23, %v8979_v37  ;;  %v12514_v34 = vor.u32 %v10958_v47, %v8973_v28  ;;  %v2946_v37 = vadd.f32 %v12291_v24, %v12096_v20  ;;  %v11325_v24 = vld [vmem:[%s18628_s1 + $0xa5c] sm:$0xf0] }
 0x112   :  { %19276 = vst [vmem:[#allocation65_spill] sm:$0xff] %v12510_v51 }
 0x113   :  { %v3118_v1 = vpop.f32.mrf.mxu2  ;;  %v3299_v40 = vpop.f32.mrf.mxu0  ;;  %19278 = vst [vmem:[#allocation67_spill] sm:$0xff] %v12514_v34 }
 0x114   :  { %v3207_v31 = vpop.f32.mrf.mxu3  ;;  %v3119_v59 = vadd.f32 %v3118_v1, %v3030_v53  ;;  %v3032_v18 = vpop.f32.mrf.mxu1  ;;  %v11001_v53 = vld [vmem:[%s18628_s1 + $0x44] sm:$0xf] }
 0x115   :  { %v3033_v11 = vadd.f32 %v3032_v18, %v2944_v30  ;;  %v9144_v23 = vor.u32 %v11001_v53, %v9141_v46  ;;  %v9397_v30 = vld [vmem:[%s18628_s1 + $0x260] sm:$0xf0]  ;;  %v8989_v53 = vld [vmem:[%s18629_s0 + $0x228] sm:$0xf0] }
 0x116   :  { %v3208_v61 = vadd.f32 %v3207_v31, %v3119_v59  ;;  %3338 = vmatmul.bf16.gmra.mxu0 %v12510_v51  ;;  %v9400_v10 = vor.u32 %v11065_v44, %v9397_v30  ;;  %v9781_v44 = vld [vmem:[%s18628_s1 + $0x560] sm:$0xf0]  ;;  %v10968_v30 = vld [vmem:[%s18629_s0 + $0x234] sm:$0xf0] }
 0x117   :  { %3071 = vmatmul.bf16.gmra.mxu1 %v12508_v58  ;;  %3464 = vmatpush.bf16.msra.mxu2 %v9144_v23  ;;  %v9003_v23 = vld [vmem:[%s18629_s0 + $0x220] sm:$0xf] }
 0x118   :  { %3160 = vmatmul.bf16.gmra.mxu2 %v12512_v48  ;;  %v12529_v3 = vadd.f32 %v3296_v2, %v3208_v61  ;;  %3553 = vmatpush.bf16.msra.mxu3 %v9400_v10  ;;  %v10419_v61 = vld [vmem:[%s18628_s1 + $0xa40] sm:$0xf]  ;;  %v11161_v2 = vld [vmem:[%s18628_s1 + $0x544] sm:$0xf] }
 0x119   :  { %3249 = vmatmul.bf16.gmra.mxu3 %v12514_v34  ;;  %v10420_v46 = vor.u32 %v11325_v24, %v10419_v61  ;;  %v9784_v10 = vor.u32 %v11161_v2, %v9781_v44  ;;  %v8997_v61 = vld [vmem:[%s18629_s0 + $0x230] sm:$0xf0]  ;;  %v12578_v2 = vor.u32 %v10968_v30, %v9003_v23 }
 0x11a   :  { %19279 = vst [vmem:[#allocation68_spill] sm:$0xff] %v12529_v3 }
 0x11b   :  { %v3121_v47 = vpop.f32.mrf.mxu2  ;;  %v3301_v59 = vpop.f32.mrf.mxu0  ;;  %3375 = vmatpush.bf16.msra.mxu1 %v10420_v46  ;;  %3638 = vmatpush.bf16.msra.mxu0 %v9784_v10  ;;  %19282 = vst [vmem:[#allocation71_spill] sm:$0xff] %v12578_v2 }
 0x11c   :  { %v3210_v28 = vpop.f32.mrf.mxu3  ;;  %v3122_v1 = vadd.f32 %v3121_v47, %v3033_v11  ;;  %v3034_v31 = vpop.f32.mrf.mxu1  ;;  %v10963_v11 = vld [vmem:[%s18629_s0 + $0x214] sm:$0xf] }
 0x11d   :  { %v3035_v18 = vadd.f32 %v3034_v31, %v2946_v37  ;;  %v8995_v37 = vld [vmem:[%s18629_s0 + $0x218] sm:$0xf]  ;;  %v10964_v31 = vld [vmem:[%s18629_s0 + $0x21c] sm:$0xf] }
 0x11e   :  { %v3211_v51 = vadd.f32 %v3210_v28, %v3122_v1  ;;  %v2949_v28 = vadd.f32 %v12342_v29, %v12096_v20  ;;  %v10967_v1 = vld [vmem:[%s18629_s0 + $0x22c] sm:$0xf0]  ;;  %v12582_v48 = vor.u32 %v10964_v31, %v8997_v61  ;;  %v9013_v31 = vld [vmem:[%s18629_s0 + $0x258] sm:$0xf0]  ;;  %v10970_v61 = vld [vmem:[%s18629_s0 + $0x24c] sm:$0xf] }
 0x11f   :  { %v12580_v58 = vor.u32 %v10967_v1, %v8995_v37  ;;  %v10969_v1 = vld [vmem:[%s18629_s0 + $0x244] sm:$0xf] }
 0x120   :  { %v12563_v47 = vadd.f32 %v3299_v40, %v3211_v51  ;;  %v12576_v40 = vor.u32 %v10963_v11, %v8989_v53  ;;  %19284 = vst [vmem:[#allocation73_spill] sm:$0xff] %v12582_v48 }
 0x121   :  { %19283 = vst [vmem:[#allocation72_spill] sm:$0xff] %v12580_v58 }
 0x122   :  { %19280 = vst [vmem:[#allocation69_spill] sm:$0xff] %v12563_v47 }
 0x123   :  { %v3123_v24 = vpop.f32.mrf.mxu2  ;;  %19281 = vst [vmem:[#allocation70_spill] sm:$0xff] %v12576_v40  ;;  %v3304_v34 = vpop.f32.mrf.mxu0 }
 0x124   :  { %v3212_v51 = vpop.f32.mrf.mxu3  ;;  %v3124_v29 = vadd.f32 %v3123_v24, %v3035_v18  ;;  %v3037_v44 = vpop.f32.mrf.mxu1  ;;  %v2951_v18 = vadd.f32 %v12361_v60, %v12096_v20  ;;  %v9027_v20 = vld [vmem:[%s18629_s0 + $0x250] sm:$0xf]  ;;  %v10974_v60 = vld [vmem:[%s18629_s0 + $0x264] sm:$0xf0]  ;;  %v9021_v24 = vld [vmem:[%s18629_s0 + $0x260] sm:$0xf0] }
 0x125   :  { %v3038_v47 = vadd.f32 %v3037_v44, %v2949_v28  ;;  %v12618_v44 = vor.u32 %v10969_v1, %v9013_v31  ;;  %v9109_v1 = vld [vmem:[%s18628_s1 + $0x20] sm:$0xf0] }
 0x126   :  { %v3213_v3 = vadd.f32 %v3212_v51, %v3124_v29  ;;  %3343 = vmatmul.bf16.gmra.mxu0 %v12578_v2 }
 0x127   :  { %3076 = vmatmul.bf16.gmra.mxu1 %v12576_v40  ;;  %19285 = vst [vmem:[#allocation74_spill] sm:$0xff] %v12618_v44 }
 0x128   :  { %3165 = vmatmul.bf16.gmra.mxu2 %v12580_v58  ;;  %v12588_v11 = vadd.f32 %v3301_v59, %v3213_v3  ;;  %v9019_v3 = vld [vmem:[%s18629_s0 + $0x248] sm:$0xf] }
 0x129   :  { %3254 = vmatmul.bf16.gmra.mxu3 %v12582_v48 }
 0x12b   :  { %v3126_v53 = vpop.f32.mrf.mxu2  ;;  %v3306_v30 = vpop.f32.mrf.mxu0 }
 0x12c   :  { %v3215_v46 = vpop.f32.mrf.mxu3  ;;  %v3127_v37 = vadd.f32 %v3126_v53, %v3038_v47  ;;  %v3039_v23 = vpop.f32.mrf.mxu1  ;;  %v10973_v47 = vld [vmem:[%s18629_s0 + $0x25c] sm:$0xf0] }
 0x12d   :  { %v3040_v10 = vadd.f32 %v3039_v23, %v2951_v18  ;;  %v12620_v18 = vor.u32 %v10974_v60, %v9027_v20  ;;  %v12624_v23 = vor.u32 %v10970_v61, %v9021_v24  ;;  %v9365_v20 = vld [vmem:[%s18628_s1 + $0x220] sm:$0xf0] }
 0x12e   :  { %v3216_v28 = vadd.f32 %v3215_v46, %v3127_v37  ;;  %v12622_v37 = vor.u32 %v10973_v47, %v9019_v3 }
 0x12f   :  { %19286 = vst [vmem:[#allocation75_spill] sm:$0xff] %v12620_v18 }
 0x130   :  { %v12607_v59 = vadd.f32 %v3304_v34, %v3216_v28  ;;  %19287 = vst [vmem:[#allocation76_spill] sm:$0xff] %v12622_v37 }
 0x131   :  { %19288 = vst [vmem:[#allocation77_spill] sm:$0xff] %v12624_v23 }
 0x133   :  { %v3128_v51 = vpop.f32.mrf.mxu2  ;;  %v3309_v46 = vpop.f32.mrf.mxu0 }
 0x134   :  { %v3217_v29 = vpop.f32.mrf.mxu3  ;;  %v3129_v34 = vadd.f32 %v3128_v51, %v3040_v10  ;;  %v3042_v53 = vpop.f32.mrf.mxu1  ;;  %v10993_v10 = vld [vmem:[%s18628_s1 + $0x4] sm:$0xf] }
 0x135   :  { %v3043_v28 = vadd.f32 %v3042_v53, %v12133_v55  ;;  %v11057_v55 = vld [vmem:[%s18628_s1 + $0x204] sm:$0xf]  ;;  %v9112_v3 = vor.u32 %v10993_v10, %v9109_v1 }
 0x136   :  { %v3218_v2 = vadd.f32 %v3217_v29, %v3129_v34  ;;  %3348 = vmatmul.bf16.gmra.mxu0 %v12620_v18  ;;  %v9368_v60 = vor.u32 %v11057_v55, %v9365_v20  ;;  %v11153_v10 = vld [vmem:[%s18628_s1 + $0x504] sm:$0xf]  ;;  %v9051_v20 = vld [vmem:[%s18629_s0 + $0x280] sm:$0xf] }
 0x137   :  { %3081 = vmatmul.bf16.gmra.mxu1 %v12618_v44  ;;  %3465 = vmatpush.bf16.msra.mxu2 %v9112_v3  ;;  %v9749_v55 = vld [vmem:[%s18628_s1 + $0x520] sm:$0xf0]  ;;  %v9043_v3 = vld [vmem:[%s18629_s0 + $0x278] sm:$0xf] }
 0x138   :  { %3170 = vmatmul.bf16.gmra.mxu2 %v12622_v37  ;;  %v12640_v31 = vadd.f32 %v3306_v30, %v3218_v2  ;;  %3554 = vmatpush.bf16.msra.mxu3 %v9368_v60  ;;  %v10387_v2 = vld [vmem:[%s18628_s1 + $0xa00] sm:$0xf]  ;;  %v10980_v60 = vld [vmem:[%s18629_s0 + $0x294] sm:$0xf0] }
 0x139   :  { %3259 = vmatmul.bf16.gmra.mxu3 %v12624_v23  ;;  %v11317_v30 = vld [vmem:[%s18628_s1 + $0xa1c] sm:$0xf0] }
 0x13a   :  { %v10388_v1 = vor.u32 %v11317_v30, %v10387_v2  ;;  %v9045_v2 = vld [vmem:[%s18629_s0 + $0x290] sm:$0xf0] }
 0x13b   :  { %v3131_v47 = vpop.f32.mrf.mxu2  ;;  %v3311_v29 = vpop.f32.mrf.mxu0 }
 0x13c   :  { %v3220_v61 = vpop.f32.mrf.mxu3  ;;  %v3132_v24 = vadd.f32 %v3131_v47, %v3043_v28  ;;  %v3044_v51 = vpop.f32.mrf.mxu1  ;;  %v10975_v28 = vld [vmem:[%s18629_s0 + $0x274] sm:$0xf]  ;;  %v9752_v47 = vor.u32 %v11153_v10, %v9749_v55  ;;  %3376 = vmatpush.bf16.msra.mxu1 %v10388_v1  ;;  %v9685_v1 = vld [vmem:[%s18628_s1 + $0x4a0] sm:$0xf0] }
 0x13d   :  { %v3045_v34 = vadd.f32 %v3044_v51, %v12166_v14  ;;  %v9037_v14 = vld [vmem:[%s18629_s0 + $0x288] sm:$0xf0]  ;;  %v10976_v51 = vld [vmem:[%s18629_s0 + $0x27c] sm:$0xf] }
 0x13e   :  { %v3221_v53 = vadd.f32 %v3220_v61, %v3132_v24  ;;  %v10979_v24 = vld [vmem:[%s18629_s0 + $0x28c] sm:$0xf0]  ;;  %3639 = vmatpush.bf16.msra.mxu0 %v9752_v47  ;;  %v12684_v23 = vor.u32 %v10975_v28, %v9037_v14  ;;  %v12690_v44 = vor.u32 %v10976_v51, %v9045_v2  ;;  %v11145_v28 = vld [vmem:[%s18628_s1 + $0x4c4] sm:$0xf] }
 0x13f   :  { %v12688_v48 = vor.u32 %v10979_v24, %v9043_v3 }
 0x140   :  { %v12673_v61 = vadd.f32 %v3309_v46, %v3221_v53  ;;  %19290 = vst [vmem:[#allocation79_spill] sm:$0xff] %v12684_v23  ;;  %v12686_v46 = vor.u32 %v10980_v60, %v9051_v20 }
 0x141   :  { %19292 = vst [vmem:[#allocation81_spill] sm:$0xff] %v12688_v48 }
 0x142   :  { %19289 = vst [vmem:[#allocation78_spill] sm:$0xff] %v12673_v61 }
 0x143   :  { %v3133_v30 = vpop.f32.mrf.mxu2  ;;  %19291 = vst [vmem:[#allocation80_spill] sm:$0xff] %v12686_v46  ;;  %v3314_v55 = vpop.f32.mrf.mxu0 }
 0x144   :  { %v3222_v18 = vpop.f32.mrf.mxu3  ;;  %v3134_v53 = vadd.f32 %v3133_v30, %v3045_v34  ;;  %v3047_v10 = vpop.f32.mrf.mxu1  ;;  %19293 = vst [vmem:[#allocation82_spill] sm:$0xff] %v12690_v44  ;;  %v9717_v34 = vld [vmem:[%s18628_s1 + $0x4e0] sm:$0xf0] }
 0x145   :  { %v3048_v37 = vadd.f32 %v3047_v10, %v12209_v12  ;;  %v9720_v12 = vor.u32 %v11145_v28, %v9717_v34  ;;  %v9653_v30 = vld [vmem:[%s18628_s1 + $0x460] sm:$0xf0]  ;;  %v9075_v28 = vld [vmem:[%s18629_s0 + $0x2b0] sm:$0xf]  ;;  %v10986_v34 = vld [vmem:[%s18629_s0 + $0x2c4] sm:$0xf0] }
 0x146   :  { %v3223_v61 = vadd.f32 %v3222_v18, %v3134_v53  ;;  %3353 = vmatmul.bf16.gmra.mxu0 %v12686_v46  ;;  %v11137_v18 = vld [vmem:[%s18628_s1 + $0x484] sm:$0xf] }
 0x147   :  { %3086 = vmatmul.bf16.gmra.mxu1 %v12684_v23  ;;  %3640 = vmatpush.bf16.msra.mxu0 %v9720_v12  ;;  %v9688_v60 = vor.u32 %v11137_v18, %v9685_v1  ;;  %v10981_v53 = vld [vmem:[%s18629_s0 + $0x2a4] sm:$0xf]  ;;  %v10985_v18 = vld [vmem:[%s18629_s0 + $0x2bc] sm:$0xf0]  ;;  %v10982_v1 = vld [vmem:[%s18629_s0 + $0x2ac] sm:$0xf] }
 0x148   :  { %3175 = vmatmul.bf16.gmra.mxu2 %v12688_v48  ;;  %v12703_v14 = vadd.f32 %v3311_v29, %v3223_v61  ;;  %v11129_v61 = vld [vmem:[%s18628_s1 + $0x444] sm:$0xf] }
 0x149   :  { %3264 = vmatmul.bf16.gmra.mxu3 %v12690_v44  ;;  %v9656_v10 = vor.u32 %v11129_v61, %v9653_v30 }
 0x14a   :  { %19294 = vst [vmem:[#allocation83_spill] sm:$0xff] %v12703_v14 }
 0x14b   :  { %v3136_v3 = vpop.f32.mrf.mxu2  ;;  %v3316_v51 = vpop.f32.mrf.mxu0  ;;  %3641 = vmatpush.bf16.msra.mxu0 %v9688_v60 }
 0x14c   :  { %v3225_v20 = vpop.f32.mrf.mxu3  ;;  %v3137_v47 = vadd.f32 %v3136_v3, %v3048_v37  ;;  %v3049_v24 = vpop.f32.mrf.mxu1  ;;  %v9061_v37 = vld [vmem:[%s18629_s0 + $0x2b8] sm:$0xf0]  ;;  %v9069_v3 = vld [vmem:[%s18629_s0 + $0x2c0] sm:$0xf0] }
 0x14d   :  { %v3050_v2 = vadd.f32 %v3049_v24, %v12224_v25  ;;  %v9067_v25 = vld [vmem:[%s18629_s0 + $0x2a8] sm:$0xf]  ;;  %v12750_v24 = vor.u32 %v10981_v53, %v9061_v37  ;;  %v12756_v23 = vor.u32 %v10982_v1, %v9069_v3  ;;  %v10357_v53 = vld [vmem:[%s18628_s1 + $0x9e0] sm:$0xf0] }
 0x14e   :  { %v3226_v29 = vadd.f32 %v3225_v20, %v3137_v47  ;;  %v11121_v20 = vld [vmem:[%s18628_s1 + $0x404] sm:$0xf]  ;;  %v12754_v44 = vor.u32 %v10985_v18, %v9067_v25 }
 0x14f   :  { %19296 = vst [vmem:[#allocation85_spill] sm:$0xff] %v12750_v24  ;;  %3642 = vmatpush.bf16.msra.mxu0 %v9656_v10  ;;  %v10613_v25 = vld [vmem:[%s18628_s1 + $0xbe0] sm:$0xf0] }
 0x150   :  { %v12733_v12 = vadd.f32 %v3314_v55, %v3226_v29  ;;  %v9621_v55 = vld [vmem:[%s18628_s1 + $0x420] sm:$0xf0]  ;;  %v12752_v29 = vor.u32 %v10986_v34, %v9075_v28  ;;  %19298 = vst [vmem:[#allocation87_spill] sm:$0xff] %v12754_v44 }
 0x151   :  { %19299 = vst [vmem:[#allocation88_spill] sm:$0xff] %v12756_v23 }
 0x152   :  { %19295 = vst [vmem:[#allocation84_spill] sm:$0xff] %v12733_v12  ;;  %v9624_v12 = vor.u32 %v11121_v20, %v9621_v55 }
 0x153   :  { %v3138_v60 = vpop.f32.mrf.mxu2  ;;  %19297 = vst [vmem:[#allocation86_spill] sm:$0xff] %v12752_v29  ;;  %v3319_v46 = vpop.f32.mrf.mxu0 }
 0x154   :  { %v3227_v47 = vpop.f32.mrf.mxu3  ;;  %v3139_v61 = vadd.f32 %v3138_v60, %v3050_v2  ;;  %v3052_v30 = vpop.f32.mrf.mxu1  ;;  %v11305_v2 = vld [vmem:[%s18628_s1 + $0x9c4] sm:$0xf]  ;;  %3643 = vmatpush.bf16.msra.mxu0 %v9624_v12  ;;  %v10987_v12 = vld [vmem:[%s18629_s0 + $0x2d4] sm:$0xf] }
 0x155   :  { %v3053_v48 = vadd.f32 %v3052_v30, %v12267_v33  ;;  %v11369_v33 = vld [vmem:[%s18628_s1 + $0xbc4] sm:$0xf]  ;;  %v10360_v10 = vor.u32 %v11305_v2, %v10357_v53  ;;  %v10992_v30 = vld [vmem:[%s18629_s0 + $0x2f4] sm:$0xf0]  ;;  %v10991_v53 = vld [vmem:[%s18629_s0 + $0x2ec] sm:$0xf0] }
 0x156   :  { %v3228_v14 = vadd.f32 %v3227_v47, %v3139_v61  ;;  %3358 = vmatmul.bf16.gmra.mxu0 %v12752_v29  ;;  %v10616_v28 = vor.u32 %v11369_v33, %v10613_v25  ;;  %v9099_v61 = vld [vmem:[%s18629_s0 + $0x2e0] sm:$0xf]  ;;  %v10988_v33 = vld [vmem:[%s18629_s0 + $0x2dc] sm:$0xf] }
 0x157   :  { %3091 = vmatmul.bf16.gmra.mxu1 %v12750_v24  ;;  %3814 = vmatpush.bf16.msrb.mxu2 %v10360_v10  ;;  %v9093_v10 = vld [vmem:[%s18629_s0 + $0x2f0] sm:$0xf0] }
 0x158   :  { %3180 = vmatmul.bf16.gmra.mxu2 %v12754_v44  ;;  %v12772_v37 = vadd.f32 %v3316_v51, %v3228_v14  ;;  %3903 = vmatpush.bf16.msrb.mxu3 %v10616_v28  ;;  %v11241_v14 = vld [vmem:[%s18628_s1 + $0x7c4] sm:$0xf] }
 0x159   :  { %3269 = vmatmul.bf16.gmra.mxu3 %v12756_v23  ;;  %v10101_v51 = vld [vmem:[%s18628_s1 + $0x7e0] sm:$0xf0] }
 0x15a   :  { %v10104_v47 = vor.u32 %v11241_v14, %v10101_v51  ;;  %v12816_v14 = vor.u32 %v10988_v33, %v9093_v10  ;;  %v8741_v33 = vld [vmem:[%s18629_s0 + $0x28] sm:$0xf0] }
 0x15b   :  { %v3141_v34 = vpop.f32.mrf.mxu2  ;;  %v3321_v20 = vpop.f32.mrf.mxu0 }
 0x15c   :  { %v3230_v18 = vpop.f32.mrf.mxu3  ;;  %v3142_v1 = vadd.f32 %v3141_v34, %v3053_v48  ;;  %v3054_v3 = vpop.f32.mrf.mxu1  ;;  %v9085_v48 = vld [vmem:[%s18629_s0 + $0x2e8] sm:$0xf0]  ;;  %3725 = vmatpush.bf16.msrb.mxu1 %v10104_v47  ;;  %19303 = vst [vmem:[#allocation92_spill] sm:$0xff] %v12816_v14 }
 0x15d   :  { %v3055_v55 = vadd.f32 %v3054_v3, %v12294_v62  ;;  %v9091_v62 = vld [vmem:[%s18629_s0 + $0x2d8] sm:$0xf]  ;;  %v12810_v34 = vor.u32 %v10987_v12, %v9085_v48 }
 0x15e   :  { %v3231_v60 = vadd.f32 %v3230_v18, %v3142_v1  ;;  %v12812_v18 = vor.u32 %v10992_v30, %v9099_v61 }
 0x15f   :  { %19300 = vst [vmem:[#allocation89_spill] sm:$0xff] %v12810_v34 }
 0x160   :  { %v12799_v2 = vadd.f32 %v3319_v46, %v3231_v60  ;;  %19301 = vst [vmem:[#allocation90_spill] sm:$0xff] %v12812_v18  ;;  %v12814_v60 = vor.u32 %v10991_v53, %v9091_v62 }
 0x162   :  { %19302 = vst [vmem:[#allocation91_spill] sm:$0xff] %v12814_v60 }
 0x163   :  { %v3143_v25 = vpop.f32.mrf.mxu2  ;;  %v3324_v3 = vpop.f32.mrf.mxu0 }
 0x164   :  { %v3232_v28 = vpop.f32.mrf.mxu3  ;;  %v3144_v46 = vadd.f32 %v3143_v25, %v3055_v55  ;;  %v3057_v1 = vpop.f32.mrf.mxu1 }
 0x165   :  { %v3058_v51 = vadd.f32 %v3057_v1, %v12349_v8  ;;  %v10899_v8 = vld [vmem:[%s18629_s0 + $0x14] sm:$0xf] }
 0x166   :  { %v3233_v29 = vadd.f32 %v3232_v28, %v3144_v46  ;;  %3363 = vmatmul.bf16.gmra.mxu0 %v12812_v18  ;;  %v12834_v25 = vor.u32 %v10899_v8, %v8741_v33 }
 0x167   :  { %3096 = vmatmul.bf16.gmra.mxu1 %v12810_v34 }
 0x168   :  { %3185 = vmatmul.bf16.gmra.mxu2 %v12814_v60  ;;  %v12823_v12 = vadd.f32 %v3321_v20, %v3233_v29  ;;  %19304 = vst [vmem:[#allocation93_spill] sm:$0xff] %v12834_v25 }
 0x169   :  { %3274 = vmatmul.bf16.gmra.mxu3 %v12816_v14 }
 0x16b   :  { %v3146_v55 = vpop.f32.mrf.mxu2  ;;  %v3326_v61 = vpop.f32.mrf.mxu0 }
 0x16c   :  { %v3235_v48 = vpop.f32.mrf.mxu3  ;;  %v3147_v47 = vadd.f32 %v3146_v55, %v3058_v51  ;;  %v3059_v62 = vpop.f32.mrf.mxu1  ;;  %v10325_v55 = vld [vmem:[%s18628_s1 + $0x9a0] sm:$0xf0] }
 0x16d   :  { %v3060_v30 = vadd.f32 %v3059_v62, %v12364_v38  ;;  %v10581_v62 = vld [vmem:[%s18628_s1 + $0xba0] sm:$0xf0] }
 0x16e   :  { %v3236_v53 = vadd.f32 %v3235_v48, %v3147_v47 }
 0x170   :  { %v12832_v10 = vadd.f32 %v3324_v3, %v3236_v53  ;;  %v11297_v3 = vld [vmem:[%s18628_s1 + $0x984] sm:$0xf] }
 0x171   :  { %v10328_v47 = vor.u32 %v11297_v3, %v10325_v55  ;;  %v10905_v55 = vld [vmem:[%s18629_s0 + $0x44] sm:$0xf] }
 0x173   :  { %v3148_v29 = vpop.f32.mrf.mxu2  ;;  %v3329_v1 = vpop.f32.mrf.mxu0  ;;  %3815 = vmatpush.bf16.msrb.mxu2 %v10328_v47 }
 0x174   :  { %v3237_v20 = vpop.f32.mrf.mxu3  ;;  %v3149_v28 = vadd.f32 %v3148_v29, %v3060_v30  ;;  %v3062_v46 = vpop.f32.mrf.mxu1 }
 0x175   :  { %v3063_v38 = vadd.f32 %v3062_v46, %v12152_v4  ;;  %v11361_v4 = vld [vmem:[%s18628_s1 + $0xb84] sm:$0xf] }
 0x176   :  { %v3238_v51 = vadd.f32 %v3237_v20, %v3149_v28  ;;  %3644 = vmatmul.bf16.vlgmr.msra.gmra.mxu0 %v11941_v7  ;;  %v10584_v30 = vor.u32 %v11361_v4, %v10581_v62  ;;  %v19319_v7 = vld [vmem:[#allocation50_spill] sm:$0xff] }
 0x177   :  { %3377 = vmatmul.bf16.vlgmr.msra.gmra.mxu1 %v12834_v25 }
 0x178   :  { %3466 = vmatmul.bf16.vlgmr.msra.gmra.mxu2 %v11604_v41  ;;  %v12850_v48 = vadd.f32 %v3326_v61, %v3238_v51  ;;  %3904 = vmatpush.bf16.msrb.mxu3 %v10584_v30  ;;  %v11233_v61 = vld [vmem:[%s18628_s1 + $0x784] sm:$0xf] }
 0x179   :  { %3555 = vmatmul.bf16.vlgmr.msra.gmra.mxu3 %v11937_v5  ;;  %v10069_v51 = vld [vmem:[%s18628_s1 + $0x7a0] sm:$0xf0] }
 0x17a   :  { %v10072_v3 = vor.u32 %v11233_v61, %v10069_v51 }
 0x17b   :  { %v3151_v53 = vpop.f32.mrf.mxu2  ;;  %v3331_v20 = vpop.f32.mrf.mxu0 }
 0x17c   :  { %v3240_v8 = vpop.f32.mrf.mxu3  ;;  %v3152_v33 = vadd.f32 %v3151_v53, %v3063_v38  ;;  %v3064_v29 = vpop.f32.mrf.mxu1  ;;  %v8765_v38 = vld [vmem:[%s18629_s0 + $0x58] sm:$0xf0]  ;;  %3726 = vmatpush.bf16.msrb.mxu1 %v10072_v3 }
 0x17d   :  { %v3065_v28 = vadd.f32 %v3064_v29, %v12197_v63  ;;  %v12870_v62 = vor.u32 %v10905_v55, %v8765_v38 }
 0x17e   :  { %v3241_v46 = vadd.f32 %v3240_v8, %v3152_v33 }
 0x17f   :  { %19305 = vst [vmem:[#allocation94_spill] sm:$0xff] %v12870_v62 }
 0x180   :  { %v12868_v4 = vadd.f32 %v3329_v1, %v3241_v46 }
 0x183   :  { %v3153_v63 = vpop.f32.mrf.mxu2  ;;  %v3334_v8 = vpop.f32.mrf.mxu0 }
 0x184   :  { %v3242_v47 = vpop.f32.mrf.mxu3  ;;  %v3154_v30 = vadd.f32 %v3153_v63, %v3065_v28  ;;  %v3067_v53 = vpop.f32.mrf.mxu1  ;;  %v8789_v63 = vld [vmem:[%s18629_s0 + $0x88] sm:$0xf0] }
 0x185   :  { %v3068_v33 = vadd.f32 %v3067_v53, %v12216_v21  ;;  %v10911_v21 = vld [vmem:[%s18629_s0 + $0x74] sm:$0xf] }
 0x186   :  { %v3243_v29 = vadd.f32 %v3242_v47, %v3154_v30  ;;  %3649 = vmatmul.bf16.gmra.mxu0 %v11995_v32  ;;  %v12888_v53 = vor.u32 %v10911_v21, %v8789_v63 }
 0x187   :  { %3382 = vmatmul.bf16.gmra.mxu1 %v12870_v62 }
 0x188   :  { %3471 = vmatmul.bf16.gmra.mxu2 %v11736_v36  ;;  %v12877_v1 = vadd.f32 %v3331_v20, %v3243_v29  ;;  %19306 = vst [vmem:[#allocation95_spill] sm:$0xff] %v12888_v53 }
 0x189   :  { %3560 = vmatmul.bf16.gmra.mxu3 %v11991_v26  ;;  %v19318_v26 = vld [vmem:[#allocation42_spill] sm:$0xff] }
 0x18b   :  { %v3156_v46 = vpop.f32.mrf.mxu2  ;;  %v3336_v28 = vpop.f32.mrf.mxu0 }
 0x18c   :  { %v3245_v61 = vpop.f32.mrf.mxu3  ;;  %v3157_v51 = vadd.f32 %v3156_v46, %v3068_v33  ;;  %v3069_v3 = vpop.f32.mrf.mxu1 }
 0x18d   :  { %v3070_v55 = vadd.f32 %v3069_v3, %v12255_v54 }
 0x18e   :  { %v3246_v38 = vadd.f32 %v3245_v61, %v3157_v51  ;;  %v10293_v51 = vld [vmem:[%s18628_s1 + $0x960] sm:$0xf0] }
 0x190   :  { %v12886_v47 = vadd.f32 %v3334_v8, %v3246_v38  ;;  %v11289_v8 = vld [vmem:[%s18628_s1 + $0x944] sm:$0xf] }
 0x191   :  { %v10549_v38 = vld [vmem:[%s18628_s1 + $0xb60] sm:$0xf0] }
 0x193   :  { %v3158_v20 = vpop.f32.mrf.mxu2  ;;  %v3339_v46 = vpop.f32.mrf.mxu0 }
 0x194   :  { %v3247_v30 = vpop.f32.mrf.mxu3  ;;  %v3159_v33 = vadd.f32 %v3158_v20, %v3070_v55  ;;  %v3072_v29 = vpop.f32.mrf.mxu1  ;;  %v10296_v55 = vor.u32 %v11289_v8, %v10293_v51  ;;  %v10917_v51 = vld [vmem:[%s18629_s0 + $0xa4] sm:$0xf] }
 0x195   :  { %v3073_v54 = vadd.f32 %v3072_v29, %v12286_v13  ;;  %v11353_v13 = vld [vmem:[%s18628_s1 + $0xb44] sm:$0xf] }
 0x196   :  { %v3248_v61 = vadd.f32 %v3247_v30, %v3159_v33  ;;  %3654 = vmatmul.bf16.gmra.mxu0 %v12031_v52  ;;  %v10552_v21 = vor.u32 %v11353_v13, %v10549_v38  ;;  %3816 = vmatpush.bf16.msrb.mxu2 %v10296_v55 }
 0x197   :  { %3387 = vmatmul.bf16.gmra.mxu1 %v12888_v53 }
 0x198   :  { %3476 = vmatmul.bf16.gmra.mxu2 %v11847_v27  ;;  %v12904_v3 = vadd.f32 %v3336_v28, %v3248_v61  ;;  %3905 = vmatpush.bf16.msrb.mxu3 %v10552_v21  ;;  %v11225_v28 = vld [vmem:[%s18628_s1 + $0x744] sm:$0xf] }
 0x199   :  { %3565 = vmatmul.bf16.gmra.mxu3 %v12027_v50  ;;  %v10037_v61 = vld [vmem:[%s18628_s1 + $0x760] sm:$0xf0] }
 0x19a   :  { %v10040_v8 = vor.u32 %v11225_v28, %v10037_v61 }
 0x19b   :  { %v3161_v63 = vpop.f32.mrf.mxu2  ;;  %v3341_v29 = vpop.f32.mrf.mxu0 }
 0x19c   :  { %v3250_v20 = vpop.f32.mrf.mxu3  ;;  %v3162_v30 = vadd.f32 %v3161_v63, %v3073_v54  ;;  %v3074_v33 = vpop.f32.mrf.mxu1  ;;  %v8813_v54 = vld [vmem:[%s18629_s0 + $0xb8] sm:$0xf0]  ;;  %3727 = vmatpush.bf16.msrb.mxu1 %v10040_v8 }
 0x19d   :  { %v3075_v52 = vadd.f32 %v3074_v33, %v12337_v35  ;;  %v12924_v38 = vor.u32 %v10917_v51, %v8813_v54 }
 0x19e   :  { %v3251_v50 = vadd.f32 %v3250_v20, %v3162_v30 }
 0x19f   :  { %19307 = vst [vmem:[#allocation96_spill] sm:$0xff] %v12924_v38 }
 0x1a0   :  { %v12922_v13 = vadd.f32 %v3339_v46, %v3251_v50 }
 0x1a3   :  { %v3163_v35 = vpop.f32.mrf.mxu2  ;;  %v3344_v20 = vpop.f32.mrf.mxu0 }
 0x1a4   :  { %v3252_v55 = vpop.f32.mrf.mxu3  ;;  %v3164_v21 = vadd.f32 %v3163_v35, %v3075_v52  ;;  %v3077_v63 = vpop.f32.mrf.mxu1  ;;  %v8837_v35 = vld [vmem:[%s18629_s0 + $0xe8] sm:$0xf0] }
 0x1a5   :  { %v3078_v30 = vadd.f32 %v3077_v63, %v12356_v6  ;;  %v10923_v6 = vld [vmem:[%s18629_s0 + $0xd4] sm:$0xf] }
 0x1a6   :  { %v3253_v33 = vadd.f32 %v3252_v55, %v3164_v21  ;;  %3659 = vmatmul.bf16.gmra.mxu0 %v12085_v17  ;;  %v12942_v63 = vor.u32 %v10923_v6, %v8837_v35  ;;  %v19312_v17 = vld [vmem:[#allocation38_spill] sm:$0xff] }
 0x1a7   :  { %3392 = vmatmul.bf16.gmra.mxu1 %v12924_v38 }
 0x1a8   :  { %3481 = vmatmul.bf16.gmra.mxu2 %v11901_v57  ;;  %v12931_v50 = vadd.f32 %v3341_v29, %v3253_v33  ;;  %19308 = vst [vmem:[#allocation97_spill] sm:$0xff] %v12942_v63 }
 0x1a9   :  { %3570 = vmatmul.bf16.gmra.mxu3 %v12081_v15 }
 0x1ab   :  { %v3166_v46 = vpop.f32.mrf.mxu2  ;;  %v3346_v52 = vpop.f32.mrf.mxu0 }
 0x1ac   :  { %v3255_v28 = vpop.f32.mrf.mxu3  ;;  %v3167_v61 = vadd.f32 %v3166_v46, %v3078_v30  ;;  %v3079_v8 = vpop.f32.mrf.mxu1 }
 0x1ad   :  { %v3080_v51 = vadd.f32 %v3079_v8, %v12397_v45 }
 0x1ae   :  { %v3256_v54 = vadd.f32 %v3255_v28, %v3167_v61  ;;  %v10261_v61 = vld [vmem:[%s18628_s1 + $0x920] sm:$0xf0] }
 0x1b0   :  { %v12940_v55 = vadd.f32 %v3344_v20, %v3256_v54  ;;  %v11281_v20 = vld [vmem:[%s18628_s1 + $0x904] sm:$0xf] }
 0x1b1   :  { %v10517_v54 = vld [vmem:[%s18628_s1 + $0xb20] sm:$0xf0] }
 0x1b3   :  { %v3168_v29 = vpop.f32.mrf.mxu2  ;;  %v3349_v46 = vpop.f32.mrf.mxu0 }
 0x1b4   :  { %v3257_v21 = vpop.f32.mrf.mxu3  ;;  %v3169_v30 = vadd.f32 %v3168_v29, %v3080_v51  ;;  %v3082_v33 = vpop.f32.mrf.mxu1  ;;  %v10264_v51 = vor.u32 %v11281_v20, %v10261_v61  ;;  %v10929_v61 = vld [vmem:[%s18629_s0 + $0x104] sm:$0xf] }
 0x1b5   :  { %v3083_v45 = vadd.f32 %v3082_v33, %v12155_v9  ;;  %v11345_v9 = vld [vmem:[%s18628_s1 + $0xb04] sm:$0xf] }
 0x1b6   :  { %v3258_v28 = vadd.f32 %v3257_v21, %v3169_v30  ;;  %3664 = vmatmul.bf16.gmra.mxu0 %v12128_v49  ;;  %v10520_v6 = vor.u32 %v11345_v9, %v10517_v54  ;;  %3817 = vmatpush.bf16.msrb.mxu2 %v10264_v51 }
 0x1b7   :  { %3397 = vmatmul.bf16.gmra.mxu1 %v12942_v63 }
 0x1b8   :  { %3486 = vmatmul.bf16.gmra.mxu2 %v11606_v42  ;;  %v12958_v8 = vadd.f32 %v3346_v52, %v3258_v28  ;;  %3906 = vmatpush.bf16.msrb.mxu3 %v10520_v6  ;;  %v11217_v52 = vld [vmem:[%s18628_s1 + $0x704] sm:$0xf] }
 0x1b9   :  { %3575 = vmatmul.bf16.gmra.mxu3 %v12122_v39  ;;  %v10005_v28 = vld [vmem:[%s18628_s1 + $0x720] sm:$0xf0] }
 0x1ba   :  { %v10008_v20 = vor.u32 %v11217_v52, %v10005_v28  ;;  %v19310_v52 = vld [vmem:[#allocation40_spill] sm:$0xff]  ;;  %v19311_v28 = vld [vmem:[#allocation7_spill] sm:$0xff] }
 0x1bb   :  { %v3171_v35 = vpop.f32.mrf.mxu2  ;;  %v3351_v33 = vpop.f32.mrf.mxu0 }
 0x1bc   :  { %v3260_v29 = vpop.f32.mrf.mxu3  ;;  %v3172_v21 = vadd.f32 %v3171_v35, %v3083_v45  ;;  %v3084_v30 = vpop.f32.mrf.mxu1  ;;  %v8861_v45 = vld [vmem:[%s18629_s0 + $0x118] sm:$0xf0]  ;;  %3728 = vmatpush.bf16.msrb.mxu1 %v10008_v20 }
 0x1bd   :  { %v3085_v49 = vadd.f32 %v3084_v30, %v12200_v0  ;;  %v12978_v54 = vor.u32 %v10929_v61, %v8861_v45 }
 0x1be   :  { %v3261_v39 = vadd.f32 %v3260_v29, %v3172_v21 }
 0x1bf   :  { %19309 = vst [vmem:[#allocation98_spill] sm:$0xff] %v12978_v54 }
 0x1c0   :  { %v12976_v9 = vadd.f32 %v3349_v46, %v3261_v39 }
 0x1c3   :  { %v3173_v0 = vpop.f32.mrf.mxu2  ;;  %v3354_v29 = vpop.f32.mrf.mxu0 }
 0x1c4   :  { %v3262_v51 = vpop.f32.mrf.mxu3  ;;  %v3174_v6 = vadd.f32 %v3173_v0, %v3085_v49  ;;  %v3087_v35 = vpop.f32.mrf.mxu1  ;;  %v19313_v0 = vld [vmem:[#allocation44_spill] sm:$0xff] }
 0x1c5   :  { %v3088_v21 = vadd.f32 %v3087_v35, %v12219_v22  ;;  %v10935_v22 = vld [vmem:[%s18629_s0 + $0x134] sm:$0xf] }
 0x1c6   :  { %v3263_v30 = vadd.f32 %v3262_v51, %v3174_v6  ;;  %3669 = vmatmul.bf16.gmra.mxu0 %v19310_v52  ;;  %v8885_v51 = vld [vmem:[%s18629_s0 + $0x148] sm:$0xf0] }
 0x1c7   :  { %3402 = vmatmul.bf16.gmra.mxu1 %v12978_v54 }
 0x1c8   :  { %3491 = vmatmul.bf16.gmra.mxu2 %v19311_v28  ;;  %v12985_v39 = vadd.f32 %v3351_v33, %v3263_v30  ;;  %v12996_v30 = vor.u32 %v10935_v22, %v8885_v51  ;;  %v10485_v51 = vld [vmem:[%s18628_s1 + $0xae0] sm:$0xf0] }
 0x1c9   :  { %3580 = vmatmul.bf16.gmra.mxu3 %v19312_v17  ;;  %v19315_v17 = vld [vmem:[#allocation47_spill] sm:$0xff] }
 0x1ca   :  { %19314 = vst [vmem:[#allocation44_spill] sm:$0xff] %v12996_v30 }
 0x1cb   :  { %v3176_v46 = vpop.f32.mrf.mxu2  ;;  %v3356_v49 = vpop.f32.mrf.mxu0 }
 0x1cc   :  { %v3265_v20 = vpop.f32.mrf.mxu3  ;;  %v3177_v61 = vadd.f32 %v3176_v46, %v3088_v21  ;;  %v3089_v45 = vpop.f32.mrf.mxu1 }
 0x1cd   :  { %v3090_v15 = vadd.f32 %v3089_v45, %v19313_v0  ;;  %v19317_v0 = vld [vmem:[#allocation11_spill] sm:$0xff] }
 0x1ce   :  { %v3266_v32 = vadd.f32 %v3265_v20, %v3177_v61  ;;  %v19316_v61 = vld [vmem:[#allocation45_spill] sm:$0xff] }
 0x1d0   :  { %v12994_v6 = vadd.f32 %v3354_v29, %v3266_v32  ;;  %v11273_v32 = vld [vmem:[%s18628_s1 + $0x8c4] sm:$0xf] }
 0x1d3   :  { %v3178_v33 = vpop.f32.mrf.mxu2  ;;  %v3359_v52 = vpop.f32.mrf.mxu0 }
 0x1d4   :  { %v3267_v35 = vpop.f32.mrf.mxu3  ;;  %v3179_v21 = vadd.f32 %v3178_v33, %v3090_v15  ;;  %v3092_v46 = vpop.f32.mrf.mxu1  ;;  %v10229_v15 = vld [vmem:[%s18628_s1 + $0x8e0] sm:$0xf0] }
 0x1d5   :  { %v3093_v45 = vadd.f32 %v3092_v46, %v19315_v17  ;;  %v11337_v17 = vld [vmem:[%s18628_s1 + $0xac4] sm:$0xf]  ;;  %v10232_v22 = vor.u32 %v11273_v32, %v10229_v15  ;;  %v9339_v15 = vld [vmem:[%s18628_s1 + $0x1c8] sm:$0xf] }
 0x1d6   :  { %v3268_v20 = vadd.f32 %v3267_v35, %v3179_v21  ;;  %3674 = vmatmul.bf16.gmra.mxu0 %v19316_v61  ;;  %v10488_v33 = vor.u32 %v11337_v17, %v10485_v51 }
 0x1d7   :  { %3407 = vmatmul.bf16.gmra.mxu1 %v12996_v30  ;;  %3818 = vmatpush.bf16.msrb.mxu2 %v10232_v22  ;;  %v19322_v30 = vld [vmem:[#allocation51_spill] sm:$0xff] }
 0x1d8   :  { %3496 = vmatmul.bf16.gmra.mxu2 %v19317_v0  ;;  %v13012_v29 = vadd.f32 %v3356_v49, %v3268_v20  ;;  %3907 = vmatpush.bf16.msrb.mxu3 %v10488_v33  ;;  %v11209_v49 = vld [vmem:[%s18628_s1 + $0x6c4] sm:$0xf]  ;;  %v19323_v0 = vld [vmem:[#allocation15_spill] sm:$0xff] }
 0x1d9   :  { %3585 = vmatmul.bf16.gmra.mxu3 %v19318_v26  ;;  %v9973_v20 = vld [vmem:[%s18628_s1 + $0x6e0] sm:$0xf0] }
 0x1da   :  { %v9976_v32 = vor.u32 %v11209_v49, %v9973_v20  ;;  %v19321_v20 = vld [vmem:[#allocation53_spill] sm:$0xff] }
 0x1db   :  { %v3181_v35 = vpop.f32.mrf.mxu2  ;;  %v3361_v26 = vpop.f32.mrf.mxu0 }
 0x1dc   :  { %v3270_v21 = vpop.f32.mrf.mxu3  ;;  %v3182_v46 = vadd.f32 %v3181_v35, %v3093_v45  ;;  %v3094_v61 = vpop.f32.mrf.mxu1  ;;  %v11054_v45 = vld [vmem:[%s18628_s1 + $0x1e4] sm:$0xf0]  ;;  %3729 = vmatpush.bf16.msrb.mxu1 %v9976_v32 }
 0x1dd   :  { %v3095_v5 = vadd.f32 %v3094_v61, %v19319_v7  ;;  %v10941_v7 = vld [vmem:[%s18629_s0 + $0x164] sm:$0xf]  ;;  %v8909_v61 = vld [vmem:[%s18629_s0 + $0x178] sm:$0xf0]  ;;  %v9340_v17 = vor.u32 %v11054_v45, %v9339_v15 }
 0x1de   :  { %v3271_v18 = vadd.f32 %v3270_v21, %v3182_v46  ;;  %v13038_v35 = vor.u32 %v10941_v7, %v8909_v61  ;;  %v19325_v61 = vld [vmem:[#allocation56_spill] sm:$0xff] }
 0x1df   :  { %3992 = vmatpush.bf16.msrb.mxu0 %v9340_v17 }
 0x1e0   :  { %v13036_v22 = vadd.f32 %v3359_v52, %v3271_v18  ;;  %19320 = vst [vmem:[#allocation47_spill] sm:$0xff] %v13038_v35  ;;  %v19324_v18 = vld [vmem:[#allocation48_spill] sm:$0xff] }
 0x1e3   :  { %v3183_v51 = vpop.f32.mrf.mxu2  ;;  %v3364_v49 = vpop.f32.mrf.mxu0 }
 0x1e4   :  { %v3272_v33 = vpop.f32.mrf.mxu3  ;;  %v3184_v21 = vadd.f32 %v3183_v51, %v3095_v5  ;;  %v3097_v46 = vpop.f32.mrf.mxu1 }
 0x1e5   :  { %v3098_v14 = vadd.f32 %v3097_v46, %v19321_v20 }
 0x1e6   :  { %v3273_v23 = vadd.f32 %v3272_v33, %v3184_v21  ;;  %3679 = vmatmul.bf16.gmra.mxu0 %v19322_v30  ;;  %v10947_v33 = vld [vmem:[%s18629_s0 + $0x194] sm:$0xf]  ;;  %v8933_v21 = vld [vmem:[%s18629_s0 + $0x1a8] sm:$0xf0] }
 0x1e7   :  { %3412 = vmatmul.bf16.gmra.mxu1 %v13038_v35  ;;  %v13056_v20 = vor.u32 %v10947_v33, %v8933_v21  ;;  %v19331_v33 = vld [vmem:[#allocation54_spill] sm:$0xff] }
 0x1e8   :  { %3501 = vmatmul.bf16.gmra.mxu2 %v19323_v0  ;;  %v13045_v52 = vadd.f32 %v3361_v26, %v3273_v23  ;;  %v11329_v21 = vld [vmem:[%s18628_s1 + $0xa84] sm:$0xf] }
 0x1e9   :  { %3590 = vmatmul.bf16.gmra.mxu3 %v19324_v18  ;;  %19326 = vst [vmem:[#allocation50_spill] sm:$0xff] %v13056_v20  ;;  %v19327_v18 = vld [vmem:[#allocation59_spill] sm:$0xff] }
 0x1eb   :  { %v3186_v32 = vpop.f32.mrf.mxu2  ;;  %v3366_v5 = vpop.f32.mrf.mxu0 }
 0x1ec   :  { %v3275_v15 = vpop.f32.mrf.mxu3  ;;  %v3187_v45 = vadd.f32 %v3186_v32, %v3098_v14  ;;  %v3099_v7 = vpop.f32.mrf.mxu1 }
 0x1ed   :  { %v3100_v17 = vadd.f32 %v3099_v7, %v19325_v61 }
 0x1ee   :  { %v3276_v51 = vadd.f32 %v3275_v15, %v3187_v45  ;;  %v19329_v45 = vld [vmem:[#allocation57_spill] sm:$0xff] }
 0x1f0   :  { %v13054_v46 = vadd.f32 %v3364_v49, %v3276_v51  ;;  %v11467_v49 = vld [vmem:[%s18630_s2] sm:$0xff]  ;;  %v19330_v51 = vld [vmem:[#allocation4_spill] sm:$0xff] }
 0x1f1   :  { %v13066_v61 = vperm.slane %v11467_v49, 1 }
 0x1f3   :  { %v3188_v26 = vpop.f32.mrf.mxu2  ;;  %v3645_v30 = vpop.f32.mrf.mxu0 }
 0x1f4   :  { %v3277_v23 = vpop.f32.mrf.mxu3  ;;  %v3189_v14 = vadd.f32 %v3188_v26, %v3100_v17  ;;  %v3378_v32 = vpop.f32.mrf.mxu1  ;;  %v10197_v17 = vld [vmem:[%s18628_s1 + $0x8a0] sm:$0xf0] }
 0x1f5   :  { %v13059_v7 = vadd.f32 %v3378_v32, %v19327_v18  ;;  %v11265_v18 = vld [vmem:[%s18628_s1 + $0x884] sm:$0xf] }
 0x1f6   :  { %v3278_v15 = vadd.f32 %v3277_v23, %v3189_v14  ;;  %3684 = vmatmul.bf16.gmra.mxu0 %v19329_v45  ;;  %v10200_v23 = vor.u32 %v11265_v18, %v10197_v17  ;;  %v10453_v14 = vld [vmem:[%s18628_s1 + $0xaa0] sm:$0xf0] }
 0x1f7   :  { %19328 = vst [vmem:[#allocation53_spill] sm:$0xff] %v13059_v7  ;;  %3417 = vmatmul.bf16.gmra.mxu1 %v13056_v20  ;;  %v10456_v32 = vor.u32 %v11329_v21, %v10453_v14  ;;  %v9307_v21 = vld [vmem:[%s18628_s1 + $0x188] sm:$0xf] }
 0x1f8   :  { %3506 = vmatmul.bf16.gmra.mxu2 %v19330_v51  ;;  %v13079_v26 = vadd.f32 %v3366_v5, %v3278_v15  ;;  %v11201_v5 = vld [vmem:[%s18628_s1 + $0x684] sm:$0xf] }
 0x1f9   :  { %3595 = vmatmul.bf16.gmra.mxu3 %v19331_v33  ;;  %3819 = vmatpush.bf16.msrb.mxu2 %v10200_v23  ;;  %v9941_v15 = vld [vmem:[%s18628_s1 + $0x6a0] sm:$0xf0] }
 0x1fa   :  { %3908 = vmatpush.bf16.msrb.mxu3 %v10456_v32  ;;  %v9944_v17 = vor.u32 %v11201_v5, %v9941_v15 }
 0x1fb   :  { %v3467_v49 = vpop.f32.mrf.mxu2  ;;  %v3647_v51 = vpop.f32.mrf.mxu0 }
 0x1fc   :  { %v3556_v45 = vpop.f32.mrf.mxu3  ;;  %v3468_v33 = vadd.f32 %v3467_v49, %v13066_v61  ;;  %v3380_v20 = vpop.f32.mrf.mxu1  ;;  %3730 = vmatpush.bf16.msrb.mxu1 %v9944_v17 }
 0x1fd   :  { %v13086_v35 = vadd.f32 %v3380_v20, %v12476_v16  ;;  %v11046_v16 = vld [vmem:[%s18628_s1 + $0x1a4] sm:$0xf0]  ;;  %v10953_v20 = vld [vmem:[%s18629_s0 + $0x1c4] sm:$0xf] }
 0x1fe   :  { %v3557_v0 = vadd.f32 %v3556_v45, %v3468_v33  ;;  %v8957_v45 = vld [vmem:[%s18629_s0 + $0x1d8] sm:$0xf0]  ;;  %v9308_v33 = vor.u32 %v11046_v16, %v9307_v21 }
 0x1ff   :  { %19332 = vst [vmem:[#allocation56_spill] sm:$0xff] %v13086_v35  ;;  %v13110_v49 = vor.u32 %v10953_v20, %v8957_v45 }
 0x200   :  { %v13108_v23 = vadd.f32 %v3645_v30, %v3557_v0  ;;  %3993 = vmatpush.bf16.msrb.mxu0 %v9308_v33  ;;  %v19335_v30 = vld [vmem:[#allocation8_spill] sm:$0xff] }
 0x201   :  { %19333 = vst [vmem:[#allocation59_spill] sm:$0xff] %v13110_v49  ;;  %v19336_v33 = vld [vmem:[#allocation68_spill] sm:$0xff] }
 0x203   :  { %v3469_v14 = vpop.f32.mrf.mxu2  ;;  %v3650_v18 = vpop.f32.mrf.mxu0 }
 0x204   :  { %v3558_v32 = vpop.f32.mrf.mxu3  ;;  %v3470_v5 = vadd.f32 %v3469_v14, %v13066_v61  ;;  %v3383_v15 = vpop.f32.mrf.mxu1 }
 0x205   :  { %v13114_v7 = vadd.f32 %v3383_v15, %v12495_v43 }
 0x206   :  { %v3559_v35 = vadd.f32 %v3558_v32, %v3470_v5  ;;  %3689 = vmatmul.bf16.gmra.mxu0 %v12468_v56  ;;  %v10959_v5 = vld [vmem:[%s18629_s0 + $0x1f4] sm:$0xf] }
 0x207   :  { %19334 = vst [vmem:[#allocation99_spill] sm:$0xff] %v13114_v7  ;;  %3422 = vmatmul.bf16.gmra.mxu1 %v13110_v49 }
 0x208   :  { %3511 = vmatmul.bf16.gmra.mxu2 %v19335_v30  ;;  %v13120_v0 = vadd.f32 %v3647_v51, %v3559_v35  ;;  %v8981_v35 = vld [vmem:[%s18629_s0 + $0x208] sm:$0xf0] }
 0x209   :  { %3600 = vmatmul.bf16.gmra.mxu3 %v12464_v19  ;;  %v13136_v56 = vor.u32 %v10959_v5, %v8981_v35  ;;  %v19342_v19 = vld [vmem:[#allocation12_spill] sm:$0xff]  ;;  %v10165_v5 = vld [vmem:[%s18628_s1 + $0x860] sm:$0xf0] }
 0x20a   :  { %v11321_v35 = vld [vmem:[%s18628_s1 + $0xa44] sm:$0xf] }
 0x20b   :  { %v3472_v17 = vpop.f32.mrf.mxu2  ;;  %v3652_v45 = vpop.f32.mrf.mxu0  ;;  %19338 = vst [vmem:[#allocation100_spill] sm:$0xff] %v13136_v56 }
 0x20c   :  { %v3561_v21 = vpop.f32.mrf.mxu3  ;;  %v3473_v16 = vadd.f32 %v3472_v17, %v13066_v61  ;;  %v3385_v20 = vpop.f32.mrf.mxu1 }
 0x20d   :  { %v13124_v43 = vadd.f32 %v3385_v20, %v19336_v33  ;;  %v19339_v33 = vld [vmem:[#allocation69_spill] sm:$0xff] }
 0x20e   :  { %v3562_v14 = vadd.f32 %v3561_v21, %v3473_v16 }
 0x20f   :  { %19337 = vst [vmem:[#allocation68_spill] sm:$0xff] %v13124_v43  ;;  %v19341_v43 = vld [vmem:[#allocation66_spill] sm:$0xff] }
 0x210   :  { %v13134_v51 = vadd.f32 %v3650_v18, %v3562_v14  ;;  %v19343_v18 = vld [vmem:[#allocation64_spill] sm:$0xff]  ;;  %v11257_v14 = vld [vmem:[%s18628_s1 + $0x844] sm:$0xf] }
 0x213   :  { %v3474_v15 = vpop.f32.mrf.mxu2  ;;  %v3655_v16 = vpop.f32.mrf.mxu0 }
 0x214   :  { %v3563_v17 = vpop.f32.mrf.mxu3  ;;  %v3475_v20 = vadd.f32 %v3474_v15, %v13066_v61  ;;  %v3388_v21 = vpop.f32.mrf.mxu1 }
 0x215   :  { %v13140_v32 = vadd.f32 %v3388_v21, %v19339_v33 }
 0x216   :  { %v3564_v7 = vadd.f32 %v3563_v17, %v3475_v20  ;;  %3694 = vmatmul.bf16.gmra.mxu0 %v19341_v43  ;;  %v10168_v17 = vor.u32 %v11257_v14, %v10165_v5  ;;  %v10421_v20 = vld [vmem:[%s18628_s1 + $0xa60] sm:$0xf0] }
 0x217   :  { %19340 = vst [vmem:[#allocation69_spill] sm:$0xff] %v13140_v32  ;;  %3427 = vmatmul.bf16.gmra.mxu1 %v13136_v56  ;;  %v10424_v21 = vor.u32 %v11321_v35, %v10421_v20  ;;  %v9275_v35 = vld [vmem:[%s18628_s1 + $0x148] sm:$0xf] }
 0x218   :  { %3516 = vmatmul.bf16.gmra.mxu2 %v19342_v19  ;;  %v13155_v15 = vadd.f32 %v3652_v45, %v3564_v7  ;;  %v11193_v7 = vld [vmem:[%s18628_s1 + $0x644] sm:$0xf] }
 0x219   :  { %3605 = vmatmul.bf16.gmra.mxu3 %v19343_v18  ;;  %3820 = vmatpush.bf16.msrb.mxu2 %v10168_v17  ;;  %v9909_v45 = vld [vmem:[%s18628_s1 + $0x660] sm:$0xf0] }
 0x21a   :  { %3909 = vmatpush.bf16.msrb.mxu3 %v10424_v21  ;;  %v9912_v5 = vor.u32 %v11193_v7, %v9909_v45 }
 0x21b   :  { %v3477_v33 = vpop.f32.mrf.mxu2  ;;  %v3657_v19 = vpop.f32.mrf.mxu0 }
 0x21c   :  { %v3566_v43 = vpop.f32.mrf.mxu3  ;;  %v3478_v18 = vadd.f32 %v3477_v33, %v13066_v61  ;;  %v3390_v56 = vpop.f32.mrf.mxu1  ;;  %3731 = vmatpush.bf16.msrb.mxu1 %v9912_v5 }
 0x21d   :  { %v13162_v49 = vadd.f32 %v3390_v56, %v12588_v11  ;;  %v11038_v56 = vld [vmem:[%s18628_s1 + $0x164] sm:$0xf0]  ;;  %v10965_v11 = vld [vmem:[%s18629_s0 + $0x224] sm:$0xf] }
 0x21e   :  { %v3567_v30 = vadd.f32 %v3566_v43, %v3478_v18  ;;  %v9005_v43 = vld [vmem:[%s18629_s0 + $0x238] sm:$0xf0]  ;;  %v9276_v18 = vor.u32 %v11038_v56, %v9275_v35 }
 0x21f   :  { %19344 = vst [vmem:[#allocation101_spill] sm:$0xff] %v13162_v49  ;;  %v13186_v33 = vor.u32 %v10965_v11, %v9005_v43 }
 0x220   :  { %v13184_v17 = vadd.f32 %v3655_v16, %v3567_v30  ;;  %3994 = vmatpush.bf16.msrb.mxu0 %v9276_v18  ;;  %v19347_v30 = vld [vmem:[#allocation16_spill] sm:$0xff] }
 0x221   :  { %19345 = vst [vmem:[#allocation102_spill] sm:$0xff] %v13186_v33 }
 0x223   :  { %v3479_v20 = vpop.f32.mrf.mxu2  ;;  %v3660_v14 = vpop.f32.mrf.mxu0 }
 0x224   :  { %v3568_v21 = vpop.f32.mrf.mxu3  ;;  %v3480_v7 = vadd.f32 %v3479_v20, %v13066_v61  ;;  %v3393_v45 = vpop.f32.mrf.mxu1 }
 0x225   :  { %v13190_v32 = vadd.f32 %v3393_v45, %v12607_v59 }
 0x226   :  { %v3569_v49 = vadd.f32 %v3568_v21, %v3480_v7  ;;  %3699 = vmatmul.bf16.gmra.mxu0 %v12580_v58  ;;  %v10971_v21 = vld [vmem:[%s18629_s0 + $0x254] sm:$0xf]  ;;  %v19353_v58 = vld [vmem:[#allocation5_spill] sm:$0xff] }
 0x227   :  { %19346 = vst [vmem:[#allocation103_spill] sm:$0xff] %v13190_v32  ;;  %3432 = vmatmul.bf16.gmra.mxu1 %v13186_v33 }
 0x228   :  { %3521 = vmatmul.bf16.gmra.mxu2 %v19347_v30  ;;  %v13196_v16 = vadd.f32 %v3657_v19, %v3569_v49  ;;  %v9029_v19 = vld [vmem:[%s18629_s0 + $0x268] sm:$0xf0] }
 0x229   :  { %3610 = vmatmul.bf16.gmra.mxu3 %v12576_v40 }
 0x22b   :  { %v3482_v5 = vpop.f32.mrf.mxu2  ;;  %v3662_v43 = vpop.f32.mrf.mxu0 }
 0x22c   :  { %v3571_v35 = vpop.f32.mrf.mxu3  ;;  %v3483_v56 = vadd.f32 %v3482_v5, %v13066_v61  ;;  %v3395_v11 = vpop.f32.mrf.mxu1  ;;  %v13212_v5 = vor.u32 %v10971_v21, %v9029_v19  ;;  %v10133_v21 = vld [vmem:[%s18628_s1 + $0x820] sm:$0xf0] }
 0x22d   :  { %v13200_v59 = vadd.f32 %v3395_v11, %v12640_v31  ;;  %v19350_v11 = vld [vmem:[#allocation78_spill] sm:$0xff] }
 0x22e   :  { %v3572_v18 = vadd.f32 %v3571_v35, %v3483_v56  ;;  %19349 = vst [vmem:[#allocation105_spill] sm:$0xff] %v13212_v5  ;;  %v11313_v19 = vld [vmem:[%s18628_s1 + $0xa04] sm:$0xf] }
 0x22f   :  { %19348 = vst [vmem:[#allocation104_spill] sm:$0xff] %v13200_v59  ;;  %v19352_v59 = vld [vmem:[#allocation76_spill] sm:$0xff] }
 0x230   :  { %v13210_v49 = vadd.f32 %v3660_v14, %v3572_v18  ;;  %v19354_v14 = vld [vmem:[#allocation74_spill] sm:$0xff] }
 0x231   :  { %v11249_v18 = vld [vmem:[%s18628_s1 + $0x804] sm:$0xf] }
 0x233   :  { %v3484_v7 = vpop.f32.mrf.mxu2  ;;  %v3665_v56 = vpop.f32.mrf.mxu0 }
 0x234   :  { %v3573_v45 = vpop.f32.mrf.mxu3  ;;  %v3485_v31 = vadd.f32 %v3484_v7, %v13066_v61  ;;  %v3398_v35 = vpop.f32.mrf.mxu1 }
 0x235   :  { %v13216_v20 = vadd.f32 %v3398_v35, %v19350_v11 }
 0x236   :  { %v3574_v32 = vadd.f32 %v3573_v45, %v3485_v31  ;;  %3704 = vmatmul.bf16.gmra.mxu0 %v19352_v59  ;;  %v10136_v45 = vor.u32 %v11249_v18, %v10133_v21  ;;  %v10389_v31 = vld [vmem:[%s18628_s1 + $0xa20] sm:$0xf0] }
 0x237   :  { %19351 = vst [vmem:[#allocation78_spill] sm:$0xff] %v13216_v20  ;;  %3437 = vmatmul.bf16.gmra.mxu1 %v13212_v5  ;;  %v10392_v35 = vor.u32 %v11313_v19, %v10389_v31  ;;  %v9243_v19 = vld [vmem:[%s18628_s1 + $0x108] sm:$0xf]  ;;  %v19359_v20 = vld [vmem:[#allocation84_spill] sm:$0xff] }
 0x238   :  { %3526 = vmatmul.bf16.gmra.mxu2 %v19353_v58  ;;  %v13231_v7 = vadd.f32 %v3662_v43, %v3574_v32  ;;  %v19356_v58 = vld [vmem:[#allocation83_spill] sm:$0xff]  ;;  %v11185_v32 = vld [vmem:[%s18628_s1 + $0x604] sm:$0xf] }
 0x239   :  { %3615 = vmatmul.bf16.gmra.mxu3 %v19354_v14  ;;  %3821 = vmatpush.bf16.msrb.mxu2 %v10136_v45  ;;  %v9877_v43 = vld [vmem:[%s18628_s1 + $0x620] sm:$0xf0] }
 0x23a   :  { %19355 = vst [vmem:[#allocation106_spill] sm:$0xff] %v13231_v7  ;;  %3910 = vmatpush.bf16.msrb.mxu3 %v10392_v35  ;;  %v9880_v21 = vor.u32 %v11185_v32, %v9877_v43 }
 0x23b   :  { %v3487_v11 = vpop.f32.mrf.mxu2  ;;  %v3667_v5 = vpop.f32.mrf.mxu0 }
 0x23c   :  { %v3576_v59 = vpop.f32.mrf.mxu3  ;;  %v3488_v14 = vadd.f32 %v3487_v11, %v13066_v61  ;;  %v3400_v40 = vpop.f32.mrf.mxu1  ;;  %3732 = vmatpush.bf16.msrb.mxu1 %v9880_v21 }
 0x23d   :  { %v13238_v33 = vadd.f32 %v3400_v40, %v19356_v58  ;;  %v11030_v58 = vld [vmem:[%s18628_s1 + $0x124] sm:$0xf0]  ;;  %v10977_v40 = vld [vmem:[%s18629_s0 + $0x284] sm:$0xf] }
 0x23e   :  { %v3577_v30 = vadd.f32 %v3576_v59, %v3488_v14  ;;  %v9053_v59 = vld [vmem:[%s18629_s0 + $0x298] sm:$0xf0]  ;;  %v9244_v14 = vor.u32 %v11030_v58, %v9243_v19  ;;  %v9211_v19 = vld [vmem:[%s18628_s1 + $0xc8] sm:$0xf] }
 0x23f   :  { %19357 = vst [vmem:[#allocation83_spill] sm:$0xff] %v13238_v33  ;;  %v13262_v11 = vor.u32 %v10977_v40, %v9053_v59  ;;  %v19362_v58 = vld [vmem:[#allocation9_spill] sm:$0xff]  ;;  %v19363_v40 = vld [vmem:[#allocation79_spill] sm:$0xff] }
 0x240   :  { %v13260_v45 = vadd.f32 %v3665_v56, %v3577_v30  ;;  %3995 = vmatpush.bf16.msrb.mxu0 %v9244_v14  ;;  %v11022_v30 = vld [vmem:[%s18628_s1 + $0xe4] sm:$0xf0]  ;;  %v19361_v56 = vld [vmem:[#allocation81_spill] sm:$0xff] }
 0x241   :  { %19358 = vst [vmem:[#allocation107_spill] sm:$0xff] %v13262_v11  ;;  %v9212_v21 = vor.u32 %v11022_v30, %v9211_v19  ;;  %v9179_v59 = vld [vmem:[%s18628_s1 + $0x88] sm:$0xf] }
 0x242   :  { %v11014_v14 = vld [vmem:[%s18628_s1 + $0xa4] sm:$0xf0] }
 0x243   :  { %v3489_v31 = vpop.f32.mrf.mxu2  ;;  %v3670_v18 = vpop.f32.mrf.mxu0 }
 0x244   :  { %v3578_v35 = vpop.f32.mrf.mxu3  ;;  %v3490_v32 = vadd.f32 %v3489_v31, %v13066_v61  ;;  %v3403_v43 = vpop.f32.mrf.mxu1  ;;  %3996 = vmatpush.bf16.msrb.mxu0 %v9212_v21  ;;  %v11006_v21 = vld [vmem:[%s18628_s1 + $0x64] sm:$0xf0] }
 0x245   :  { %v13266_v33 = vadd.f32 %v3403_v43, %v19359_v20 }
 0x246   :  { %v3579_v7 = vadd.f32 %v3578_v35, %v3490_v32  ;;  %3709 = vmatmul.bf16.gmra.mxu0 %v19361_v56  ;;  %v9180_v32 = vor.u32 %v11014_v14, %v9179_v59 }
 0x247   :  { %19360 = vst [vmem:[#allocation84_spill] sm:$0xff] %v13266_v33  ;;  %3442 = vmatmul.bf16.gmra.mxu1 %v13262_v11 }
 0x248   :  { %3531 = vmatmul.bf16.gmra.mxu2 %v19362_v58  ;;  %v13278_v20 = vadd.f32 %v3667_v5, %v3579_v7  ;;  %3997 = vmatpush.bf16.msrb.mxu0 %v9180_v32  ;;  %v9147_v7 = vld [vmem:[%s18628_s1 + $0x48] sm:$0xf] }
 0x249   :  { %3620 = vmatmul.bf16.gmra.mxu3 %v19363_v40  ;;  %v9148_v14 = vor.u32 %v11006_v21, %v9147_v7  ;;  %v9115_v32 = vld [vmem:[%s18628_s1 + $0x8] sm:$0xf] }
 0x24b   :  { %v3492_v31 = vpop.f32.mrf.mxu2  ;;  %v3672_v30 = vpop.f32.mrf.mxu0 }
 0x24c   :  { %v3581_v35 = vpop.f32.mrf.mxu3  ;;  %v3493_v43 = vadd.f32 %v3492_v31, %v13066_v61  ;;  %v3405_v19 = vpop.f32.mrf.mxu1  ;;  %v10983_v31 = vld [vmem:[%s18629_s0 + $0x2b4] sm:$0xf]  ;;  %3998 = vmatpush.bf16.msrb.mxu0 %v9148_v14  ;;  %v19367_v14 = vld [vmem:[#allocation13_spill] sm:$0xff] }
 0x24d   :  { %v13288_v56 = vadd.f32 %v3405_v19, %v12772_v37  ;;  %v9077_v37 = vld [vmem:[%s18629_s0 + $0x2c8] sm:$0xf0] }
 0x24e   :  { %v3582_v5 = vadd.f32 %v3581_v35, %v3493_v43  ;;  %v10998_v43 = vld [vmem:[%s18628_s1 + $0x24] sm:$0xf0]  ;;  %v13312_v21 = vor.u32 %v10983_v31, %v9077_v37 }
 0x24f   :  { %19364 = vst [vmem:[#allocation108_spill] sm:$0xff] %v13288_v56  ;;  %v9116_v59 = vor.u32 %v10998_v43, %v9115_v32  ;;  %v9851_v31 = vld [vmem:[%s18628_s1 + $0x5c8] sm:$0xf] }
 0x250   :  { %v13304_v35 = vadd.f32 %v3670_v18, %v3582_v5  ;;  %19365 = vst [vmem:[#allocation109_spill] sm:$0xff] %v13312_v21  ;;  %v11182_v37 = vld [vmem:[%s18628_s1 + $0x5e4] sm:$0xf0] }
 0x251   :  { %3999 = vmatpush.bf16.msrb.mxu0 %v9116_v59  ;;  %v11246_v59 = vld [vmem:[%s18628_s1 + $0x7e4] sm:$0xf0] }
 0x253   :  { %v3494_v19 = vpop.f32.mrf.mxu2  ;;  %v3675_v40 = vpop.f32.mrf.mxu0 }
 0x254   :  { %v3583_v7 = vpop.f32.mrf.mxu3  ;;  %v3495_v33 = vadd.f32 %v3494_v19, %v13066_v61  ;;  %v3408_v56 = vpop.f32.mrf.mxu1 }
 0x255   :  { %v13316_v18 = vadd.f32 %v3408_v56, %v12799_v2  ;;  %v10107_v2 = vld [vmem:[%s18628_s1 + $0x7c8] sm:$0xf]  ;;  %v9852_v56 = vor.u32 %v11182_v37, %v9851_v31  ;;  %v19371_v31 = vld [vmem:[#allocation17_spill] sm:$0xff] }
 0x256   :  { %v3584_v5 = vadd.f32 %v3583_v7, %v3495_v33  ;;  %3714 = vmatmul.bf16.gmra.mxu0 %v12754_v44  ;;  %v10108_v32 = vor.u32 %v11246_v59, %v10107_v2  ;;  %v10989_v2 = vld [vmem:[%s18629_s0 + $0x2e4] sm:$0xf] }
 0x257   :  { %19366 = vst [vmem:[#allocation110_spill] sm:$0xff] %v13316_v18  ;;  %3447 = vmatmul.bf16.gmra.mxu1 %v13312_v21  ;;  %4170 = vmatpush.bf16.msra.mxu2 %v9852_v56 }
 0x258   :  { %3536 = vmatmul.bf16.gmra.mxu2 %v19367_v14  ;;  %v13331_v33 = vadd.f32 %v3672_v30, %v3584_v5  ;;  %4259 = vmatpush.bf16.msra.mxu3 %v10108_v32  ;;  %v9595_v30 = vld [vmem:[%s18628_s1 + $0x3c8] sm:$0xf] }
 0x259   :  { %3625 = vmatmul.bf16.gmra.mxu3 %v12750_v24  ;;  %v11118_v5 = vld [vmem:[%s18628_s1 + $0x3e4] sm:$0xf0] }
 0x25a   :  { %v9596_v37 = vor.u32 %v11118_v5, %v9595_v30 }
 0x25b   :  { %v3497_v43 = vpop.f32.mrf.mxu2  ;;  %v3677_v24 = vpop.f32.mrf.mxu0 }
 0x25c   :  { %v3586_v19 = vpop.f32.mrf.mxu3  ;;  %v3498_v7 = vadd.f32 %v3497_v43, %v13066_v61  ;;  %v3410_v44 = vpop.f32.mrf.mxu1  ;;  %4081 = vmatpush.bf16.msra.mxu1 %v9596_v37 }
 0x25d   :  { %v13338_v21 = vadd.f32 %v3410_v44, %v12823_v12  ;;  %v9101_v44 = vld [vmem:[%s18629_s0 + $0x2f8] sm:$0xf0] }
 0x25e   :  { %v3587_v14 = vadd.f32 %v3586_v19, %v3498_v7  ;;  %v13356_v32 = vor.u32 %v10989_v2, %v9101_v44 }
 0x25f   :  { %19368 = vst [vmem:[#allocation111_spill] sm:$0xff] %v13338_v21 }
 0x260   :  { %v13354_v12 = vadd.f32 %v3675_v40, %v3587_v14  ;;  %19369 = vst [vmem:[#allocation112_spill] sm:$0xff] %v13356_v32 }
 0x263   :  { %v3499_v56 = vpop.f32.mrf.mxu2  ;;  %v3680_v7 = vpop.f32.mrf.mxu0 }
 0x264   :  { %v3588_v59 = vpop.f32.mrf.mxu3  ;;  %v3500_v43 = vadd.f32 %v3499_v56, %v13066_v61  ;;  %v3413_v19 = vpop.f32.mrf.mxu1 }
 0x265   :  { %v13360_v30 = vadd.f32 %v3413_v19, %v12832_v10 }
 0x266   :  { %v3589_v5 = vadd.f32 %v3588_v59, %v3500_v43  ;;  %3719 = vmatmul.bf16.gmra.mxu0 %v12814_v60 }
 0x267   :  { %19370 = vst [vmem:[#allocation113_spill] sm:$0xff] %v13360_v30  ;;  %3452 = vmatmul.bf16.gmra.mxu1 %v13356_v32  ;;  %v19374_v32 = vld [vmem:[#allocation21_spill] sm:$0xff] }
 0x268   :  { %3541 = vmatmul.bf16.gmra.mxu2 %v19371_v31  ;;  %v13366_v40 = vadd.f32 %v3677_v24, %v3589_v5 }
 0x269   :  { %3630 = vmatmul.bf16.gmra.mxu3 %v12810_v34 }
 0x26b   :  { %v3502_v14 = vpop.f32.mrf.mxu2  ;;  %v3682_v56 = vpop.f32.mrf.mxu0 }
 0x26c   :  { %v3591_v37 = vpop.f32.mrf.mxu3  ;;  %v3503_v2 = vadd.f32 %v3502_v14, %v13066_v61  ;;  %v3415_v44 = vpop.f32.mrf.mxu1 }
 0x26d   :  { %v13370_v10 = vadd.f32 %v3415_v44, %v12850_v48  ;;  %v19375_v48 = vld [vmem:[#allocation19_spill] sm:$0xff] }
 0x26e   :  { %v3592_v59 = vadd.f32 %v3591_v37, %v3503_v2  ;;  %v11238_v2 = vld [vmem:[%s18628_s1 + $0x7a4] sm:$0xf0] }
 0x26f   :  { %19372 = vst [vmem:[#allocation114_spill] sm:$0xff] %v13370_v10 }
 0x270   :  { %v13374_v19 = vadd.f32 %v3680_v7, %v3592_v59  ;;  %v9819_v7 = vld [vmem:[%s18628_s1 + $0x588] sm:$0xf] }
 0x273   :  { %v3504_v18 = vpop.f32.mrf.mxu2  ;;  %v3685_v60 = vpop.f32.mrf.mxu0 }
 0x274   :  { %v3593_v21 = vpop.f32.mrf.mxu3  ;;  %v3505_v24 = vadd.f32 %v3504_v18, %v13066_v61  ;;  %v3418_v5 = vpop.f32.mrf.mxu1  ;;  %v11174_v18 = vld [vmem:[%s18628_s1 + $0x5a4] sm:$0xf0] }
 0x275   :  { %v13378_v34 = vadd.f32 %v3418_v5, %v12868_v4  ;;  %v10075_v4 = vld [vmem:[%s18628_s1 + $0x788] sm:$0xf]  ;;  %v9820_v37 = vor.u32 %v11174_v18, %v9819_v7 }
 0x276   :  { %v3594_v14 = vadd.f32 %v3593_v21, %v3505_v24  ;;  %4000 = vmatmul.bf16.vlgmr.msrb.gmra.mxu0 %v11604_v41  ;;  %v10076_v44 = vor.u32 %v11238_v2, %v10075_v4 }
 0x277   :  { %19373 = vst [vmem:[#allocation115_spill] sm:$0xff] %v13378_v34  ;;  %3733 = vmatmul.bf16.vlgmr.msrb.gmra.mxu1 %v19374_v32  ;;  %4171 = vmatpush.bf16.msra.mxu2 %v9820_v37 }
 0x278   :  { %3822 = vmatmul.bf16.vlgmr.msrb.gmra.mxu2 %v19375_v48  ;;  %v13393_v21 = vadd.f32 %v3682_v56, %v3594_v14  ;;  %4260 = vmatpush.bf16.msra.mxu3 %v10076_v44  ;;  %v9563_v56 = vld [vmem:[%s18628_s1 + $0x388] sm:$0xf] }
 0x279   :  { %3911 = vmatmul.bf16.vlgmr.msrb.gmra.mxu3 %v12834_v25  ;;  %v11110_v14 = vld [vmem:[%s18628_s1 + $0x3a4] sm:$0xf0] }
 0x27a   :  { %v9564_v18 = vor.u32 %v11110_v14, %v9563_v56  ;;  %v19379_v25 = vld [vmem:[#allocation23_spill] sm:$0xff] }
 0x27b   :  { %v3507_v59 = vpop.f32.mrf.mxu2  ;;  %v3687_v30 = vpop.f32.mrf.mxu0 }
 0x27c   :  { %v3596_v24 = vpop.f32.mrf.mxu3  ;;  %v3508_v5 = vadd.f32 %v3507_v59, %v13066_v61  ;;  %v3420_v43 = vpop.f32.mrf.mxu1  ;;  %4082 = vmatpush.bf16.msra.mxu1 %v9564_v18 }
 0x27d   :  { %v13400_v10 = vadd.f32 %v3420_v43, %v12877_v1 }
 0x27e   :  { %v3597_v41 = vadd.f32 %v3596_v24, %v3508_v5  ;;  %v19378_v5 = vld [vmem:[#allocation25_spill] sm:$0xff] }
 0x27f   :  { %19376 = vst [vmem:[#allocation116_spill] sm:$0xff] %v13400_v10 }
 0x280   :  { %v13410_v4 = vadd.f32 %v3685_v60, %v3597_v41 }
 0x283   :  { %v3509_v37 = vpop.f32.mrf.mxu2  ;;  %v3690_v44 = vpop.f32.mrf.mxu0 }
 0x284   :  { %v3598_v2 = vpop.f32.mrf.mxu3  ;;  %v3510_v1 = vadd.f32 %v3509_v37, %v13066_v61  ;;  %v3423_v43 = vpop.f32.mrf.mxu1 }
 0x285   :  { %v13414_v59 = vadd.f32 %v3423_v43, %v12886_v47 }
 0x286   :  { %v3599_v24 = vadd.f32 %v3598_v2, %v3510_v1  ;;  %4005 = vmatmul.bf16.gmra.mxu0 %v11736_v36 }
 0x287   :  { %19377 = vst [vmem:[#allocation117_spill] sm:$0xff] %v13414_v59  ;;  %3738 = vmatmul.bf16.gmra.mxu1 %v19378_v5 }
 0x288   :  { %3827 = vmatmul.bf16.gmra.mxu2 %v19379_v25  ;;  %v13420_v41 = vadd.f32 %v3687_v30, %v3599_v24 }
 0x289   :  { %3916 = vmatmul.bf16.gmra.mxu3 %v12870_v62  ;;  %v19382_v62 = vld [vmem:[#allocation29_spill] sm:$0xff] }
 0x28b   :  { %v3512_v60 = vpop.f32.mrf.mxu2  ;;  %v3692_v37 = vpop.f32.mrf.mxu0 }
 0x28c   :  { %v3601_v56 = vpop.f32.mrf.mxu3  ;;  %v3513_v14 = vadd.f32 %v3512_v60, %v13066_v61  ;;  %v3425_v18 = vpop.f32.mrf.mxu1 }
 0x28d   :  { %v13424_v47 = vadd.f32 %v3425_v18, %v12904_v3  ;;  %v19383_v3 = vld [vmem:[#allocation27_spill] sm:$0xff] }
 0x28e   :  { %v3602_v2 = vadd.f32 %v3601_v56, %v3513_v14  ;;  %v11230_v14 = vld [vmem:[%s18628_s1 + $0x764] sm:$0xf0] }
 0x28f   :  { %19380 = vst [vmem:[#allocation118_spill] sm:$0xff] %v13424_v47 }
 0x290   :  { %v13428_v43 = vadd.f32 %v3690_v44, %v3602_v2  ;;  %v9787_v44 = vld [vmem:[%s18628_s1 + $0x548] sm:$0xf] }
 0x293   :  { %v3514_v7 = vpop.f32.mrf.mxu2  ;;  %v3695_v10 = vpop.f32.mrf.mxu0 }
 0x294   :  { %v3603_v34 = vpop.f32.mrf.mxu3  ;;  %v3515_v30 = vadd.f32 %v3514_v7, %v13066_v61  ;;  %v3428_v24 = vpop.f32.mrf.mxu1  ;;  %v11166_v7 = vld [vmem:[%s18628_s1 + $0x564] sm:$0xf0] }
 0x295   :  { %v13432_v36 = vadd.f32 %v3428_v24, %v12922_v13  ;;  %v9788_v56 = vor.u32 %v11166_v7, %v9787_v44 }
 0x296   :  { %v3604_v60 = vadd.f32 %v3603_v34, %v3515_v30  ;;  %4010 = vmatmul.bf16.gmra.mxu0 %v11847_v27  ;;  %v10043_v34 = vld [vmem:[%s18628_s1 + $0x748] sm:$0xf] }
 0x297   :  { %19381 = vst [vmem:[#allocation119_spill] sm:$0xff] %v13432_v36  ;;  %3743 = vmatmul.bf16.gmra.mxu1 %v19382_v62  ;;  %v10044_v18 = vor.u32 %v11230_v14, %v10043_v34  ;;  %4172 = vmatpush.bf16.msra.mxu2 %v9788_v56 }
 0x298   :  { %3832 = vmatmul.bf16.gmra.mxu2 %v19383_v3  ;;  %v13447_v13 = vadd.f32 %v3692_v37, %v3604_v60  ;;  %v9531_v37 = vld [vmem:[%s18628_s1 + $0x348] sm:$0xf] }
 0x299   :  { %3921 = vmatmul.bf16.gmra.mxu3 %v12888_v53  ;;  %v11102_v60 = vld [vmem:[%s18628_s1 + $0x364] sm:$0xf0] }
 0x29a   :  { %4261 = vmatpush.bf16.msra.mxu3 %v10044_v18  ;;  %v9532_v7 = vor.u32 %v11102_v60, %v9531_v37  ;;  %v19387_v53 = vld [vmem:[#allocation31_spill] sm:$0xff] }
 0x29b   :  { %v3517_v2 = vpop.f32.mrf.mxu2  ;;  %v3697_v59 = vpop.f32.mrf.mxu0 }
 0x29c   :  { %v3606_v30 = vpop.f32.mrf.mxu3  ;;  %v3518_v24 = vadd.f32 %v3517_v2, %v13066_v61  ;;  %v3430_v1 = vpop.f32.mrf.mxu1  ;;  %4083 = vmatpush.bf16.msra.mxu1 %v9532_v7 }
 0x29d   :  { %v13454_v47 = vadd.f32 %v3430_v1, %v12931_v50 }
 0x29e   :  { %v3607_v27 = vadd.f32 %v3606_v30, %v3518_v24  ;;  %v19386_v24 = vld [vmem:[#allocation33_spill] sm:$0xff] }
 0x29f   :  { %19384 = vst [vmem:[#allocation120_spill] sm:$0xff] %v13454_v47 }
 0x2a0   :  { %v13464_v34 = vadd.f32 %v3695_v10, %v3607_v27 }
 0x2a3   :  { %v3519_v56 = vpop.f32.mrf.mxu2  ;;  %v3700_v18 = vpop.f32.mrf.mxu0 }
 0x2a4   :  { %v3608_v14 = vpop.f32.mrf.mxu3  ;;  %v3520_v50 = vadd.f32 %v3519_v56, %v13066_v61  ;;  %v3433_v1 = vpop.f32.mrf.mxu1 }
 0x2a5   :  { %v13468_v2 = vadd.f32 %v3433_v1, %v12940_v55 }
 0x2a6   :  { %v3609_v30 = vadd.f32 %v3608_v14, %v3520_v50  ;;  %4015 = vmatmul.bf16.gmra.mxu0 %v11901_v57 }
 0x2a7   :  { %19385 = vst [vmem:[#allocation121_spill] sm:$0xff] %v13468_v2  ;;  %3748 = vmatmul.bf16.gmra.mxu1 %v19386_v24 }
 0x2a8   :  { %3837 = vmatmul.bf16.gmra.mxu2 %v19387_v53  ;;  %v13474_v27 = vadd.f32 %v3697_v59, %v3609_v30 }
 0x2a9   :  { %3926 = vmatmul.bf16.gmra.mxu3 %v12924_v38  ;;  %v19390_v38 = vld [vmem:[#allocation37_spill] sm:$0xff] }
 0x2ab   :  { %v3522_v10 = vpop.f32.mrf.mxu2  ;;  %v3702_v56 = vpop.f32.mrf.mxu0 }
 0x2ac   :  { %v3611_v37 = vpop.f32.mrf.mxu3  ;;  %v3523_v60 = vadd.f32 %v3522_v10, %v13066_v61  ;;  %v3435_v7 = vpop.f32.mrf.mxu1 }
 0x2ad   :  { %v13478_v55 = vadd.f32 %v3435_v7, %v12958_v8  ;;  %v19391_v8 = vld [vmem:[#allocation35_spill] sm:$0xff] }
 0x2ae   :  { %v3612_v14 = vadd.f32 %v3611_v37, %v3523_v60  ;;  %v11222_v60 = vld [vmem:[%s18628_s1 + $0x724] sm:$0xf0] }
 0x2af   :  { %19388 = vst [vmem:[#allocation122_spill] sm:$0xff] %v13478_v55 }
 0x2b0   :  { %v13482_v1 = vadd.f32 %v3700_v18, %v3612_v14  ;;  %v9755_v18 = vld [vmem:[%s18628_s1 + $0x508] sm:$0xf] }
 0x2b3   :  { %v3524_v44 = vpop.f32.mrf.mxu2  ;;  %v3705_v47 = vpop.f32.mrf.mxu0 }
 0x2b4   :  { %v3613_v36 = vpop.f32.mrf.mxu3  ;;  %v3525_v59 = vadd.f32 %v3524_v44, %v13066_v61  ;;  %v3438_v30 = vpop.f32.mrf.mxu1  ;;  %v11158_v44 = vld [vmem:[%s18628_s1 + $0x524] sm:$0xf0] }
 0x2b5   :  { %v13486_v57 = vadd.f32 %v3438_v30, %v12976_v9  ;;  %v9756_v37 = vor.u32 %v11158_v44, %v9755_v18 }
 0x2b6   :  { %v3614_v10 = vadd.f32 %v3613_v36, %v3525_v59  ;;  %4020 = vmatmul.bf16.gmra.mxu0 %v11606_v42  ;;  %v10011_v36 = vld [vmem:[%s18628_s1 + $0x708] sm:$0xf] }
 0x2b7   :  { %19389 = vst [vmem:[#allocation123_spill] sm:$0xff] %v13486_v57  ;;  %3753 = vmatmul.bf16.gmra.mxu1 %v19390_v38  ;;  %v10012_v7 = vor.u32 %v11222_v60, %v10011_v36  ;;  %4173 = vmatpush.bf16.msra.mxu2 %v9756_v37 }
 0x2b8   :  { %3842 = vmatmul.bf16.gmra.mxu2 %v19391_v8  ;;  %v13501_v9 = vadd.f32 %v3702_v56, %v3614_v10  ;;  %v9499_v56 = vld [vmem:[%s18628_s1 + $0x308] sm:$0xf] }
 0x2b9   :  { %3931 = vmatmul.bf16.gmra.mxu3 %v12942_v63  ;;  %v11094_v10 = vld [vmem:[%s18628_s1 + $0x324] sm:$0xf0] }
 0x2ba   :  { %4262 = vmatpush.bf16.msra.mxu3 %v10012_v7  ;;  %v9500_v44 = vor.u32 %v11094_v10, %v9499_v56  ;;  %v19395_v63 = vld [vmem:[#allocation39_spill] sm:$0xff] }
 0x2bb   :  { %v3527_v14 = vpop.f32.mrf.mxu2  ;;  %v3707_v2 = vpop.f32.mrf.mxu0 }
 0x2bc   :  { %v3616_v59 = vpop.f32.mrf.mxu3  ;;  %v3528_v30 = vadd.f32 %v3527_v14, %v13066_v61  ;;  %v3440_v50 = vpop.f32.mrf.mxu1  ;;  %4084 = vmatpush.bf16.msra.mxu1 %v9500_v44 }
 0x2bd   :  { %v13508_v55 = vadd.f32 %v3440_v50, %v12985_v39 }
 0x2be   :  { %v3617_v42 = vadd.f32 %v3616_v59, %v3528_v30  ;;  %v19394_v30 = vld [vmem:[#allocation41_spill] sm:$0xff] }
 0x2bf   :  { %19392 = vst [vmem:[#allocation124_spill] sm:$0xff] %v13508_v55 }
 0x2c0   :  { %v13518_v36 = vadd.f32 %v3705_v47, %v3617_v42 }
 0x2c3   :  { %v3529_v37 = vpop.f32.mrf.mxu2  ;;  %v3710_v7 = vpop.f32.mrf.mxu0 }
 0x2c4   :  { %v3618_v60 = vpop.f32.mrf.mxu3  ;;  %v3530_v39 = vadd.f32 %v3529_v37, %v13066_v61  ;;  %v3443_v50 = vpop.f32.mrf.mxu1 }
 0x2c5   :  { %v13522_v14 = vadd.f32 %v3443_v50, %v12994_v6 }
 0x2c6   :  { %v3619_v59 = vadd.f32 %v3618_v60, %v3530_v39  ;;  %4025 = vmatmul.bf16.gmra.mxu0 %v19311_v28 }
 0x2c7   :  { %19393 = vst [vmem:[#allocation125_spill] sm:$0xff] %v13522_v14  ;;  %3758 = vmatmul.bf16.gmra.mxu1 %v19394_v30 }
 0x2c8   :  { %3847 = vmatmul.bf16.gmra.mxu2 %v19395_v63  ;;  %v13528_v42 = vadd.f32 %v3707_v2, %v3619_v59 }
 0x2c9   :  { %3936 = vmatmul.bf16.gmra.mxu3 %v12978_v54  ;;  %v19398_v54 = vld [vmem:[#allocation46_spill] sm:$0xff] }
 0x2cb   :  { %v3532_v47 = vpop.f32.mrf.mxu2  ;;  %v3712_v37 = vpop.f32.mrf.mxu0 }
 0x2cc   :  { %v3621_v56 = vpop.f32.mrf.mxu3  ;;  %v3533_v10 = vadd.f32 %v3532_v47, %v13066_v61  ;;  %v3445_v44 = vpop.f32.mrf.mxu1 }
 0x2cd   :  { %v13532_v6 = vadd.f32 %v3445_v44, %v13012_v29  ;;  %v19399_v29 = vld [vmem:[#allocation11_spill] sm:$0xff] }
 0x2ce   :  { %v3622_v60 = vadd.f32 %v3621_v56, %v3533_v10  ;;  %v19400_v56 = vld [vmem:[#allocation43_spill] sm:$0xff]  ;;  %v19401_v10 = vld [vmem:[#allocation44_spill] sm:$0xff] }
 0x2cf   :  { %19396 = vst [vmem:[#allocation126_spill] sm:$0xff] %v13532_v6 }
 0x2d0   :  { %v13536_v50 = vadd.f32 %v3710_v7, %v3622_v60  ;;  %v9723_v7 = vld [vmem:[%s18628_s1 + $0x4c8] sm:$0xf] }
 0x2d1   :  { %v11214_v60 = vld [vmem:[%s18628_s1 + $0x6e4] sm:$0xf0] }
 0x2d3   :  { %v3534_v18 = vpop.f32.mrf.mxu2  ;;  %v3715_v55 = vpop.f32.mrf.mxu0 }
 0x2d4   :  { %v3623_v57 = vpop.f32.mrf.mxu3  ;;  %v3535_v2 = vadd.f32 %v3534_v18, %v13066_v61  ;;  %v3448_v59 = vpop.f32.mrf.mxu1  ;;  %v11150_v18 = vld [vmem:[%s18628_s1 + $0x4e4] sm:$0xf0] }
 0x2d5   :  { %v13540_v28 = vadd.f32 %v3448_v59, %v13036_v22  ;;  %v9724_v44 = vor.u32 %v11150_v18, %v9723_v7  ;;  %v10363_v7 = vld [vmem:[%s18628_s1 + $0x9c8] sm:$0xf] }
 0x2d6   :  { %v3624_v47 = vadd.f32 %v3623_v57, %v3535_v2  ;;  %4030 = vmatmul.bf16.gmra.mxu0 %v19399_v29  ;;  %v9979_v57 = vld [vmem:[%s18628_s1 + $0x6c8] sm:$0xf] }
 0x2d7   :  { %19397 = vst [vmem:[#allocation127_spill] sm:$0xff] %v13540_v28  ;;  %3763 = vmatmul.bf16.gmra.mxu1 %v19398_v54  ;;  %v9980_v2 = vor.u32 %v11214_v60, %v9979_v57  ;;  %4174 = vmatpush.bf16.msra.mxu2 %v9724_v44  ;;  %v19406_v28 = vld [vmem:[#allocation49_spill] sm:$0xff] }
 0x2d8   :  { %3852 = vmatmul.bf16.gmra.mxu2 %v19400_v56  ;;  %v13555_v22 = vadd.f32 %v3712_v37, %v3624_v47  ;;  %v9467_v37 = vld [vmem:[%s18628_s1 + $0x2c8] sm:$0xf] }
 0x2d9   :  { %3941 = vmatmul.bf16.gmra.mxu3 %v19401_v10  ;;  %v11086_v47 = vld [vmem:[%s18628_s1 + $0x2e4] sm:$0xf0] }
 0x2da   :  { %4263 = vmatpush.bf16.msra.mxu3 %v9980_v2  ;;  %v9468_v57 = vor.u32 %v11086_v47, %v9467_v37  ;;  %v19404_v37 = vld [vmem:[#allocation52_spill] sm:$0xff]  ;;  %v19405_v47 = vld [vmem:[#allocation15_spill] sm:$0xff] }
 0x2db   :  { %v3537_v59 = vpop.f32.mrf.mxu2  ;;  %v3717_v29 = vpop.f32.mrf.mxu0 }
 0x2dc   :  { %v3626_v39 = vpop.f32.mrf.mxu3  ;;  %v3538_v14 = vadd.f32 %v3537_v59, %v13066_v61  ;;  %v3450_v6 = vpop.f32.mrf.mxu1  ;;  %4085 = vmatpush.bf16.msra.mxu1 %v9468_v57 }
 0x2dd   :  { %v13562_v10 = vadd.f32 %v3450_v6, %v13045_v52  ;;  %v11310_v52 = vld [vmem:[%s18628_s1 + $0x9e4] sm:$0xf0] }
 0x2de   :  { %v3627_v54 = vadd.f32 %v3626_v39, %v3538_v14  ;;  %v10364_v14 = vor.u32 %v11310_v52, %v10363_v7 }
 0x2df   :  { %19402 = vst [vmem:[#allocation128_spill] sm:$0xff] %v13562_v10 }
 0x2e0   :  { %v13578_v6 = vadd.f32 %v3715_v55, %v3627_v54  ;;  %4348 = vmatpush.bf16.msra.mxu0 %v10364_v14  ;;  %v19407_v54 = vld [vmem:[#allocation47_spill] sm:$0xff] }
 0x2e3   :  { %v3539_v39 = vpop.f32.mrf.mxu2  ;;  %v3720_v59 = vpop.f32.mrf.mxu0 }
 0x2e4   :  { %v3628_v44 = vpop.f32.mrf.mxu3  ;;  %v3540_v60 = vadd.f32 %v3539_v39, %v13066_v61  ;;  %v3453_v2 = vpop.f32.mrf.mxu1 }
 0x2e5   :  { %v13582_v56 = vadd.f32 %v3453_v2, %v13054_v46 }
 0x2e6   :  { %v3629_v18 = vadd.f32 %v3628_v44, %v3540_v60  ;;  %4035 = vmatmul.bf16.gmra.mxu0 %v19405_v47 }
 0x2e7   :  { %19403 = vst [vmem:[#allocation129_spill] sm:$0xff] %v13582_v56  ;;  %3768 = vmatmul.bf16.gmra.mxu1 %v19404_v37 }
 0x2e8   :  { %3857 = vmatmul.bf16.gmra.mxu2 %v19406_v28  ;;  %v13588_v55 = vadd.f32 %v3717_v29, %v3629_v18  ;;  %v19409_v28 = vld [vmem:[#allocation58_spill] sm:$0xff] }
 0x2e9   :  { %3946 = vmatmul.bf16.gmra.mxu3 %v19407_v54 }
 0x2eb   :  { %v3542_v7 = vpop.f32.mrf.mxu2  ;;  %v3722_v39 = vpop.f32.mrf.mxu0 }
 0x2ec   :  { %v3631_v57 = vpop.f32.mrf.mxu3  ;;  %v3543_v52 = vadd.f32 %v3542_v7, %v13066_v61  ;;  %v3455_v14 = vpop.f32.mrf.mxu1 }
 0x2ed   :  { %v13592_v46 = vadd.f32 %v3455_v14, %v13079_v26  ;;  %v19410_v26 = vld [vmem:[#allocation4_spill] sm:$0xff]  ;;  %v11206_v14 = vld [vmem:[%s18628_s1 + $0x6a4] sm:$0xf0] }
 0x2ee   :  { %v3632_v44 = vadd.f32 %v3631_v57, %v3543_v52  ;;  %v19411_v57 = vld [vmem:[#allocation55_spill] sm:$0xff]  ;;  %v19412_v52 = vld [vmem:[#allocation50_spill] sm:$0xff] }
 0x2ef   :  { %19408 = vst [vmem:[#allocation130_spill] sm:$0xff] %v13592_v46 }
 0x2f0   :  { %v13596_v2 = vadd.f32 %v3720_v59, %v3632_v44  ;;  %v9691_v59 = vld [vmem:[%s18628_s1 + $0x488] sm:$0xf] }
 0x2f3   :  { %v3544_v10 = vpop.f32.mrf.mxu2  ;;  %v13599_v54 = vpop.f32.mrf.mxu0 }
 0x2f4   :  { %v3633_v47 = vpop.f32.mrf.mxu3  ;;  %v3545_v29 = vadd.f32 %v3544_v10, %v13066_v61  ;;  %v3734_v18 = vpop.f32.mrf.mxu1  ;;  %v11142_v61 = vld [vmem:[%s18628_s1 + $0x4a4] sm:$0xf0] }
 0x2f5   :  { %v3735_v7 = vadd.f32 %v3734_v18, %v13108_v23  ;;  %v9947_v23 = vld [vmem:[%s18628_s1 + $0x688] sm:$0xf] }
 0x2f6   :  { %v3634_v37 = vadd.f32 %v3633_v47, %v3545_v29  ;;  %4040 = vmatmul.bf16.gmra.mxu0 %v19410_v26  ;;  %v9692_v47 = vor.u32 %v11142_v61, %v9691_v59  ;;  %v9948_v44 = vor.u32 %v11206_v14, %v9947_v23  ;;  %v11302_v61 = vld [vmem:[%s18628_s1 + $0x9a4] sm:$0xf0] }
 0x2f7   :  { %3773 = vmatmul.bf16.gmra.mxu1 %v19409_v28 }
 0x2f8   :  { %3862 = vmatmul.bf16.gmra.mxu2 %v19411_v57  ;;  %v13615_v10 = vadd.f32 %v3722_v39, %v3634_v37  ;;  %4264 = vmatpush.bf16.msra.mxu3 %v9948_v44  ;;  %v9435_v37 = vld [vmem:[%s18628_s1 + $0x288] sm:$0xf] }
 0x2f9   :  { %3951 = vmatmul.bf16.gmra.mxu3 %v19412_v52  ;;  %4175 = vmatpush.bf16.msra.mxu2 %v9692_v47  ;;  %v11078_v39 = vld [vmem:[%s18628_s1 + $0x2a4] sm:$0xf0] }
 0x2fa   :  { %v9436_v59 = vor.u32 %v11078_v39, %v9435_v37  ;;  %v19418_v37 = vld [vmem:[#allocation8_spill] sm:$0xff] }
 0x2fb   :  { %v3823_v29 = vpop.f32.mrf.mxu2  ;;  %v13620_v46 = vpop.f32.mrf.mxu0 }
 0x2fc   :  { %v3912_v18 = vpop.f32.mrf.mxu3  ;;  %v3824_v60 = vadd.f32 %v3823_v29, %v3735_v7  ;;  %v3736_v56 = vpop.f32.mrf.mxu1  ;;  %19413 = vst [vmem:[#allocation131_spill] sm:$0xff] %v13620_v46  ;;  %v10331_v7 = vld [vmem:[%s18628_s1 + $0x988] sm:$0xf]  ;;  %4086 = vmatpush.bf16.msra.mxu1 %v9436_v59 }
 0x2fd   :  { %v3737_v26 = vadd.f32 %v3736_v56, %v13120_v0  ;;  %v10332_v0 = vor.u32 %v11302_v61, %v10331_v7  ;;  %v19419_v7 = vld [vmem:[#allocation61_spill] sm:$0xff]  ;;  %v19420_v59 = vld [vmem:[#allocation59_spill] sm:$0xff] }
 0x2fe   :  { %v13623_v52 = vadd.f32 %v3912_v18, %v3824_v60  ;;  %v19417_v18 = vld [vmem:[#allocation63_spill] sm:$0xff] }
 0x2ff   :  { %4349 = vmatpush.bf16.msra.mxu0 %v10332_v0 }
 0x300   :  { %19414 = vst [vmem:[#allocation132_spill] sm:$0xff] %v13623_v52 }
 0x303   :  { %v3825_v56 = vpop.f32.mrf.mxu2  ;;  %v13637_v14 = vpop.f32.mrf.mxu0 }
 0x304   :  { %v3914_v60 = vpop.f32.mrf.mxu3  ;;  %v3826_v23 = vadd.f32 %v3825_v56, %v3737_v26  ;;  %v3739_v47 = vpop.f32.mrf.mxu1  ;;  %19415 = vst [vmem:[#allocation133_spill] sm:$0xff] %v13637_v14 }
 0x305   :  { %v3740_v44 = vadd.f32 %v3739_v47, %v13134_v51 }
 0x306   :  { %v13640_v29 = vadd.f32 %v3914_v60, %v3826_v23  ;;  %4045 = vmatmul.bf16.gmra.mxu0 %v19418_v37 }
 0x307   :  { %3778 = vmatmul.bf16.gmra.mxu1 %v19417_v18 }
 0x308   :  { %19416 = vst [vmem:[#allocation134_spill] sm:$0xff] %v13640_v29  ;;  %3867 = vmatmul.bf16.gmra.mxu2 %v19419_v7  ;;  %v19423_v29 = vld [vmem:[#allocation67_spill] sm:$0xff] }
 0x309   :  { %3956 = vmatmul.bf16.gmra.mxu3 %v19420_v59 }
 0x30b   :  { %v3828_v61 = vpop.f32.mrf.mxu2  ;;  %v13648_v14 = vpop.f32.mrf.mxu0 }
 0x30c   :  { %v3917_v26 = vpop.f32.mrf.mxu3  ;;  %v3829_v0 = vadd.f32 %v3828_v61, %v3740_v44  ;;  %v3741_v56 = vpop.f32.mrf.mxu1  ;;  %v19424_v44 = vld [vmem:[#allocation12_spill] sm:$0xff] }
 0x30d   :  { %v3742_v51 = vadd.f32 %v3741_v56, %v13155_v15  ;;  %v19425_v15 = vld [vmem:[#allocation65_spill] sm:$0xff]  ;;  %v11198_v56 = vld [vmem:[%s18628_s1 + $0x664] sm:$0xf0] }
 0x30e   :  { %v13651_v60 = vadd.f32 %v3917_v26, %v3829_v0  ;;  %v19426_v26 = vld [vmem:[#allocation100_spill] sm:$0xff]  ;;  %v9659_v0 = vld [vmem:[%s18628_s1 + $0x448] sm:$0xf] }
 0x310   :  { %19421 = vst [vmem:[#allocation135_spill] sm:$0xff] %v13651_v60 }
 0x313   :  { %v3830_v23 = vpop.f32.mrf.mxu2  ;;  %v13653_v46 = vpop.f32.mrf.mxu0 }
 0x314   :  { %v3919_v47 = vpop.f32.mrf.mxu3  ;;  %v3831_v37 = vadd.f32 %v3830_v23, %v3742_v51  ;;  %v3744_v18 = vpop.f32.mrf.mxu1 }
 0x315   :  { %v3745_v39 = vadd.f32 %v3744_v18, %v13184_v17  ;;  %v11134_v17 = vld [vmem:[%s18628_s1 + $0x464] sm:$0xf0] }
 0x316   :  { %v13656_v52 = vadd.f32 %v3919_v47, %v3831_v37  ;;  %4050 = vmatmul.bf16.gmra.mxu0 %v19424_v44  ;;  %v9915_v18 = vld [vmem:[%s18628_s1 + $0x648] sm:$0xf]  ;;  %v9660_v37 = vor.u32 %v11134_v17, %v9659_v0 }
 0x317   :  { %3783 = vmatmul.bf16.gmra.mxu1 %v19423_v29  ;;  %v9916_v51 = vor.u32 %v11198_v56, %v9915_v18  ;;  %v9403_v0 = vld [vmem:[%s18628_s1 + $0x248] sm:$0xf] }
 0x318   :  { %19422 = vst [vmem:[#allocation136_spill] sm:$0xff] %v13656_v52  ;;  %3872 = vmatmul.bf16.gmra.mxu2 %v19425_v15  ;;  %v11070_v17 = vld [vmem:[%s18628_s1 + $0x264] sm:$0xf0] }
 0x319   :  { %3961 = vmatmul.bf16.gmra.mxu3 %v19426_v26  ;;  %4176 = vmatpush.bf16.msra.mxu2 %v9660_v37  ;;  %v9404_v18 = vor.u32 %v11070_v17, %v9403_v0  ;;  %v11294_v37 = vld [vmem:[%s18628_s1 + $0x964] sm:$0xf0]  ;;  %v19432_v0 = vld [vmem:[#allocation16_spill] sm:$0xff] }
 0x31a   :  { %4265 = vmatpush.bf16.msra.mxu3 %v9916_v51 }
 0x31b   :  { %v3833_v23 = vpop.f32.mrf.mxu2  ;;  %v13676_v52 = vpop.f32.mrf.mxu0  ;;  %4087 = vmatpush.bf16.msra.mxu1 %v9404_v18  ;;  %v19434_v18 = vld [vmem:[#allocation102_spill] sm:$0xff] }
 0x31c   :  { %v3922_v47 = vpop.f32.mrf.mxu3  ;;  %v3834_v61 = vadd.f32 %v3833_v23, %v3745_v39  ;;  %v3746_v60 = vpop.f32.mrf.mxu1  ;;  %19427 = vst [vmem:[#allocation137_spill] sm:$0xff] %v13676_v52  ;;  %v10299_v39 = vld [vmem:[%s18628_s1 + $0x948] sm:$0xf]  ;;  %v19431_v52 = vld [vmem:[#allocation73_spill] sm:$0xff] }
 0x31d   :  { %v3747_v44 = vadd.f32 %v3746_v60, %v13196_v16  ;;  %v10300_v16 = vor.u32 %v11294_v37, %v10299_v39  ;;  %v19433_v39 = vld [vmem:[#allocation71_spill] sm:$0xff] }
 0x31e   :  { %v13679_v26 = vadd.f32 %v3922_v47, %v3834_v61 }
 0x31f   :  { %4350 = vmatpush.bf16.msra.mxu0 %v10300_v16 }
 0x320   :  { %19428 = vst [vmem:[#allocation138_spill] sm:$0xff] %v13679_v26 }
 0x323   :  { %v3835_v60 = vpop.f32.mrf.mxu2  ;;  %v13693_v23 = vpop.f32.mrf.mxu0 }
 0x324   :  { %v3924_v61 = vpop.f32.mrf.mxu3  ;;  %v3836_v56 = vadd.f32 %v3835_v60, %v3747_v44  ;;  %v3749_v51 = vpop.f32.mrf.mxu1  ;;  %19429 = vst [vmem:[#allocation139_spill] sm:$0xff] %v13693_v23 }
 0x325   :  { %v3750_v47 = vadd.f32 %v3749_v51, %v13210_v49  ;;  %v19435_v49 = vld [vmem:[#allocation106_spill] sm:$0xff] }
 0x326   :  { %v13696_v59 = vadd.f32 %v3924_v61, %v3836_v56  ;;  %4055 = vmatmul.bf16.gmra.mxu0 %v19432_v0 }
 0x327   :  { %3788 = vmatmul.bf16.gmra.mxu1 %v19431_v52 }
 0x328   :  { %19430 = vst [vmem:[#allocation140_spill] sm:$0xff] %v13696_v59  ;;  %3877 = vmatmul.bf16.gmra.mxu2 %v19433_v39  ;;  %v19438_v59 = vld [vmem:[#allocation77_spill] sm:$0xff] }
 0x329   :  { %3966 = vmatmul.bf16.gmra.mxu3 %v19434_v18 }
 0x32b   :  { %v3838_v37 = vpop.f32.mrf.mxu2  ;;  %v13704_v23 = vpop.f32.mrf.mxu0 }
 0x32c   :  { %v3927_v44 = vpop.f32.mrf.mxu3  ;;  %v3839_v16 = vadd.f32 %v3838_v37, %v3750_v47  ;;  %v3751_v60 = vpop.f32.mrf.mxu1  ;;  %v19439_v47 = vld [vmem:[#allocation5_spill] sm:$0xff] }
 0x32d   :  { %v3752_v61 = vadd.f32 %v3751_v60, %v19435_v49  ;;  %v19440_v60 = vld [vmem:[#allocation75_spill] sm:$0xff] }
 0x32e   :  { %v13707_v56 = vadd.f32 %v3927_v44, %v3839_v16  ;;  %v19441_v44 = vld [vmem:[#allocation105_spill] sm:$0xff]  ;;  %v9627_v16 = vld [vmem:[%s18628_s1 + $0x408] sm:$0xf] }
 0x330   :  { %19436 = vst [vmem:[#allocation106_spill] sm:$0xff] %v13707_v56 }
 0x333   :  { %v3840_v51 = vpop.f32.mrf.mxu2  ;;  %v13709_v15 = vpop.f32.mrf.mxu0 }
 0x334   :  { %v3929_v52 = vpop.f32.mrf.mxu3  ;;  %v3841_v0 = vadd.f32 %v3840_v51, %v3752_v61  ;;  %v3754_v29 = vpop.f32.mrf.mxu1 }
 0x335   :  { %v3755_v17 = vadd.f32 %v3754_v29, %v13260_v45  ;;  %v11126_v45 = vld [vmem:[%s18628_s1 + $0x424] sm:$0xf0] }
 0x336   :  { %v13712_v26 = vadd.f32 %v3929_v52, %v3841_v0  ;;  %4060 = vmatmul.bf16.gmra.mxu0 %v19439_v47  ;;  %v9883_v52 = vld [vmem:[%s18628_s1 + $0x608] sm:$0xf]  ;;  %v9628_v29 = vor.u32 %v11126_v45, %v9627_v16 }
 0x337   :  { %3793 = vmatmul.bf16.gmra.mxu1 %v19438_v59  ;;  %v11190_v0 = vld [vmem:[%s18628_s1 + $0x624] sm:$0xf0] }
 0x338   :  { %19437 = vst [vmem:[#allocation141_spill] sm:$0xff] %v13712_v26  ;;  %3882 = vmatmul.bf16.gmra.mxu2 %v19440_v60  ;;  %v9884_v49 = vor.u32 %v11190_v0, %v9883_v52  ;;  %v9371_v16 = vld [vmem:[%s18628_s1 + $0x208] sm:$0xf] }
 0x339   :  { %3971 = vmatmul.bf16.gmra.mxu3 %v19441_v44  ;;  %4177 = vmatpush.bf16.msra.mxu2 %v9628_v29  ;;  %v11062_v45 = vld [vmem:[%s18628_s1 + $0x224] sm:$0xf0] }
 0x33a   :  { %4266 = vmatpush.bf16.msra.mxu3 %v9884_v49  ;;  %v9372_v52 = vor.u32 %v11062_v45, %v9371_v16  ;;  %v11286_v29 = vld [vmem:[%s18628_s1 + $0x924] sm:$0xf0] }
 0x33b   :  { %v3843_v61 = vpop.f32.mrf.mxu2  ;;  %v13732_v26 = vpop.f32.mrf.mxu0  ;;  %v10235_v16 = vld [vmem:[%s18628_s1 + $0x8c8] sm:$0xf] }
 0x33c   :  { %v3932_v51 = vpop.f32.mrf.mxu3  ;;  %v3844_v37 = vadd.f32 %v3843_v61, %v3755_v17  ;;  %v3756_v56 = vpop.f32.mrf.mxu1  ;;  %v10267_v17 = vld [vmem:[%s18628_s1 + $0x908] sm:$0xf]  ;;  %4088 = vmatpush.bf16.msra.mxu1 %v9372_v52 }
 0x33d   :  { %v3757_v47 = vadd.f32 %v3756_v56, %v13278_v20  ;;  %v10268_v20 = vor.u32 %v11286_v29, %v10267_v17  ;;  %v11278_v45 = vld [vmem:[%s18628_s1 + $0x8e4] sm:$0xf0]  ;;  %v19444_v17 = vld [vmem:[#allocation82_spill] sm:$0xff]  ;;  %v19445_v29 = vld [vmem:[#allocation80_spill] sm:$0xff] }
 0x33e   :  { %v13735_v44 = vadd.f32 %v3932_v51, %v3844_v37 }
 0x33f   :  { %4351 = vmatpush.bf16.msra.mxu0 %v10268_v20  ;;  %v11270_v20 = vld [vmem:[%s18628_s1 + $0x8a4] sm:$0xf0] }
 0x340   :  { %19442 = vst [vmem:[#allocation142_spill] sm:$0xff] %v13735_v44 }
 0x343   :  { %v3845_v56 = vpop.f32.mrf.mxu2  ;;  %v13749_v61 = vpop.f32.mrf.mxu0 }
 0x344   :  { %v3934_v37 = vpop.f32.mrf.mxu3  ;;  %v3846_v0 = vadd.f32 %v3845_v56, %v3757_v47  ;;  %v3759_v49 = vpop.f32.mrf.mxu1  ;;  %v10236_v47 = vor.u32 %v11278_v45, %v10235_v16 }
 0x345   :  { %v3760_v51 = vadd.f32 %v3759_v49, %v13304_v35  ;;  %v10203_v35 = vld [vmem:[%s18628_s1 + $0x888] sm:$0xf] }
 0x346   :  { %v13752_v18 = vadd.f32 %v3934_v37, %v3846_v0  ;;  %4065 = vmatmul.bf16.gmra.mxu0 %v19362_v58  ;;  %v10204_v0 = vor.u32 %v11270_v20, %v10203_v35 }
 0x347   :  { %3798 = vmatmul.bf16.gmra.mxu1 %v19444_v17  ;;  %4352 = vmatpush.bf16.msra.mxu0 %v10236_v47  ;;  %v10171_v47 = vld [vmem:[%s18628_s1 + $0x848] sm:$0xf]  ;;  %v19452_v17 = vld [vmem:[#allocation109_spill] sm:$0xff] }
 0x348   :  { %19443 = vst [vmem:[#allocation143_spill] sm:$0xff] %v13752_v18  ;;  %3887 = vmatmul.bf16.gmra.mxu2 %v19445_v29  ;;  %v11262_v18 = vld [vmem:[%s18628_s1 + $0x864] sm:$0xf0] }
 0x349   :  { %3976 = vmatmul.bf16.gmra.mxu3 %v13262_v11  ;;  %v10172_v58 = vor.u32 %v11262_v18, %v10171_v47  ;;  %v19450_v47 = vld [vmem:[#allocation13_spill] sm:$0xff] }
 0x34b   :  { %v3848_v56 = vpop.f32.mrf.mxu2  ;;  %v13772_v45 = vpop.f32.mrf.mxu0  ;;  %4353 = vmatpush.bf16.msra.mxu0 %v10204_v0 }
 0x34c   :  { %v3937_v37 = vpop.f32.mrf.mxu3  ;;  %v3849_v49 = vadd.f32 %v3848_v56, %v3760_v51  ;;  %v3761_v16 = vpop.f32.mrf.mxu1  ;;  %19446 = vst [vmem:[#allocation144_spill] sm:$0xff] %v13772_v45  ;;  %v10139_v51 = vld [vmem:[%s18628_s1 + $0x808] sm:$0xf]  ;;  %v19451_v45 = vld [vmem:[#allocation86_spill] sm:$0xff] }
 0x34d   :  { %v3762_v52 = vadd.f32 %v3761_v16, %v13331_v33  ;;  %v11254_v33 = vld [vmem:[%s18628_s1 + $0x824] sm:$0xf0] }
 0x34e   :  { %v13775_v44 = vadd.f32 %v3937_v37, %v3849_v49  ;;  %v10140_v56 = vor.u32 %v11254_v33, %v10139_v51  ;;  %v11114_v51 = vld [vmem:[%s18628_s1 + $0x3cc] sm:$0xf] }
 0x34f   :  { %4354 = vmatpush.bf16.msra.mxu0 %v10172_v58  ;;  %v19449_v58 = vld [vmem:[#allocation88_spill] sm:$0xff] }
 0x350   :  { %19447 = vst [vmem:[#allocation145_spill] sm:$0xff] %v13775_v44 }
 0x353   :  { %v3850_v35 = vpop.f32.mrf.mxu2  ;;  %v13789_v49 = vpop.f32.mrf.mxu0  ;;  %4355 = vmatpush.bf16.msra.mxu0 %v10140_v56 }
 0x354   :  { %v3939_v20 = vpop.f32.mrf.mxu3  ;;  %v3851_v37 = vadd.f32 %v3850_v35, %v3762_v52  ;;  %v3764_v0 = vpop.f32.mrf.mxu1  ;;  %v11050_v52 = vld [vmem:[%s18628_s1 + $0x1cc] sm:$0xf] }
 0x355   :  { %v3765_v16 = vadd.f32 %v3764_v0, %v13354_v12  ;;  %v9341_v12 = vld [vmem:[%s18628_s1 + $0x1e8] sm:$0xf0] }
 0x356   :  { %v13792_v18 = vadd.f32 %v3939_v20, %v3851_v37  ;;  %4070 = vmatmul.bf16.gmra.mxu0 %v19450_v47  ;;  %v9344_v33 = vor.u32 %v11050_v52, %v9341_v12  ;;  %v9597_v35 = vld [vmem:[%s18628_s1 + $0x3e8] sm:$0xf0]  ;;  %v10619_v52 = vld [vmem:[%s18628_s1 + $0xbc8] sm:$0xf] }
 0x357   :  { %3803 = vmatmul.bf16.gmra.mxu1 %v19449_v58  ;;  %v9600_v20 = vor.u32 %v11114_v51, %v9597_v35  ;;  %v11374_v12 = vld [vmem:[%s18628_s1 + $0xbe4] sm:$0xf0] }
 0x358   :  { %19448 = vst [vmem:[#allocation146_spill] sm:$0xff] %v13792_v18  ;;  %3892 = vmatmul.bf16.gmra.mxu2 %v19451_v45  ;;  %v10620_v51 = vor.u32 %v11374_v12, %v10619_v52  ;;  %v19459_v52 = vld [vmem:[#allocation112_spill] sm:$0xff] }
 0x359   :  { %3981 = vmatmul.bf16.gmra.mxu3 %v19452_v17  ;;  %4526 = vmatpush.bf16.msrb.mxu2 %v9344_v33 }
 0x35a   :  { %4615 = vmatpush.bf16.msrb.mxu3 %v9600_v20  ;;  %4437 = vmatpush.bf16.msrb.mxu1 %v10620_v51  ;;  %v19457_v20 = vld [vmem:[#allocation92_spill] sm:$0xff] }
 0x35b   :  { %v3853_v56 = vpop.f32.mrf.mxu2  ;;  %v13812_v44 = vpop.f32.mrf.mxu0 }
 0x35c   :  { %v3942_v37 = vpop.f32.mrf.mxu3  ;;  %v3854_v0 = vadd.f32 %v3853_v56, %v3765_v16  ;;  %v3766_v11 = vpop.f32.mrf.mxu1  ;;  %19453 = vst [vmem:[#allocation147_spill] sm:$0xff] %v13812_v44 }
 0x35d   :  { %v3767_v18 = vadd.f32 %v3766_v11, %v13366_v40 }
 0x35e   :  { %v13815_v47 = vadd.f32 %v3942_v37, %v3854_v0  ;;  %v19458_v0 = vld [vmem:[#allocation90_spill] sm:$0xff] }
 0x360   :  { %19454 = vst [vmem:[#allocation148_spill] sm:$0xff] %v13815_v47 }
 0x363   :  { %v3855_v33 = vpop.f32.mrf.mxu2  ;;  %v13823_v17 = vpop.f32.mrf.mxu0 }
 0x364   :  { %v3944_v16 = vpop.f32.mrf.mxu3  ;;  %v3856_v35 = vadd.f32 %v3855_v33, %v3767_v18  ;;  %v3769_v56 = vpop.f32.mrf.mxu1  ;;  %19455 = vst [vmem:[#allocation149_spill] sm:$0xff] %v13823_v17 }
 0x365   :  { %v3770_v11 = vadd.f32 %v3769_v56, %v13374_v19 }
 0x366   :  { %v13826_v40 = vadd.f32 %v3944_v16, %v3856_v35  ;;  %4075 = vmatmul.bf16.gmra.mxu0 %v19371_v31 }
 0x367   :  { %3808 = vmatmul.bf16.gmra.mxu1 %v19457_v20 }
 0x368   :  { %19456 = vst [vmem:[#allocation150_spill] sm:$0xff] %v13826_v40  ;;  %3897 = vmatmul.bf16.gmra.mxu2 %v19458_v0  ;;  %v19462_v40 = vld [vmem:[#allocation18_spill] sm:$0xff] }
 0x369   :  { %3986 = vmatmul.bf16.gmra.mxu3 %v19459_v52 }
 0x36b   :  { %v3858_v12 = vpop.f32.mrf.mxu2  ;;  %v13834_v17 = vpop.f32.mrf.mxu0 }
 0x36c   :  { %v3947_v18 = vpop.f32.mrf.mxu3  ;;  %v3859_v51 = vadd.f32 %v3858_v12, %v3770_v11  ;;  %v3771_v33 = vpop.f32.mrf.mxu1  ;;  %v11042_v12 = vld [vmem:[%s18628_s1 + $0x18c] sm:$0xf] }
 0x36d   :  { %v3772_v19 = vadd.f32 %v3771_v33, %v13393_v21  ;;  %v19463_v21 = vld [vmem:[#allocation20_spill] sm:$0xff] }
 0x36e   :  { %v13837_v16 = vadd.f32 %v3947_v18, %v3859_v51  ;;  %v9565_v18 = vld [vmem:[%s18628_s1 + $0x3a8] sm:$0xf0] }
 0x370   :  { %19460 = vst [vmem:[#allocation151_spill] sm:$0xff] %v13837_v16 }
 0x373   :  { %v3860_v35 = vpop.f32.mrf.mxu2  ;;  %v13839_v44 = vpop.f32.mrf.mxu0 }
 0x374   :  { %v3949_v56 = vpop.f32.mrf.mxu3  ;;  %v3861_v31 = vadd.f32 %v3860_v35, %v3772_v19  ;;  %v3774_v20 = vpop.f32.mrf.mxu1 }
 0x375   :  { %v3775_v37 = vadd.f32 %v3774_v20, %v13410_v4  ;;  %v11106_v4 = vld [vmem:[%s18628_s1 + $0x38c] sm:$0xf] }
 0x376   :  { %v13842_v47 = vadd.f32 %v3949_v56, %v3861_v31  ;;  %4356 = vmatmul.bf16.vlgmr.msra.gmra.mxu0 %v19375_v48  ;;  %v9309_v31 = vld [vmem:[%s18628_s1 + $0x1a8] sm:$0xf0]  ;;  %v9568_v51 = vor.u32 %v11106_v4, %v9565_v18 }
 0x377   :  { %4089 = vmatmul.bf16.vlgmr.msra.gmra.mxu1 %v19462_v40  ;;  %v9312_v20 = vor.u32 %v11042_v12, %v9309_v31  ;;  %v10587_v12 = vld [vmem:[%s18628_s1 + $0xb88] sm:$0xf] }
 0x378   :  { %19461 = vst [vmem:[#allocation152_spill] sm:$0xff] %v13842_v47  ;;  %4178 = vmatmul.bf16.vlgmr.msra.gmra.mxu2 %v19463_v21  ;;  %4616 = vmatpush.bf16.msrb.mxu3 %v9568_v51  ;;  %v11366_v31 = vld [vmem:[%s18628_s1 + $0xba4] sm:$0xf0] }
 0x379   :  { %4267 = vmatmul.bf16.vlgmr.msra.gmra.mxu3 %v19374_v32  ;;  %4527 = vmatpush.bf16.msrb.mxu2 %v9312_v20  ;;  %v10588_v4 = vor.u32 %v11366_v31, %v10587_v12 }
 0x37b   :  { %v3863_v33 = vpop.f32.mrf.mxu2  ;;  %v13862_v11 = vpop.f32.mrf.mxu0  ;;  %4438 = vmatpush.bf16.msrb.mxu1 %v10588_v4 }
 0x37c   :  { %v3952_v19 = vpop.f32.mrf.mxu3  ;;  %v3864_v35 = vadd.f32 %v3863_v33, %v3775_v37  ;;  %v3776_v56 = vpop.f32.mrf.mxu1 }
 0x37d   :  { %v3777_v16 = vadd.f32 %v3776_v56, %v13420_v41  ;;  %v19467_v56 = vld [vmem:[#allocation24_spill] sm:$0xff] }
 0x37e   :  { %v13865_v47 = vadd.f32 %v3952_v19, %v3864_v35  ;;  %v19466_v19 = vld [vmem:[#allocation22_spill] sm:$0xff] }
 0x380   :  { %19464 = vst [vmem:[#allocation153_spill] sm:$0xff] %v13865_v47 }
 0x383   :  { %v3865_v20 = vpop.f32.mrf.mxu2  ;;  %v13873_v48 = vpop.f32.mrf.mxu0 }
 0x384   :  { %v3954_v37 = vpop.f32.mrf.mxu3  ;;  %v3866_v18 = vadd.f32 %v3865_v20, %v3777_v16  ;;  %v3779_v33 = vpop.f32.mrf.mxu1 }
 0x385   :  { %v3780_v41 = vadd.f32 %v3779_v33, %v13428_v43 }
 0x386   :  { %v13876_v51 = vadd.f32 %v3954_v37, %v3866_v18  ;;  %4361 = vmatmul.bf16.gmra.mxu0 %v19379_v25 }
 0x387   :  { %4094 = vmatmul.bf16.gmra.mxu1 %v19466_v19 }
 0x388   :  { %19465 = vst [vmem:[#allocation154_spill] sm:$0xff] %v13876_v51  ;;  %4183 = vmatmul.bf16.gmra.mxu2 %v19467_v56  ;;  %v19470_v51 = vld [vmem:[#allocation26_spill] sm:$0xff] }
 0x389   :  { %4272 = vmatmul.bf16.gmra.mxu3 %v19378_v5 }
 0x38b   :  { %v3868_v12 = vpop.f32.mrf.mxu2  ;;  %v13884_v20 = vpop.f32.mrf.mxu0 }
 0x38c   :  { %v3957_v16 = vpop.f32.mrf.mxu3  ;;  %v3869_v31 = vadd.f32 %v3868_v12, %v3780_v41  ;;  %v3781_v4 = vpop.f32.mrf.mxu1  ;;  %v11034_v12 = vld [vmem:[%s18628_s1 + $0x14c] sm:$0xf] }
 0x38d   :  { %v3782_v43 = vadd.f32 %v3781_v4, %v13447_v13  ;;  %v19471_v13 = vld [vmem:[#allocation28_spill] sm:$0xff] }
 0x38e   :  { %v13887_v37 = vadd.f32 %v3957_v16, %v3869_v31  ;;  %v9533_v16 = vld [vmem:[%s18628_s1 + $0x368] sm:$0xf0] }
 0x390   :  { %19468 = vst [vmem:[#allocation155_spill] sm:$0xff] %v13887_v37 }
 0x393   :  { %v3870_v18 = vpop.f32.mrf.mxu2  ;;  %v13889_v52 = vpop.f32.mrf.mxu0 }
 0x394   :  { %v3959_v33 = vpop.f32.mrf.mxu3  ;;  %v3871_v25 = vadd.f32 %v3870_v18, %v3782_v43  ;;  %v3784_v32 = vpop.f32.mrf.mxu1 }
 0x395   :  { %v3785_v35 = vadd.f32 %v3784_v32, %v13464_v34  ;;  %v11098_v32 = vld [vmem:[%s18628_s1 + $0x34c] sm:$0xf] }
 0x396   :  { %v13892_v47 = vadd.f32 %v3959_v33, %v3871_v25  ;;  %4366 = vmatmul.bf16.gmra.mxu0 %v19383_v3  ;;  %v9277_v25 = vld [vmem:[%s18628_s1 + $0x168] sm:$0xf0]  ;;  %v9536_v31 = vor.u32 %v11098_v32, %v9533_v16 }
 0x397   :  { %4099 = vmatmul.bf16.gmra.mxu1 %v19470_v51  ;;  %v9280_v34 = vor.u32 %v11034_v12, %v9277_v25  ;;  %v10555_v12 = vld [vmem:[%s18628_s1 + $0xb48] sm:$0xf] }
 0x398   :  { %19469 = vst [vmem:[#allocation156_spill] sm:$0xff] %v13892_v47  ;;  %4188 = vmatmul.bf16.gmra.mxu2 %v19471_v13  ;;  %4617 = vmatpush.bf16.msrb.mxu3 %v9536_v31  ;;  %v11358_v25 = vld [vmem:[%s18628_s1 + $0xb64] sm:$0xf0] }
 0x399   :  { %4277 = vmatmul.bf16.gmra.mxu3 %v19382_v62  ;;  %4528 = vmatpush.bf16.msrb.mxu2 %v9280_v34  ;;  %v10556_v32 = vor.u32 %v11358_v25, %v10555_v12 }
 0x39b   :  { %v3873_v4 = vpop.f32.mrf.mxu2  ;;  %v13912_v41 = vpop.f32.mrf.mxu0  ;;  %4439 = vmatpush.bf16.msrb.mxu1 %v10556_v32 }
 0x39c   :  { %v3962_v43 = vpop.f32.mrf.mxu3  ;;  %v3874_v18 = vadd.f32 %v3873_v4, %v3785_v35  ;;  %v3786_v33 = vpop.f32.mrf.mxu1 }
 0x39d   :  { %v3787_v37 = vadd.f32 %v3786_v33, %v13474_v27  ;;  %v19475_v33 = vld [vmem:[#allocation32_spill] sm:$0xff] }
 0x39e   :  { %v13915_v47 = vadd.f32 %v3962_v43, %v3874_v18  ;;  %v19474_v43 = vld [vmem:[#allocation30_spill] sm:$0xff] }
 0x3a0   :  { %19472 = vst [vmem:[#allocation157_spill] sm:$0xff] %v13915_v47 }
 0x3a3   :  { %v3875_v34 = vpop.f32.mrf.mxu2  ;;  %v13923_v3 = vpop.f32.mrf.mxu0 }
 0x3a4   :  { %v3964_v35 = vpop.f32.mrf.mxu3  ;;  %v3876_v16 = vadd.f32 %v3875_v34, %v3787_v37  ;;  %v3789_v4 = vpop.f32.mrf.mxu1 }
 0x3a5   :  { %v3790_v27 = vadd.f32 %v3789_v4, %v13482_v1 }
 0x3a6   :  { %v13926_v31 = vadd.f32 %v3964_v35, %v3876_v16  ;;  %4371 = vmatmul.bf16.gmra.mxu0 %v19387_v53 }
 0x3a7   :  { %4104 = vmatmul.bf16.gmra.mxu1 %v19474_v43 }
 0x3a8   :  { %19473 = vst [vmem:[#allocation158_spill] sm:$0xff] %v13926_v31  ;;  %4193 = vmatmul.bf16.gmra.mxu2 %v19475_v33  ;;  %v19478_v31 = vld [vmem:[#allocation34_spill] sm:$0xff] }
 0x3a9   :  { %4282 = vmatmul.bf16.gmra.mxu3 %v19386_v24 }
 0x3ab   :  { %v3878_v12 = vpop.f32.mrf.mxu2  ;;  %v13934_v34 = vpop.f32.mrf.mxu0 }
 0x3ac   :  { %v3967_v37 = vpop.f32.mrf.mxu3  ;;  %v3879_v25 = vadd.f32 %v3878_v12, %v3790_v27  ;;  %v3791_v32 = vpop.f32.mrf.mxu1  ;;  %v11026_v12 = vld [vmem:[%s18628_s1 + $0x10c] sm:$0xf] }
 0x3ad   :  { %v3792_v1 = vadd.f32 %v3791_v32, %v13501_v9  ;;  %v19479_v9 = vld [vmem:[#allocation36_spill] sm:$0xff] }
 0x3ae   :  { %v13937_v35 = vadd.f32 %v3967_v37, %v3879_v25  ;;  %v9501_v37 = vld [vmem:[%s18628_s1 + $0x328] sm:$0xf0] }
 0x3b0   :  { %19476 = vst [vmem:[#allocation159_spill] sm:$0xff] %v13937_v35 }
 0x3b3   :  { %v3880_v16 = vpop.f32.mrf.mxu2  ;;  %v13939_v5 = vpop.f32.mrf.mxu0 }
 0x3b4   :  { %v3969_v4 = vpop.f32.mrf.mxu3  ;;  %v3881_v53 = vadd.f32 %v3880_v16, %v3792_v1  ;;  %v3794_v62 = vpop.f32.mrf.mxu1 }
 0x3b5   :  { %v3795_v18 = vadd.f32 %v3794_v62, %v13518_v36  ;;  %v9245_v62 = vld [vmem:[%s18628_s1 + $0x128] sm:$0xf0] }
 0x3b6   :  { %v13942_v47 = vadd.f32 %v3969_v4, %v3881_v53  ;;  %4376 = vmatmul.bf16.gmra.mxu0 %v19391_v8  ;;  %v11090_v53 = vld [vmem:[%s18628_s1 + $0x30c] sm:$0xf]  ;;  %v9248_v36 = vor.u32 %v11026_v12, %v9245_v62  ;;  %v10523_v12 = vld [vmem:[%s18628_s1 + $0xb08] sm:$0xf] }
 0x3b7   :  { %4109 = vmatmul.bf16.gmra.mxu1 %v19478_v31  ;;  %v9504_v25 = vor.u32 %v11090_v53, %v9501_v37  ;;  %v11350_v62 = vld [vmem:[%s18628_s1 + $0xb24] sm:$0xf0] }
 0x3b8   :  { %19477 = vst [vmem:[#allocation160_spill] sm:$0xff] %v13942_v47  ;;  %4198 = vmatmul.bf16.gmra.mxu2 %v19479_v9  ;;  %v10524_v53 = vor.u32 %v11350_v62, %v10523_v12 }
 0x3b9   :  { %4287 = vmatmul.bf16.gmra.mxu3 %v19390_v38  ;;  %4529 = vmatpush.bf16.msrb.mxu2 %v9248_v36 }
 0x3ba   :  { %4618 = vmatpush.bf16.msrb.mxu3 %v9504_v25  ;;  %4440 = vmatpush.bf16.msrb.mxu1 %v10524_v53 }
 0x3bb   :  { %v3883_v32 = vpop.f32.mrf.mxu2  ;;  %v13962_v27 = vpop.f32.mrf.mxu0 }
 0x3bc   :  { %v3972_v1 = vpop.f32.mrf.mxu3  ;;  %v3884_v16 = vadd.f32 %v3883_v32, %v3795_v18  ;;  %v3796_v4 = vpop.f32.mrf.mxu1 }
 0x3bd   :  { %v3797_v35 = vadd.f32 %v3796_v4, %v13528_v42  ;;  %v19483_v4 = vld [vmem:[#allocation40_spill] sm:$0xff] }
 0x3be   :  { %v13965_v47 = vadd.f32 %v3972_v1, %v3884_v16  ;;  %v19482_v1 = vld [vmem:[#allocation38_spill] sm:$0xff] }
 0x3c0   :  { %19480 = vst [vmem:[#allocation161_spill] sm:$0xff] %v13965_v47 }
 0x3c3   :  { %v3885_v36 = vpop.f32.mrf.mxu2  ;;  %v13973_v8 = vpop.f32.mrf.mxu0 }
 0x3c4   :  { %v3974_v18 = vpop.f32.mrf.mxu3  ;;  %v3886_v37 = vadd.f32 %v3885_v36, %v3797_v35  ;;  %v3799_v32 = vpop.f32.mrf.mxu1 }
 0x3c5   :  { %v3800_v42 = vadd.f32 %v3799_v32, %v13536_v50 }
 0x3c6   :  { %v13976_v25 = vadd.f32 %v3974_v18, %v3886_v37  ;;  %4381 = vmatmul.bf16.gmra.mxu0 %v19395_v63 }
 0x3c7   :  { %4114 = vmatmul.bf16.gmra.mxu1 %v19482_v1 }
 0x3c8   :  { %19481 = vst [vmem:[#allocation162_spill] sm:$0xff] %v13976_v25  ;;  %4203 = vmatmul.bf16.gmra.mxu2 %v19483_v4  ;;  %v19486_v25 = vld [vmem:[#allocation42_spill] sm:$0xff] }
 0x3c9   :  { %4292 = vmatmul.bf16.gmra.mxu3 %v19394_v30 }
 0x3cb   :  { %v3888_v12 = vpop.f32.mrf.mxu2  ;;  %v13984_v36 = vpop.f32.mrf.mxu0 }
 0x3cc   :  { %v3977_v35 = vpop.f32.mrf.mxu3  ;;  %v3889_v62 = vadd.f32 %v3888_v12, %v3800_v42  ;;  %v3801_v53 = vpop.f32.mrf.mxu1  ;;  %v19487_v42 = vld [vmem:[#allocation43_spill] sm:$0xff] }
 0x3cd   :  { %v3802_v50 = vadd.f32 %v3801_v53, %v13555_v22  ;;  %v19488_v22 = vld [vmem:[#allocation45_spill] sm:$0xff]  ;;  %v9469_v53 = vld [vmem:[%s18628_s1 + $0x2e8] sm:$0xf0] }
 0x3ce   :  { %v13987_v18 = vadd.f32 %v3977_v35, %v3889_v62  ;;  %v19489_v35 = vld [vmem:[#allocation46_spill] sm:$0xff]  ;;  %v11018_v62 = vld [vmem:[%s18628_s1 + $0xcc] sm:$0xf] }
 0x3d0   :  { %19484 = vst [vmem:[#allocation163_spill] sm:$0xff] %v13987_v18 }
 0x3d3   :  { %v3890_v37 = vpop.f32.mrf.mxu2  ;;  %v13989_v24 = vpop.f32.mrf.mxu0 }
 0x3d4   :  { %v3979_v32 = vpop.f32.mrf.mxu3  ;;  %v3891_v63 = vadd.f32 %v3890_v37, %v3802_v50  ;;  %v3804_v38 = vpop.f32.mrf.mxu1 }
 0x3d5   :  { %v3805_v16 = vadd.f32 %v3804_v38, %v13578_v6  ;;  %v9213_v38 = vld [vmem:[%s18628_s1 + $0xe8] sm:$0xf0] }
 0x3d6   :  { %v13992_v47 = vadd.f32 %v3979_v32, %v3891_v63  ;;  %4386 = vmatmul.bf16.gmra.mxu0 %v19487_v42  ;;  %v11082_v63 = vld [vmem:[%s18628_s1 + $0x2cc] sm:$0xf]  ;;  %v9216_v6 = vor.u32 %v11018_v62, %v9213_v38  ;;  %v10491_v62 = vld [vmem:[%s18628_s1 + $0xac8] sm:$0xf] }
 0x3d7   :  { %4119 = vmatmul.bf16.gmra.mxu1 %v19486_v25  ;;  %v9472_v50 = vor.u32 %v11082_v63, %v9469_v53  ;;  %v11342_v38 = vld [vmem:[%s18628_s1 + $0xae4] sm:$0xf0] }
 0x3d8   :  { %19485 = vst [vmem:[#allocation164_spill] sm:$0xff] %v13992_v47  ;;  %4208 = vmatmul.bf16.gmra.mxu2 %v19488_v22  ;;  %v10492_v63 = vor.u32 %v11342_v38, %v10491_v62  ;;  %v19495_v62 = vld [vmem:[#allocation49_spill] sm:$0xff] }
 0x3d9   :  { %4297 = vmatmul.bf16.gmra.mxu3 %v19489_v35  ;;  %4530 = vmatpush.bf16.msrb.mxu2 %v9216_v6  ;;  %v9853_v6 = vld [vmem:[%s18628_s1 + $0x5e8] sm:$0xf0] }
 0x3da   :  { %4619 = vmatpush.bf16.msrb.mxu3 %v9472_v50  ;;  %4441 = vmatpush.bf16.msrb.mxu1 %v10492_v63  ;;  %v19497_v63 = vld [vmem:[#allocation52_spill] sm:$0xff] }
 0x3db   :  { %v3893_v37 = vpop.f32.mrf.mxu2  ;;  %v14012_v47 = vpop.f32.mrf.mxu0 }
 0x3dc   :  { %v3982_v32 = vpop.f32.mrf.mxu3  ;;  %v3894_v12 = vadd.f32 %v3893_v37, %v3805_v16  ;;  %v3806_v18 = vpop.f32.mrf.mxu1  ;;  %19490 = vst [vmem:[#allocation165_spill] sm:$0xff] %v14012_v47  ;;  %v11178_v16 = vld [vmem:[%s18628_s1 + $0x5cc] sm:$0xf]  ;;  %v19494_v47 = vld [vmem:[#allocation48_spill] sm:$0xff] }
 0x3dd   :  { %v3807_v42 = vadd.f32 %v3806_v18, %v13588_v55  ;;  %v9856_v55 = vor.u32 %v11178_v16, %v9853_v6  ;;  %v19496_v16 = vld [vmem:[#allocation51_spill] sm:$0xff] }
 0x3de   :  { %v14015_v35 = vadd.f32 %v3982_v32, %v3894_v12 }
 0x3df   :  { %4704 = vmatpush.bf16.msrb.mxu0 %v9856_v55 }
 0x3e0   :  { %19491 = vst [vmem:[#allocation166_spill] sm:$0xff] %v14015_v35 }
 0x3e3   :  { %v3895_v18 = vpop.f32.mrf.mxu2  ;;  %v14029_v37 = vpop.f32.mrf.mxu0 }
 0x3e4   :  { %v3984_v12 = vpop.f32.mrf.mxu3  ;;  %v3896_v53 = vadd.f32 %v3895_v18, %v3807_v42  ;;  %v3809_v50 = vpop.f32.mrf.mxu1  ;;  %19492 = vst [vmem:[#allocation167_spill] sm:$0xff] %v14029_v37 }
 0x3e5   :  { %v3810_v32 = vadd.f32 %v3809_v50, %v13596_v2 }
 0x3e6   :  { %v14032_v30 = vadd.f32 %v3984_v12, %v3896_v53  ;;  %4391 = vmatmul.bf16.gmra.mxu0 %v19495_v62  ;;  %v14048_v53 = vld [vmem:[%s18630_s2] sm:$0xff] }
 0x3e7   :  { %4124 = vmatmul.bf16.gmra.mxu1 %v19494_v47  ;;  %19500 = vst [vmem:[#allocation171_spill] sm:$0xff] %v14048_v53  ;;  %v14051_v50 = vperm.slane %v14048_v53, 2 }
 0x3e8   :  { %19493 = vst [vmem:[#allocation168_spill] sm:$0xff] %v14032_v30  ;;  %4213 = vmatmul.bf16.gmra.mxu2 %v19496_v16 }
 0x3e9   :  { %4302 = vmatmul.bf16.gmra.mxu3 %v19497_v63  ;;  %v4002_v38 = vadd.f32 %v13599_v54, %v14051_v50  ;;  %v11010_v54 = vld [vmem:[%s18628_s1 + $0x8c] sm:$0xf] }
 0x3eb   :  { %v3898_v6 = vpop.f32.mrf.mxu2  ;;  %v14040_v37 = vpop.f32.mrf.mxu0 }
 0x3ec   :  { %v3987_v42 = vpop.f32.mrf.mxu3  ;;  %v3899_v55 = vadd.f32 %v3898_v6, %v3810_v32  ;;  %v3811_v18 = vpop.f32.mrf.mxu1  ;;  %19498 = vst [vmem:[#allocation169_spill] sm:$0xff] %v14040_v37 }
 0x3ed   :  { %v3812_v2 = vadd.f32 %v3811_v18, %v13615_v10  ;;  %v19503_v18 = vld [vmem:[#allocation57_spill] sm:$0xff] }
 0x3ee   :  { %v14043_v12 = vadd.f32 %v3987_v42, %v3899_v55  ;;  %v19502_v42 = vld [vmem:[#allocation54_spill] sm:$0xff] }
 0x3f0   :  { %19499 = vst [vmem:[#allocation170_spill] sm:$0xff] %v14043_v12 }
 0x3f3   :  { %v3900_v35 = vpop.f32.mrf.mxu2  ;;  %v4357_v62 = vpop.f32.mrf.mxu0 }
 0x3f4   :  { %v3989_v32 = vpop.f32.mrf.mxu3  ;;  %v3901_v6 = vadd.f32 %v3900_v35, %v3812_v2  ;;  %v4090_v30 = vpop.f32.mrf.mxu1  ;;  %v11074_v35 = vld [vmem:[%s18628_s1 + $0x28c] sm:$0xf] }
 0x3f5   :  { %v4091_v63 = vadd.f32 %v4090_v30, %v4002_v38  ;;  %v9181_v30 = vld [vmem:[%s18628_s1 + $0xa8] sm:$0xf0] }
 0x3f6   :  { %v14055_v10 = vadd.f32 %v3989_v32, %v3901_v6  ;;  %4396 = vmatmul.bf16.gmra.mxu0 %v19411_v57  ;;  %v9184_v38 = vor.u32 %v11010_v54, %v9181_v30  ;;  %v9437_v2 = vld [vmem:[%s18628_s1 + $0x2a8] sm:$0xf0]  ;;  %v10459_v54 = vld [vmem:[%s18628_s1 + $0xa88] sm:$0xf] }
 0x3f7   :  { %4129 = vmatmul.bf16.gmra.mxu1 %v19502_v42  ;;  %v9440_v32 = vor.u32 %v11074_v35, %v9437_v2  ;;  %v19504_v6 = vld [vmem:[#allocation131_spill] sm:$0xff] }
 0x3f8   :  { %19501 = vst [vmem:[#allocation172_spill] sm:$0xff] %v14055_v10  ;;  %4218 = vmatmul.bf16.gmra.mxu2 %v19503_v18  ;;  %v4004_v55 = vadd.f32 %v19504_v6, %v14051_v50  ;;  %v11334_v30 = vld [vmem:[%s18628_s1 + $0xaa4] sm:$0xf0]  ;;  %v11170_v35 = vld [vmem:[%s18628_s1 + $0x58c] sm:$0xf] }
 0x3f9   :  { %4307 = vmatmul.bf16.gmra.mxu3 %v19409_v28  ;;  %4531 = vmatpush.bf16.msrb.mxu2 %v9184_v38  ;;  %v10460_v2 = vor.u32 %v11334_v30, %v10459_v54  ;;  %v19506_v54 = vld [vmem:[#allocation60_spill] sm:$0xff]  ;;  %v19507_v30 = vld [vmem:[#allocation62_spill] sm:$0xff] }
 0x3fa   :  { %4620 = vmatpush.bf16.msrb.mxu3 %v9440_v32 }
 0x3fb   :  { %v4179_v12 = vpop.f32.mrf.mxu2  ;;  %v4359_v42 = vpop.f32.mrf.mxu0  ;;  %4442 = vmatpush.bf16.msrb.mxu1 %v10460_v2 }
 0x3fc   :  { %v4268_v10 = vpop.f32.mrf.mxu3  ;;  %v4180_v57 = vadd.f32 %v4179_v12, %v4091_v63  ;;  %v4092_v28 = vpop.f32.mrf.mxu1  ;;  %v9821_v63 = vld [vmem:[%s18628_s1 + $0x5a8] sm:$0xf0] }
 0x3fd   :  { %v4093_v53 = vadd.f32 %v4092_v28, %v4004_v55  ;;  %v9824_v12 = vor.u32 %v11170_v35, %v9821_v63  ;;  %v4009_v35 = vadd.f32 %v13648_v14, %v14051_v50  ;;  %v19510_v14 = vld [vmem:[#allocation64_spill] sm:$0xff] }
 0x3fe   :  { %v4269_v18 = vadd.f32 %v4268_v10, %v4180_v57  ;;  %v19505_v57 = vld [vmem:[#allocation133_spill] sm:$0xff] }
 0x3ff   :  { %4705 = vmatpush.bf16.msrb.mxu0 %v9824_v12  ;;  %v4007_v10 = vadd.f32 %v19505_v57, %v14051_v50 }
 0x400   :  { %v14089_v28 = vadd.f32 %v4357_v62, %v4269_v18  ;;  %v19508_v62 = vld [vmem:[#allocation63_spill] sm:$0xff] }
 0x403   :  { %v4181_v55 = vpop.f32.mrf.mxu2  ;;  %v4362_v37 = vpop.f32.mrf.mxu0 }
 0x404   :  { %v4270_v38 = vpop.f32.mrf.mxu3  ;;  %v4182_v32 = vadd.f32 %v4181_v55, %v4093_v53  ;;  %v4095_v6 = vpop.f32.mrf.mxu1 }
 0x405   :  { %v4096_v47 = vadd.f32 %v4095_v6, %v4007_v10 }
 0x406   :  { %v4271_v16 = vadd.f32 %v4270_v38, %v4182_v32  ;;  %4401 = vmatmul.bf16.gmra.mxu0 %v19419_v7  ;;  %v4012_v32 = vadd.f32 %v13653_v46, %v14051_v50  ;;  %v9149_v46 = vld [vmem:[%s18628_s1 + $0x68] sm:$0xf0] }
 0x407   :  { %4134 = vmatmul.bf16.gmra.mxu1 %v19506_v54 }
 0x408   :  { %4223 = vmatmul.bf16.gmra.mxu2 %v19507_v30  ;;  %v14097_v18 = vadd.f32 %v4359_v42, %v4271_v16 }
 0x409   :  { %4312 = vmatmul.bf16.gmra.mxu3 %v19508_v62 }
 0x40a   :  { %19509 = vst [vmem:[#allocation131_spill] sm:$0xff] %v14097_v18  ;;  %v19511_v18 = vld [vmem:[#allocation65_spill] sm:$0xff] }
 0x40b   :  { %v4184_v2 = vpop.f32.mrf.mxu2  ;;  %v4364_v57 = vpop.f32.mrf.mxu0 }
 0x40c   :  { %v4273_v63 = vpop.f32.mrf.mxu3  ;;  %v4185_v53 = vadd.f32 %v4184_v2, %v4096_v47  ;;  %v4097_v12 = vpop.f32.mrf.mxu1  ;;  %v19512_v47 = vld [vmem:[#allocation66_spill] sm:$0xff] }
 0x40d   :  { %v4098_v10 = vadd.f32 %v4097_v12, %v4009_v35  ;;  %v19513_v35 = vld [vmem:[#allocation67_spill] sm:$0xff]  ;;  %v19514_v12 = vld [vmem:[#allocation137_spill] sm:$0xff] }
 0x40e   :  { %v4274_v55 = vadd.f32 %v4273_v63, %v4185_v53  ;;  %v9405_v63 = vld [vmem:[%s18628_s1 + $0x268] sm:$0xf0] }
 0x410   :  { %v14101_v38 = vadd.f32 %v4362_v37, %v4274_v55  ;;  %v11002_v37 = vld [vmem:[%s18628_s1 + $0x4c] sm:$0xf] }
 0x411   :  { %v9152_v2 = vor.u32 %v11002_v37, %v9149_v46  ;;  %v11162_v37 = vld [vmem:[%s18628_s1 + $0x54c] sm:$0xf] }
 0x413   :  { %v4186_v6 = vpop.f32.mrf.mxu2  ;;  %v4367_v42 = vpop.f32.mrf.mxu0  ;;  %4532 = vmatpush.bf16.msrb.mxu2 %v9152_v2 }
 0x414   :  { %v4275_v7 = vpop.f32.mrf.mxu3  ;;  %v4187_v62 = vadd.f32 %v4186_v6, %v4098_v10  ;;  %v4100_v16 = vpop.f32.mrf.mxu1  ;;  %v4014_v10 = vadd.f32 %v19514_v12, %v14051_v50 }
 0x415   :  { %v4101_v54 = vadd.f32 %v4100_v16, %v4012_v32 }
 0x416   :  { %v4276_v30 = vadd.f32 %v4275_v7, %v4187_v62  ;;  %4406 = vmatmul.bf16.gmra.mxu0 %v19511_v18  ;;  %v11066_v7 = vld [vmem:[%s18628_s1 + $0x24c] sm:$0xf] }
 0x417   :  { %4139 = vmatmul.bf16.gmra.mxu1 %v19510_v14  ;;  %v9408_v53 = vor.u32 %v11066_v7, %v9405_v63  ;;  %v19515_v63 = vld [vmem:[#allocation139_spill] sm:$0xff] }
 0x418   :  { %4228 = vmatmul.bf16.gmra.mxu2 %v19512_v47  ;;  %v14118_v62 = vadd.f32 %v4364_v57, %v4276_v30  ;;  %v10427_v30 = vld [vmem:[%s18628_s1 + $0xa48] sm:$0xf] }
 0x419   :  { %4317 = vmatmul.bf16.gmra.mxu3 %v19513_v35  ;;  %v11326_v57 = vld [vmem:[%s18628_s1 + $0xa64] sm:$0xf0] }
 0x41a   :  { %4621 = vmatpush.bf16.msrb.mxu3 %v9408_v53  ;;  %v10428_v46 = vor.u32 %v11326_v57, %v10427_v30  ;;  %v4017_v53 = vadd.f32 %v19515_v63, %v14051_v50  ;;  %v19516_v30 = vld [vmem:[#allocation70_spill] sm:$0xff]  ;;  %v19517_v57 = vld [vmem:[#allocation72_spill] sm:$0xff] }
 0x41b   :  { %v4189_v55 = vpop.f32.mrf.mxu2  ;;  %v4369_v18 = vpop.f32.mrf.mxu0 }
 0x41c   :  { %v4278_v32 = vpop.f32.mrf.mxu3  ;;  %v4190_v6 = vadd.f32 %v4189_v55, %v4101_v54  ;;  %v4102_v16 = vpop.f32.mrf.mxu1  ;;  %v9789_v54 = vld [vmem:[%s18628_s1 + $0x568] sm:$0xf0]  ;;  %4443 = vmatpush.bf16.msrb.mxu1 %v10428_v46 }
 0x41d   :  { %v4103_v35 = vadd.f32 %v4102_v16, %v4014_v10  ;;  %v9792_v7 = vor.u32 %v11162_v37, %v9789_v54  ;;  %v4019_v37 = vadd.f32 %v13704_v23, %v14051_v50  ;;  %v19519_v23 = vld [vmem:[#allocation74_spill] sm:$0xff] }
 0x41e   :  { %v4279_v14 = vadd.f32 %v4278_v32, %v4190_v6 }
 0x41f   :  { %4706 = vmatpush.bf16.msrb.mxu0 %v9792_v7 }
 0x420   :  { %v14137_v2 = vadd.f32 %v4367_v42, %v4279_v14  ;;  %v19518_v42 = vld [vmem:[#allocation73_spill] sm:$0xff] }
 0x423   :  { %v4191_v12 = vpop.f32.mrf.mxu2  ;;  %v4372_v6 = vpop.f32.mrf.mxu0 }
 0x424   :  { %v4280_v10 = vpop.f32.mrf.mxu3  ;;  %v4192_v55 = vadd.f32 %v4191_v12, %v4103_v35  ;;  %v4105_v32 = vpop.f32.mrf.mxu1 }
 0x425   :  { %v4106_v16 = vadd.f32 %v4105_v32, %v4017_v53 }
 0x426   :  { %v4281_v47 = vadd.f32 %v4280_v10, %v4192_v55  ;;  %4411 = vmatmul.bf16.gmra.mxu0 %v19433_v39  ;;  %v4022_v55 = vadd.f32 %v13709_v15, %v14051_v50  ;;  %v9117_v15 = vld [vmem:[%s18628_s1 + $0x28] sm:$0xf0] }
 0x427   :  { %4144 = vmatmul.bf16.gmra.mxu1 %v19516_v30 }
 0x428   :  { %4233 = vmatmul.bf16.gmra.mxu2 %v19517_v57  ;;  %v14145_v14 = vadd.f32 %v4369_v18, %v4281_v47 }
 0x429   :  { %4322 = vmatmul.bf16.gmra.mxu3 %v19518_v42 }
 0x42b   :  { %v4194_v46 = vpop.f32.mrf.mxu2  ;;  %v4374_v63 = vpop.f32.mrf.mxu0 }
 0x42c   :  { %v4283_v54 = vpop.f32.mrf.mxu3  ;;  %v4195_v35 = vadd.f32 %v4194_v46, %v4106_v16  ;;  %v4107_v7 = vpop.f32.mrf.mxu1  ;;  %v19520_v16 = vld [vmem:[#allocation76_spill] sm:$0xff]  ;;  %v9373_v46 = vld [vmem:[%s18628_s1 + $0x228] sm:$0xf0] }
 0x42d   :  { %v4108_v53 = vadd.f32 %v4107_v7, %v4019_v37 }
 0x42e   :  { %v4284_v12 = vadd.f32 %v4283_v54, %v4195_v35  ;;  %v4024_v35 = vadd.f32 %v13732_v26, %v14051_v50  ;;  %v11154_v26 = vld [vmem:[%s18628_s1 + $0x50c] sm:$0xf] }
 0x430   :  { %v14149_v10 = vadd.f32 %v4372_v6, %v4284_v12  ;;  %v10994_v6 = vld [vmem:[%s18628_s1 + $0xc] sm:$0xf] }
 0x431   :  { %v9120_v37 = vor.u32 %v10994_v6, %v9117_v15 }
 0x433   :  { %v4196_v32 = vpop.f32.mrf.mxu2  ;;  %v4377_v47 = vpop.f32.mrf.mxu0  ;;  %4533 = vmatpush.bf16.msrb.mxu2 %v9120_v37  ;;  %v4027_v37 = vadd.f32 %v13749_v61, %v14051_v50 }
 0x434   :  { %v4285_v39 = vpop.f32.mrf.mxu3  ;;  %v4197_v42 = vadd.f32 %v4196_v32, %v4108_v53  ;;  %v4110_v18 = vpop.f32.mrf.mxu1 }
 0x435   :  { %v4111_v30 = vadd.f32 %v4110_v18, %v4022_v55 }
 0x436   :  { %v4286_v57 = vadd.f32 %v4285_v39, %v4197_v42  ;;  %4416 = vmatmul.bf16.gmra.mxu0 %v19440_v60  ;;  %v11058_v39 = vld [vmem:[%s18628_s1 + $0x20c] sm:$0xf] }
 0x437   :  { %4149 = vmatmul.bf16.gmra.mxu1 %v19519_v23  ;;  %v9376_v54 = vor.u32 %v11058_v39, %v9373_v46 }
 0x438   :  { %4238 = vmatmul.bf16.gmra.mxu2 %v19520_v16  ;;  %v14166_v42 = vadd.f32 %v4374_v63, %v4286_v57  ;;  %v10395_v57 = vld [vmem:[%s18628_s1 + $0xa08] sm:$0xf] }
 0x439   :  { %4327 = vmatmul.bf16.gmra.mxu3 %v19438_v59  ;;  %v11318_v63 = vld [vmem:[%s18628_s1 + $0xa24] sm:$0xf0] }
 0x43a   :  { %4622 = vmatpush.bf16.msrb.mxu3 %v9376_v54  ;;  %v10396_v6 = vor.u32 %v11318_v63, %v10395_v57  ;;  %v11146_v57 = vld [vmem:[%s18628_s1 + $0x4cc] sm:$0xf]  ;;  %v19522_v63 = vld [vmem:[#allocation81_spill] sm:$0xff] }
 0x43b   :  { %v4199_v7 = vpop.f32.mrf.mxu2  ;;  %v4379_v32 = vpop.f32.mrf.mxu0 }
 0x43c   :  { %v4288_v53 = vpop.f32.mrf.mxu3  ;;  %v4200_v12 = vadd.f32 %v4199_v7, %v4111_v30  ;;  %v4112_v55 = vpop.f32.mrf.mxu1  ;;  %v9757_v30 = vld [vmem:[%s18628_s1 + $0x528] sm:$0xf0]  ;;  %4444 = vmatpush.bf16.msrb.mxu1 %v10396_v6 }
 0x43d   :  { %v4113_v18 = vadd.f32 %v4112_v55, %v4024_v35  ;;  %v9760_v15 = vor.u32 %v11154_v26, %v9757_v30  ;;  %v11138_v6 = vld [vmem:[%s18628_s1 + $0x48c] sm:$0xf] }
 0x43e   :  { %v4289_v60 = vadd.f32 %v4288_v53, %v4200_v12  ;;  %v9693_v30 = vld [vmem:[%s18628_s1 + $0x4a8] sm:$0xf0] }
 0x43f   :  { %4707 = vmatpush.bf16.msrb.mxu0 %v9760_v15  ;;  %v19524_v15 = vld [vmem:[#allocation144_spill] sm:$0xff] }
 0x440   :  { %v14185_v39 = vadd.f32 %v4377_v47, %v4289_v60  ;;  %v9725_v60 = vld [vmem:[%s18628_s1 + $0x4e8] sm:$0xf0] }
 0x441   :  { %v19521_v47 = vld [vmem:[#allocation79_spill] sm:$0xff]  ;;  %v9728_v61 = vor.u32 %v11146_v57, %v9725_v60 }
 0x443   :  { %v4201_v46 = vpop.f32.mrf.mxu2  ;;  %v4382_v53 = vpop.f32.mrf.mxu0  ;;  %4708 = vmatpush.bf16.msrb.mxu0 %v9728_v61  ;;  %v11130_v61 = vld [vmem:[%s18628_s1 + $0x44c] sm:$0xf] }
 0x444   :  { %v4290_v54 = vpop.f32.mrf.mxu3  ;;  %v4202_v35 = vadd.f32 %v4201_v46, %v4113_v18  ;;  %v4115_v7 = vpop.f32.mrf.mxu1  ;;  %v19523_v18 = vld [vmem:[#allocation82_spill] sm:$0xff] }
 0x445   :  { %v4116_v12 = vadd.f32 %v4115_v7, %v4027_v37  ;;  %v4029_v37 = vadd.f32 %v19524_v15, %v14051_v50 }
 0x446   :  { %v4291_v55 = vadd.f32 %v4290_v54, %v4202_v35  ;;  %4421 = vmatmul.bf16.gmra.mxu0 %v19445_v29  ;;  %v9696_v35 = vor.u32 %v11138_v6, %v9693_v30  ;;  %v9661_v29 = vld [vmem:[%s18628_s1 + $0x468] sm:$0xf0]  ;;  %v4032_v30 = vadd.f32 %v13789_v49, %v14051_v50 }
 0x447   :  { %4154 = vmatmul.bf16.gmra.mxu1 %v19521_v47  ;;  %v9629_v6 = vld [vmem:[%s18628_s1 + $0x428] sm:$0xf0] }
 0x448   :  { %4243 = vmatmul.bf16.gmra.mxu2 %v19522_v63  ;;  %v14199_v26 = vadd.f32 %v4379_v32, %v4291_v55  ;;  %4709 = vmatpush.bf16.msrb.mxu0 %v9696_v35  ;;  %v11306_v49 = vld [vmem:[%s18628_s1 + $0x9cc] sm:$0xf] }
 0x449   :  { %4332 = vmatmul.bf16.gmra.mxu3 %v19523_v18  ;;  %v9664_v18 = vor.u32 %v11130_v61, %v9661_v29 }
 0x44b   :  { %v4204_v46 = vpop.f32.mrf.mxu2  ;;  %v4384_v60 = vpop.f32.mrf.mxu0 }
 0x44c   :  { %v4293_v54 = vpop.f32.mrf.mxu3  ;;  %v4205_v7 = vadd.f32 %v4204_v46, %v4116_v12  ;;  %v4117_v57 = vpop.f32.mrf.mxu1  ;;  %4710 = vmatpush.bf16.msrb.mxu0 %v9664_v18  ;;  %v11122_v12 = vld [vmem:[%s18628_s1 + $0x40c] sm:$0xf] }
 0x44d   :  { %v4118_v32 = vadd.f32 %v4117_v57, %v4029_v37  ;;  %v9632_v46 = vor.u32 %v11122_v12, %v9629_v6  ;;  %v19526_v57 = vld [vmem:[#allocation87_spill] sm:$0xff] }
 0x44e   :  { %v4294_v55 = vadd.f32 %v4293_v54, %v4205_v7  ;;  %v19525_v7 = vld [vmem:[#allocation85_spill] sm:$0xff]  ;;  %v10621_v6 = vld [vmem:[%s18628_s1 + $0xbe8] sm:$0xf0] }
 0x450   :  { %v14215_v59 = vadd.f32 %v4382_v53, %v4294_v55  ;;  %4711 = vmatpush.bf16.msrb.mxu0 %v9632_v46  ;;  %v11370_v55 = vld [vmem:[%s18628_s1 + $0xbcc] sm:$0xf] }
 0x453   :  { %v4206_v15 = vpop.f32.mrf.mxu2  ;;  %v4387_v29 = vpop.f32.mrf.mxu0 }
 0x454   :  { %v4295_v37 = vpop.f32.mrf.mxu3  ;;  %v4207_v54 = vadd.f32 %v4206_v15, %v4118_v32  ;;  %v4120_v35 = vpop.f32.mrf.mxu1  ;;  %v10365_v32 = vld [vmem:[%s18628_s1 + $0x9e8] sm:$0xf0] }
 0x455   :  { %v4121_v53 = vadd.f32 %v4120_v35, %v4032_v30  ;;  %v10368_v12 = vor.u32 %v11306_v49, %v10365_v32  ;;  %v10624_v30 = vor.u32 %v11370_v55, %v10621_v6  ;;  %v19527_v15 = vld [vmem:[#allocation147_spill] sm:$0xff]  ;;  %v19528_v55 = vld [vmem:[#allocation149_spill] sm:$0xff] }
 0x456   :  { %v4296_v18 = vadd.f32 %v4295_v37, %v4207_v54  ;;  %4426 = vmatmul.bf16.gmra.mxu0 %v19451_v45  ;;  %v4034_v37 = vadd.f32 %v19527_v15, %v14051_v50 }
 0x457   :  { %4159 = vmatmul.bf16.gmra.mxu1 %v19525_v7  ;;  %4882 = vmatpush.bf16.msra.mxu2 %v10368_v12 }
 0x458   :  { %4248 = vmatmul.bf16.gmra.mxu2 %v19526_v57  ;;  %v14238_v61 = vadd.f32 %v4384_v60, %v4296_v18  ;;  %4971 = vmatpush.bf16.msra.mxu3 %v10624_v30  ;;  %v11242_v60 = vld [vmem:[%s18628_s1 + $0x7cc] sm:$0xf] }
 0x459   :  { %4337 = vmatmul.bf16.gmra.mxu3 %v19449_v58  ;;  %v10109_v18 = vld [vmem:[%s18628_s1 + $0x7e8] sm:$0xf0] }
 0x45a   :  { %v10112_v49 = vor.u32 %v11242_v60, %v10109_v18  ;;  %v19531_v60 = vld [vmem:[#allocation92_spill] sm:$0xff] }
 0x45b   :  { %v4209_v46 = vpop.f32.mrf.mxu2  ;;  %v4389_v58 = vpop.f32.mrf.mxu0 }
 0x45c   :  { %v4298_v54 = vpop.f32.mrf.mxu3  ;;  %v4210_v35 = vadd.f32 %v4209_v46, %v4121_v53  ;;  %v4122_v45 = vpop.f32.mrf.mxu1  ;;  %4793 = vmatpush.bf16.msra.mxu1 %v10112_v49  ;;  %v4037_v53 = vadd.f32 %v19528_v55, %v14051_v50 }
 0x45d   :  { %v4123_v7 = vadd.f32 %v4122_v45, %v4034_v37 }
 0x45e   :  { %v4299_v57 = vadd.f32 %v4298_v54, %v4210_v35  ;;  %v19529_v54 = vld [vmem:[#allocation89_spill] sm:$0xff]  ;;  %v19530_v35 = vld [vmem:[#allocation91_spill] sm:$0xff] }
 0x460   :  { %v14251_v32 = vadd.f32 %v4387_v29, %v4299_v57  ;;  %v4039_v57 = vadd.f32 %v13834_v17, %v14051_v50  ;;  %v19533_v17 = vld [vmem:[#allocation93_spill] sm:$0xff] }
 0x463   :  { %v4211_v12 = vpop.f32.mrf.mxu2  ;;  %v4392_v15 = vpop.f32.mrf.mxu0 }
 0x464   :  { %v4300_v6 = vpop.f32.mrf.mxu3  ;;  %v4212_v30 = vadd.f32 %v4211_v12, %v4123_v7  ;;  %v4125_v45 = vpop.f32.mrf.mxu1 }
 0x465   :  { %v4126_v37 = vadd.f32 %v4125_v45, %v4037_v53  ;;  %v4042_v45 = vadd.f32 %v13839_v44, %v14051_v50  ;;  %v10333_v44 = vld [vmem:[%s18628_s1 + $0x9a8] sm:$0xf0] }
 0x466   :  { %v4301_v46 = vadd.f32 %v4300_v6, %v4212_v30  ;;  %4431 = vmatmul.bf16.gmra.mxu0 %v19458_v0 }
 0x467   :  { %4164 = vmatmul.bf16.gmra.mxu1 %v19529_v54 }
 0x468   :  { %4253 = vmatmul.bf16.gmra.mxu2 %v19530_v35  ;;  %v14259_v29 = vadd.f32 %v4389_v58, %v4301_v46 }
 0x469   :  { %4342 = vmatmul.bf16.gmra.mxu3 %v19531_v60 }
 0x46a   :  { %19532 = vst [vmem:[#allocation133_spill] sm:$0xff] %v14259_v29 }
 0x46b   :  { %v4214_v18 = vpop.f32.mrf.mxu2  ;;  %v4394_v12 = vpop.f32.mrf.mxu0 }
 0x46c   :  { %v4303_v49 = vpop.f32.mrf.mxu3  ;;  %v4215_v7 = vadd.f32 %v4214_v18, %v4126_v37  ;;  %v4127_v55 = vpop.f32.mrf.mxu1  ;;  %v19534_v37 = vld [vmem:[#allocation2_spill] sm:$0xff] }
 0x46d   :  { %v4128_v53 = vadd.f32 %v4127_v55, %v4039_v57  ;;  %v10589_v57 = vld [vmem:[%s18628_s1 + $0xba8] sm:$0xf0] }
 0x46e   :  { %v4304_v6 = vadd.f32 %v4303_v49, %v4215_v7  ;;  %v4044_v49 = vadd.f32 %v13862_v11, %v14051_v50  ;;  %v4047_v11 = vadd.f32 %v13873_v48, %v14051_v50  ;;  %v4049_v48 = vadd.f32 %v13884_v20, %v14051_v50  ;;  %v19537_v20 = vld [vmem:[#allocation95_spill] sm:$0xff] }
 0x470   :  { %v14263_v30 = vadd.f32 %v4392_v15, %v4304_v6  ;;  %v11298_v15 = vld [vmem:[%s18628_s1 + $0x98c] sm:$0xf] }
 0x473   :  { %v4216_v0 = vpop.f32.mrf.mxu2  ;;  %v4397_v46 = vpop.f32.mrf.mxu0 }
 0x474   :  { %v4305_v54 = vpop.f32.mrf.mxu3  ;;  %v4217_v60 = vadd.f32 %v4216_v0, %v4128_v53  ;;  %v4130_v58 = vpop.f32.mrf.mxu1  ;;  %v11362_v0 = vld [vmem:[%s18628_s1 + $0xb8c] sm:$0xf] }
 0x475   :  { %v4131_v35 = vadd.f32 %v4130_v58, %v4042_v45  ;;  %v10592_v18 = vor.u32 %v11362_v0, %v10589_v57 }
 0x476   :  { %v4306_v29 = vadd.f32 %v4305_v54, %v4217_v60  ;;  %4712 = vmatmul.bf16.vlgmr.msrb.gmra.mxu0 %v19463_v21  ;;  %v10336_v60 = vor.u32 %v11298_v15, %v10333_v44 }
 0x477   :  { %4445 = vmatmul.bf16.vlgmr.msrb.gmra.mxu1 %v19533_v17  ;;  %4972 = vmatpush.bf16.msra.mxu3 %v10592_v18 }
 0x478   :  { %4534 = vmatmul.bf16.vlgmr.msrb.gmra.mxu2 %v19534_v37  ;;  %v14280_v54 = vadd.f32 %v4394_v12, %v4306_v29  ;;  %v11234_v29 = vld [vmem:[%s18628_s1 + $0x78c] sm:$0xf] }
 0x479   :  { %4623 = vmatmul.bf16.vlgmr.msrb.gmra.mxu3 %v19462_v40  ;;  %4883 = vmatpush.bf16.msra.mxu2 %v10336_v60  ;;  %v10077_v12 = vld [vmem:[%s18628_s1 + $0x7a8] sm:$0xf0] }
 0x47a   :  { %v10080_v15 = vor.u32 %v11234_v29, %v10077_v12 }
 0x47b   :  { %v4219_v7 = vpop.f32.mrf.mxu2  ;;  %v4399_v45 = vpop.f32.mrf.mxu0 }
 0x47c   :  { %v4308_v55 = vpop.f32.mrf.mxu3  ;;  %v4220_v53 = vadd.f32 %v4219_v7, %v4131_v35  ;;  %v4132_v6 = vpop.f32.mrf.mxu1  ;;  %4794 = vmatpush.bf16.msra.mxu1 %v10080_v15 }
 0x47d   :  { %v4133_v58 = vadd.f32 %v4132_v6, %v4044_v49 }
 0x47e   :  { %v4309_v21 = vadd.f32 %v4308_v55, %v4220_v53  ;;  %v19535_v55 = vld [vmem:[#allocation94_spill] sm:$0xff] }
 0x47f   :  { %v19536_v53 = vld [vmem:[#allocation6_spill] sm:$0xff] }
 0x480   :  { %v14293_v44 = vadd.f32 %v4397_v46, %v4309_v21 }
 0x483   :  { %v4221_v35 = vpop.f32.mrf.mxu2  ;;  %v4402_v18 = vpop.f32.mrf.mxu0 }
 0x484   :  { %v4310_v0 = vpop.f32.mrf.mxu3  ;;  %v4222_v60 = vadd.f32 %v4221_v35, %v4133_v58  ;;  %v4135_v57 = vpop.f32.mrf.mxu1 }
 0x485   :  { %v4136_v49 = vadd.f32 %v4135_v57, %v4047_v11 }
 0x486   :  { %v4311_v7 = vadd.f32 %v4310_v0, %v4222_v60  ;;  %4717 = vmatmul.bf16.gmra.mxu0 %v19467_v56  ;;  %v4052_v0 = vadd.f32 %v13889_v52, %v14051_v50  ;;  %v10301_v52 = vld [vmem:[%s18628_s1 + $0x968] sm:$0xf0] }
 0x487   :  { %4450 = vmatmul.bf16.gmra.mxu1 %v19535_v55 }
 0x488   :  { %4539 = vmatmul.bf16.gmra.mxu2 %v19536_v53  ;;  %v14301_v21 = vadd.f32 %v4399_v45, %v4311_v7 }
 0x489   :  { %4628 = vmatmul.bf16.gmra.mxu3 %v19466_v19 }
 0x48b   :  { %v4224_v46 = vpop.f32.mrf.mxu2  ;;  %v4404_v12 = vpop.f32.mrf.mxu0 }
 0x48c   :  { %v4313_v6 = vpop.f32.mrf.mxu3  ;;  %v4225_v58 = vadd.f32 %v4224_v46, %v4136_v49  ;;  %v4137_v29 = vpop.f32.mrf.mxu1  ;;  %v19538_v49 = vld [vmem:[#allocation10_spill] sm:$0xff] }
 0x48d   :  { %v4138_v15 = vadd.f32 %v4137_v29, %v4049_v48  ;;  %v4054_v29 = vadd.f32 %v13912_v41, %v14051_v50 }
 0x48e   :  { %v4314_v11 = vadd.f32 %v4313_v6, %v4225_v58  ;;  %v10557_v6 = vld [vmem:[%s18628_s1 + $0xb68] sm:$0xf0] }
 0x490   :  { %v14305_v35 = vadd.f32 %v4402_v18, %v4314_v11  ;;  %v11290_v18 = vld [vmem:[%s18628_s1 + $0x94c] sm:$0xf] }
 0x491   :  { %v10304_v46 = vor.u32 %v11290_v18, %v10301_v52 }
 0x493   :  { %v4226_v60 = vpop.f32.mrf.mxu2  ;;  %v4407_v7 = vpop.f32.mrf.mxu0  ;;  %4884 = vmatpush.bf16.msra.mxu2 %v10304_v46 }
 0x494   :  { %v4315_v57 = vpop.f32.mrf.mxu3  ;;  %v4227_v56 = vadd.f32 %v4226_v60, %v4138_v15  ;;  %v4140_v45 = vpop.f32.mrf.mxu1 }
 0x495   :  { %v4141_v19 = vadd.f32 %v4140_v45, %v4052_v0 }
 0x496   :  { %v4316_v40 = vadd.f32 %v4315_v57, %v4227_v56  ;;  %4722 = vmatmul.bf16.gmra.mxu0 %v19471_v13  ;;  %v11354_v56 = vld [vmem:[%s18628_s1 + $0xb4c] sm:$0xf] }
 0x497   :  { %4455 = vmatmul.bf16.gmra.mxu1 %v19537_v20  ;;  %v10560_v58 = vor.u32 %v11354_v56, %v10557_v6 }
 0x498   :  { %4544 = vmatmul.bf16.gmra.mxu2 %v19538_v49  ;;  %v14322_v48 = vadd.f32 %v4404_v12, %v4316_v40  ;;  %v11226_v40 = vld [vmem:[%s18628_s1 + $0x74c] sm:$0xf] }
 0x499   :  { %4633 = vmatmul.bf16.gmra.mxu3 %v19470_v51  ;;  %v10045_v12 = vld [vmem:[%s18628_s1 + $0x768] sm:$0xf0] }
 0x49a   :  { %4973 = vmatpush.bf16.msra.mxu3 %v10560_v58  ;;  %v10048_v18 = vor.u32 %v11226_v40, %v10045_v12 }
 0x49b   :  { %v4229_v15 = vpop.f32.mrf.mxu2  ;;  %v4409_v57 = vpop.f32.mrf.mxu0 }
 0x49c   :  { %v4318_v11 = vpop.f32.mrf.mxu3  ;;  %v4230_v0 = vadd.f32 %v4229_v15, %v4141_v19  ;;  %v4142_v60 = vpop.f32.mrf.mxu1  ;;  %4795 = vmatpush.bf16.msra.mxu1 %v10048_v18  ;;  %v4057_v19 = vadd.f32 %v13923_v3, %v14051_v50  ;;  %v4059_v3 = vadd.f32 %v13934_v34, %v14051_v50  ;;  %v19541_v34 = vld [vmem:[#allocation97_spill] sm:$0xff] }
 0x49d   :  { %v4143_v45 = vadd.f32 %v4142_v60, %v4054_v29 }
 0x49e   :  { %v4319_v13 = vadd.f32 %v4318_v11, %v4230_v0  ;;  %v19539_v11 = vld [vmem:[#allocation96_spill] sm:$0xff]  ;;  %v19540_v0 = vld [vmem:[#allocation14_spill] sm:$0xff] }
 0x4a0   :  { %v14335_v52 = vadd.f32 %v4407_v7, %v4319_v13 }
 0x4a3   :  { %v4231_v41 = vpop.f32.mrf.mxu2  ;;  %v4412_v58 = vpop.f32.mrf.mxu0 }
 0x4a4   :  { %v4320_v56 = vpop.f32.mrf.mxu3  ;;  %v4232_v46 = vadd.f32 %v4231_v41, %v4143_v45  ;;  %v4145_v6 = vpop.f32.mrf.mxu1 }
 0x4a5   :  { %v4146_v29 = vadd.f32 %v4145_v6, %v4057_v19 }
 0x4a6   :  { %v4321_v15 = vadd.f32 %v4320_v56, %v4232_v46  ;;  %4727 = vmatmul.bf16.gmra.mxu0 %v19475_v33  ;;  %v4062_v56 = vadd.f32 %v13939_v5, %v14051_v50  ;;  %v10269_v5 = vld [vmem:[%s18628_s1 + $0x928] sm:$0xf0] }
 0x4a7   :  { %4460 = vmatmul.bf16.gmra.mxu1 %v19539_v11 }
 0x4a8   :  { %4549 = vmatmul.bf16.gmra.mxu2 %v19540_v0  ;;  %v14343_v13 = vadd.f32 %v4409_v57, %v4321_v15 }
 0x4a9   :  { %4638 = vmatmul.bf16.gmra.mxu3 %v19474_v43 }
 0x4ab   :  { %v4234_v7 = vpop.f32.mrf.mxu2  ;;  %v4414_v12 = vpop.f32.mrf.mxu0 }
 0x4ac   :  { %v4323_v60 = vpop.f32.mrf.mxu3  ;;  %v4235_v45 = vadd.f32 %v4234_v7, %v4146_v29  ;;  %v4147_v40 = vpop.f32.mrf.mxu1  ;;  %v19542_v29 = vld [vmem:[#allocation3_spill] sm:$0xff] }
 0x4ad   :  { %v4148_v18 = vadd.f32 %v4147_v40, %v4059_v3  ;;  %v4064_v40 = vadd.f32 %v13962_v27, %v14051_v50 }
 0x4ae   :  { %v4324_v19 = vadd.f32 %v4323_v60, %v4235_v45  ;;  %v10525_v60 = vld [vmem:[%s18628_s1 + $0xb28] sm:$0xf0] }
 0x4b0   :  { %v14347_v41 = vadd.f32 %v4412_v58, %v4324_v19  ;;  %v11282_v58 = vld [vmem:[%s18628_s1 + $0x90c] sm:$0xf] }
 0x4b1   :  { %v10272_v7 = vor.u32 %v11282_v58, %v10269_v5 }
 0x4b3   :  { %v4236_v46 = vpop.f32.mrf.mxu2  ;;  %v4417_v15 = vpop.f32.mrf.mxu0  ;;  %4885 = vmatpush.bf16.msra.mxu2 %v10272_v7 }
 0x4b4   :  { %v4325_v6 = vpop.f32.mrf.mxu3  ;;  %v4237_v33 = vadd.f32 %v4236_v46, %v4148_v18  ;;  %v4150_v57 = vpop.f32.mrf.mxu1 }
 0x4b5   :  { %v4151_v43 = vadd.f32 %v4150_v57, %v4062_v56 }
 0x4b6   :  { %v4326_v51 = vadd.f32 %v4325_v6, %v4237_v33  ;;  %4732 = vmatmul.bf16.gmra.mxu0 %v19479_v9  ;;  %v11346_v33 = vld [vmem:[%s18628_s1 + $0xb0c] sm:$0xf] }
 0x4b7   :  { %4465 = vmatmul.bf16.gmra.mxu1 %v19541_v34  ;;  %v10528_v45 = vor.u32 %v11346_v33, %v10525_v60 }
 0x4b8   :  { %4554 = vmatmul.bf16.gmra.mxu2 %v19542_v29  ;;  %v14364_v3 = vadd.f32 %v4414_v12, %v4326_v51  ;;  %v11218_v51 = vld [vmem:[%s18628_s1 + $0x70c] sm:$0xf] }
 0x4b9   :  { %4643 = vmatmul.bf16.gmra.mxu3 %v19478_v31  ;;  %v10013_v12 = vld [vmem:[%s18628_s1 + $0x728] sm:$0xf0] }
 0x4ba   :  { %4974 = vmatpush.bf16.msra.mxu3 %v10528_v45  ;;  %v10016_v58 = vor.u32 %v11218_v51, %v10013_v12 }
 0x4bb   :  { %v4239_v18 = vpop.f32.mrf.mxu2  ;;  %v4419_v6 = vpop.f32.mrf.mxu0 }
 0x4bc   :  { %v4328_v19 = vpop.f32.mrf.mxu3  ;;  %v4240_v56 = vadd.f32 %v4239_v18, %v4151_v43  ;;  %v4152_v46 = vpop.f32.mrf.mxu1  ;;  %4796 = vmatpush.bf16.msra.mxu1 %v10016_v58  ;;  %v4067_v43 = vadd.f32 %v13973_v8, %v14051_v50  ;;  %v4069_v8 = vadd.f32 %v13984_v36, %v14051_v50  ;;  %v19545_v36 = vld [vmem:[#allocation44_spill] sm:$0xff] }
 0x4bd   :  { %v4153_v57 = vadd.f32 %v4152_v46, %v4064_v40 }
 0x4be   :  { %v4329_v9 = vadd.f32 %v4328_v19, %v4240_v56  ;;  %v19543_v19 = vld [vmem:[#allocation98_spill] sm:$0xff]  ;;  %v19544_v56 = vld [vmem:[#allocation7_spill] sm:$0xff] }
 0x4c0   :  { %v14377_v5 = vadd.f32 %v4417_v15, %v4329_v9 }
 0x4c3   :  { %v4241_v27 = vpop.f32.mrf.mxu2  ;;  %v4422_v45 = vpop.f32.mrf.mxu0 }
 0x4c4   :  { %v4330_v33 = vpop.f32.mrf.mxu3  ;;  %v4242_v7 = vadd.f32 %v4241_v27, %v4153_v57  ;;  %v4155_v60 = vpop.f32.mrf.mxu1 }
 0x4c5   :  { %v4156_v40 = vadd.f32 %v4155_v60, %v4067_v43 }
 0x4c6   :  { %v4331_v18 = vadd.f32 %v4330_v33, %v4242_v7  ;;  %4737 = vmatmul.bf16.gmra.mxu0 %v19483_v4  ;;  %v4072_v33 = vadd.f32 %v13989_v24, %v14051_v50  ;;  %v10237_v24 = vld [vmem:[%s18628_s1 + $0x8e8] sm:$0xf0] }
 0x4c7   :  { %4470 = vmatmul.bf16.gmra.mxu1 %v19543_v19 }
 0x4c8   :  { %4559 = vmatmul.bf16.gmra.mxu2 %v19544_v56  ;;  %v14385_v9 = vadd.f32 %v4419_v6, %v4331_v18 }
 0x4c9   :  { %4648 = vmatmul.bf16.gmra.mxu3 %v19482_v1 }
 0x4cb   :  { %v4244_v15 = vpop.f32.mrf.mxu2  ;;  %v4424_v12 = vpop.f32.mrf.mxu0 }
 0x4cc   :  { %v4333_v46 = vpop.f32.mrf.mxu3  ;;  %v4245_v57 = vadd.f32 %v4244_v15, %v4156_v40  ;;  %v4157_v51 = vpop.f32.mrf.mxu1  ;;  %v19546_v40 = vld [vmem:[#allocation11_spill] sm:$0xff] }
 0x4cd   :  { %v4158_v58 = vadd.f32 %v4157_v51, %v4069_v8  ;;  %v19547_v51 = vld [vmem:[#allocation165_spill] sm:$0xff] }
 0x4ce   :  { %v4334_v43 = vadd.f32 %v4333_v46, %v4245_v57  ;;  %v10493_v46 = vld [vmem:[%s18628_s1 + $0xae8] sm:$0xf0] }
 0x4d0   :  { %v14389_v27 = vadd.f32 %v4422_v45, %v4334_v43  ;;  %v11274_v45 = vld [vmem:[%s18628_s1 + $0x8cc] sm:$0xf] }
 0x4d1   :  { %v10240_v15 = vor.u32 %v11274_v45, %v10237_v24  ;;  %v9347_v24 = vld [vmem:[%s18628_s1 + $0x1d0] sm:$0xf] }
 0x4d3   :  { %v4246_v7 = vpop.f32.mrf.mxu2  ;;  %v4427_v18 = vpop.f32.mrf.mxu0  ;;  %4886 = vmatpush.bf16.msra.mxu2 %v10240_v15 }
 0x4d4   :  { %v4335_v60 = vpop.f32.mrf.mxu3  ;;  %v4247_v4 = vadd.f32 %v4246_v7, %v4158_v58  ;;  %v4160_v6 = vpop.f32.mrf.mxu1  ;;  %v4074_v58 = vadd.f32 %v19547_v51, %v14051_v50 }
 0x4d5   :  { %v4161_v1 = vadd.f32 %v4160_v6, %v4072_v33 }
 0x4d6   :  { %v4336_v31 = vadd.f32 %v4335_v60, %v4247_v4  ;;  %4742 = vmatmul.bf16.gmra.mxu0 %v19488_v22  ;;  %v11338_v4 = vld [vmem:[%s18628_s1 + $0xacc] sm:$0xf] }
 0x4d7   :  { %4475 = vmatmul.bf16.gmra.mxu1 %v19545_v36  ;;  %v10496_v57 = vor.u32 %v11338_v4, %v10493_v46  ;;  %v19549_v46 = vld [vmem:[#allocation167_spill] sm:$0xff] }
 0x4d8   :  { %4564 = vmatmul.bf16.gmra.mxu2 %v19546_v40  ;;  %v14406_v8 = vadd.f32 %v4424_v12, %v4336_v31  ;;  %v11210_v31 = vld [vmem:[%s18628_s1 + $0x6cc] sm:$0xf] }
 0x4d9   :  { %4653 = vmatmul.bf16.gmra.mxu3 %v19486_v25  ;;  %v9981_v12 = vld [vmem:[%s18628_s1 + $0x6e8] sm:$0xf0] }
 0x4da   :  { %4975 = vmatpush.bf16.msra.mxu3 %v10496_v57  ;;  %v9984_v45 = vor.u32 %v11210_v31, %v9981_v12  ;;  %v4077_v57 = vadd.f32 %v19549_v46, %v14051_v50  ;;  %v19550_v12 = vld [vmem:[#allocation47_spill] sm:$0xff] }
 0x4db   :  { %v4249_v43 = vpop.f32.mrf.mxu2  ;;  %v4429_v6 = vpop.f32.mrf.mxu0  ;;  %v19551_v36 = vld [vmem:[#allocation51_spill] sm:$0xff] }
 0x4dc   :  { %v4338_v33 = vpop.f32.mrf.mxu3  ;;  %v4250_v7 = vadd.f32 %v4249_v43, %v4161_v1  ;;  %v4162_v60 = vpop.f32.mrf.mxu1  ;;  %v11055_v1 = vld [vmem:[%s18628_s1 + $0x1ec] sm:$0xf0]  ;;  %4797 = vmatpush.bf16.msra.mxu1 %v9984_v45  ;;  %v19552_v40 = vld [vmem:[#allocation15_spill] sm:$0xff]  ;;  %v19554_v45 = vld [vmem:[#allocation169_spill] sm:$0xff] }
 0x4dd   :  { %v4163_v22 = vadd.f32 %v4162_v60, %v4074_v58  ;;  %v9348_v4 = vor.u32 %v11055_v1, %v9347_v24  ;;  %v4079_v24 = vadd.f32 %v19554_v45, %v14051_v50  ;;  %v19557_v50 = vld [vmem:[#allocation57_spill] sm:$0xff] }
 0x4de   :  { %v4339_v25 = vadd.f32 %v4338_v33, %v4250_v7 }
 0x4df   :  { %5060 = vmatpush.bf16.msra.mxu0 %v9348_v4 }
 0x4e0   :  { %v14425_v15 = vadd.f32 %v4427_v18, %v4339_v25  ;;  %v19553_v25 = vld [vmem:[#allocation48_spill] sm:$0xff] }
 0x4e2   :  { %19548 = vst [vmem:[#allocation137_spill] sm:$0xff] %v14425_v15 }
 0x4e3   :  { %v4251_v51 = vpop.f32.mrf.mxu2  ;;  %v4432_v7 = vpop.f32.mrf.mxu0 }
 0x4e4   :  { %v4340_v58 = vpop.f32.mrf.mxu3  ;;  %v4252_v43 = vadd.f32 %v4251_v51, %v4163_v22  ;;  %v4165_v33 = vpop.f32.mrf.mxu1 }
 0x4e5   :  { %v4166_v60 = vadd.f32 %v4165_v33, %v4077_v57 }
 0x4e6   :  { %v4341_v31 = vadd.f32 %v4340_v58, %v4252_v43  ;;  %4747 = vmatmul.bf16.gmra.mxu0 %v19551_v36 }
 0x4e7   :  { %4480 = vmatmul.bf16.gmra.mxu1 %v19550_v12 }
 0x4e8   :  { %4569 = vmatmul.bf16.gmra.mxu2 %v19552_v40  ;;  %v14433_v18 = vadd.f32 %v4429_v6, %v4341_v31 }
 0x4e9   :  { %4658 = vmatmul.bf16.gmra.mxu3 %v19553_v25  ;;  %v19556_v25 = vld [vmem:[#allocation50_spill] sm:$0xff] }
 0x4eb   :  { %v4254_v1 = vpop.f32.mrf.mxu2  ;;  %v4434_v51 = vpop.f32.mrf.mxu0 }
 0x4ec   :  { %v4343_v4 = vpop.f32.mrf.mxu3  ;;  %v4255_v22 = vadd.f32 %v4254_v1, %v4166_v60  ;;  %v4167_v46 = vpop.f32.mrf.mxu1  ;;  %v19558_v60 = vld [vmem:[#allocation171_spill] sm:$0xff] }
 0x4ed   :  { %v4168_v57 = vadd.f32 %v4167_v46, %v4079_v24  ;;  %v14445_v45 = vperm.slane %v19558_v60, 3  ;;  %v19559_v24 = vld [vmem:[#allocation4_spill] sm:$0xff]  ;;  %v11266_v1 = vld [vmem:[%s18628_s1 + $0x88c] sm:$0xf] }
 0x4ee   :  { %v4344_v58 = vadd.f32 %v4343_v4, %v4255_v22  ;;  %v10461_v4 = vld [vmem:[%s18628_s1 + $0xaa8] sm:$0xf0] }
 0x4f0   :  { %v14437_v43 = vadd.f32 %v4432_v7, %v4344_v58  ;;  %v19560_v7 = vld [vmem:[#allocation54_spill] sm:$0xff] }
 0x4f3   :  { %v4256_v33 = vpop.f32.mrf.mxu2  ;;  %v4713_v15 = vpop.f32.mrf.mxu0 }
 0x4f4   :  { %v4345_v36 = vpop.f32.mrf.mxu3  ;;  %v4257_v12 = vadd.f32 %v4256_v33, %v4168_v57  ;;  %v4446_v40 = vpop.f32.mrf.mxu1 }
 0x4f5   :  { %v14440_v6 = vadd.f32 %v4446_v40, %v14089_v28  ;;  %v10205_v28 = vld [vmem:[%s18628_s1 + $0x8a8] sm:$0xf0] }
 0x4f6   :  { %v4346_v31 = vadd.f32 %v4345_v36, %v4257_v12  ;;  %4752 = vmatmul.bf16.gmra.mxu0 %v19557_v50  ;;  %v11330_v36 = vld [vmem:[%s18628_s1 + $0xa8c] sm:$0xf]  ;;  %v10208_v12 = vor.u32 %v11266_v1, %v10205_v28 }
 0x4f7   :  { %19555 = vst [vmem:[#allocation139_spill] sm:$0xff] %v14440_v6  ;;  %4485 = vmatmul.bf16.gmra.mxu1 %v19556_v25  ;;  %v10464_v22 = vor.u32 %v11330_v36, %v10461_v4  ;;  %v19561_v50 = vld [vmem:[#allocation131_spill] sm:$0xff]  ;;  %v9315_v36 = vld [vmem:[%s18628_s1 + $0x190] sm:$0xf]  ;;  %v19565_v6 = vld [vmem:[#allocation62_spill] sm:$0xff] }
 0x4f8   :  { %4574 = vmatmul.bf16.gmra.mxu2 %v19559_v24  ;;  %v14458_v40 = vadd.f32 %v4434_v51, %v4346_v31  ;;  %v11202_v51 = vld [vmem:[%s18628_s1 + $0x68c] sm:$0xf] }
 0x4f9   :  { %4663 = vmatmul.bf16.gmra.mxu3 %v19560_v7  ;;  %4887 = vmatpush.bf16.msra.mxu2 %v10208_v12  ;;  %v9949_v31 = vld [vmem:[%s18628_s1 + $0x6a8] sm:$0xf0] }
 0x4fa   :  { %4976 = vmatpush.bf16.msra.mxu3 %v10464_v22  ;;  %v9952_v28 = vor.u32 %v11202_v51, %v9949_v31  ;;  %v19564_v1 = vld [vmem:[#allocation59_spill] sm:$0xff] }
 0x4fb   :  { %v4535_v46 = vpop.f32.mrf.mxu2  ;;  %v4715_v60 = vpop.f32.mrf.mxu0 }
 0x4fc   :  { %v4624_v57 = vpop.f32.mrf.mxu3  ;;  %v4536_v58 = vadd.f32 %v4535_v46, %v14445_v45  ;;  %v4448_v33 = vpop.f32.mrf.mxu1  ;;  %4798 = vmatpush.bf16.msra.mxu1 %v9952_v28 }
 0x4fd   :  { %v14465_v7 = vadd.f32 %v4448_v33, %v19561_v50  ;;  %v11047_v50 = vld [vmem:[%s18628_s1 + $0x1ac] sm:$0xf0] }
 0x4fe   :  { %v4625_v25 = vadd.f32 %v4624_v57, %v4536_v58  ;;  %v9316_v12 = vor.u32 %v11047_v50, %v9315_v36 }
 0x4ff   :  { %19562 = vst [vmem:[#allocation144_spill] sm:$0xff] %v14465_v7  ;;  %v19566_v7 = vld [vmem:[#allocation8_spill] sm:$0xff] }
 0x500   :  { %v14481_v4 = vadd.f32 %v4713_v15, %v4625_v25  ;;  %5061 = vmatpush.bf16.msra.mxu0 %v9316_v12  ;;  %v19567_v15 = vld [vmem:[#allocation60_spill] sm:$0xff] }
 0x503   :  { %v4537_v22 = vpop.f32.mrf.mxu2  ;;  %v4718_v33 = vpop.f32.mrf.mxu0 }
 0x504   :  { %v4626_v46 = vpop.f32.mrf.mxu3  ;;  %v4538_v57 = vadd.f32 %v4537_v22, %v14445_v45  ;;  %v4451_v58 = vpop.f32.mrf.mxu1 }
 0x505   :  { %v14485_v51 = vadd.f32 %v4451_v58, %v14101_v38 }
 0x506   :  { %v4627_v31 = vadd.f32 %v4626_v46, %v4538_v57  ;;  %4757 = vmatmul.bf16.gmra.mxu0 %v19565_v6 }
 0x507   :  { %19563 = vst [vmem:[#allocation147_spill] sm:$0xff] %v14485_v51  ;;  %4490 = vmatmul.bf16.gmra.mxu1 %v19564_v1 }
 0x508   :  { %4579 = vmatmul.bf16.gmra.mxu2 %v19566_v7  ;;  %v14491_v25 = vadd.f32 %v4715_v60, %v4627_v31 }
 0x509   :  { %4668 = vmatmul.bf16.gmra.mxu3 %v19567_v15 }
 0x50a   :  { %19568 = vst [vmem:[#allocation149_spill] sm:$0xff] %v14491_v25  ;;  %v19571_v25 = vld [vmem:[#allocation100_spill] sm:$0xff] }
 0x50b   :  { %v4540_v28 = vpop.f32.mrf.mxu2  ;;  %v4720_v22 = vpop.f32.mrf.mxu0 }
 0x50c   :  { %v4629_v36 = vpop.f32.mrf.mxu3  ;;  %v4541_v50 = vadd.f32 %v4540_v28, %v14445_v45  ;;  %v4453_v12 = vpop.f32.mrf.mxu1 }
 0x50d   :  { %v14495_v38 = vadd.f32 %v4453_v12, %v14118_v62  ;;  %v19572_v62 = vld [vmem:[#allocation66_spill] sm:$0xff] }
 0x50e   :  { %v4630_v46 = vadd.f32 %v4629_v36, %v4541_v50  ;;  %v19573_v36 = vld [vmem:[#allocation12_spill] sm:$0xff] }
 0x50f   :  { %19569 = vst [vmem:[#allocation165_spill] sm:$0xff] %v14495_v38  ;;  %v19574_v50 = vld [vmem:[#allocation64_spill] sm:$0xff] }
 0x510   :  { %v14499_v58 = vadd.f32 %v4718_v33, %v4630_v46  ;;  %v11258_v33 = vld [vmem:[%s18628_s1 + $0x84c] sm:$0xf] }
 0x511   :  { %v10429_v46 = vld [vmem:[%s18628_s1 + $0xa68] sm:$0xf0] }
 0x513   :  { %v4542_v6 = vpop.f32.mrf.mxu2  ;;  %v4723_v15 = vpop.f32.mrf.mxu0 }
 0x514   :  { %v4631_v1 = vpop.f32.mrf.mxu3  ;;  %v4543_v60 = vadd.f32 %v4542_v6, %v14445_v45  ;;  %v4456_v31 = vpop.f32.mrf.mxu1  ;;  %v10173_v6 = vld [vmem:[%s18628_s1 + $0x868] sm:$0xf0] }
 0x515   :  { %v14503_v7 = vadd.f32 %v4456_v31, %v14137_v2  ;;  %v11322_v2 = vld [vmem:[%s18628_s1 + $0xa4c] sm:$0xf]  ;;  %v10176_v12 = vor.u32 %v11258_v33, %v10173_v6  ;;  %v19577_v33 = vld [vmem:[#allocation102_spill] sm:$0xff] }
 0x516   :  { %v4632_v28 = vadd.f32 %v4631_v1, %v4543_v60  ;;  %4762 = vmatmul.bf16.gmra.mxu0 %v19572_v62  ;;  %v10432_v60 = vor.u32 %v11322_v2, %v10429_v46  ;;  %v9283_v2 = vld [vmem:[%s18628_s1 + $0x150] sm:$0xf] }
 0x517   :  { %19570 = vst [vmem:[#allocation167_spill] sm:$0xff] %v14503_v7  ;;  %4495 = vmatmul.bf16.gmra.mxu1 %v19571_v25  ;;  %4888 = vmatpush.bf16.msra.mxu2 %v10176_v12  ;;  %v19578_v7 = vld [vmem:[#allocation72_spill] sm:$0xff] }
 0x518   :  { %4584 = vmatmul.bf16.gmra.mxu2 %v19573_v36  ;;  %v14518_v1 = vadd.f32 %v4720_v22, %v4632_v28  ;;  %4977 = vmatpush.bf16.msra.mxu3 %v10432_v60  ;;  %v11194_v22 = vld [vmem:[%s18628_s1 + $0x64c] sm:$0xf] }
 0x519   :  { %4673 = vmatmul.bf16.gmra.mxu3 %v19574_v50  ;;  %v9917_v28 = vld [vmem:[%s18628_s1 + $0x668] sm:$0xf0] }
 0x51a   :  { %v9920_v6 = vor.u32 %v11194_v22, %v9917_v28 }
 0x51b   :  { %v4545_v31 = vpop.f32.mrf.mxu2  ;;  %v4725_v62 = vpop.f32.mrf.mxu0 }
 0x51c   :  { %v4634_v57 = vpop.f32.mrf.mxu3  ;;  %v4546_v51 = vadd.f32 %v4545_v31, %v14445_v45  ;;  %v4458_v38 = vpop.f32.mrf.mxu1  ;;  %4799 = vmatpush.bf16.msra.mxu1 %v9920_v6 }
 0x51d   :  { %v14525_v50 = vadd.f32 %v4458_v38, %v14145_v14  ;;  %v11039_v14 = vld [vmem:[%s18628_s1 + $0x16c] sm:$0xf0] }
 0x51e   :  { %v4635_v25 = vadd.f32 %v4634_v57, %v4546_v51  ;;  %v9284_v51 = vor.u32 %v11039_v14, %v9283_v2 }
 0x51f   :  { %19575 = vst [vmem:[#allocation169_spill] sm:$0xff] %v14525_v50  ;;  %v19579_v50 = vld [vmem:[#allocation16_spill] sm:$0xff] }
 0x520   :  { %v14541_v38 = vadd.f32 %v4723_v15, %v4635_v25  ;;  %5062 = vmatpush.bf16.msra.mxu0 %v9284_v51  ;;  %v19580_v15 = vld [vmem:[#allocation70_spill] sm:$0xff] }
 0x523   :  { %v4547_v57 = vpop.f32.mrf.mxu2  ;;  %v4728_v31 = vpop.f32.mrf.mxu0 }
 0x524   :  { %v4636_v12 = vpop.f32.mrf.mxu3  ;;  %v4548_v46 = vadd.f32 %v4547_v57, %v14445_v45  ;;  %v4461_v60 = vpop.f32.mrf.mxu1 }
 0x525   :  { %v14545_v22 = vadd.f32 %v4461_v60, %v14149_v10 }
 0x526   :  { %v4637_v28 = vadd.f32 %v4636_v12, %v4548_v46  ;;  %4767 = vmatmul.bf16.gmra.mxu0 %v19578_v7 }
 0x527   :  { %19576 = vst [vmem:[#allocation171_spill] sm:$0xff] %v14545_v22  ;;  %4500 = vmatmul.bf16.gmra.mxu1 %v19577_v33 }
 0x528   :  { %4589 = vmatmul.bf16.gmra.mxu2 %v19579_v50  ;;  %v14551_v25 = vadd.f32 %v4725_v62, %v4637_v28 }
 0x529   :  { %4678 = vmatmul.bf16.gmra.mxu3 %v19580_v15 }
 0x52a   :  { %19581 = vst [vmem:[#allocation131_spill] sm:$0xff] %v14551_v25  ;;  %v19584_v25 = vld [vmem:[#allocation105_spill] sm:$0xff] }
 0x52b   :  { %v4550_v6 = vpop.f32.mrf.mxu2  ;;  %v4730_v57 = vpop.f32.mrf.mxu0 }
 0x52c   :  { %v4639_v2 = vpop.f32.mrf.mxu3  ;;  %v4551_v14 = vadd.f32 %v4550_v6, %v14445_v45  ;;  %v4463_v51 = vpop.f32.mrf.mxu1 }
 0x52d   :  { %v14555_v10 = vadd.f32 %v4463_v51, %v14166_v42  ;;  %v19585_v42 = vld [vmem:[#allocation5_spill] sm:$0xff] }
 0x52e   :  { %v4640_v12 = vadd.f32 %v4639_v2, %v4551_v14  ;;  %v10397_v14 = vld [vmem:[%s18628_s1 + $0xa28] sm:$0xf0] }
 0x52f   :  { %19582 = vst [vmem:[#allocation173_spill] sm:$0xff] %v14555_v10 }
 0x530   :  { %v14559_v60 = vadd.f32 %v4728_v31, %v4640_v12  ;;  %v11250_v31 = vld [vmem:[%s18628_s1 + $0x80c] sm:$0xf] }
 0x533   :  { %v4552_v7 = vpop.f32.mrf.mxu2  ;;  %v4733_v15 = vpop.f32.mrf.mxu0 }
 0x534   :  { %v4641_v33 = vpop.f32.mrf.mxu3  ;;  %v4553_v62 = vadd.f32 %v4552_v7, %v14445_v45  ;;  %v4466_v28 = vpop.f32.mrf.mxu1  ;;  %v10141_v7 = vld [vmem:[%s18628_s1 + $0x828] sm:$0xf0] }
 0x535   :  { %v14563_v50 = vadd.f32 %v4466_v28, %v14185_v39  ;;  %v11314_v39 = vld [vmem:[%s18628_s1 + $0xa0c] sm:$0xf]  ;;  %v10144_v2 = vor.u32 %v11250_v31, %v10141_v7  ;;  %v9219_v31 = vld [vmem:[%s18628_s1 + $0xd0] sm:$0xf] }
 0x536   :  { %v4642_v6 = vadd.f32 %v4641_v33, %v4553_v62  ;;  %4772 = vmatmul.bf16.gmra.mxu0 %v19520_v16  ;;  %v10400_v51 = vor.u32 %v11314_v39, %v10397_v14  ;;  %v9251_v39 = vld [vmem:[%s18628_s1 + $0x110] sm:$0xf] }
 0x537   :  { %19583 = vst [vmem:[#allocation174_spill] sm:$0xff] %v14563_v50  ;;  %4505 = vmatmul.bf16.gmra.mxu1 %v19584_v25  ;;  %4889 = vmatpush.bf16.msra.mxu2 %v10144_v2 }
 0x538   :  { %4594 = vmatmul.bf16.gmra.mxu2 %v19585_v42  ;;  %v14578_v33 = vadd.f32 %v4730_v57, %v4642_v6  ;;  %4978 = vmatpush.bf16.msra.mxu3 %v10400_v51  ;;  %v11186_v57 = vld [vmem:[%s18628_s1 + $0x60c] sm:$0xf] }
 0x539   :  { %4683 = vmatmul.bf16.gmra.mxu3 %v19519_v23  ;;  %v9885_v6 = vld [vmem:[%s18628_s1 + $0x628] sm:$0xf0]  ;;  %v19597_v23 = vld [vmem:[#allocation133_spill] sm:$0xff] }
 0x53a   :  { %v9888_v7 = vor.u32 %v11186_v57, %v9885_v6 }
 0x53b   :  { %v4555_v12 = vpop.f32.mrf.mxu2  ;;  %v4735_v22 = vpop.f32.mrf.mxu0 }
 0x53c   :  { %v4644_v62 = vpop.f32.mrf.mxu3  ;;  %v4556_v28 = vadd.f32 %v4555_v12, %v14445_v45  ;;  %v4468_v46 = vpop.f32.mrf.mxu1  ;;  %4800 = vmatpush.bf16.msra.mxu1 %v9888_v7 }
 0x53d   :  { %v14585_v10 = vadd.f32 %v4468_v46, %v14199_v26  ;;  %v11031_v26 = vld [vmem:[%s18628_s1 + $0x12c] sm:$0xf0] }
 0x53e   :  { %v4645_v16 = vadd.f32 %v4644_v62, %v4556_v28  ;;  %v9252_v46 = vor.u32 %v11031_v26, %v9251_v39  ;;  %v19589_v39 = vld [vmem:[#allocation9_spill] sm:$0xff]  ;;  %v9187_v26 = vld [vmem:[%s18628_s1 + $0x90] sm:$0xf] }
 0x53f   :  { %19586 = vst [vmem:[#allocation175_spill] sm:$0xff] %v14585_v10 }
 0x540   :  { %v14601_v2 = vadd.f32 %v4733_v15, %v4645_v16  ;;  %5063 = vmatpush.bf16.msra.mxu0 %v9252_v46  ;;  %v11023_v16 = vld [vmem:[%s18628_s1 + $0xec] sm:$0xf0]  ;;  %v19588_v15 = vld [vmem:[#allocation107_spill] sm:$0xff] }
 0x541   :  { %v9220_v7 = vor.u32 %v11023_v16, %v9219_v31  ;;  %v11015_v46 = vld [vmem:[%s18628_s1 + $0xac] sm:$0xf0] }
 0x543   :  { %v4557_v14 = vpop.f32.mrf.mxu2  ;;  %v4738_v28 = vpop.f32.mrf.mxu0 }
 0x544   :  { %v4646_v51 = vpop.f32.mrf.mxu3  ;;  %v4558_v12 = vadd.f32 %v4557_v14, %v14445_v45  ;;  %v4471_v62 = vpop.f32.mrf.mxu1  ;;  %5064 = vmatpush.bf16.msra.mxu0 %v9220_v7  ;;  %v11007_v7 = vld [vmem:[%s18628_s1 + $0x6c] sm:$0xf0] }
 0x545   :  { %v14605_v57 = vadd.f32 %v4471_v62, %v14215_v59 }
 0x546   :  { %v4647_v6 = vadd.f32 %v4646_v51, %v4558_v12  ;;  %4777 = vmatmul.bf16.gmra.mxu0 %v19522_v63  ;;  %v9188_v12 = vor.u32 %v11015_v46, %v9187_v26  ;;  %v19595_v26 = vld [vmem:[#allocation85_spill] sm:$0xff] }
 0x547   :  { %19587 = vst [vmem:[#allocation176_spill] sm:$0xff] %v14605_v57  ;;  %4510 = vmatmul.bf16.gmra.mxu1 %v19588_v15  ;;  %v19602_v15 = vld [vmem:[#allocation17_spill] sm:$0xff] }
 0x548   :  { %4599 = vmatmul.bf16.gmra.mxu2 %v19589_v39  ;;  %v14617_v59 = vadd.f32 %v4735_v22, %v4647_v6  ;;  %5065 = vmatpush.bf16.msra.mxu0 %v9188_v12  ;;  %v9155_v6 = vld [vmem:[%s18628_s1 + $0x50] sm:$0xf] }
 0x549   :  { %4688 = vmatmul.bf16.gmra.mxu3 %v19521_v47  ;;  %v9156_v46 = vor.u32 %v11007_v7, %v9155_v6  ;;  %v19593_v7 = vld [vmem:[#allocation87_spill] sm:$0xff] }
 0x54b   :  { %v4560_v14 = vpop.f32.mrf.mxu2  ;;  %v4740_v16 = vpop.f32.mrf.mxu0 }
 0x54c   :  { %v4649_v51 = vpop.f32.mrf.mxu3  ;;  %v4561_v31 = vadd.f32 %v4560_v14, %v14445_v45  ;;  %v4473_v62 = vpop.f32.mrf.mxu1  ;;  %5066 = vmatpush.bf16.msra.mxu0 %v9156_v46  ;;  %v19594_v46 = vld [vmem:[#allocation13_spill] sm:$0xff] }
 0x54d   :  { %v14627_v50 = vadd.f32 %v4473_v62, %v14238_v61  ;;  %v9123_v61 = vld [vmem:[%s18628_s1 + $0x10] sm:$0xf] }
 0x54e   :  { %v4650_v22 = vadd.f32 %v4649_v51, %v4561_v31  ;;  %v10999_v51 = vld [vmem:[%s18628_s1 + $0x2c] sm:$0xf0] }
 0x54f   :  { %19590 = vst [vmem:[#allocation177_spill] sm:$0xff] %v14627_v50  ;;  %v9124_v62 = vor.u32 %v10999_v51, %v9123_v61  ;;  %v9859_v61 = vld [vmem:[%s18628_s1 + $0x5d0] sm:$0xf] }
 0x550   :  { %v14637_v14 = vadd.f32 %v4738_v28, %v4650_v22  ;;  %v19592_v22 = vld [vmem:[#allocation109_spill] sm:$0xff]  ;;  %v11183_v51 = vld [vmem:[%s18628_s1 + $0x5ec] sm:$0xf0] }
 0x551   :  { %5067 = vmatpush.bf16.msra.mxu0 %v9124_v62 }
 0x553   :  { %v4562_v12 = vpop.f32.mrf.mxu2  ;;  %v4743_v47 = vpop.f32.mrf.mxu0 }
 0x554   :  { %v4651_v31 = vpop.f32.mrf.mxu3  ;;  %v4563_v10 = vadd.f32 %v4562_v12, %v14445_v45  ;;  %v4476_v63 = vpop.f32.mrf.mxu1  ;;  %v11247_v12 = vld [vmem:[%s18628_s1 + $0x7ec] sm:$0xf0] }
 0x555   :  { %v14647_v6 = vadd.f32 %v4476_v63, %v14251_v32  ;;  %v10115_v63 = vld [vmem:[%s18628_s1 + $0x7d0] sm:$0xf] }
 0x556   :  { %v4652_v28 = vadd.f32 %v4651_v31, %v4563_v10  ;;  %4782 = vmatmul.bf16.gmra.mxu0 %v19593_v7  ;;  %v9860_v10 = vor.u32 %v11183_v51, %v9859_v61  ;;  %v10116_v31 = vor.u32 %v11247_v12, %v10115_v63 }
 0x557   :  { %19591 = vst [vmem:[#allocation178_spill] sm:$0xff] %v14647_v6  ;;  %4515 = vmatmul.bf16.gmra.mxu1 %v19592_v22 }
 0x558   :  { %4604 = vmatmul.bf16.gmra.mxu2 %v19594_v46  ;;  %v14662_v32 = vadd.f32 %v4740_v16, %v4652_v28  ;;  %5327 = vmatpush.bf16.msrb.mxu3 %v10116_v31  ;;  %v9603_v16 = vld [vmem:[%s18628_s1 + $0x3d0] sm:$0xf] }
 0x559   :  { %4693 = vmatmul.bf16.gmra.mxu3 %v19595_v26  ;;  %5238 = vmatpush.bf16.msrb.mxu2 %v9860_v10  ;;  %v11119_v28 = vld [vmem:[%s18628_s1 + $0x3ec] sm:$0xf0] }
 0x55a   :  { %19596 = vst [vmem:[#allocation179_spill] sm:$0xff] %v14662_v32  ;;  %v9604_v51 = vor.u32 %v11119_v28, %v9603_v16  ;;  %v19601_v32 = vld [vmem:[#allocation91_spill] sm:$0xff]  ;;  %v19603_v16 = vld [vmem:[#allocation89_spill] sm:$0xff] }
 0x55b   :  { %v4565_v62 = vpop.f32.mrf.mxu2  ;;  %v4745_v26 = vpop.f32.mrf.mxu0 }
 0x55c   :  { %v4654_v57 = vpop.f32.mrf.mxu3  ;;  %v4566_v50 = vadd.f32 %v4565_v62, %v14445_v45  ;;  %v4478_v7 = vpop.f32.mrf.mxu1  ;;  %5149 = vmatpush.bf16.msrb.mxu1 %v9604_v51  ;;  %v19600_v62 = vld [vmem:[#allocation112_spill] sm:$0xff] }
 0x55d   :  { %v14669_v22 = vadd.f32 %v4478_v7, %v19597_v23 }
 0x55e   :  { %v4655_v46 = vadd.f32 %v4654_v57, %v4566_v50 }
 0x55f   :  { %19598 = vst [vmem:[#allocation133_spill] sm:$0xff] %v14669_v22 }
 0x560   :  { %v14679_v63 = vadd.f32 %v4743_v47, %v4655_v46 }
 0x563   :  { %v4567_v10 = vpop.f32.mrf.mxu2  ;;  %v4748_v57 = vpop.f32.mrf.mxu0 }
 0x564   :  { %v4656_v12 = vpop.f32.mrf.mxu3  ;;  %v4568_v23 = vadd.f32 %v4567_v10, %v14445_v45  ;;  %v4481_v50 = vpop.f32.mrf.mxu1 }
 0x565   :  { %v14683_v7 = vadd.f32 %v4481_v50, %v14263_v30 }
 0x566   :  { %v4657_v31 = vadd.f32 %v4656_v12, %v4568_v23  ;;  %4787 = vmatmul.bf16.gmra.mxu0 %v19601_v32 }
 0x567   :  { %19599 = vst [vmem:[#allocation180_spill] sm:$0xff] %v14683_v7  ;;  %4520 = vmatmul.bf16.gmra.mxu1 %v19600_v62  ;;  %v19606_v62 = vld [vmem:[#allocation21_spill] sm:$0xff] }
 0x568   :  { %4609 = vmatmul.bf16.gmra.mxu2 %v19602_v15  ;;  %v14689_v47 = vadd.f32 %v4745_v26, %v4657_v31 }
 0x569   :  { %4698 = vmatmul.bf16.gmra.mxu3 %v19603_v16 }
 0x56b   :  { %v4570_v46 = vpop.f32.mrf.mxu2  ;;  %v4750_v61 = vpop.f32.mrf.mxu0 }
 0x56c   :  { %v4659_v28 = vpop.f32.mrf.mxu3  ;;  %v4571_v51 = vadd.f32 %v4570_v46, %v14445_v45  ;;  %v4483_v10 = vpop.f32.mrf.mxu1 }
 0x56d   :  { %v14693_v30 = vadd.f32 %v4483_v10, %v14280_v54  ;;  %v19607_v54 = vld [vmem:[#allocation19_spill] sm:$0xff] }
 0x56e   :  { %v4660_v12 = vadd.f32 %v4659_v28, %v4571_v51  ;;  %v11239_v51 = vld [vmem:[%s18628_s1 + $0x7ac] sm:$0xf0] }
 0x56f   :  { %19604 = vst [vmem:[#allocation181_spill] sm:$0xff] %v14693_v30 }
 0x570   :  { %v14697_v50 = vadd.f32 %v4748_v57, %v4660_v12  ;;  %v9827_v57 = vld [vmem:[%s18628_s1 + $0x590] sm:$0xf] }
 0x573   :  { %v4572_v6 = vpop.f32.mrf.mxu2  ;;  %v4753_v32 = vpop.f32.mrf.mxu0 }
 0x574   :  { %v4661_v22 = vpop.f32.mrf.mxu3  ;;  %v4573_v26 = vadd.f32 %v4572_v6, %v14445_v45  ;;  %v4486_v31 = vpop.f32.mrf.mxu1  ;;  %v11175_v6 = vld [vmem:[%s18628_s1 + $0x5ac] sm:$0xf0] }
 0x575   :  { %v14701_v16 = vadd.f32 %v4486_v31, %v14293_v44  ;;  %v10083_v44 = vld [vmem:[%s18628_s1 + $0x790] sm:$0xf]  ;;  %v9828_v28 = vor.u32 %v11175_v6, %v9827_v57 }
 0x576   :  { %v4662_v46 = vadd.f32 %v4661_v22, %v4573_v26  ;;  %5068 = vmatmul.bf16.vlgmr.msra.gmra.mxu0 %v19534_v37  ;;  %v10084_v10 = vor.u32 %v11239_v51, %v10083_v44 }
 0x577   :  { %19605 = vst [vmem:[#allocation182_spill] sm:$0xff] %v14701_v16  ;;  %4801 = vmatmul.bf16.vlgmr.msra.gmra.mxu1 %v19606_v62  ;;  %5239 = vmatpush.bf16.msrb.mxu2 %v9828_v28 }
 0x578   :  { %4890 = vmatmul.bf16.vlgmr.msra.gmra.mxu2 %v19607_v54  ;;  %v14716_v22 = vadd.f32 %v4750_v61, %v4662_v46  ;;  %5328 = vmatpush.bf16.msrb.mxu3 %v10084_v10  ;;  %v9571_v61 = vld [vmem:[%s18628_s1 + $0x390] sm:$0xf] }
 0x579   :  { %4979 = vmatmul.bf16.vlgmr.msra.gmra.mxu3 %v19533_v17  ;;  %v11111_v46 = vld [vmem:[%s18628_s1 + $0x3ac] sm:$0xf0]  ;;  %v19611_v17 = vld [vmem:[#allocation23_spill] sm:$0xff] }
 0x57a   :  { %v9572_v6 = vor.u32 %v11111_v46, %v9571_v61 }
 0x57b   :  { %v4575_v12 = vpop.f32.mrf.mxu2  ;;  %v4755_v7 = vpop.f32.mrf.mxu0 }
 0x57c   :  { %v4664_v26 = vpop.f32.mrf.mxu3  ;;  %v4576_v31 = vadd.f32 %v4575_v12, %v14445_v45  ;;  %v4488_v23 = vpop.f32.mrf.mxu1  ;;  %5150 = vmatpush.bf16.msrb.mxu1 %v9572_v6 }
 0x57d   :  { %v14723_v30 = vadd.f32 %v4488_v23, %v14301_v21 }
 0x57e   :  { %v4665_v37 = vadd.f32 %v4664_v26, %v4576_v31  ;;  %v19610_v31 = vld [vmem:[#allocation25_spill] sm:$0xff] }
 0x57f   :  { %19608 = vst [vmem:[#allocation183_spill] sm:$0xff] %v14723_v30 }
 0x580   :  { %v14733_v44 = vadd.f32 %v4753_v32, %v4665_v37 }
 0x583   :  { %v4577_v28 = vpop.f32.mrf.mxu2  ;;  %v4758_v10 = vpop.f32.mrf.mxu0 }
 0x584   :  { %v4666_v51 = vpop.f32.mrf.mxu3  ;;  %v4578_v21 = vadd.f32 %v4577_v28, %v14445_v45  ;;  %v4491_v23 = vpop.f32.mrf.mxu1 }
 0x585   :  { %v14737_v12 = vadd.f32 %v4491_v23, %v14305_v35 }
 0x586   :  { %v4667_v26 = vadd.f32 %v4666_v51, %v4578_v21  ;;  %5073 = vmatmul.bf16.gmra.mxu0 %v19536_v53 }
 0x587   :  { %19609 = vst [vmem:[#allocation184_spill] sm:$0xff] %v14737_v12  ;;  %4806 = vmatmul.bf16.gmra.mxu1 %v19610_v31 }
 0x588   :  { %4895 = vmatmul.bf16.gmra.mxu2 %v19611_v17  ;;  %v14743_v37 = vadd.f32 %v4755_v7, %v4667_v26 }
 0x589   :  { %4984 = vmatmul.bf16.gmra.mxu3 %v19535_v55  ;;  %v19614_v55 = vld [vmem:[#allocation29_spill] sm:$0xff] }
 0x58b   :  { %v4580_v32 = vpop.f32.mrf.mxu2  ;;  %v4760_v28 = vpop.f32.mrf.mxu0 }
 0x58c   :  { %v4669_v61 = vpop.f32.mrf.mxu3  ;;  %v4581_v46 = vadd.f32 %v4580_v32, %v14445_v45  ;;  %v4493_v6 = vpop.f32.mrf.mxu1 }
 0x58d   :  { %v14747_v35 = vadd.f32 %v4493_v6, %v14322_v48  ;;  %v19615_v48 = vld [vmem:[#allocation27_spill] sm:$0xff] }
 0x58e   :  { %v4670_v51 = vadd.f32 %v4669_v61, %v4581_v46  ;;  %v11231_v46 = vld [vmem:[%s18628_s1 + $0x76c] sm:$0xf0] }
 0x58f   :  { %19612 = vst [vmem:[#allocation185_spill] sm:$0xff] %v14747_v35 }
 0x590   :  { %v14751_v23 = vadd.f32 %v4758_v10, %v4670_v51  ;;  %v9795_v10 = vld [vmem:[%s18628_s1 + $0x550] sm:$0xf] }
 0x593   :  { %v4582_v57 = vpop.f32.mrf.mxu2  ;;  %v4763_v30 = vpop.f32.mrf.mxu0 }
 0x594   :  { %v4671_v16 = vpop.f32.mrf.mxu3  ;;  %v4583_v7 = vadd.f32 %v4582_v57, %v14445_v45  ;;  %v4496_v26 = vpop.f32.mrf.mxu1  ;;  %v11167_v57 = vld [vmem:[%s18628_s1 + $0x56c] sm:$0xf0] }
 0x595   :  { %v14755_v53 = vadd.f32 %v4496_v26, %v14335_v52  ;;  %v10051_v52 = vld [vmem:[%s18628_s1 + $0x750] sm:$0xf]  ;;  %v9796_v61 = vor.u32 %v11167_v57, %v9795_v10 }
 0x596   :  { %v4672_v32 = vadd.f32 %v4671_v16, %v4583_v7  ;;  %5078 = vmatmul.bf16.gmra.mxu0 %v19538_v49  ;;  %v10052_v6 = vor.u32 %v11231_v46, %v10051_v52 }
 0x597   :  { %19613 = vst [vmem:[#allocation186_spill] sm:$0xff] %v14755_v53  ;;  %4811 = vmatmul.bf16.gmra.mxu1 %v19614_v55  ;;  %5240 = vmatpush.bf16.msrb.mxu2 %v9796_v61 }
 0x598   :  { %4900 = vmatmul.bf16.gmra.mxu2 %v19615_v48  ;;  %v14770_v16 = vadd.f32 %v4760_v28, %v4672_v32  ;;  %5329 = vmatpush.bf16.msrb.mxu3 %v10052_v6  ;;  %v9539_v28 = vld [vmem:[%s18628_s1 + $0x350] sm:$0xf] }
 0x599   :  { %4989 = vmatmul.bf16.gmra.mxu3 %v19537_v20  ;;  %v11103_v32 = vld [vmem:[%s18628_s1 + $0x36c] sm:$0xf0]  ;;  %v19619_v20 = vld [vmem:[#allocation31_spill] sm:$0xff] }
 0x59a   :  { %v9540_v57 = vor.u32 %v11103_v32, %v9539_v28 }
 0x59b   :  { %v4585_v51 = vpop.f32.mrf.mxu2  ;;  %v4765_v12 = vpop.f32.mrf.mxu0 }
 0x59c   :  { %v4674_v7 = vpop.f32.mrf.mxu3  ;;  %v4586_v26 = vadd.f32 %v4585_v51, %v14445_v45  ;;  %v4498_v21 = vpop.f32.mrf.mxu1  ;;  %5151 = vmatpush.bf16.msrb.mxu1 %v9540_v57 }
 0x59d   :  { %v14777_v35 = vadd.f32 %v4498_v21, %v14343_v13 }
 0x59e   :  { %v4675_v49 = vadd.f32 %v4674_v7, %v4586_v26  ;;  %v19618_v26 = vld [vmem:[#allocation33_spill] sm:$0xff] }
 0x59f   :  { %19616 = vst [vmem:[#allocation187_spill] sm:$0xff] %v14777_v35 }
 0x5a0   :  { %v14787_v52 = vadd.f32 %v4763_v30, %v4675_v49 }
 0x5a3   :  { %v4587_v61 = vpop.f32.mrf.mxu2  ;;  %v4768_v6 = vpop.f32.mrf.mxu0 }
 0x5a4   :  { %v4676_v46 = vpop.f32.mrf.mxu3  ;;  %v4588_v13 = vadd.f32 %v4587_v61, %v14445_v45  ;;  %v4501_v21 = vpop.f32.mrf.mxu1 }
 0x5a5   :  { %v14791_v51 = vadd.f32 %v4501_v21, %v14347_v41 }
 0x5a6   :  { %v4677_v7 = vadd.f32 %v4676_v46, %v4588_v13  ;;  %5083 = vmatmul.bf16.gmra.mxu0 %v19540_v0 }
 0x5a7   :  { %19617 = vst [vmem:[#allocation188_spill] sm:$0xff] %v14791_v51  ;;  %4816 = vmatmul.bf16.gmra.mxu1 %v19618_v26 }
 0x5a8   :  { %4905 = vmatmul.bf16.gmra.mxu2 %v19619_v20  ;;  %v14797_v49 = vadd.f32 %v4765_v12, %v4677_v7 }
 0x5a9   :  { %4994 = vmatmul.bf16.gmra.mxu3 %v19539_v11  ;;  %v19622_v11 = vld [vmem:[#allocation37_spill] sm:$0xff] }
 0x5ab   :  { %v4590_v30 = vpop.f32.mrf.mxu2  ;;  %v4770_v61 = vpop.f32.mrf.mxu0 }
 0x5ac   :  { %v4679_v28 = vpop.f32.mrf.mxu3  ;;  %v4591_v32 = vadd.f32 %v4590_v30, %v14445_v45  ;;  %v4503_v57 = vpop.f32.mrf.mxu1 }
 0x5ad   :  { %v14801_v41 = vadd.f32 %v4503_v57, %v14364_v3  ;;  %v19623_v3 = vld [vmem:[#allocation35_spill] sm:$0xff] }
 0x5ae   :  { %v4680_v46 = vadd.f32 %v4679_v28, %v4591_v32  ;;  %v11223_v32 = vld [vmem:[%s18628_s1 + $0x72c] sm:$0xf0] }
 0x5af   :  { %19620 = vst [vmem:[#allocation189_spill] sm:$0xff] %v14801_v41 }
 0x5b0   :  { %v14805_v21 = vadd.f32 %v4768_v6, %v4680_v46  ;;  %v9763_v6 = vld [vmem:[%s18628_s1 + $0x510] sm:$0xf] }
 0x5b3   :  { %v4592_v10 = vpop.f32.mrf.mxu2  ;;  %v4773_v35 = vpop.f32.mrf.mxu0 }
 0x5b4   :  { %v4681_v53 = vpop.f32.mrf.mxu3  ;;  %v4593_v12 = vadd.f32 %v4592_v10, %v14445_v45  ;;  %v4506_v7 = vpop.f32.mrf.mxu1  ;;  %v11159_v10 = vld [vmem:[%s18628_s1 + $0x52c] sm:$0xf0] }
 0x5b5   :  { %v14809_v0 = vadd.f32 %v4506_v7, %v14377_v5  ;;  %v9764_v28 = vor.u32 %v11159_v10, %v9763_v6 }
 0x5b6   :  { %v4682_v30 = vadd.f32 %v4681_v53, %v4593_v12  ;;  %5088 = vmatmul.bf16.gmra.mxu0 %v19542_v29  ;;  %v10019_v53 = vld [vmem:[%s18628_s1 + $0x710] sm:$0xf] }
 0x5b7   :  { %19621 = vst [vmem:[#allocation190_spill] sm:$0xff] %v14809_v0  ;;  %4821 = vmatmul.bf16.gmra.mxu1 %v19622_v11  ;;  %v10020_v57 = vor.u32 %v11223_v32, %v10019_v53  ;;  %5241 = vmatpush.bf16.msrb.mxu2 %v9764_v28 }
 0x5b8   :  { %4910 = vmatmul.bf16.gmra.mxu2 %v19623_v3  ;;  %v14824_v5 = vadd.f32 %v4770_v61, %v4682_v30  ;;  %v9507_v61 = vld [vmem:[%s18628_s1 + $0x310] sm:$0xf] }
 0x5b9   :  { %4999 = vmatmul.bf16.gmra.mxu3 %v19541_v34  ;;  %v11095_v30 = vld [vmem:[%s18628_s1 + $0x32c] sm:$0xf0]  ;;  %v19627_v34 = vld [vmem:[#allocation39_spill] sm:$0xff] }
 0x5ba   :  { %5330 = vmatpush.bf16.msrb.mxu3 %v10020_v57  ;;  %v9508_v10 = vor.u32 %v11095_v30, %v9507_v61 }
 0x5bb   :  { %v4595_v46 = vpop.f32.mrf.mxu2  ;;  %v4775_v51 = vpop.f32.mrf.mxu0 }
 0x5bc   :  { %v4684_v12 = vpop.f32.mrf.mxu3  ;;  %v4596_v7 = vadd.f32 %v4595_v46, %v14445_v45  ;;  %v4508_v13 = vpop.f32.mrf.mxu1  ;;  %5152 = vmatpush.bf16.msrb.mxu1 %v9508_v10 }
 0x5bd   :  { %v14831_v41 = vadd.f32 %v4508_v13, %v14385_v9 }
 0x5be   :  { %v4685_v29 = vadd.f32 %v4684_v12, %v4596_v7  ;;  %v19626_v7 = vld [vmem:[#allocation41_spill] sm:$0xff] }
 0x5bf   :  { %19624 = vst [vmem:[#allocation191_spill] sm:$0xff] %v14831_v41 }
 0x5c0   :  { %v14841_v53 = vadd.f32 %v4773_v35, %v4685_v29 }
 0x5c3   :  { %v4597_v28 = vpop.f32.mrf.mxu2  ;;  %v4778_v57 = vpop.f32.mrf.mxu0 }
 0x5c4   :  { %v4686_v32 = vpop.f32.mrf.mxu3  ;;  %v4598_v9 = vadd.f32 %v4597_v28, %v14445_v45  ;;  %v4511_v13 = vpop.f32.mrf.mxu1 }
 0x5c5   :  { %v14845_v46 = vadd.f32 %v4511_v13, %v14389_v27 }
 0x5c6   :  { %v4687_v12 = vadd.f32 %v4686_v32, %v4598_v9  ;;  %5093 = vmatmul.bf16.gmra.mxu0 %v19544_v56  ;;  %v19629_v56 = vld [vmem:[#allocation137_spill] sm:$0xff] }
 0x5c7   :  { %19625 = vst [vmem:[#allocation192_spill] sm:$0xff] %v14845_v46  ;;  %4826 = vmatmul.bf16.gmra.mxu1 %v19626_v7  ;;  %v19631_v7 = vld [vmem:[#allocation46_spill] sm:$0xff] }
 0x5c8   :  { %4915 = vmatmul.bf16.gmra.mxu2 %v19627_v34  ;;  %v14851_v29 = vadd.f32 %v4775_v51, %v4687_v12 }
 0x5c9   :  { %5004 = vmatmul.bf16.gmra.mxu3 %v19543_v19 }
 0x5cb   :  { %v4600_v35 = vpop.f32.mrf.mxu2  ;;  %v4780_v28 = vpop.f32.mrf.mxu0 }
 0x5cc   :  { %v4689_v61 = vpop.f32.mrf.mxu3  ;;  %v4601_v30 = vadd.f32 %v4600_v35, %v14445_v45  ;;  %v4513_v10 = vpop.f32.mrf.mxu1 }
 0x5cd   :  { %v14855_v27 = vadd.f32 %v4513_v10, %v14406_v8  ;;  %v19632_v8 = vld [vmem:[#allocation11_spill] sm:$0xff] }
 0x5ce   :  { %v4690_v32 = vadd.f32 %v4689_v61, %v4601_v30  ;;  %v19633_v61 = vld [vmem:[#allocation43_spill] sm:$0xff]  ;;  %v19634_v30 = vld [vmem:[#allocation44_spill] sm:$0xff] }
 0x5cf   :  { %19628 = vst [vmem:[#allocation193_spill] sm:$0xff] %v14855_v27 }
 0x5d0   :  { %v14859_v13 = vadd.f32 %v4778_v57, %v4690_v32  ;;  %v9731_v57 = vld [vmem:[%s18628_s1 + $0x4d0] sm:$0xf] }
 0x5d1   :  { %v11215_v32 = vld [vmem:[%s18628_s1 + $0x6ec] sm:$0xf0] }
 0x5d3   :  { %v4602_v6 = vpop.f32.mrf.mxu2  ;;  %v4783_v41 = vpop.f32.mrf.mxu0 }
 0x5d4   :  { %v4691_v0 = vpop.f32.mrf.mxu3  ;;  %v4603_v51 = vadd.f32 %v4602_v6, %v14445_v45  ;;  %v4516_v12 = vpop.f32.mrf.mxu1  ;;  %v11151_v6 = vld [vmem:[%s18628_s1 + $0x4ec] sm:$0xf0] }
 0x5d5   :  { %v14863_v19 = vadd.f32 %v4516_v12, %v19629_v56  ;;  %v9732_v10 = vor.u32 %v11151_v6, %v9731_v57  ;;  %v10371_v57 = vld [vmem:[%s18628_s1 + $0x9d0] sm:$0xf] }
 0x5d6   :  { %v4692_v35 = vadd.f32 %v4691_v0, %v4603_v51  ;;  %5098 = vmatmul.bf16.gmra.mxu0 %v19632_v8  ;;  %v9987_v0 = vld [vmem:[%s18628_s1 + $0x6d0] sm:$0xf] }
 0x5d7   :  { %19630 = vst [vmem:[#allocation137_spill] sm:$0xff] %v14863_v19  ;;  %4831 = vmatmul.bf16.gmra.mxu1 %v19631_v7  ;;  %v9988_v51 = vor.u32 %v11215_v32, %v9987_v0  ;;  %5242 = vmatpush.bf16.msrb.mxu2 %v9732_v10  ;;  %v19639_v19 = vld [vmem:[#allocation49_spill] sm:$0xff] }
 0x5d8   :  { %4920 = vmatmul.bf16.gmra.mxu2 %v19633_v61  ;;  %v14878_v56 = vadd.f32 %v4780_v28, %v4692_v35  ;;  %v9475_v28 = vld [vmem:[%s18628_s1 + $0x2d0] sm:$0xf] }
 0x5d9   :  { %5009 = vmatmul.bf16.gmra.mxu3 %v19634_v30  ;;  %v11087_v35 = vld [vmem:[%s18628_s1 + $0x2ec] sm:$0xf0] }
 0x5da   :  { %5331 = vmatpush.bf16.msrb.mxu3 %v9988_v51  ;;  %v9476_v0 = vor.u32 %v11087_v35, %v9475_v28  ;;  %v19637_v28 = vld [vmem:[#allocation52_spill] sm:$0xff]  ;;  %v19638_v35 = vld [vmem:[#allocation15_spill] sm:$0xff] }
 0x5db   :  { %v4605_v12 = vpop.f32.mrf.mxu2  ;;  %v4785_v8 = vpop.f32.mrf.mxu0 }
 0x5dc   :  { %v4694_v9 = vpop.f32.mrf.mxu3  ;;  %v4606_v46 = vadd.f32 %v4605_v12, %v14445_v45  ;;  %v4518_v27 = vpop.f32.mrf.mxu1  ;;  %5153 = vmatpush.bf16.msrb.mxu1 %v9476_v0 }
 0x5dd   :  { %v14885_v30 = vadd.f32 %v4518_v27, %v14433_v18  ;;  %v11311_v18 = vld [vmem:[%s18628_s1 + $0x9ec] sm:$0xf0] }
 0x5de   :  { %v4695_v7 = vadd.f32 %v4694_v9, %v4606_v46  ;;  %v10372_v46 = vor.u32 %v11311_v18, %v10371_v57 }
 0x5df   :  { %19635 = vst [vmem:[#allocation194_spill] sm:$0xff] %v14885_v30 }
 0x5e0   :  { %v14901_v27 = vadd.f32 %v4783_v41, %v4695_v7  ;;  %5416 = vmatpush.bf16.msrb.mxu0 %v10372_v46  ;;  %v19640_v41 = vld [vmem:[#allocation47_spill] sm:$0xff] }
 0x5e3   :  { %v4607_v9 = vpop.f32.mrf.mxu2  ;;  %v4788_v12 = vpop.f32.mrf.mxu0 }
 0x5e4   :  { %v4696_v10 = vpop.f32.mrf.mxu3  ;;  %v4608_v32 = vadd.f32 %v4607_v9, %v14445_v45  ;;  %v4521_v51 = vpop.f32.mrf.mxu1 }
 0x5e5   :  { %v14905_v61 = vadd.f32 %v4521_v51, %v14437_v43 }
 0x5e6   :  { %v4697_v6 = vadd.f32 %v4696_v10, %v4608_v32  ;;  %5103 = vmatmul.bf16.gmra.mxu0 %v19638_v35 }
 0x5e7   :  { %19636 = vst [vmem:[#allocation195_spill] sm:$0xff] %v14905_v61  ;;  %4836 = vmatmul.bf16.gmra.mxu1 %v19637_v28 }
 0x5e8   :  { %4925 = vmatmul.bf16.gmra.mxu2 %v19639_v19  ;;  %v14911_v7 = vadd.f32 %v4785_v8, %v4697_v6  ;;  %v19642_v19 = vld [vmem:[#allocation58_spill] sm:$0xff] }
 0x5e9   :  { %5014 = vmatmul.bf16.gmra.mxu3 %v19640_v41 }
 0x5eb   :  { %v4610_v57 = vpop.f32.mrf.mxu2  ;;  %v4790_v9 = vpop.f32.mrf.mxu0 }
 0x5ec   :  { %v4699_v0 = vpop.f32.mrf.mxu3  ;;  %v4611_v18 = vadd.f32 %v4610_v57, %v14445_v45  ;;  %v4523_v46 = vpop.f32.mrf.mxu1 }
 0x5ed   :  { %v14915_v43 = vadd.f32 %v4523_v46, %v14458_v40  ;;  %v19643_v40 = vld [vmem:[#allocation55_spill] sm:$0xff] }
 0x5ee   :  { %v4700_v10 = vadd.f32 %v4699_v0, %v4611_v18  ;;  %v19644_v0 = vld [vmem:[#allocation50_spill] sm:$0xff]  ;;  %v11207_v18 = vld [vmem:[%s18628_s1 + $0x6ac] sm:$0xf0] }
 0x5ef   :  { %19641 = vst [vmem:[#allocation196_spill] sm:$0xff] %v14915_v43  ;;  %v19646_v43 = vld [vmem:[#allocation149_spill] sm:$0xff] }
 0x5f0   :  { %v14919_v51 = vadd.f32 %v4788_v12, %v4700_v10  ;;  %v9699_v12 = vld [vmem:[%s18628_s1 + $0x490] sm:$0xf] }
 0x5f3   :  { %v4612_v30 = vpop.f32.mrf.mxu2  ;;  %v14922_v41 = vpop.f32.mrf.mxu0 }
 0x5f4   :  { %v4701_v35 = vpop.f32.mrf.mxu3  ;;  %v4613_v8 = vadd.f32 %v4612_v30, %v14445_v45  ;;  %v4802_v6 = vpop.f32.mrf.mxu1  ;;  %v11143_v45 = vld [vmem:[%s18628_s1 + $0x4ac] sm:$0xf0] }
 0x5f5   :  { %v4803_v57 = vadd.f32 %v4802_v6, %v14481_v4  ;;  %v9955_v4 = vld [vmem:[%s18628_s1 + $0x690] sm:$0xf] }
 0x5f6   :  { %v4702_v28 = vadd.f32 %v4701_v35, %v4613_v8  ;;  %5108 = vmatmul.bf16.gmra.mxu0 %v19559_v24  ;;  %v9700_v35 = vor.u32 %v11143_v45, %v9699_v12  ;;  %v9956_v46 = vor.u32 %v11207_v18, %v9955_v4  ;;  %v11303_v45 = vld [vmem:[%s18628_s1 + $0x9ac] sm:$0xf0] }
 0x5f7   :  { %4841 = vmatmul.bf16.gmra.mxu1 %v19642_v19 }
 0x5f8   :  { %4930 = vmatmul.bf16.gmra.mxu2 %v19643_v40  ;;  %v14938_v30 = vadd.f32 %v4790_v9, %v4702_v28  ;;  %5332 = vmatpush.bf16.msrb.mxu3 %v9956_v46  ;;  %v9443_v28 = vld [vmem:[%s18628_s1 + $0x290] sm:$0xf] }
 0x5f9   :  { %5019 = vmatmul.bf16.gmra.mxu3 %v19644_v0  ;;  %5243 = vmatpush.bf16.msrb.mxu2 %v9700_v35  ;;  %v11079_v9 = vld [vmem:[%s18628_s1 + $0x2ac] sm:$0xf0] }
 0x5fa   :  { %v9444_v12 = vor.u32 %v11079_v9, %v9443_v28  ;;  %v19651_v28 = vld [vmem:[#allocation8_spill] sm:$0xff] }
 0x5fb   :  { %v4891_v10 = vpop.f32.mrf.mxu2  ;;  %v14943_v61 = vpop.f32.mrf.mxu0 }
 0x5fc   :  { %v4980_v8 = vpop.f32.mrf.mxu3  ;;  %v4892_v6 = vadd.f32 %v4891_v10, %v4803_v57  ;;  %v4804_v32 = vpop.f32.mrf.mxu1  ;;  %19645 = vst [vmem:[#allocation197_spill] sm:$0xff] %v14943_v61  ;;  %v10339_v57 = vld [vmem:[%s18628_s1 + $0x990] sm:$0xf]  ;;  %5154 = vmatpush.bf16.msrb.mxu1 %v9444_v12  ;;  %v19653_v12 = vld [vmem:[#allocation59_spill] sm:$0xff] }
 0x5fd   :  { %v4805_v24 = vadd.f32 %v4804_v32, %v19646_v43  ;;  %v10340_v43 = vor.u32 %v11303_v45, %v10339_v57  ;;  %v19652_v57 = vld [vmem:[#allocation61_spill] sm:$0xff] }
 0x5fe   :  { %v14946_v0 = vadd.f32 %v4980_v8, %v4892_v6  ;;  %v19650_v6 = vld [vmem:[#allocation63_spill] sm:$0xff] }
 0x5ff   :  { %5417 = vmatpush.bf16.msrb.mxu0 %v10340_v43 }
 0x600   :  { %19647 = vst [vmem:[#allocation149_spill] sm:$0xff] %v14946_v0 }
 0x603   :  { %v4893_v32 = vpop.f32.mrf.mxu2  ;;  %v14960_v46 = vpop.f32.mrf.mxu0 }
 0x604   :  { %v4982_v4 = vpop.f32.mrf.mxu3  ;;  %v4894_v35 = vadd.f32 %v4893_v32, %v4805_v24  ;;  %v4807_v18 = vpop.f32.mrf.mxu1  ;;  %19648 = vst [vmem:[#allocation198_spill] sm:$0xff] %v14960_v46 }
 0x605   :  { %v4808_v10 = vadd.f32 %v4807_v18, %v14499_v58 }
 0x606   :  { %v14963_v8 = vadd.f32 %v4982_v4, %v4894_v35  ;;  %5113 = vmatmul.bf16.gmra.mxu0 %v19651_v28 }
 0x607   :  { %4846 = vmatmul.bf16.gmra.mxu1 %v19650_v6 }
 0x608   :  { %19649 = vst [vmem:[#allocation199_spill] sm:$0xff] %v14963_v8  ;;  %4935 = vmatmul.bf16.gmra.mxu2 %v19652_v57  ;;  %v19656_v8 = vld [vmem:[#allocation67_spill] sm:$0xff] }
 0x609   :  { %5024 = vmatmul.bf16.gmra.mxu3 %v19653_v12 }
 0x60b   :  { %v4896_v45 = vpop.f32.mrf.mxu2  ;;  %v14971_v46 = vpop.f32.mrf.mxu0 }
 0x60c   :  { %v4985_v24 = vpop.f32.mrf.mxu3  ;;  %v4897_v43 = vadd.f32 %v4896_v45, %v4808_v10  ;;  %v4809_v32 = vpop.f32.mrf.mxu1  ;;  %v19658_v45 = vld [vmem:[#allocation100_spill] sm:$0xff] }
 0x60d   :  { %v4810_v58 = vadd.f32 %v4809_v32, %v14518_v1  ;;  %v19657_v1 = vld [vmem:[#allocation65_spill] sm:$0xff] }
 0x60e   :  { %v14974_v4 = vadd.f32 %v4985_v24, %v4897_v43  ;;  %v9667_v24 = vld [vmem:[%s18628_s1 + $0x450] sm:$0xf] }
 0x60f   :  { %v11199_v43 = vld [vmem:[%s18628_s1 + $0x66c] sm:$0xf0] }
 0x610   :  { %19654 = vst [vmem:[#allocation200_spill] sm:$0xff] %v14974_v4 }
 0x613   :  { %v4898_v35 = vpop.f32.mrf.mxu2  ;;  %v14976_v61 = vpop.f32.mrf.mxu0 }
 0x614   :  { %v4987_v18 = vpop.f32.mrf.mxu3  ;;  %v4899_v28 = vadd.f32 %v4898_v35, %v4810_v58  ;;  %v4812_v6 = vpop.f32.mrf.mxu1 }
 0x615   :  { %v4813_v9 = vadd.f32 %v4812_v6, %v14541_v38  ;;  %v11135_v38 = vld [vmem:[%s18628_s1 + $0x46c] sm:$0xf0] }
 0x616   :  { %v14979_v0 = vadd.f32 %v4987_v18, %v4899_v28  ;;  %5118 = vmatmul.bf16.gmra.mxu0 %v19573_v36  ;;  %v9923_v6 = vld [vmem:[%s18628_s1 + $0x650] sm:$0xf]  ;;  %v9668_v28 = vor.u32 %v11135_v38, %v9667_v24 }
 0x617   :  { %4851 = vmatmul.bf16.gmra.mxu1 %v19656_v8  ;;  %v9924_v32 = vor.u32 %v11199_v43, %v9923_v6  ;;  %v9411_v24 = vld [vmem:[%s18628_s1 + $0x250] sm:$0xf] }
 0x618   :  { %19655 = vst [vmem:[#allocation201_spill] sm:$0xff] %v14979_v0  ;;  %4940 = vmatmul.bf16.gmra.mxu2 %v19657_v1  ;;  %v19660_v0 = vld [vmem:[#allocation131_spill] sm:$0xff]  ;;  %v11071_v38 = vld [vmem:[%s18628_s1 + $0x26c] sm:$0xf0] }
 0x619   :  { %5029 = vmatmul.bf16.gmra.mxu3 %v19658_v45  ;;  %5244 = vmatpush.bf16.msrb.mxu2 %v9668_v28  ;;  %v9412_v6 = vor.u32 %v11071_v38, %v9411_v24  ;;  %v11295_v28 = vld [vmem:[%s18628_s1 + $0x96c] sm:$0xf0] }
 0x61a   :  { %5333 = vmatpush.bf16.msrb.mxu3 %v9924_v32  ;;  %v19665_v24 = vld [vmem:[#allocation16_spill] sm:$0xff] }
 0x61b   :  { %v4901_v58 = vpop.f32.mrf.mxu2  ;;  %v14999_v4 = vpop.f32.mrf.mxu0  ;;  %5155 = vmatpush.bf16.msrb.mxu1 %v9412_v6  ;;  %v19667_v6 = vld [vmem:[#allocation102_spill] sm:$0xff] }
 0x61c   :  { %v4990_v35 = vpop.f32.mrf.mxu3  ;;  %v4902_v18 = vadd.f32 %v4901_v58, %v4813_v9  ;;  %v4814_v10 = vpop.f32.mrf.mxu1  ;;  %19659 = vst [vmem:[#allocation202_spill] sm:$0xff] %v14999_v4  ;;  %v10307_v9 = vld [vmem:[%s18628_s1 + $0x950] sm:$0xf]  ;;  %v19664_v4 = vld [vmem:[#allocation73_spill] sm:$0xff] }
 0x61d   :  { %v4815_v36 = vadd.f32 %v4814_v10, %v19660_v0  ;;  %v10308_v0 = vor.u32 %v11295_v28, %v10307_v9  ;;  %v19666_v9 = vld [vmem:[#allocation71_spill] sm:$0xff] }
 0x61e   :  { %v15002_v45 = vadd.f32 %v4990_v35, %v4902_v18 }
 0x61f   :  { %5418 = vmatpush.bf16.msrb.mxu0 %v10308_v0 }
 0x620   :  { %19661 = vst [vmem:[#allocation131_spill] sm:$0xff] %v15002_v45 }
 0x623   :  { %v4903_v10 = vpop.f32.mrf.mxu2  ;;  %v15016_v35 = vpop.f32.mrf.mxu0 }
 0x624   :  { %v4992_v43 = vpop.f32.mrf.mxu3  ;;  %v4904_v32 = vadd.f32 %v4903_v10, %v4815_v36  ;;  %v4817_v58 = vpop.f32.mrf.mxu1  ;;  %19662 = vst [vmem:[#allocation203_spill] sm:$0xff] %v15016_v35 }
 0x625   :  { %v4818_v18 = vadd.f32 %v4817_v58, %v14559_v60 }
 0x626   :  { %v15019_v12 = vadd.f32 %v4992_v43, %v4904_v32  ;;  %5123 = vmatmul.bf16.gmra.mxu0 %v19665_v24 }
 0x627   :  { %4856 = vmatmul.bf16.gmra.mxu1 %v19664_v4 }
 0x628   :  { %19663 = vst [vmem:[#allocation204_spill] sm:$0xff] %v15019_v12  ;;  %4945 = vmatmul.bf16.gmra.mxu2 %v19666_v9  ;;  %v19670_v12 = vld [vmem:[#allocation77_spill] sm:$0xff] }
 0x629   :  { %5034 = vmatmul.bf16.gmra.mxu3 %v19667_v6 }
 0x62b   :  { %v4906_v28 = vpop.f32.mrf.mxu2  ;;  %v15027_v35 = vpop.f32.mrf.mxu0 }
 0x62c   :  { %v4995_v36 = vpop.f32.mrf.mxu3  ;;  %v4907_v0 = vadd.f32 %v4906_v28, %v4818_v18  ;;  %v4819_v10 = vpop.f32.mrf.mxu1  ;;  %v9635_v28 = vld [vmem:[%s18628_s1 + $0x410] sm:$0xf] }
 0x62d   :  { %v4820_v60 = vadd.f32 %v4819_v10, %v14578_v33  ;;  %v19671_v33 = vld [vmem:[#allocation75_spill] sm:$0xff] }
 0x62e   :  { %v15030_v43 = vadd.f32 %v4995_v36, %v4907_v0  ;;  %v11191_v36 = vld [vmem:[%s18628_s1 + $0x62c] sm:$0xf0] }
 0x630   :  { %19668 = vst [vmem:[#allocation205_spill] sm:$0xff] %v15030_v43 }
 0x633   :  { %v4908_v32 = vpop.f32.mrf.mxu2  ;;  %v15032_v8 = vpop.f32.mrf.mxu0 }
 0x634   :  { %v4997_v58 = vpop.f32.mrf.mxu3  ;;  %v4909_v24 = vadd.f32 %v4908_v32, %v4820_v60  ;;  %v4822_v4 = vpop.f32.mrf.mxu1 }
 0x635   :  { %v4823_v38 = vadd.f32 %v4822_v4, %v14601_v2  ;;  %v11127_v2 = vld [vmem:[%s18628_s1 + $0x42c] sm:$0xf0] }
 0x636   :  { %v15035_v45 = vadd.f32 %v4997_v58, %v4909_v24  ;;  %5128 = vmatmul.bf16.gmra.mxu0 %v19585_v42  ;;  %v9891_v4 = vld [vmem:[%s18628_s1 + $0x610] sm:$0xf]  ;;  %v9636_v24 = vor.u32 %v11127_v2, %v9635_v28 }
 0x637   :  { %4861 = vmatmul.bf16.gmra.mxu1 %v19670_v12  ;;  %v9892_v0 = vor.u32 %v11191_v36, %v9891_v4  ;;  %v9379_v28 = vld [vmem:[%s18628_s1 + $0x210] sm:$0xf] }
 0x638   :  { %19669 = vst [vmem:[#allocation206_spill] sm:$0xff] %v15035_v45  ;;  %4950 = vmatmul.bf16.gmra.mxu2 %v19671_v33  ;;  %v11063_v2 = vld [vmem:[%s18628_s1 + $0x22c] sm:$0xf0] }
 0x639   :  { %5039 = vmatmul.bf16.gmra.mxu3 %v19584_v25  ;;  %5245 = vmatpush.bf16.msrb.mxu2 %v9636_v24  ;;  %v9380_v4 = vor.u32 %v11063_v2, %v9379_v28  ;;  %v11287_v24 = vld [vmem:[%s18628_s1 + $0x92c] sm:$0xf0] }
 0x63a   :  { %5334 = vmatpush.bf16.msrb.mxu3 %v9892_v0  ;;  %v10243_v28 = vld [vmem:[%s18628_s1 + $0x8d0] sm:$0xf] }
 0x63b   :  { %v4911_v10 = vpop.f32.mrf.mxu2  ;;  %v15055_v18 = vpop.f32.mrf.mxu0  ;;  %5156 = vmatpush.bf16.msrb.mxu1 %v9380_v4  ;;  %v11279_v2 = vld [vmem:[%s18628_s1 + $0x8ec] sm:$0xf0]  ;;  %v19678_v4 = vld [vmem:[#allocation179_spill] sm:$0xff] }
 0x63c   :  { %v5000_v60 = vpop.f32.mrf.mxu3  ;;  %v4912_v32 = vadd.f32 %v4911_v10, %v4823_v38  ;;  %v4824_v58 = vpop.f32.mrf.mxu1  ;;  %v10275_v38 = vld [vmem:[%s18628_s1 + $0x910] sm:$0xf] }
 0x63d   :  { %v4825_v43 = vadd.f32 %v4824_v58, %v14617_v59  ;;  %v10276_v59 = vor.u32 %v11287_v24, %v10275_v38  ;;  %v19674_v38 = vld [vmem:[#allocation82_spill] sm:$0xff]  ;;  %v19675_v24 = vld [vmem:[#allocation80_spill] sm:$0xff] }
 0x63e   :  { %v15058_v45 = vadd.f32 %v5000_v60, %v4912_v32 }
 0x63f   :  { %5419 = vmatpush.bf16.msrb.mxu0 %v10276_v59  ;;  %v10211_v59 = vld [vmem:[%s18628_s1 + $0x890] sm:$0xf] }
 0x640   :  { %19672 = vst [vmem:[#allocation207_spill] sm:$0xff] %v15058_v45 }
 0x643   :  { %v4913_v36 = vpop.f32.mrf.mxu2  ;;  %v15072_v32 = vpop.f32.mrf.mxu0 }
 0x644   :  { %v5002_v0 = vpop.f32.mrf.mxu3  ;;  %v4914_v10 = vadd.f32 %v4913_v36, %v4825_v43  ;;  %v4827_v60 = vpop.f32.mrf.mxu1  ;;  %v10244_v43 = vor.u32 %v11279_v2, %v10243_v28  ;;  %v11271_v36 = vld [vmem:[%s18628_s1 + $0x8ac] sm:$0xf0] }
 0x645   :  { %v4828_v58 = vadd.f32 %v4827_v60, %v14637_v14  ;;  %v19676_v14 = vld [vmem:[#allocation107_spill] sm:$0xff]  ;;  %v10212_v60 = vor.u32 %v11271_v36, %v10211_v59 }
 0x646   :  { %v15075_v42 = vadd.f32 %v5002_v0, %v4914_v10  ;;  %5133 = vmatmul.bf16.gmra.mxu0 %v19589_v39 }
 0x647   :  { %4866 = vmatmul.bf16.gmra.mxu1 %v19674_v38  ;;  %5420 = vmatpush.bf16.msrb.mxu0 %v10244_v43  ;;  %v10179_v43 = vld [vmem:[%s18628_s1 + $0x850] sm:$0xf]  ;;  %v19684_v38 = vld [vmem:[#allocation109_spill] sm:$0xff] }
 0x648   :  { %19673 = vst [vmem:[#allocation208_spill] sm:$0xff] %v15075_v42  ;;  %4955 = vmatmul.bf16.gmra.mxu2 %v19675_v24 }
 0x649   :  { %5044 = vmatmul.bf16.gmra.mxu3 %v19676_v14  ;;  %v11263_v14 = vld [vmem:[%s18628_s1 + $0x86c] sm:$0xf0] }
 0x64a   :  { %v10180_v25 = vor.u32 %v11263_v14, %v10179_v43  ;;  %v19682_v43 = vld [vmem:[#allocation13_spill] sm:$0xff] }
 0x64b   :  { %v4916_v0 = vpop.f32.mrf.mxu2  ;;  %v15095_v39 = vpop.f32.mrf.mxu0  ;;  %5421 = vmatpush.bf16.msrb.mxu0 %v10212_v60 }
 0x64c   :  { %v5005_v10 = vpop.f32.mrf.mxu3  ;;  %v4917_v28 = vadd.f32 %v4916_v0, %v4828_v58  ;;  %v4829_v2 = vpop.f32.mrf.mxu1  ;;  %19677 = vst [vmem:[#allocation209_spill] sm:$0xff] %v15095_v39  ;;  %v10147_v58 = vld [vmem:[%s18628_s1 + $0x810] sm:$0xf]  ;;  %v19683_v39 = vld [vmem:[#allocation86_spill] sm:$0xff] }
 0x64d   :  { %v4830_v45 = vadd.f32 %v4829_v2, %v19678_v4  ;;  %v11255_v4 = vld [vmem:[%s18628_s1 + $0x82c] sm:$0xf0] }
 0x64e   :  { %v15098_v42 = vadd.f32 %v5005_v10, %v4917_v28  ;;  %v10148_v0 = vor.u32 %v11255_v4, %v10147_v58  ;;  %v11115_v58 = vld [vmem:[%s18628_s1 + $0x3d4] sm:$0xf] }
 0x64f   :  { %5422 = vmatpush.bf16.msrb.mxu0 %v10180_v25  ;;  %v19681_v25 = vld [vmem:[#allocation88_spill] sm:$0xff] }
 0x650   :  { %19679 = vst [vmem:[#allocation179_spill] sm:$0xff] %v15098_v42 }
 0x653   :  { %v4918_v59 = vpop.f32.mrf.mxu2  ;;  %v15112_v28 = vpop.f32.mrf.mxu0  ;;  %5423 = vmatpush.bf16.msrb.mxu0 %v10148_v0 }
 0x654   :  { %v5007_v36 = vpop.f32.mrf.mxu3  ;;  %v4919_v10 = vadd.f32 %v4918_v59, %v4830_v45  ;;  %v4832_v60 = vpop.f32.mrf.mxu1  ;;  %v11051_v45 = vld [vmem:[%s18628_s1 + $0x1d4] sm:$0xf] }
 0x655   :  { %v4833_v2 = vadd.f32 %v4832_v60, %v14679_v63  ;;  %v9349_v63 = vld [vmem:[%s18628_s1 + $0x1f0] sm:$0xf0] }
 0x656   :  { %v15115_v14 = vadd.f32 %v5007_v36, %v4919_v10  ;;  %5138 = vmatmul.bf16.gmra.mxu0 %v19682_v43  ;;  %v9352_v4 = vor.u32 %v11051_v45, %v9349_v63  ;;  %v9605_v59 = vld [vmem:[%s18628_s1 + $0x3f0] sm:$0xf0]  ;;  %v10627_v45 = vld [vmem:[%s18628_s1 + $0xbd0] sm:$0xf] }
 0x657   :  { %4871 = vmatmul.bf16.gmra.mxu1 %v19681_v25  ;;  %v9608_v36 = vor.u32 %v11115_v58, %v9605_v59  ;;  %v11375_v63 = vld [vmem:[%s18628_s1 + $0xbec] sm:$0xf0] }
 0x658   :  { %19680 = vst [vmem:[#allocation210_spill] sm:$0xff] %v15115_v14  ;;  %4960 = vmatmul.bf16.gmra.mxu2 %v19683_v39  ;;  %v10628_v58 = vor.u32 %v11375_v63, %v10627_v45  ;;  %v19691_v45 = vld [vmem:[#allocation112_spill] sm:$0xff] }
 0x659   :  { %5049 = vmatmul.bf16.gmra.mxu3 %v19684_v38  ;;  %5594 = vmatpush.bf16.msra.mxu2 %v9352_v4 }
 0x65a   :  { %5683 = vmatpush.bf16.msra.mxu3 %v9608_v36  ;;  %5505 = vmatpush.bf16.msra.mxu1 %v10628_v58  ;;  %v19689_v36 = vld [vmem:[#allocation92_spill] sm:$0xff] }
 0x65b   :  { %v4921_v0 = vpop.f32.mrf.mxu2  ;;  %v15135_v42 = vpop.f32.mrf.mxu0 }
 0x65c   :  { %v5010_v10 = vpop.f32.mrf.mxu3  ;;  %v4922_v60 = vadd.f32 %v4921_v0, %v4833_v2  ;;  %v4834_v6 = vpop.f32.mrf.mxu1  ;;  %19685 = vst [vmem:[#allocation211_spill] sm:$0xff] %v15135_v42 }
 0x65d   :  { %v4835_v14 = vadd.f32 %v4834_v6, %v14689_v47 }
 0x65e   :  { %v15138_v43 = vadd.f32 %v5010_v10, %v4922_v60  ;;  %v19690_v60 = vld [vmem:[#allocation90_spill] sm:$0xff] }
 0x660   :  { %19686 = vst [vmem:[#allocation212_spill] sm:$0xff] %v15138_v43 }
 0x663   :  { %v4923_v4 = vpop.f32.mrf.mxu2  ;;  %v15146_v38 = vpop.f32.mrf.mxu0 }
 0x664   :  { %v5012_v2 = vpop.f32.mrf.mxu3  ;;  %v4924_v59 = vadd.f32 %v4923_v4, %v4835_v14  ;;  %v4837_v0 = vpop.f32.mrf.mxu1  ;;  %19687 = vst [vmem:[#allocation213_spill] sm:$0xff] %v15146_v38 }
 0x665   :  { %v4838_v47 = vadd.f32 %v4837_v0, %v14697_v50 }
 0x666   :  { %v15149_v6 = vadd.f32 %v5012_v2, %v4924_v59  ;;  %5143 = vmatmul.bf16.gmra.mxu0 %v19602_v15 }
 0x667   :  { %4876 = vmatmul.bf16.gmra.mxu1 %v19689_v36 }
 0x668   :  { %19688 = vst [vmem:[#allocation214_spill] sm:$0xff] %v15149_v6  ;;  %4965 = vmatmul.bf16.gmra.mxu2 %v19690_v60  ;;  %v19694_v6 = vld [vmem:[#allocation18_spill] sm:$0xff] }
 0x669   :  { %5054 = vmatmul.bf16.gmra.mxu3 %v19691_v45 }
 0x66b   :  { %v4926_v63 = vpop.f32.mrf.mxu2  ;;  %v15157_v38 = vpop.f32.mrf.mxu0 }
 0x66c   :  { %v5015_v14 = vpop.f32.mrf.mxu3  ;;  %v4927_v58 = vadd.f32 %v4926_v63, %v4838_v47  ;;  %v4839_v4 = vpop.f32.mrf.mxu1  ;;  %v11043_v63 = vld [vmem:[%s18628_s1 + $0x194] sm:$0xf] }
 0x66d   :  { %v4840_v50 = vadd.f32 %v4839_v4, %v14716_v22  ;;  %v19695_v22 = vld [vmem:[#allocation20_spill] sm:$0xff] }
 0x66e   :  { %v15160_v2 = vadd.f32 %v5015_v14, %v4927_v58  ;;  %v9573_v14 = vld [vmem:[%s18628_s1 + $0x3b0] sm:$0xf0] }
 0x670   :  { %19692 = vst [vmem:[#allocation215_spill] sm:$0xff] %v15160_v2 }
 0x673   :  { %v4928_v59 = vpop.f32.mrf.mxu2  ;;  %v15162_v42 = vpop.f32.mrf.mxu0 }
 0x674   :  { %v5017_v0 = vpop.f32.mrf.mxu3  ;;  %v4929_v15 = vadd.f32 %v4928_v59, %v4840_v50  ;;  %v4842_v36 = vpop.f32.mrf.mxu1 }
 0x675   :  { %v4843_v10 = vadd.f32 %v4842_v36, %v14733_v44  ;;  %v11107_v44 = vld [vmem:[%s18628_s1 + $0x394] sm:$0xf] }
 0x676   :  { %v15165_v43 = vadd.f32 %v5017_v0, %v4929_v15  ;;  %5424 = vmatmul.bf16.vlgmr.msrb.gmra.mxu0 %v19607_v54  ;;  %v9317_v15 = vld [vmem:[%s18628_s1 + $0x1b0] sm:$0xf0]  ;;  %v9576_v58 = vor.u32 %v11107_v44, %v9573_v14 }
 0x677   :  { %5157 = vmatmul.bf16.vlgmr.msrb.gmra.mxu1 %v19694_v6  ;;  %v9320_v36 = vor.u32 %v11043_v63, %v9317_v15  ;;  %v10595_v63 = vld [vmem:[%s18628_s1 + $0xb90] sm:$0xf] }
 0x678   :  { %19693 = vst [vmem:[#allocation216_spill] sm:$0xff] %v15165_v43  ;;  %5246 = vmatmul.bf16.vlgmr.msrb.gmra.mxu2 %v19695_v22  ;;  %5684 = vmatpush.bf16.msra.mxu3 %v9576_v58  ;;  %v11367_v15 = vld [vmem:[%s18628_s1 + $0xbac] sm:$0xf0] }
 0x679   :  { %5335 = vmatmul.bf16.vlgmr.msrb.gmra.mxu3 %v19606_v62  ;;  %5595 = vmatpush.bf16.msra.mxu2 %v9320_v36  ;;  %v10596_v44 = vor.u32 %v11367_v15, %v10595_v63 }
 0x67b   :  { %v4931_v4 = vpop.f32.mrf.mxu2  ;;  %v15185_v47 = vpop.f32.mrf.mxu0  ;;  %5506 = vmatpush.bf16.msra.mxu1 %v10596_v44 }
 0x67c   :  { %v5020_v50 = vpop.f32.mrf.mxu3  ;;  %v4932_v59 = vadd.f32 %v4931_v4, %v4843_v10  ;;  %v4844_v0 = vpop.f32.mrf.mxu1 }
 0x67d   :  { %v4845_v2 = vadd.f32 %v4844_v0, %v14743_v37  ;;  %v19699_v0 = vld [vmem:[#allocation24_spill] sm:$0xff] }
 0x67e   :  { %v15188_v43 = vadd.f32 %v5020_v50, %v4932_v59  ;;  %v19698_v50 = vld [vmem:[#allocation22_spill] sm:$0xff] }
 0x680   :  { %19696 = vst [vmem:[#allocation217_spill] sm:$0xff] %v15188_v43 }
 0x683   :  { %v4933_v36 = vpop.f32.mrf.mxu2  ;;  %v15196_v54 = vpop.f32.mrf.mxu0 }
 0x684   :  { %v5022_v10 = vpop.f32.mrf.mxu3  ;;  %v4934_v14 = vadd.f32 %v4933_v36, %v4845_v2  ;;  %v4847_v4 = vpop.f32.mrf.mxu1 }
 0x685   :  { %v4848_v37 = vadd.f32 %v4847_v4, %v14751_v23 }
 0x686   :  { %v15199_v58 = vadd.f32 %v5022_v10, %v4934_v14  ;;  %5429 = vmatmul.bf16.gmra.mxu0 %v19611_v17 }
 0x687   :  { %5162 = vmatmul.bf16.gmra.mxu1 %v19698_v50 }
 0x688   :  { %19697 = vst [vmem:[#allocation218_spill] sm:$0xff] %v15199_v58  ;;  %5251 = vmatmul.bf16.gmra.mxu2 %v19699_v0  ;;  %v19702_v58 = vld [vmem:[#allocation26_spill] sm:$0xff] }
 0x689   :  { %5340 = vmatmul.bf16.gmra.mxu3 %v19610_v31 }
 0x68b   :  { %v4936_v63 = vpop.f32.mrf.mxu2  ;;  %v15207_v36 = vpop.f32.mrf.mxu0 }
 0x68c   :  { %v5025_v2 = vpop.f32.mrf.mxu3  ;;  %v4937_v15 = vadd.f32 %v4936_v63, %v4848_v37  ;;  %v4849_v44 = vpop.f32.mrf.mxu1  ;;  %v11035_v63 = vld [vmem:[%s18628_s1 + $0x154] sm:$0xf] }
 0x68d   :  { %v4850_v23 = vadd.f32 %v4849_v44, %v14770_v16  ;;  %v19703_v16 = vld [vmem:[#allocation28_spill] sm:$0xff] }
 0x68e   :  { %v15210_v10 = vadd.f32 %v5025_v2, %v4937_v15  ;;  %v9541_v2 = vld [vmem:[%s18628_s1 + $0x370] sm:$0xf0] }
 0x690   :  { %19700 = vst [vmem:[#allocation219_spill] sm:$0xff] %v15210_v10 }
 0x693   :  { %v4938_v14 = vpop.f32.mrf.mxu2  ;;  %v15212_v45 = vpop.f32.mrf.mxu0 }
 0x694   :  { %v5027_v4 = vpop.f32.mrf.mxu3  ;;  %v4939_v17 = vadd.f32 %v4938_v14, %v4850_v23  ;;  %v4852_v62 = vpop.f32.mrf.mxu1 }
 0x695   :  { %v4853_v59 = vadd.f32 %v4852_v62, %v14787_v52  ;;  %v11099_v62 = vld [vmem:[%s18628_s1 + $0x354] sm:$0xf] }
 0x696   :  { %v15215_v43 = vadd.f32 %v5027_v4, %v4939_v17  ;;  %5434 = vmatmul.bf16.gmra.mxu0 %v19615_v48  ;;  %v9285_v17 = vld [vmem:[%s18628_s1 + $0x170] sm:$0xf0]  ;;  %v9544_v15 = vor.u32 %v11099_v62, %v9541_v2 }
 0x697   :  { %5167 = vmatmul.bf16.gmra.mxu1 %v19702_v58  ;;  %v9288_v52 = vor.u32 %v11035_v63, %v9285_v17  ;;  %v10563_v63 = vld [vmem:[%s18628_s1 + $0xb50] sm:$0xf] }
 0x698   :  { %19701 = vst [vmem:[#allocation220_spill] sm:$0xff] %v15215_v43  ;;  %5256 = vmatmul.bf16.gmra.mxu2 %v19703_v16  ;;  %5685 = vmatpush.bf16.msra.mxu3 %v9544_v15  ;;  %v11359_v17 = vld [vmem:[%s18628_s1 + $0xb6c] sm:$0xf0] }
 0x699   :  { %5345 = vmatmul.bf16.gmra.mxu3 %v19614_v55  ;;  %5596 = vmatpush.bf16.msra.mxu2 %v9288_v52  ;;  %v10564_v62 = vor.u32 %v11359_v17, %v10563_v63 }
 0x69b   :  { %v4941_v44 = vpop.f32.mrf.mxu2  ;;  %v15235_v37 = vpop.f32.mrf.mxu0  ;;  %5507 = vmatpush.bf16.msra.mxu1 %v10564_v62 }
 0x69c   :  { %v5030_v23 = vpop.f32.mrf.mxu3  ;;  %v4942_v14 = vadd.f32 %v4941_v44, %v4853_v59  ;;  %v4854_v4 = vpop.f32.mrf.mxu1 }
 0x69d   :  { %v4855_v10 = vadd.f32 %v4854_v4, %v14797_v49  ;;  %v19707_v4 = vld [vmem:[#allocation32_spill] sm:$0xff] }
 0x69e   :  { %v15238_v43 = vadd.f32 %v5030_v23, %v4942_v14  ;;  %v19706_v23 = vld [vmem:[#allocation30_spill] sm:$0xff] }
 0x6a0   :  { %19704 = vst [vmem:[#allocation221_spill] sm:$0xff] %v15238_v43 }
 0x6a3   :  { %v4943_v52 = vpop.f32.mrf.mxu2  ;;  %v15246_v48 = vpop.f32.mrf.mxu0 }
 0x6a4   :  { %v5032_v59 = vpop.f32.mrf.mxu3  ;;  %v4944_v2 = vadd.f32 %v4943_v52, %v4855_v10  ;;  %v4857_v44 = vpop.f32.mrf.mxu1 }
 0x6a5   :  { %v4858_v49 = vadd.f32 %v4857_v44, %v14805_v21 }
 0x6a6   :  { %v15249_v15 = vadd.f32 %v5032_v59, %v4944_v2  ;;  %5439 = vmatmul.bf16.gmra.mxu0 %v19619_v20 }
 0x6a7   :  { %5172 = vmatmul.bf16.gmra.mxu1 %v19706_v23 }
 0x6a8   :  { %19705 = vst [vmem:[#allocation222_spill] sm:$0xff] %v15249_v15  ;;  %5261 = vmatmul.bf16.gmra.mxu2 %v19707_v4  ;;  %v19710_v15 = vld [vmem:[#allocation34_spill] sm:$0xff] }
 0x6a9   :  { %5350 = vmatmul.bf16.gmra.mxu3 %v19618_v26 }
 0x6ab   :  { %v4946_v63 = vpop.f32.mrf.mxu2  ;;  %v15257_v52 = vpop.f32.mrf.mxu0 }
 0x6ac   :  { %v5035_v10 = vpop.f32.mrf.mxu3  ;;  %v4947_v17 = vadd.f32 %v4946_v63, %v4858_v49  ;;  %v4859_v62 = vpop.f32.mrf.mxu1  ;;  %v11027_v63 = vld [vmem:[%s18628_s1 + $0x114] sm:$0xf] }
 0x6ad   :  { %v4860_v21 = vadd.f32 %v4859_v62, %v14824_v5  ;;  %v19711_v5 = vld [vmem:[#allocation36_spill] sm:$0xff] }
 0x6ae   :  { %v15260_v59 = vadd.f32 %v5035_v10, %v4947_v17  ;;  %v9509_v10 = vld [vmem:[%s18628_s1 + $0x330] sm:$0xf0] }
 0x6b0   :  { %19708 = vst [vmem:[#allocation223_spill] sm:$0xff] %v15260_v59 }
 0x6b3   :  { %v4948_v2 = vpop.f32.mrf.mxu2  ;;  %v15262_v31 = vpop.f32.mrf.mxu0 }
 0x6b4   :  { %v5037_v44 = vpop.f32.mrf.mxu3  ;;  %v4949_v20 = vadd.f32 %v4948_v2, %v4860_v21  ;;  %v4862_v55 = vpop.f32.mrf.mxu1 }
 0x6b5   :  { %v4863_v14 = vadd.f32 %v4862_v55, %v14841_v53  ;;  %v9253_v55 = vld [vmem:[%s18628_s1 + $0x130] sm:$0xf0] }
 0x6b6   :  { %v15265_v43 = vadd.f32 %v5037_v44, %v4949_v20  ;;  %5444 = vmatmul.bf16.gmra.mxu0 %v19623_v3  ;;  %v11091_v20 = vld [vmem:[%s18628_s1 + $0x314] sm:$0xf]  ;;  %v9256_v53 = vor.u32 %v11027_v63, %v9253_v55  ;;  %v10531_v63 = vld [vmem:[%s18628_s1 + $0xb10] sm:$0xf] }
 0x6b7   :  { %5177 = vmatmul.bf16.gmra.mxu1 %v19710_v15  ;;  %v9512_v17 = vor.u32 %v11091_v20, %v9509_v10  ;;  %v11351_v55 = vld [vmem:[%s18628_s1 + $0xb2c] sm:$0xf0] }
 0x6b8   :  { %19709 = vst [vmem:[#allocation224_spill] sm:$0xff] %v15265_v43  ;;  %5266 = vmatmul.bf16.gmra.mxu2 %v19711_v5  ;;  %v10532_v20 = vor.u32 %v11351_v55, %v10531_v63  ;;  %v19716_v63 = vld [vmem:[#allocation41_spill] sm:$0xff] }
 0x6b9   :  { %5355 = vmatmul.bf16.gmra.mxu3 %v19622_v11  ;;  %5597 = vmatpush.bf16.msra.mxu2 %v9256_v53 }
 0x6ba   :  { %5686 = vmatpush.bf16.msra.mxu3 %v9512_v17  ;;  %5508 = vmatpush.bf16.msra.mxu1 %v10532_v20 }
 0x6bb   :  { %v4951_v62 = vpop.f32.mrf.mxu2  ;;  %v15285_v49 = vpop.f32.mrf.mxu0 }
 0x6bc   :  { %v5040_v21 = vpop.f32.mrf.mxu3  ;;  %v4952_v2 = vadd.f32 %v4951_v62, %v4863_v14  ;;  %v4864_v44 = vpop.f32.mrf.mxu1 }
 0x6bd   :  { %v4865_v59 = vadd.f32 %v4864_v44, %v14851_v29  ;;  %v19715_v44 = vld [vmem:[#allocation40_spill] sm:$0xff] }
 0x6be   :  { %v15288_v43 = vadd.f32 %v5040_v21, %v4952_v2  ;;  %v19714_v21 = vld [vmem:[#allocation38_spill] sm:$0xff] }
 0x6c0   :  { %19712 = vst [vmem:[#allocation225_spill] sm:$0xff] %v15288_v43 }
 0x6c3   :  { %v4953_v53 = vpop.f32.mrf.mxu2  ;;  %v15296_v3 = vpop.f32.mrf.mxu0 }
 0x6c4   :  { %v5042_v14 = vpop.f32.mrf.mxu3  ;;  %v4954_v10 = vadd.f32 %v4953_v53, %v4865_v59  ;;  %v4867_v62 = vpop.f32.mrf.mxu1 }
 0x6c5   :  { %v4868_v29 = vadd.f32 %v4867_v62, %v14859_v13 }
 0x6c6   :  { %v15299_v17 = vadd.f32 %v5042_v14, %v4954_v10  ;;  %5449 = vmatmul.bf16.gmra.mxu0 %v19627_v34 }
 0x6c7   :  { %5182 = vmatmul.bf16.gmra.mxu1 %v19714_v21 }
 0x6c8   :  { %19713 = vst [vmem:[#allocation226_spill] sm:$0xff] %v15299_v17  ;;  %5271 = vmatmul.bf16.gmra.mxu2 %v19715_v44  ;;  %v19719_v17 = vld [vmem:[#allocation42_spill] sm:$0xff] }
 0x6c9   :  { %5360 = vmatmul.bf16.gmra.mxu3 %v19716_v63 }
 0x6cb   :  { %v4956_v55 = vpop.f32.mrf.mxu2  ;;  %v15307_v11 = vpop.f32.mrf.mxu0 }
 0x6cc   :  { %v5045_v59 = vpop.f32.mrf.mxu3  ;;  %v4957_v20 = vadd.f32 %v4956_v55, %v4868_v29  ;;  %v4869_v53 = vpop.f32.mrf.mxu1  ;;  %v19720_v29 = vld [vmem:[#allocation43_spill] sm:$0xff] }
 0x6cd   :  { %v4870_v13 = vadd.f32 %v4869_v53, %v14878_v56  ;;  %v19721_v56 = vld [vmem:[#allocation45_spill] sm:$0xff]  ;;  %v9477_v53 = vld [vmem:[%s18628_s1 + $0x2f0] sm:$0xf0] }
 0x6ce   :  { %v15310_v14 = vadd.f32 %v5045_v59, %v4957_v20  ;;  %v19722_v59 = vld [vmem:[#allocation46_spill] sm:$0xff]  ;;  %v11019_v20 = vld [vmem:[%s18628_s1 + $0xd4] sm:$0xf] }
 0x6d0   :  { %19717 = vst [vmem:[#allocation227_spill] sm:$0xff] %v15310_v14 }
 0x6d3   :  { %v4958_v10 = vpop.f32.mrf.mxu2  ;;  %v15312_v21 = vpop.f32.mrf.mxu0 }
 0x6d4   :  { %v5047_v62 = vpop.f32.mrf.mxu3  ;;  %v4959_v34 = vadd.f32 %v4958_v10, %v4870_v13  ;;  %v4872_v26 = vpop.f32.mrf.mxu1 }
 0x6d5   :  { %v4873_v2 = vadd.f32 %v4872_v26, %v14901_v27  ;;  %v11083_v26 = vld [vmem:[%s18628_s1 + $0x2d4] sm:$0xf] }
 0x6d6   :  { %v15315_v43 = vadd.f32 %v5047_v62, %v4959_v34  ;;  %5454 = vmatmul.bf16.gmra.mxu0 %v19720_v29  ;;  %v9221_v34 = vld [vmem:[%s18628_s1 + $0xf0] sm:$0xf0]  ;;  %v9480_v13 = vor.u32 %v11083_v26, %v9477_v53 }
 0x6d7   :  { %5187 = vmatmul.bf16.gmra.mxu1 %v19719_v17  ;;  %v9224_v27 = vor.u32 %v11019_v20, %v9221_v34  ;;  %v10499_v20 = vld [vmem:[%s18628_s1 + $0xad0] sm:$0xf] }
 0x6d8   :  { %19718 = vst [vmem:[#allocation228_spill] sm:$0xff] %v15315_v43  ;;  %5276 = vmatmul.bf16.gmra.mxu2 %v19721_v56  ;;  %5687 = vmatpush.bf16.msra.mxu3 %v9480_v13  ;;  %v11343_v34 = vld [vmem:[%s18628_s1 + $0xaec] sm:$0xf0] }
 0x6d9   :  { %5365 = vmatmul.bf16.gmra.mxu3 %v19722_v59  ;;  %5598 = vmatpush.bf16.msra.mxu2 %v9224_v27  ;;  %v10500_v26 = vor.u32 %v11343_v34, %v10499_v20  ;;  %v9861_v27 = vld [vmem:[%s18628_s1 + $0x5f0] sm:$0xf0]  ;;  %v19728_v20 = vld [vmem:[#allocation49_spill] sm:$0xff] }
 0x6db   :  { %v4961_v10 = vpop.f32.mrf.mxu2  ;;  %v15335_v43 = vpop.f32.mrf.mxu0  ;;  %5509 = vmatpush.bf16.msra.mxu1 %v10500_v26  ;;  %v19730_v26 = vld [vmem:[#allocation52_spill] sm:$0xff] }
 0x6dc   :  { %v5050_v62 = vpop.f32.mrf.mxu3  ;;  %v4962_v55 = vadd.f32 %v4961_v10, %v4873_v2  ;;  %v4874_v14 = vpop.f32.mrf.mxu1  ;;  %19723 = vst [vmem:[#allocation229_spill] sm:$0xff] %v15335_v43  ;;  %v11179_v2 = vld [vmem:[%s18628_s1 + $0x5d4] sm:$0xf] }
 0x6dd   :  { %v4875_v29 = vadd.f32 %v4874_v14, %v14911_v7  ;;  %v9864_v7 = vor.u32 %v11179_v2, %v9861_v27  ;;  %v19727_v43 = vld [vmem:[#allocation48_spill] sm:$0xff]  ;;  %v19729_v2 = vld [vmem:[#allocation51_spill] sm:$0xff] }
 0x6de   :  { %v15338_v59 = vadd.f32 %v5050_v62, %v4962_v55 }
 0x6df   :  { %5772 = vmatpush.bf16.msra.mxu0 %v9864_v7 }
 0x6e0   :  { %19724 = vst [vmem:[#allocation230_spill] sm:$0xff] %v15338_v59 }
 0x6e3   :  { %v4963_v14 = vpop.f32.mrf.mxu2  ;;  %v15352_v10 = vpop.f32.mrf.mxu0 }
 0x6e4   :  { %v5052_v55 = vpop.f32.mrf.mxu3  ;;  %v4964_v53 = vadd.f32 %v4963_v14, %v4875_v29  ;;  %v4877_v13 = vpop.f32.mrf.mxu1  ;;  %19725 = vst [vmem:[#allocation231_spill] sm:$0xff] %v15352_v10 }
 0x6e5   :  { %v4878_v62 = vadd.f32 %v4877_v13, %v14919_v51 }
 0x6e6   :  { %v15355_v63 = vadd.f32 %v5052_v55, %v4964_v53  ;;  %5459 = vmatmul.bf16.gmra.mxu0 %v19728_v20  ;;  %v15371_v53 = vld [vmem:[%s18630_s2] sm:$0xff] }
 0x6e7   :  { %5192 = vmatmul.bf16.gmra.mxu1 %v19727_v43  ;;  %19733 = vst [vmem:[#allocation235_spill] sm:$0xff] %v15371_v53  ;;  %v15374_v13 = vperm.slane %v15371_v53, 4 }
 0x6e8   :  { %19726 = vst [vmem:[#allocation232_spill] sm:$0xff] %v15355_v63  ;;  %5281 = vmatmul.bf16.gmra.mxu2 %v19729_v2 }
 0x6e9   :  { %5370 = vmatmul.bf16.gmra.mxu3 %v19730_v26  ;;  %v5070_v34 = vadd.f32 %v14922_v41, %v15374_v13  ;;  %v11011_v41 = vld [vmem:[%s18628_s1 + $0x94] sm:$0xf] }
 0x6eb   :  { %v4966_v27 = vpop.f32.mrf.mxu2  ;;  %v15363_v10 = vpop.f32.mrf.mxu0 }
 0x6ec   :  { %v5055_v29 = vpop.f32.mrf.mxu3  ;;  %v4967_v7 = vadd.f32 %v4966_v27, %v4878_v62  ;;  %v4879_v14 = vpop.f32.mrf.mxu1  ;;  %19731 = vst [vmem:[#allocation233_spill] sm:$0xff] %v15363_v10 }
 0x6ed   :  { %v4880_v51 = vadd.f32 %v4879_v14, %v14938_v30  ;;  %v19736_v14 = vld [vmem:[#allocation57_spill] sm:$0xff] }
 0x6ee   :  { %v15366_v55 = vadd.f32 %v5055_v29, %v4967_v7  ;;  %v19735_v29 = vld [vmem:[#allocation54_spill] sm:$0xff] }
 0x6f0   :  { %19732 = vst [vmem:[#allocation234_spill] sm:$0xff] %v15366_v55 }
 0x6f3   :  { %v4968_v59 = vpop.f32.mrf.mxu2  ;;  %v5425_v20 = vpop.f32.mrf.mxu0 }
 0x6f4   :  { %v5057_v62 = vpop.f32.mrf.mxu3  ;;  %v4969_v27 = vadd.f32 %v4968_v59, %v4880_v51  ;;  %v5158_v63 = vpop.f32.mrf.mxu1  ;;  %v11075_v59 = vld [vmem:[%s18628_s1 + $0x294] sm:$0xf] }
 0x6f5   :  { %v5159_v26 = vadd.f32 %v5158_v63, %v5070_v34  ;;  %v9189_v63 = vld [vmem:[%s18628_s1 + $0xb0] sm:$0xf0] }
 0x6f6   :  { %v15378_v30 = vadd.f32 %v5057_v62, %v4969_v27  ;;  %5464 = vmatmul.bf16.gmra.mxu0 %v19643_v40  ;;  %v9192_v34 = vor.u32 %v11011_v41, %v9189_v63  ;;  %v9445_v51 = vld [vmem:[%s18628_s1 + $0x2b0] sm:$0xf0]  ;;  %v19737_v27 = vld [vmem:[#allocation197_spill] sm:$0xff]  ;;  %v10467_v41 = vld [vmem:[%s18628_s1 + $0xa90] sm:$0xf] }
 0x6f7   :  { %5197 = vmatmul.bf16.gmra.mxu1 %v19735_v29  ;;  %v9448_v62 = vor.u32 %v11075_v59, %v9445_v51  ;;  %v5072_v7 = vadd.f32 %v19737_v27, %v15374_v13  ;;  %v11335_v63 = vld [vmem:[%s18628_s1 + $0xaac] sm:$0xf0]  ;;  %v11171_v59 = vld [vmem:[%s18628_s1 + $0x594] sm:$0xf] }
 0x6f8   :  { %19734 = vst [vmem:[#allocation236_spill] sm:$0xff] %v15378_v30  ;;  %5286 = vmatmul.bf16.gmra.mxu2 %v19736_v14  ;;  %v10468_v51 = vor.u32 %v11335_v63, %v10467_v41  ;;  %v19739_v41 = vld [vmem:[#allocation60_spill] sm:$0xff]  ;;  %v19740_v63 = vld [vmem:[#allocation62_spill] sm:$0xff] }
 0x6f9   :  { %5375 = vmatmul.bf16.gmra.mxu3 %v19642_v19  ;;  %5599 = vmatpush.bf16.msra.mxu2 %v9192_v34 }
 0x6fa   :  { %5688 = vmatpush.bf16.msra.mxu3 %v9448_v62  ;;  %5510 = vmatpush.bf16.msra.mxu1 %v10468_v51 }
 0x6fb   :  { %v5247_v55 = vpop.f32.mrf.mxu2  ;;  %v5427_v29 = vpop.f32.mrf.mxu0 }
 0x6fc   :  { %v5336_v30 = vpop.f32.mrf.mxu3  ;;  %v5248_v40 = vadd.f32 %v5247_v55, %v5159_v26  ;;  %v5160_v19 = vpop.f32.mrf.mxu1  ;;  %v9829_v26 = vld [vmem:[%s18628_s1 + $0x5b0] sm:$0xf0] }
 0x6fd   :  { %v5161_v53 = vadd.f32 %v5160_v19, %v5072_v7  ;;  %v9832_v55 = vor.u32 %v11171_v59, %v9829_v26  ;;  %v5077_v59 = vadd.f32 %v14971_v46, %v15374_v13  ;;  %v19742_v46 = vld [vmem:[#allocation64_spill] sm:$0xff] }
 0x6fe   :  { %v5337_v14 = vadd.f32 %v5336_v30, %v5248_v40  ;;  %v19738_v40 = vld [vmem:[#allocation198_spill] sm:$0xff] }
 0x6ff   :  { %5773 = vmatpush.bf16.msra.mxu0 %v9832_v55  ;;  %v5075_v30 = vadd.f32 %v19738_v40, %v15374_v13 }
 0x700   :  { %v15412_v19 = vadd.f32 %v5425_v20, %v5337_v14  ;;  %v19741_v20 = vld [vmem:[#allocation63_spill] sm:$0xff] }
 0x703   :  { %v5249_v7 = vpop.f32.mrf.mxu2  ;;  %v5430_v10 = vpop.f32.mrf.mxu0 }
 0x704   :  { %v5338_v34 = vpop.f32.mrf.mxu3  ;;  %v5250_v62 = vadd.f32 %v5249_v7, %v5161_v53  ;;  %v5163_v27 = vpop.f32.mrf.mxu1 }
 0x705   :  { %v5164_v43 = vadd.f32 %v5163_v27, %v5075_v30 }
 0x706   :  { %v5339_v2 = vadd.f32 %v5338_v34, %v5250_v62  ;;  %5469 = vmatmul.bf16.gmra.mxu0 %v19652_v57  ;;  %v5080_v62 = vadd.f32 %v14976_v61, %v15374_v13  ;;  %v9157_v61 = vld [vmem:[%s18628_s1 + $0x70] sm:$0xf0] }
 0x707   :  { %5202 = vmatmul.bf16.gmra.mxu1 %v19739_v41 }
 0x708   :  { %5291 = vmatmul.bf16.gmra.mxu2 %v19740_v63  ;;  %v15420_v14 = vadd.f32 %v5427_v29, %v5339_v2 }
 0x709   :  { %5380 = vmatmul.bf16.gmra.mxu3 %v19741_v20 }
 0x70b   :  { %v5252_v51 = vpop.f32.mrf.mxu2  ;;  %v5432_v40 = vpop.f32.mrf.mxu0 }
 0x70c   :  { %v5341_v26 = vpop.f32.mrf.mxu3  ;;  %v5253_v53 = vadd.f32 %v5252_v51, %v5164_v43  ;;  %v5165_v55 = vpop.f32.mrf.mxu1  ;;  %v19743_v43 = vld [vmem:[#allocation66_spill] sm:$0xff] }
 0x70d   :  { %v5166_v30 = vadd.f32 %v5165_v55, %v5077_v59  ;;  %v19744_v59 = vld [vmem:[#allocation67_spill] sm:$0xff]  ;;  %v19745_v55 = vld [vmem:[#allocation202_spill] sm:$0xff] }
 0x70e   :  { %v5342_v7 = vadd.f32 %v5341_v26, %v5253_v53  ;;  %v9413_v26 = vld [vmem:[%s18628_s1 + $0x270] sm:$0xf0] }
 0x710   :  { %v15424_v34 = vadd.f32 %v5430_v10, %v5342_v7  ;;  %v11003_v10 = vld [vmem:[%s18628_s1 + $0x54] sm:$0xf] }
 0x711   :  { %v9160_v51 = vor.u32 %v11003_v10, %v9157_v61  ;;  %v11163_v10 = vld [vmem:[%s18628_s1 + $0x554] sm:$0xf] }
 0x713   :  { %v5254_v27 = vpop.f32.mrf.mxu2  ;;  %v5435_v29 = vpop.f32.mrf.mxu0  ;;  %5600 = vmatpush.bf16.msra.mxu2 %v9160_v51 }
 0x714   :  { %v5343_v57 = vpop.f32.mrf.mxu3  ;;  %v5255_v20 = vadd.f32 %v5254_v27, %v5166_v30  ;;  %v5168_v2 = vpop.f32.mrf.mxu1  ;;  %v5082_v30 = vadd.f32 %v19745_v55, %v15374_v13 }
 0x715   :  { %v5169_v41 = vadd.f32 %v5168_v2, %v5080_v62 }
 0x716   :  { %v5344_v63 = vadd.f32 %v5343_v57, %v5255_v20  ;;  %5474 = vmatmul.bf16.gmra.mxu0 %v19657_v1  ;;  %v11067_v57 = vld [vmem:[%s18628_s1 + $0x254] sm:$0xf] }
 0x717   :  { %5207 = vmatmul.bf16.gmra.mxu1 %v19742_v46  ;;  %v9416_v53 = vor.u32 %v11067_v57, %v9413_v26  ;;  %v19746_v26 = vld [vmem:[#allocation203_spill] sm:$0xff] }
 0x718   :  { %5296 = vmatmul.bf16.gmra.mxu2 %v19743_v43  ;;  %v15441_v20 = vadd.f32 %v5432_v40, %v5344_v63  ;;  %v10435_v63 = vld [vmem:[%s18628_s1 + $0xa50] sm:$0xf] }
 0x719   :  { %5385 = vmatmul.bf16.gmra.mxu3 %v19744_v59  ;;  %v11327_v40 = vld [vmem:[%s18628_s1 + $0xa6c] sm:$0xf0] }
 0x71a   :  { %5689 = vmatpush.bf16.msra.mxu3 %v9416_v53  ;;  %v10436_v61 = vor.u32 %v11327_v40, %v10435_v63  ;;  %v5085_v53 = vadd.f32 %v19746_v26, %v15374_v13  ;;  %v19747_v63 = vld [vmem:[#allocation70_spill] sm:$0xff]  ;;  %v19748_v40 = vld [vmem:[#allocation72_spill] sm:$0xff] }
 0x71b   :  { %v5257_v7 = vpop.f32.mrf.mxu2  ;;  %v5437_v1 = vpop.f32.mrf.mxu0 }
 0x71c   :  { %v5346_v62 = vpop.f32.mrf.mxu3  ;;  %v5258_v27 = vadd.f32 %v5257_v7, %v5169_v41  ;;  %v5170_v2 = vpop.f32.mrf.mxu1  ;;  %v9797_v41 = vld [vmem:[%s18628_s1 + $0x570] sm:$0xf0]  ;;  %5511 = vmatpush.bf16.msra.mxu1 %v10436_v61 }
 0x71d   :  { %v5171_v59 = vadd.f32 %v5170_v2, %v5082_v30  ;;  %v9800_v57 = vor.u32 %v11163_v10, %v9797_v41  ;;  %v5087_v10 = vadd.f32 %v15027_v35, %v15374_v13  ;;  %v19750_v35 = vld [vmem:[#allocation74_spill] sm:$0xff] }
 0x71e   :  { %v5347_v46 = vadd.f32 %v5346_v62, %v5258_v27 }
 0x71f   :  { %5774 = vmatpush.bf16.msra.mxu0 %v9800_v57 }
 0x720   :  { %v15460_v51 = vadd.f32 %v5435_v29, %v5347_v46  ;;  %v19749_v29 = vld [vmem:[#allocation73_spill] sm:$0xff] }
 0x723   :  { %v5259_v55 = vpop.f32.mrf.mxu2  ;;  %v5440_v27 = vpop.f32.mrf.mxu0 }
 0x724   :  { %v5348_v30 = vpop.f32.mrf.mxu3  ;;  %v5260_v7 = vadd.f32 %v5259_v55, %v5171_v59  ;;  %v5173_v62 = vpop.f32.mrf.mxu1 }
 0x725   :  { %v5174_v2 = vadd.f32 %v5173_v62, %v5085_v53 }
 0x726   :  { %v5349_v43 = vadd.f32 %v5348_v30, %v5260_v7  ;;  %5479 = vmatmul.bf16.gmra.mxu0 %v19666_v9  ;;  %v5090_v7 = vadd.f32 %v15032_v8, %v15374_v13  ;;  %v9125_v8 = vld [vmem:[%s18628_s1 + $0x30] sm:$0xf0] }
 0x727   :  { %5212 = vmatmul.bf16.gmra.mxu1 %v19747_v63 }
 0x728   :  { %5301 = vmatmul.bf16.gmra.mxu2 %v19748_v40  ;;  %v15468_v46 = vadd.f32 %v5437_v1, %v5349_v43 }
 0x729   :  { %5390 = vmatmul.bf16.gmra.mxu3 %v19749_v29 }
 0x72b   :  { %v5262_v61 = vpop.f32.mrf.mxu2  ;;  %v5442_v26 = vpop.f32.mrf.mxu0 }
 0x72c   :  { %v5351_v41 = vpop.f32.mrf.mxu3  ;;  %v5263_v59 = vadd.f32 %v5262_v61, %v5174_v2  ;;  %v5175_v57 = vpop.f32.mrf.mxu1  ;;  %v19751_v2 = vld [vmem:[#allocation76_spill] sm:$0xff] }
 0x72d   :  { %v5176_v53 = vadd.f32 %v5175_v57, %v5087_v10  ;;  %v9381_v61 = vld [vmem:[%s18628_s1 + $0x230] sm:$0xf0] }
 0x72e   :  { %v5352_v55 = vadd.f32 %v5351_v41, %v5263_v59  ;;  %v5092_v59 = vadd.f32 %v15055_v18, %v15374_v13  ;;  %v11155_v18 = vld [vmem:[%s18628_s1 + $0x514] sm:$0xf] }
 0x730   :  { %v15472_v30 = vadd.f32 %v5440_v27, %v5352_v55  ;;  %v10995_v27 = vld [vmem:[%s18628_s1 + $0x14] sm:$0xf] }
 0x731   :  { %v9128_v10 = vor.u32 %v10995_v27, %v9125_v8 }
 0x733   :  { %v5264_v62 = vpop.f32.mrf.mxu2  ;;  %v5445_v43 = vpop.f32.mrf.mxu0  ;;  %5601 = vmatpush.bf16.msra.mxu2 %v9128_v10  ;;  %v5095_v10 = vadd.f32 %v15072_v32, %v15374_v13 }
 0x734   :  { %v5353_v9 = vpop.f32.mrf.mxu3  ;;  %v5265_v29 = vadd.f32 %v5264_v62, %v5176_v53  ;;  %v5178_v1 = vpop.f32.mrf.mxu1 }
 0x735   :  { %v5179_v63 = vadd.f32 %v5178_v1, %v5090_v7 }
 0x736   :  { %v5354_v40 = vadd.f32 %v5353_v9, %v5265_v29  ;;  %5484 = vmatmul.bf16.gmra.mxu0 %v19671_v33  ;;  %v11059_v9 = vld [vmem:[%s18628_s1 + $0x214] sm:$0xf] }
 0x737   :  { %5217 = vmatmul.bf16.gmra.mxu1 %v19750_v35  ;;  %v9384_v41 = vor.u32 %v11059_v9, %v9381_v61 }
 0x738   :  { %5306 = vmatmul.bf16.gmra.mxu2 %v19751_v2  ;;  %v15489_v29 = vadd.f32 %v5442_v26, %v5354_v40  ;;  %v10403_v40 = vld [vmem:[%s18628_s1 + $0xa10] sm:$0xf] }
 0x739   :  { %5395 = vmatmul.bf16.gmra.mxu3 %v19670_v12  ;;  %v11319_v26 = vld [vmem:[%s18628_s1 + $0xa2c] sm:$0xf0] }
 0x73a   :  { %5690 = vmatpush.bf16.msra.mxu3 %v9384_v41  ;;  %v10404_v27 = vor.u32 %v11319_v26, %v10403_v40  ;;  %v11147_v40 = vld [vmem:[%s18628_s1 + $0x4d4] sm:$0xf]  ;;  %v19753_v26 = vld [vmem:[#allocation81_spill] sm:$0xff] }
 0x73b   :  { %v5267_v57 = vpop.f32.mrf.mxu2  ;;  %v5447_v62 = vpop.f32.mrf.mxu0 }
 0x73c   :  { %v5356_v53 = vpop.f32.mrf.mxu3  ;;  %v5268_v55 = vadd.f32 %v5267_v57, %v5179_v63  ;;  %v5180_v7 = vpop.f32.mrf.mxu1  ;;  %v9765_v63 = vld [vmem:[%s18628_s1 + $0x530] sm:$0xf0]  ;;  %5512 = vmatpush.bf16.msra.mxu1 %v10404_v27 }
 0x73d   :  { %v5181_v1 = vadd.f32 %v5180_v7, %v5092_v59  ;;  %v9768_v8 = vor.u32 %v11155_v18, %v9765_v63  ;;  %v11139_v27 = vld [vmem:[%s18628_s1 + $0x494] sm:$0xf] }
 0x73e   :  { %v5357_v33 = vadd.f32 %v5356_v53, %v5268_v55  ;;  %v9701_v63 = vld [vmem:[%s18628_s1 + $0x4b0] sm:$0xf0] }
 0x73f   :  { %5775 = vmatpush.bf16.msra.mxu0 %v9768_v8  ;;  %v19755_v8 = vld [vmem:[#allocation209_spill] sm:$0xff] }
 0x740   :  { %v15508_v9 = vadd.f32 %v5445_v43, %v5357_v33  ;;  %v9733_v33 = vld [vmem:[%s18628_s1 + $0x4f0] sm:$0xf0]  ;;  %v19752_v43 = vld [vmem:[#allocation79_spill] sm:$0xff] }
 0x741   :  { %v9736_v32 = vor.u32 %v11147_v40, %v9733_v33 }
 0x743   :  { %v5269_v61 = vpop.f32.mrf.mxu2  ;;  %v5450_v53 = vpop.f32.mrf.mxu0  ;;  %5776 = vmatpush.bf16.msra.mxu0 %v9736_v32  ;;  %v11131_v32 = vld [vmem:[%s18628_s1 + $0x454] sm:$0xf] }
 0x744   :  { %v5358_v41 = vpop.f32.mrf.mxu3  ;;  %v5270_v59 = vadd.f32 %v5269_v61, %v5181_v1  ;;  %v5183_v57 = vpop.f32.mrf.mxu1  ;;  %v19754_v1 = vld [vmem:[#allocation82_spill] sm:$0xff] }
 0x745   :  { %v5184_v55 = vadd.f32 %v5183_v57, %v5095_v10  ;;  %v5097_v10 = vadd.f32 %v19755_v8, %v15374_v13 }
 0x746   :  { %v5359_v7 = vadd.f32 %v5358_v41, %v5270_v59  ;;  %5489 = vmatmul.bf16.gmra.mxu0 %v19675_v24  ;;  %v9704_v59 = vor.u32 %v11139_v27, %v9701_v63  ;;  %v9669_v24 = vld [vmem:[%s18628_s1 + $0x470] sm:$0xf0]  ;;  %v5100_v63 = vadd.f32 %v15112_v28, %v15374_v13 }
 0x747   :  { %5222 = vmatmul.bf16.gmra.mxu1 %v19752_v43  ;;  %v9637_v27 = vld [vmem:[%s18628_s1 + $0x430] sm:$0xf0] }
 0x748   :  { %5311 = vmatmul.bf16.gmra.mxu2 %v19753_v26  ;;  %v15522_v18 = vadd.f32 %v5447_v62, %v5359_v7  ;;  %5777 = vmatpush.bf16.msra.mxu0 %v9704_v59  ;;  %v11307_v28 = vld [vmem:[%s18628_s1 + $0x9d4] sm:$0xf] }
 0x749   :  { %5400 = vmatmul.bf16.gmra.mxu3 %v19754_v1  ;;  %v9672_v1 = vor.u32 %v11131_v32, %v9669_v24 }
 0x74b   :  { %v5272_v61 = vpop.f32.mrf.mxu2  ;;  %v5452_v33 = vpop.f32.mrf.mxu0 }
 0x74c   :  { %v5361_v41 = vpop.f32.mrf.mxu3  ;;  %v5273_v57 = vadd.f32 %v5272_v61, %v5184_v55  ;;  %v5185_v40 = vpop.f32.mrf.mxu1  ;;  %5778 = vmatpush.bf16.msra.mxu0 %v9672_v1  ;;  %v11123_v55 = vld [vmem:[%s18628_s1 + $0x414] sm:$0xf] }
 0x74d   :  { %v5186_v62 = vadd.f32 %v5185_v40, %v5097_v10  ;;  %v9640_v61 = vor.u32 %v11123_v55, %v9637_v27  ;;  %v19757_v40 = vld [vmem:[#allocation87_spill] sm:$0xff]  ;;  %v10629_v27 = vld [vmem:[%s18628_s1 + $0xbf0] sm:$0xf0] }
 0x74e   :  { %v5362_v7 = vadd.f32 %v5361_v41, %v5273_v57  ;;  %v19756_v57 = vld [vmem:[#allocation85_spill] sm:$0xff] }
 0x750   :  { %v15538_v12 = vadd.f32 %v5450_v53, %v5362_v7  ;;  %5779 = vmatpush.bf16.msra.mxu0 %v9640_v61  ;;  %v11371_v7 = vld [vmem:[%s18628_s1 + $0xbd4] sm:$0xf] }
 0x753   :  { %v5274_v8 = vpop.f32.mrf.mxu2  ;;  %v5455_v24 = vpop.f32.mrf.mxu0 }
 0x754   :  { %v5363_v10 = vpop.f32.mrf.mxu3  ;;  %v5275_v41 = vadd.f32 %v5274_v8, %v5186_v62  ;;  %v5188_v59 = vpop.f32.mrf.mxu1  ;;  %v10373_v62 = vld [vmem:[%s18628_s1 + $0x9f0] sm:$0xf0]  ;;  %v19758_v8 = vld [vmem:[#allocation211_spill] sm:$0xff] }
 0x755   :  { %v5189_v53 = vadd.f32 %v5188_v59, %v5100_v63  ;;  %v10376_v55 = vor.u32 %v11307_v28, %v10373_v62  ;;  %v10632_v63 = vor.u32 %v11371_v7, %v10629_v27  ;;  %v19759_v7 = vld [vmem:[#allocation213_spill] sm:$0xff] }
 0x756   :  { %v5364_v1 = vadd.f32 %v5363_v10, %v5275_v41  ;;  %5494 = vmatmul.bf16.gmra.mxu0 %v19683_v39  ;;  %v5102_v10 = vadd.f32 %v19758_v8, %v15374_v13 }
 0x757   :  { %5227 = vmatmul.bf16.gmra.mxu1 %v19756_v57  ;;  %5950 = vmatpush.bf16.msrb.mxu2 %v10376_v55 }
 0x758   :  { %5316 = vmatmul.bf16.gmra.mxu2 %v19757_v40  ;;  %v15561_v32 = vadd.f32 %v5452_v33, %v5364_v1  ;;  %6039 = vmatpush.bf16.msrb.mxu3 %v10632_v63  ;;  %v11243_v33 = vld [vmem:[%s18628_s1 + $0x7d4] sm:$0xf] }
 0x759   :  { %5405 = vmatmul.bf16.gmra.mxu3 %v19681_v25  ;;  %v10117_v1 = vld [vmem:[%s18628_s1 + $0x7f0] sm:$0xf0] }
 0x75a   :  { %v10120_v28 = vor.u32 %v11243_v33, %v10117_v1  ;;  %v19762_v33 = vld [vmem:[#allocation92_spill] sm:$0xff] }
 0x75b   :  { %v5277_v61 = vpop.f32.mrf.mxu2  ;;  %v5457_v25 = vpop.f32.mrf.mxu0 }
 0x75c   :  { %v5366_v41 = vpop.f32.mrf.mxu3  ;;  %v5278_v59 = vadd.f32 %v5277_v61, %v5189_v53  ;;  %v5190_v39 = vpop.f32.mrf.mxu1  ;;  %5861 = vmatpush.bf16.msrb.mxu1 %v10120_v28  ;;  %v5105_v53 = vadd.f32 %v19759_v7, %v15374_v13 }
 0x75d   :  { %v5191_v57 = vadd.f32 %v5190_v39, %v5102_v10 }
 0x75e   :  { %v5367_v40 = vadd.f32 %v5366_v41, %v5278_v59  ;;  %v19760_v41 = vld [vmem:[#allocation89_spill] sm:$0xff]  ;;  %v19761_v59 = vld [vmem:[#allocation91_spill] sm:$0xff] }
 0x760   :  { %v15574_v62 = vadd.f32 %v5455_v24, %v5367_v40  ;;  %v5107_v40 = vadd.f32 %v15157_v38, %v15374_v13  ;;  %v19764_v38 = vld [vmem:[#allocation93_spill] sm:$0xff] }
 0x763   :  { %v5279_v55 = vpop.f32.mrf.mxu2  ;;  %v5460_v8 = vpop.f32.mrf.mxu0 }
 0x764   :  { %v5368_v27 = vpop.f32.mrf.mxu3  ;;  %v5280_v63 = vadd.f32 %v5279_v55, %v5191_v57  ;;  %v5193_v39 = vpop.f32.mrf.mxu1 }
 0x765   :  { %v5194_v10 = vadd.f32 %v5193_v39, %v5105_v53  ;;  %v5110_v39 = vadd.f32 %v15162_v42, %v15374_v13  ;;  %v10341_v42 = vld [vmem:[%s18628_s1 + $0x9b0] sm:$0xf0] }
 0x766   :  { %v5369_v61 = vadd.f32 %v5368_v27, %v5280_v63  ;;  %5499 = vmatmul.bf16.gmra.mxu0 %v19690_v60 }
 0x767   :  { %5232 = vmatmul.bf16.gmra.mxu1 %v19760_v41 }
 0x768   :  { %5321 = vmatmul.bf16.gmra.mxu2 %v19761_v59  ;;  %v15582_v24 = vadd.f32 %v5457_v25, %v5369_v61 }
 0x769   :  { %5410 = vmatmul.bf16.gmra.mxu3 %v19762_v33 }
 0x76a   :  { %19763 = vst [vmem:[#allocation197_spill] sm:$0xff] %v15582_v24 }
 0x76b   :  { %v5282_v1 = vpop.f32.mrf.mxu2  ;;  %v5462_v55 = vpop.f32.mrf.mxu0 }
 0x76c   :  { %v5371_v28 = vpop.f32.mrf.mxu3  ;;  %v5283_v57 = vadd.f32 %v5282_v1, %v5194_v10  ;;  %v5195_v7 = vpop.f32.mrf.mxu1  ;;  %v19765_v10 = vld [vmem:[#allocation2_spill] sm:$0xff] }
 0x76d   :  { %v5196_v53 = vadd.f32 %v5195_v7, %v5107_v40  ;;  %v10597_v40 = vld [vmem:[%s18628_s1 + $0xbb0] sm:$0xf0] }
 0x76e   :  { %v5372_v27 = vadd.f32 %v5371_v28, %v5283_v57  ;;  %v5112_v28 = vadd.f32 %v15185_v47, %v15374_v13  ;;  %v5115_v47 = vadd.f32 %v15196_v54, %v15374_v13  ;;  %v5117_v54 = vadd.f32 %v15207_v36, %v15374_v13  ;;  %v19768_v36 = vld [vmem:[#allocation95_spill] sm:$0xff] }
 0x770   :  { %v15586_v63 = vadd.f32 %v5460_v8, %v5372_v27  ;;  %v11299_v8 = vld [vmem:[%s18628_s1 + $0x994] sm:$0xf] }
 0x773   :  { %v5284_v60 = vpop.f32.mrf.mxu2  ;;  %v5465_v61 = vpop.f32.mrf.mxu0 }
 0x774   :  { %v5373_v41 = vpop.f32.mrf.mxu3  ;;  %v5285_v33 = vadd.f32 %v5284_v60, %v5196_v53  ;;  %v5198_v25 = vpop.f32.mrf.mxu1  ;;  %v11363_v60 = vld [vmem:[%s18628_s1 + $0xb94] sm:$0xf] }
 0x775   :  { %v5199_v59 = vadd.f32 %v5198_v25, %v5110_v39  ;;  %v10600_v1 = vor.u32 %v11363_v60, %v10597_v40 }
 0x776   :  { %v5374_v24 = vadd.f32 %v5373_v41, %v5285_v33  ;;  %5780 = vmatmul.bf16.vlgmr.msra.gmra.mxu0 %v19695_v22  ;;  %v10344_v33 = vor.u32 %v11299_v8, %v10341_v42 }
 0x777   :  { %5513 = vmatmul.bf16.vlgmr.msra.gmra.mxu1 %v19764_v38  ;;  %6040 = vmatpush.bf16.msrb.mxu3 %v10600_v1 }
 0x778   :  { %5602 = vmatmul.bf16.vlgmr.msra.gmra.mxu2 %v19765_v10  ;;  %v15603_v41 = vadd.f32 %v5462_v55, %v5374_v24  ;;  %v11235_v24 = vld [vmem:[%s18628_s1 + $0x794] sm:$0xf] }
 0x779   :  { %5691 = vmatmul.bf16.vlgmr.msra.gmra.mxu3 %v19694_v6  ;;  %5951 = vmatpush.bf16.msrb.mxu2 %v10344_v33  ;;  %v10085_v55 = vld [vmem:[%s18628_s1 + $0x7b0] sm:$0xf0] }
 0x77a   :  { %v10088_v8 = vor.u32 %v11235_v24, %v10085_v55 }
 0x77b   :  { %v5287_v57 = vpop.f32.mrf.mxu2  ;;  %v5467_v39 = vpop.f32.mrf.mxu0 }
 0x77c   :  { %v5376_v7 = vpop.f32.mrf.mxu3  ;;  %v5288_v53 = vadd.f32 %v5287_v57, %v5199_v59  ;;  %v5200_v27 = vpop.f32.mrf.mxu1  ;;  %5862 = vmatpush.bf16.msrb.mxu1 %v10088_v8 }
 0x77d   :  { %v5201_v25 = vadd.f32 %v5200_v27, %v5112_v28 }
 0x77e   :  { %v5377_v22 = vadd.f32 %v5376_v7, %v5288_v53  ;;  %v19766_v7 = vld [vmem:[#allocation94_spill] sm:$0xff] }
 0x77f   :  { %v19767_v53 = vld [vmem:[#allocation6_spill] sm:$0xff] }
 0x780   :  { %v15616_v42 = vadd.f32 %v5465_v61, %v5377_v22 }
 0x783   :  { %v5289_v59 = vpop.f32.mrf.mxu2  ;;  %v5470_v1 = vpop.f32.mrf.mxu0 }
 0x784   :  { %v5378_v60 = vpop.f32.mrf.mxu3  ;;  %v5290_v33 = vadd.f32 %v5289_v59, %v5201_v25  ;;  %v5203_v40 = vpop.f32.mrf.mxu1 }
 0x785   :  { %v5204_v28 = vadd.f32 %v5203_v40, %v5115_v47 }
 0x786   :  { %v5379_v57 = vadd.f32 %v5378_v60, %v5290_v33  ;;  %5785 = vmatmul.bf16.gmra.mxu0 %v19699_v0  ;;  %v5120_v60 = vadd.f32 %v15212_v45, %v15374_v13  ;;  %v10309_v45 = vld [vmem:[%s18628_s1 + $0x970] sm:$0xf0] }
 0x787   :  { %5518 = vmatmul.bf16.gmra.mxu1 %v19766_v7 }
 0x788   :  { %5607 = vmatmul.bf16.gmra.mxu2 %v19767_v53  ;;  %v15624_v22 = vadd.f32 %v5467_v39, %v5379_v57 }
 0x789   :  { %5696 = vmatmul.bf16.gmra.mxu3 %v19698_v50 }
 0x78b   :  { %v5292_v61 = vpop.f32.mrf.mxu2  ;;  %v5472_v55 = vpop.f32.mrf.mxu0 }
 0x78c   :  { %v5381_v27 = vpop.f32.mrf.mxu3  ;;  %v5293_v25 = vadd.f32 %v5292_v61, %v5204_v28  ;;  %v5205_v24 = vpop.f32.mrf.mxu1  ;;  %v19769_v28 = vld [vmem:[#allocation10_spill] sm:$0xff] }
 0x78d   :  { %v5206_v8 = vadd.f32 %v5205_v24, %v5117_v54  ;;  %v5122_v24 = vadd.f32 %v15235_v37, %v15374_v13 }
 0x78e   :  { %v5382_v47 = vadd.f32 %v5381_v27, %v5293_v25  ;;  %v10565_v27 = vld [vmem:[%s18628_s1 + $0xb70] sm:$0xf0] }
 0x790   :  { %v15628_v59 = vadd.f32 %v5470_v1, %v5382_v47  ;;  %v11291_v1 = vld [vmem:[%s18628_s1 + $0x954] sm:$0xf] }
 0x791   :  { %v10312_v61 = vor.u32 %v11291_v1, %v10309_v45 }
 0x793   :  { %v5294_v33 = vpop.f32.mrf.mxu2  ;;  %v5475_v57 = vpop.f32.mrf.mxu0  ;;  %5952 = vmatpush.bf16.msrb.mxu2 %v10312_v61 }
 0x794   :  { %v5383_v40 = vpop.f32.mrf.mxu3  ;;  %v5295_v0 = vadd.f32 %v5294_v33, %v5206_v8  ;;  %v5208_v39 = vpop.f32.mrf.mxu1 }
 0x795   :  { %v5209_v50 = vadd.f32 %v5208_v39, %v5120_v60 }
 0x796   :  { %v5384_v6 = vadd.f32 %v5383_v40, %v5295_v0  ;;  %5790 = vmatmul.bf16.gmra.mxu0 %v19703_v16  ;;  %v11355_v0 = vld [vmem:[%s18628_s1 + $0xb54] sm:$0xf] }
 0x797   :  { %5523 = vmatmul.bf16.gmra.mxu1 %v19768_v36  ;;  %v10568_v25 = vor.u32 %v11355_v0, %v10565_v27 }
 0x798   :  { %5612 = vmatmul.bf16.gmra.mxu2 %v19769_v28  ;;  %v15645_v54 = vadd.f32 %v5472_v55, %v5384_v6  ;;  %v11227_v6 = vld [vmem:[%s18628_s1 + $0x754] sm:$0xf] }
 0x799   :  { %5701 = vmatmul.bf16.gmra.mxu3 %v19702_v58  ;;  %v10053_v55 = vld [vmem:[%s18628_s1 + $0x770] sm:$0xf0] }
 0x79a   :  { %6041 = vmatpush.bf16.msrb.mxu3 %v10568_v25  ;;  %v10056_v1 = vor.u32 %v11227_v6, %v10053_v55 }
 0x79b   :  { %v5297_v8 = vpop.f32.mrf.mxu2  ;;  %v5477_v40 = vpop.f32.mrf.mxu0 }
 0x79c   :  { %v5386_v47 = vpop.f32.mrf.mxu3  ;;  %v5298_v60 = vadd.f32 %v5297_v8, %v5209_v50  ;;  %v5210_v33 = vpop.f32.mrf.mxu1  ;;  %5863 = vmatpush.bf16.msrb.mxu1 %v10056_v1  ;;  %v5125_v50 = vadd.f32 %v15246_v48, %v15374_v13  ;;  %v5127_v48 = vadd.f32 %v15257_v52, %v15374_v13  ;;  %v19772_v52 = vld [vmem:[#allocation97_spill] sm:$0xff] }
 0x79d   :  { %v5211_v39 = vadd.f32 %v5210_v33, %v5122_v24 }
 0x79e   :  { %v5387_v16 = vadd.f32 %v5386_v47, %v5298_v60  ;;  %v19770_v47 = vld [vmem:[#allocation96_spill] sm:$0xff]  ;;  %v19771_v60 = vld [vmem:[#allocation14_spill] sm:$0xff] }
 0x7a0   :  { %v15658_v45 = vadd.f32 %v5475_v57, %v5387_v16 }
 0x7a3   :  { %v5299_v37 = vpop.f32.mrf.mxu2  ;;  %v5480_v25 = vpop.f32.mrf.mxu0 }
 0x7a4   :  { %v5388_v0 = vpop.f32.mrf.mxu3  ;;  %v5300_v61 = vadd.f32 %v5299_v37, %v5211_v39  ;;  %v5213_v27 = vpop.f32.mrf.mxu1 }
 0x7a5   :  { %v5214_v24 = vadd.f32 %v5213_v27, %v5125_v50 }
 0x7a6   :  { %v5389_v8 = vadd.f32 %v5388_v0, %v5300_v61  ;;  %5795 = vmatmul.bf16.gmra.mxu0 %v19707_v4  ;;  %v5130_v0 = vadd.f32 %v15262_v31, %v15374_v13  ;;  %v10277_v31 = vld [vmem:[%s18628_s1 + $0x930] sm:$0xf0] }
 0x7a7   :  { %5528 = vmatmul.bf16.gmra.mxu1 %v19770_v47 }
 0x7a8   :  { %5617 = vmatmul.bf16.gmra.mxu2 %v19771_v60  ;;  %v15666_v16 = vadd.f32 %v5477_v40, %v5389_v8 }
 0x7a9   :  { %5706 = vmatmul.bf16.gmra.mxu3 %v19706_v23 }
 0x7ab   :  { %v5302_v57 = vpop.f32.mrf.mxu2  ;;  %v5482_v55 = vpop.f32.mrf.mxu0 }
 0x7ac   :  { %v5391_v33 = vpop.f32.mrf.mxu3  ;;  %v5303_v39 = vadd.f32 %v5302_v57, %v5214_v24  ;;  %v5215_v6 = vpop.f32.mrf.mxu1  ;;  %v19773_v24 = vld [vmem:[#allocation3_spill] sm:$0xff] }
 0x7ad   :  { %v5216_v1 = vadd.f32 %v5215_v6, %v5127_v48  ;;  %v5132_v6 = vadd.f32 %v15285_v49, %v15374_v13 }
 0x7ae   :  { %v5392_v50 = vadd.f32 %v5391_v33, %v5303_v39  ;;  %v10533_v33 = vld [vmem:[%s18628_s1 + $0xb30] sm:$0xf0] }
 0x7b0   :  { %v15670_v37 = vadd.f32 %v5480_v25, %v5392_v50  ;;  %v11283_v25 = vld [vmem:[%s18628_s1 + $0x914] sm:$0xf] }
 0x7b1   :  { %v10280_v57 = vor.u32 %v11283_v25, %v10277_v31 }
 0x7b3   :  { %v5304_v61 = vpop.f32.mrf.mxu2  ;;  %v5485_v8 = vpop.f32.mrf.mxu0  ;;  %5953 = vmatpush.bf16.msrb.mxu2 %v10280_v57 }
 0x7b4   :  { %v5393_v27 = vpop.f32.mrf.mxu3  ;;  %v5305_v4 = vadd.f32 %v5304_v61, %v5216_v1  ;;  %v5218_v40 = vpop.f32.mrf.mxu1 }
 0x7b5   :  { %v5219_v23 = vadd.f32 %v5218_v40, %v5130_v0 }
 0x7b6   :  { %v5394_v58 = vadd.f32 %v5393_v27, %v5305_v4  ;;  %5800 = vmatmul.bf16.gmra.mxu0 %v19711_v5  ;;  %v11347_v4 = vld [vmem:[%s18628_s1 + $0xb14] sm:$0xf] }
 0x7b7   :  { %5533 = vmatmul.bf16.gmra.mxu1 %v19772_v52  ;;  %v10536_v39 = vor.u32 %v11347_v4, %v10533_v33 }
 0x7b8   :  { %5622 = vmatmul.bf16.gmra.mxu2 %v19773_v24  ;;  %v15687_v48 = vadd.f32 %v5482_v55, %v5394_v58  ;;  %v11219_v58 = vld [vmem:[%s18628_s1 + $0x714] sm:$0xf] }
 0x7b9   :  { %5711 = vmatmul.bf16.gmra.mxu3 %v19710_v15  ;;  %v10021_v55 = vld [vmem:[%s18628_s1 + $0x730] sm:$0xf0] }
 0x7ba   :  { %6042 = vmatpush.bf16.msrb.mxu3 %v10536_v39  ;;  %v10024_v25 = vor.u32 %v11219_v58, %v10021_v55 }
 0x7bb   :  { %v5307_v1 = vpop.f32.mrf.mxu2  ;;  %v5487_v27 = vpop.f32.mrf.mxu0 }
 0x7bc   :  { %v5396_v50 = vpop.f32.mrf.mxu3  ;;  %v5308_v0 = vadd.f32 %v5307_v1, %v5219_v23  ;;  %v5220_v61 = vpop.f32.mrf.mxu1  ;;  %5864 = vmatpush.bf16.msrb.mxu1 %v10024_v25  ;;  %v5135_v23 = vadd.f32 %v15296_v3, %v15374_v13  ;;  %v5137_v3 = vadd.f32 %v15307_v11, %v15374_v13  ;;  %v19777_v11 = vld [vmem:[#allocation44_spill] sm:$0xff] }
 0x7bd   :  { %v5221_v40 = vadd.f32 %v5220_v61, %v5132_v6  ;;  %v19776_v61 = vld [vmem:[#allocation38_spill] sm:$0xff] }
 0x7be   :  { %v5397_v5 = vadd.f32 %v5396_v50, %v5308_v0  ;;  %v19774_v50 = vld [vmem:[#allocation98_spill] sm:$0xff]  ;;  %v19775_v0 = vld [vmem:[#allocation7_spill] sm:$0xff] }
 0x7c0   :  { %v15700_v31 = vadd.f32 %v5485_v8, %v5397_v5 }
 0x7c3   :  { %v5309_v49 = vpop.f32.mrf.mxu2  ;;  %v5490_v39 = vpop.f32.mrf.mxu0 }
 0x7c4   :  { %v5398_v4 = vpop.f32.mrf.mxu3  ;;  %v5310_v57 = vadd.f32 %v5309_v49, %v5221_v40  ;;  %v5223_v33 = vpop.f32.mrf.mxu1 }
 0x7c5   :  { %v5224_v6 = vadd.f32 %v5223_v33, %v5135_v23 }
 0x7c6   :  { %v5399_v1 = vadd.f32 %v5398_v4, %v5310_v57  ;;  %5805 = vmatmul.bf16.gmra.mxu0 %v19715_v44  ;;  %v5140_v57 = vadd.f32 %v15312_v21, %v15374_v13  ;;  %v10245_v21 = vld [vmem:[%s18628_s1 + $0x8f0] sm:$0xf0] }
 0x7c7   :  { %5538 = vmatmul.bf16.gmra.mxu1 %v19774_v50 }
 0x7c8   :  { %5627 = vmatmul.bf16.gmra.mxu2 %v19775_v0  ;;  %v15708_v5 = vadd.f32 %v5487_v27, %v5399_v1 }
 0x7c9   :  { %5716 = vmatmul.bf16.gmra.mxu3 %v19776_v61 }
 0x7cb   :  { %v5312_v8 = vpop.f32.mrf.mxu2  ;;  %v5492_v25 = vpop.f32.mrf.mxu0 }
 0x7cc   :  { %v5401_v58 = vpop.f32.mrf.mxu3  ;;  %v5313_v40 = vadd.f32 %v5312_v8, %v5224_v6  ;;  %v5225_v55 = vpop.f32.mrf.mxu1  ;;  %v19778_v6 = vld [vmem:[#allocation11_spill] sm:$0xff]  ;;  %v10501_v8 = vld [vmem:[%s18628_s1 + $0xaf0] sm:$0xf0] }
 0x7cd   :  { %v5226_v23 = vadd.f32 %v5225_v55, %v5137_v3 }
 0x7ce   :  { %v5402_v49 = vadd.f32 %v5401_v58, %v5313_v40  ;;  %v19779_v40 = vld [vmem:[#allocation229_spill] sm:$0xff] }
 0x7cf   :  { %v5142_v55 = vadd.f32 %v19779_v40, %v15374_v13 }
 0x7d0   :  { %v15712_v4 = vadd.f32 %v5490_v39, %v5402_v49  ;;  %v11275_v39 = vld [vmem:[%s18628_s1 + $0x8d4] sm:$0xf] }
 0x7d1   :  { %v10248_v3 = vor.u32 %v11275_v39, %v10245_v21  ;;  %v9355_v21 = vld [vmem:[%s18628_s1 + $0x1d8] sm:$0xf] }
 0x7d3   :  { %v5314_v33 = vpop.f32.mrf.mxu2  ;;  %v5495_v1 = vpop.f32.mrf.mxu0  ;;  %5954 = vmatpush.bf16.msrb.mxu2 %v10248_v3 }
 0x7d4   :  { %v5403_v44 = vpop.f32.mrf.mxu3  ;;  %v5315_v61 = vadd.f32 %v5314_v33, %v5226_v23  ;;  %v5228_v27 = vpop.f32.mrf.mxu1 }
 0x7d5   :  { %v5229_v15 = vadd.f32 %v5228_v27, %v5140_v57 }
 0x7d6   :  { %v5404_v50 = vadd.f32 %v5403_v44, %v5315_v61  ;;  %5810 = vmatmul.bf16.gmra.mxu0 %v19721_v56  ;;  %v11339_v44 = vld [vmem:[%s18628_s1 + $0xad4] sm:$0xf] }
 0x7d7   :  { %5543 = vmatmul.bf16.gmra.mxu1 %v19777_v11  ;;  %v10504_v58 = vor.u32 %v11339_v44, %v10501_v8  ;;  %v19781_v8 = vld [vmem:[#allocation231_spill] sm:$0xff] }
 0x7d8   :  { %5632 = vmatmul.bf16.gmra.mxu2 %v19778_v6  ;;  %v15729_v61 = vadd.f32 %v5492_v25, %v5404_v50  ;;  %v11211_v50 = vld [vmem:[%s18628_s1 + $0x6d4] sm:$0xf]  ;;  %v19783_v11 = vld [vmem:[#allocation51_spill] sm:$0xff] }
 0x7d9   :  { %5721 = vmatmul.bf16.gmra.mxu3 %v19719_v17  ;;  %v9989_v25 = vld [vmem:[%s18628_s1 + $0x6f0] sm:$0xf0]  ;;  %v19784_v6 = vld [vmem:[#allocation15_spill] sm:$0xff] }
 0x7da   :  { %6043 = vmatpush.bf16.msrb.mxu3 %v10504_v58  ;;  %v9992_v39 = vor.u32 %v11211_v50, %v9989_v25  ;;  %v5145_v58 = vadd.f32 %v19781_v8, %v15374_v13  ;;  %v19782_v25 = vld [vmem:[#allocation47_spill] sm:$0xff] }
 0x7db   :  { %v5317_v23 = vpop.f32.mrf.mxu2  ;;  %v5497_v27 = vpop.f32.mrf.mxu0 }
 0x7dc   :  { %v5406_v49 = vpop.f32.mrf.mxu3  ;;  %v5318_v57 = vadd.f32 %v5317_v23, %v5229_v15  ;;  %v5230_v33 = vpop.f32.mrf.mxu1  ;;  %v11056_v15 = vld [vmem:[%s18628_s1 + $0x1f4] sm:$0xf0]  ;;  %5865 = vmatpush.bf16.msrb.mxu1 %v9992_v39 }
 0x7dd   :  { %v5231_v56 = vadd.f32 %v5230_v33, %v5142_v55  ;;  %v9356_v44 = vor.u32 %v11056_v15, %v9355_v21  ;;  %v19786_v39 = vld [vmem:[#allocation233_spill] sm:$0xff] }
 0x7de   :  { %v5407_v17 = vadd.f32 %v5406_v49, %v5318_v57  ;;  %v5147_v21 = vadd.f32 %v19786_v39, %v15374_v13  ;;  %v19789_v13 = vld [vmem:[#allocation57_spill] sm:$0xff] }
 0x7df   :  { %6128 = vmatpush.bf16.msrb.mxu0 %v9356_v44 }
 0x7e0   :  { %v15748_v3 = vadd.f32 %v5495_v1, %v5407_v17  ;;  %v19785_v17 = vld [vmem:[#allocation48_spill] sm:$0xff] }
 0x7e2   :  { %19780 = vst [vmem:[#allocation198_spill] sm:$0xff] %v15748_v3 }
 0x7e3   :  { %v5319_v40 = vpop.f32.mrf.mxu2  ;;  %v5500_v57 = vpop.f32.mrf.mxu0 }
 0x7e4   :  { %v5408_v55 = vpop.f32.mrf.mxu3  ;;  %v5320_v23 = vadd.f32 %v5319_v40, %v5231_v56  ;;  %v5233_v49 = vpop.f32.mrf.mxu1 }
 0x7e5   :  { %v5234_v33 = vadd.f32 %v5233_v49, %v5145_v58 }
 0x7e6   :  { %v5409_v50 = vadd.f32 %v5408_v55, %v5320_v23  ;;  %5815 = vmatmul.bf16.gmra.mxu0 %v19783_v11 }
 0x7e7   :  { %5548 = vmatmul.bf16.gmra.mxu1 %v19782_v25 }
 0x7e8   :  { %5637 = vmatmul.bf16.gmra.mxu2 %v19784_v6  ;;  %v15756_v1 = vadd.f32 %v5497_v27, %v5409_v50 }
 0x7e9   :  { %5726 = vmatmul.bf16.gmra.mxu3 %v19785_v17  ;;  %v19788_v17 = vld [vmem:[#allocation50_spill] sm:$0xff] }
 0x7eb   :  { %v5322_v15 = vpop.f32.mrf.mxu2  ;;  %v5502_v40 = vpop.f32.mrf.mxu0 }
 0x7ec   :  { %v5411_v44 = vpop.f32.mrf.mxu3  ;;  %v5323_v56 = vadd.f32 %v5322_v15, %v5234_v33  ;;  %v5235_v8 = vpop.f32.mrf.mxu1  ;;  %v19790_v33 = vld [vmem:[#allocation235_spill] sm:$0xff]  ;;  %v11267_v15 = vld [vmem:[%s18628_s1 + $0x894] sm:$0xf] }
 0x7ed   :  { %v5236_v58 = vadd.f32 %v5235_v8, %v5147_v21  ;;  %v15768_v39 = vperm.slane %v19790_v33, 5  ;;  %v19791_v21 = vld [vmem:[#allocation4_spill] sm:$0xff] }
 0x7ee   :  { %v5412_v55 = vadd.f32 %v5411_v44, %v5323_v56  ;;  %v10469_v44 = vld [vmem:[%s18628_s1 + $0xab0] sm:$0xf0] }
 0x7f0   :  { %v15760_v23 = vadd.f32 %v5500_v57, %v5412_v55  ;;  %v19792_v57 = vld [vmem:[#allocation54_spill] sm:$0xff] }
 0x7f3   :  { %v5324_v49 = vpop.f32.mrf.mxu2  ;;  %v5781_v3 = vpop.f32.mrf.mxu0 }
 0x7f4   :  { %v5413_v11 = vpop.f32.mrf.mxu3  ;;  %v5325_v25 = vadd.f32 %v5324_v49, %v5236_v58  ;;  %v5514_v6 = vpop.f32.mrf.mxu1 }
 0x7f5   :  { %v15763_v27 = vadd.f32 %v5514_v6, %v15412_v19  ;;  %v10213_v19 = vld [vmem:[%s18628_s1 + $0x8b0] sm:$0xf0] }
 0x7f6   :  { %v5414_v50 = vadd.f32 %v5413_v11, %v5325_v25  ;;  %5820 = vmatmul.bf16.gmra.mxu0 %v19789_v13  ;;  %v11331_v11 = vld [vmem:[%s18628_s1 + $0xa94] sm:$0xf]  ;;  %v10216_v25 = vor.u32 %v11267_v15, %v10213_v19  ;;  %v19795_v15 = vld [vmem:[#allocation59_spill] sm:$0xff] }
 0x7f7   :  { %19787 = vst [vmem:[#allocation202_spill] sm:$0xff] %v15763_v27  ;;  %5553 = vmatmul.bf16.gmra.mxu1 %v19788_v17  ;;  %v10472_v56 = vor.u32 %v11331_v11, %v10469_v44  ;;  %v9323_v11 = vld [vmem:[%s18628_s1 + $0x198] sm:$0xf]  ;;  %v19796_v27 = vld [vmem:[#allocation62_spill] sm:$0xff] }
 0x7f8   :  { %5642 = vmatmul.bf16.gmra.mxu2 %v19791_v21  ;;  %v15781_v6 = vadd.f32 %v5502_v40, %v5414_v50  ;;  %v11203_v40 = vld [vmem:[%s18628_s1 + $0x694] sm:$0xf] }
 0x7f9   :  { %5731 = vmatmul.bf16.gmra.mxu3 %v19792_v57  ;;  %5955 = vmatpush.bf16.msrb.mxu2 %v10216_v25  ;;  %v9957_v50 = vld [vmem:[%s18628_s1 + $0x6b0] sm:$0xf0] }
 0x7fa   :  { %6044 = vmatpush.bf16.msrb.mxu3 %v10472_v56  ;;  %v9960_v19 = vor.u32 %v11203_v40, %v9957_v50 }
 0x7fb   :  { %v5603_v8 = vpop.f32.mrf.mxu2  ;;  %v5783_v33 = vpop.f32.mrf.mxu0 }
 0x7fc   :  { %v5692_v58 = vpop.f32.mrf.mxu3  ;;  %v5604_v55 = vadd.f32 %v5603_v8, %v15768_v39  ;;  %v5516_v49 = vpop.f32.mrf.mxu1  ;;  %5866 = vmatpush.bf16.msrb.mxu1 %v9960_v19 }
 0x7fd   :  { %v15788_v13 = vadd.f32 %v5516_v49, %v15420_v14  ;;  %v11048_v14 = vld [vmem:[%s18628_s1 + $0x1b4] sm:$0xf0] }
 0x7fe   :  { %v5693_v57 = vadd.f32 %v5692_v58, %v5604_v55  ;;  %v9324_v25 = vor.u32 %v11048_v14, %v9323_v11 }
 0x7ff   :  { %19793 = vst [vmem:[#allocation203_spill] sm:$0xff] %v15788_v13  ;;  %v19797_v13 = vld [vmem:[#allocation8_spill] sm:$0xff] }
 0x800   :  { %v15804_v44 = vadd.f32 %v5781_v3, %v5693_v57  ;;  %6129 = vmatpush.bf16.msrb.mxu0 %v9324_v25  ;;  %v19798_v3 = vld [vmem:[#allocation60_spill] sm:$0xff] }
 0x803   :  { %v5605_v56 = vpop.f32.mrf.mxu2  ;;  %v5786_v49 = vpop.f32.mrf.mxu0 }
 0x804   :  { %v5694_v8 = vpop.f32.mrf.mxu3  ;;  %v5606_v58 = vadd.f32 %v5605_v56, %v15768_v39  ;;  %v5519_v55 = vpop.f32.mrf.mxu1 }
 0x805   :  { %v15808_v40 = vadd.f32 %v5519_v55, %v15424_v34 }
 0x806   :  { %v5695_v50 = vadd.f32 %v5694_v8, %v5606_v58  ;;  %5825 = vmatmul.bf16.gmra.mxu0 %v19796_v27 }
 0x807   :  { %19794 = vst [vmem:[#allocation209_spill] sm:$0xff] %v15808_v40  ;;  %5558 = vmatmul.bf16.gmra.mxu1 %v19795_v15 }
 0x808   :  { %5647 = vmatmul.bf16.gmra.mxu2 %v19797_v13  ;;  %v15814_v57 = vadd.f32 %v5783_v33, %v5695_v50 }
 0x809   :  { %5736 = vmatmul.bf16.gmra.mxu3 %v19798_v3 }
 0x80a   :  { %19799 = vst [vmem:[#allocation211_spill] sm:$0xff] %v15814_v57  ;;  %v19802_v57 = vld [vmem:[#allocation100_spill] sm:$0xff] }
 0x80b   :  { %v5608_v19 = vpop.f32.mrf.mxu2  ;;  %v5788_v56 = vpop.f32.mrf.mxu0 }
 0x80c   :  { %v5697_v11 = vpop.f32.mrf.mxu3  ;;  %v5609_v14 = vadd.f32 %v5608_v19, %v15768_v39  ;;  %v5521_v25 = vpop.f32.mrf.mxu1 }
 0x80d   :  { %v15818_v34 = vadd.f32 %v5521_v25, %v15441_v20  ;;  %v19803_v20 = vld [vmem:[#allocation66_spill] sm:$0xff] }
 0x80e   :  { %v5698_v8 = vadd.f32 %v5697_v11, %v5609_v14  ;;  %v19804_v11 = vld [vmem:[#allocation12_spill] sm:$0xff] }
 0x80f   :  { %19800 = vst [vmem:[#allocation213_spill] sm:$0xff] %v15818_v34  ;;  %v19805_v14 = vld [vmem:[#allocation64_spill] sm:$0xff] }
 0x810   :  { %v15822_v55 = vadd.f32 %v5786_v49, %v5698_v8  ;;  %v11259_v49 = vld [vmem:[%s18628_s1 + $0x854] sm:$0xf] }
 0x811   :  { %v10437_v8 = vld [vmem:[%s18628_s1 + $0xa70] sm:$0xf0] }
 0x813   :  { %v5610_v27 = vpop.f32.mrf.mxu2  ;;  %v5791_v3 = vpop.f32.mrf.mxu0 }
 0x814   :  { %v5699_v15 = vpop.f32.mrf.mxu3  ;;  %v5611_v33 = vadd.f32 %v5610_v27, %v15768_v39  ;;  %v5524_v50 = vpop.f32.mrf.mxu1  ;;  %v10181_v27 = vld [vmem:[%s18628_s1 + $0x870] sm:$0xf0] }
 0x815   :  { %v15826_v13 = vadd.f32 %v5524_v50, %v15460_v51  ;;  %v11323_v51 = vld [vmem:[%s18628_s1 + $0xa54] sm:$0xf]  ;;  %v10184_v25 = vor.u32 %v11259_v49, %v10181_v27  ;;  %v19808_v49 = vld [vmem:[#allocation102_spill] sm:$0xff] }
 0x816   :  { %v5700_v19 = vadd.f32 %v5699_v15, %v5611_v33  ;;  %5830 = vmatmul.bf16.gmra.mxu0 %v19803_v20  ;;  %v10440_v33 = vor.u32 %v11323_v51, %v10437_v8  ;;  %v9291_v51 = vld [vmem:[%s18628_s1 + $0x158] sm:$0xf] }
 0x817   :  { %19801 = vst [vmem:[#allocation229_spill] sm:$0xff] %v15826_v13  ;;  %5563 = vmatmul.bf16.gmra.mxu1 %v19802_v57  ;;  %5956 = vmatpush.bf16.msrb.mxu2 %v10184_v25  ;;  %v19809_v13 = vld [vmem:[#allocation72_spill] sm:$0xff] }
 0x818   :  { %5652 = vmatmul.bf16.gmra.mxu2 %v19804_v11  ;;  %v15841_v15 = vadd.f32 %v5788_v56, %v5700_v19  ;;  %6045 = vmatpush.bf16.msrb.mxu3 %v10440_v33  ;;  %v11195_v56 = vld [vmem:[%s18628_s1 + $0x654] sm:$0xf] }
 0x819   :  { %5741 = vmatmul.bf16.gmra.mxu3 %v19805_v14  ;;  %v9925_v19 = vld [vmem:[%s18628_s1 + $0x670] sm:$0xf0] }
 0x81a   :  { %v9928_v27 = vor.u32 %v11195_v56, %v9925_v19 }
 0x81b   :  { %v5613_v50 = vpop.f32.mrf.mxu2  ;;  %v5793_v20 = vpop.f32.mrf.mxu0 }
 0x81c   :  { %v5702_v58 = vpop.f32.mrf.mxu3  ;;  %v5614_v40 = vadd.f32 %v5613_v50, %v15768_v39  ;;  %v5526_v34 = vpop.f32.mrf.mxu1  ;;  %5867 = vmatpush.bf16.msrb.mxu1 %v9928_v27 }
 0x81d   :  { %v15848_v14 = vadd.f32 %v5526_v34, %v15468_v46  ;;  %v11040_v46 = vld [vmem:[%s18628_s1 + $0x174] sm:$0xf0] }
 0x81e   :  { %v5703_v57 = vadd.f32 %v5702_v58, %v5614_v40  ;;  %v9292_v40 = vor.u32 %v11040_v46, %v9291_v51 }
 0x81f   :  { %19806 = vst [vmem:[#allocation231_spill] sm:$0xff] %v15848_v14  ;;  %v19810_v14 = vld [vmem:[#allocation16_spill] sm:$0xff] }
 0x820   :  { %v15864_v34 = vadd.f32 %v5791_v3, %v5703_v57  ;;  %6130 = vmatpush.bf16.msrb.mxu0 %v9292_v40  ;;  %v19811_v3 = vld [vmem:[#allocation70_spill] sm:$0xff] }
 0x823   :  { %v5615_v58 = vpop.f32.mrf.mxu2  ;;  %v5796_v50 = vpop.f32.mrf.mxu0 }
 0x824   :  { %v5704_v25 = vpop.f32.mrf.mxu3  ;;  %v5616_v8 = vadd.f32 %v5615_v58, %v15768_v39  ;;  %v5529_v33 = vpop.f32.mrf.mxu1 }
 0x825   :  { %v15868_v56 = vadd.f32 %v5529_v33, %v15472_v30 }
 0x826   :  { %v5705_v19 = vadd.f32 %v5704_v25, %v5616_v8  ;;  %5835 = vmatmul.bf16.gmra.mxu0 %v19809_v13 }
 0x827   :  { %19807 = vst [vmem:[#allocation233_spill] sm:$0xff] %v15868_v56  ;;  %5568 = vmatmul.bf16.gmra.mxu1 %v19808_v49 }
 0x828   :  { %5657 = vmatmul.bf16.gmra.mxu2 %v19810_v14  ;;  %v15874_v57 = vadd.f32 %v5793_v20, %v5705_v19 }
 0x829   :  { %5746 = vmatmul.bf16.gmra.mxu3 %v19811_v3 }
 0x82a   :  { %19812 = vst [vmem:[#allocation235_spill] sm:$0xff] %v15874_v57  ;;  %v19815_v57 = vld [vmem:[#allocation105_spill] sm:$0xff] }
 0x82b   :  { %v5618_v27 = vpop.f32.mrf.mxu2  ;;  %v5798_v58 = vpop.f32.mrf.mxu0 }
 0x82c   :  { %v5707_v51 = vpop.f32.mrf.mxu3  ;;  %v5619_v46 = vadd.f32 %v5618_v27, %v15768_v39  ;;  %v5531_v40 = vpop.f32.mrf.mxu1 }
 0x82d   :  { %v15878_v30 = vadd.f32 %v5531_v40, %v15489_v29  ;;  %v19816_v29 = vld [vmem:[#allocation5_spill] sm:$0xff] }
 0x82e   :  { %v5708_v25 = vadd.f32 %v5707_v51, %v5619_v46  ;;  %v10405_v46 = vld [vmem:[%s18628_s1 + $0xa30] sm:$0xf0] }
 0x82f   :  { %19813 = vst [vmem:[#allocation237_spill] sm:$0xff] %v15878_v30 }
 0x830   :  { %v15882_v33 = vadd.f32 %v5796_v50, %v5708_v25  ;;  %v11251_v50 = vld [vmem:[%s18628_s1 + $0x814] sm:$0xf] }
 0x833   :  { %v5620_v13 = vpop.f32.mrf.mxu2  ;;  %v5801_v3 = vpop.f32.mrf.mxu0 }
 0x834   :  { %v5709_v49 = vpop.f32.mrf.mxu3  ;;  %v5621_v20 = vadd.f32 %v5620_v13, %v15768_v39  ;;  %v5534_v19 = vpop.f32.mrf.mxu1  ;;  %v10149_v13 = vld [vmem:[%s18628_s1 + $0x830] sm:$0xf0] }
 0x835   :  { %v15886_v14 = vadd.f32 %v5534_v19, %v15508_v9  ;;  %v11315_v9 = vld [vmem:[%s18628_s1 + $0xa14] sm:$0xf]  ;;  %v10152_v51 = vor.u32 %v11251_v50, %v10149_v13  ;;  %v9227_v50 = vld [vmem:[%s18628_s1 + $0xd8] sm:$0xf] }
 0x836   :  { %v5710_v27 = vadd.f32 %v5709_v49, %v5621_v20  ;;  %5840 = vmatmul.bf16.gmra.mxu0 %v19751_v2  ;;  %v10408_v40 = vor.u32 %v11315_v9, %v10405_v46  ;;  %v9259_v9 = vld [vmem:[%s18628_s1 + $0x118] sm:$0xf] }
 0x837   :  { %19814 = vst [vmem:[#allocation238_spill] sm:$0xff] %v15886_v14  ;;  %5573 = vmatmul.bf16.gmra.mxu1 %v19815_v57  ;;  %5957 = vmatpush.bf16.msrb.mxu2 %v10152_v51 }
 0x838   :  { %5662 = vmatmul.bf16.gmra.mxu2 %v19816_v29  ;;  %v15901_v49 = vadd.f32 %v5798_v58, %v5710_v27  ;;  %6046 = vmatpush.bf16.msrb.mxu3 %v10408_v40  ;;  %v11187_v58 = vld [vmem:[%s18628_s1 + $0x614] sm:$0xf] }
 0x839   :  { %5751 = vmatmul.bf16.gmra.mxu3 %v19750_v35  ;;  %v9893_v27 = vld [vmem:[%s18628_s1 + $0x630] sm:$0xf0]  ;;  %v19828_v35 = vld [vmem:[#allocation197_spill] sm:$0xff] }
 0x83a   :  { %v9896_v13 = vor.u32 %v11187_v58, %v9893_v27 }
 0x83b   :  { %v5623_v25 = vpop.f32.mrf.mxu2  ;;  %v5803_v56 = vpop.f32.mrf.mxu0 }
 0x83c   :  { %v5712_v20 = vpop.f32.mrf.mxu3  ;;  %v5624_v19 = vadd.f32 %v5623_v25, %v15768_v39  ;;  %v5536_v8 = vpop.f32.mrf.mxu1  ;;  %5868 = vmatpush.bf16.msrb.mxu1 %v9896_v13 }
 0x83d   :  { %v15908_v30 = vadd.f32 %v5536_v8, %v15522_v18  ;;  %v11032_v18 = vld [vmem:[%s18628_s1 + $0x134] sm:$0xf0] }
 0x83e   :  { %v5713_v2 = vadd.f32 %v5712_v20, %v5624_v19  ;;  %v9260_v8 = vor.u32 %v11032_v18, %v9259_v9  ;;  %v19820_v9 = vld [vmem:[#allocation9_spill] sm:$0xff] }
 0x83f   :  { %19817 = vst [vmem:[#allocation239_spill] sm:$0xff] %v15908_v30  ;;  %v9195_v18 = vld [vmem:[%s18628_s1 + $0x98] sm:$0xf] }
 0x840   :  { %v15924_v51 = vadd.f32 %v5801_v3, %v5713_v2  ;;  %6131 = vmatpush.bf16.msrb.mxu0 %v9260_v8  ;;  %v11024_v2 = vld [vmem:[%s18628_s1 + $0xf4] sm:$0xf0]  ;;  %v19819_v3 = vld [vmem:[#allocation107_spill] sm:$0xff] }
 0x841   :  { %v9228_v13 = vor.u32 %v11024_v2, %v9227_v50  ;;  %v11016_v8 = vld [vmem:[%s18628_s1 + $0xb4] sm:$0xf0] }
 0x843   :  { %v5625_v46 = vpop.f32.mrf.mxu2  ;;  %v5806_v19 = vpop.f32.mrf.mxu0 }
 0x844   :  { %v5714_v40 = vpop.f32.mrf.mxu3  ;;  %v5626_v25 = vadd.f32 %v5625_v46, %v15768_v39  ;;  %v5539_v20 = vpop.f32.mrf.mxu1  ;;  %6132 = vmatpush.bf16.msrb.mxu0 %v9228_v13  ;;  %v11008_v13 = vld [vmem:[%s18628_s1 + $0x74] sm:$0xf0] }
 0x845   :  { %v15928_v58 = vadd.f32 %v5539_v20, %v15538_v12 }
 0x846   :  { %v5715_v27 = vadd.f32 %v5714_v40, %v5626_v25  ;;  %5845 = vmatmul.bf16.gmra.mxu0 %v19753_v26  ;;  %v9196_v25 = vor.u32 %v11016_v8, %v9195_v18  ;;  %v19826_v18 = vld [vmem:[#allocation85_spill] sm:$0xff] }
 0x847   :  { %19818 = vst [vmem:[#allocation240_spill] sm:$0xff] %v15928_v58  ;;  %5578 = vmatmul.bf16.gmra.mxu1 %v19819_v3  ;;  %v19833_v3 = vld [vmem:[#allocation17_spill] sm:$0xff] }
 0x848   :  { %5667 = vmatmul.bf16.gmra.mxu2 %v19820_v9  ;;  %v15940_v12 = vadd.f32 %v5803_v56, %v5715_v27  ;;  %6133 = vmatpush.bf16.msrb.mxu0 %v9196_v25  ;;  %v9163_v27 = vld [vmem:[%s18628_s1 + $0x58] sm:$0xf] }
 0x849   :  { %5756 = vmatmul.bf16.gmra.mxu3 %v19752_v43  ;;  %v9164_v8 = vor.u32 %v11008_v13, %v9163_v27  ;;  %v19824_v13 = vld [vmem:[#allocation87_spill] sm:$0xff] }
 0x84b   :  { %v5628_v46 = vpop.f32.mrf.mxu2  ;;  %v5808_v2 = vpop.f32.mrf.mxu0 }
 0x84c   :  { %v5717_v40 = vpop.f32.mrf.mxu3  ;;  %v5629_v50 = vadd.f32 %v5628_v46, %v15768_v39  ;;  %v5541_v20 = vpop.f32.mrf.mxu1  ;;  %6134 = vmatpush.bf16.msrb.mxu0 %v9164_v8  ;;  %v19825_v8 = vld [vmem:[#allocation13_spill] sm:$0xff] }
 0x84d   :  { %v15950_v14 = vadd.f32 %v5541_v20, %v15561_v32  ;;  %v9131_v32 = vld [vmem:[%s18628_s1 + $0x18] sm:$0xf] }
 0x84e   :  { %v5718_v56 = vadd.f32 %v5717_v40, %v5629_v50  ;;  %v11000_v40 = vld [vmem:[%s18628_s1 + $0x34] sm:$0xf0] }
 0x84f   :  { %19821 = vst [vmem:[#allocation241_spill] sm:$0xff] %v15950_v14  ;;  %v9132_v20 = vor.u32 %v11000_v40, %v9131_v32  ;;  %v9867_v32 = vld [vmem:[%s18628_s1 + $0x5d8] sm:$0xf] }
 0x850   :  { %v15960_v46 = vadd.f32 %v5806_v19, %v5718_v56  ;;  %v19823_v56 = vld [vmem:[#allocation109_spill] sm:$0xff] }
 0x851   :  { %6135 = vmatpush.bf16.msrb.mxu0 %v9132_v20  ;;  %v11184_v40 = vld [vmem:[%s18628_s1 + $0x5f4] sm:$0xf0] }
 0x853   :  { %v5630_v25 = vpop.f32.mrf.mxu2  ;;  %v5811_v43 = vpop.f32.mrf.mxu0 }
 0x854   :  { %v5719_v50 = vpop.f32.mrf.mxu3  ;;  %v5631_v30 = vadd.f32 %v5630_v25, %v15768_v39  ;;  %v5544_v26 = vpop.f32.mrf.mxu1  ;;  %v11248_v25 = vld [vmem:[%s18628_s1 + $0x7f4] sm:$0xf0] }
 0x855   :  { %v15970_v27 = vadd.f32 %v5544_v26, %v15574_v62  ;;  %v10123_v26 = vld [vmem:[%s18628_s1 + $0x7d8] sm:$0xf] }
 0x856   :  { %v5720_v19 = vadd.f32 %v5719_v50, %v5631_v30  ;;  %5850 = vmatmul.bf16.gmra.mxu0 %v19824_v13  ;;  %v9868_v30 = vor.u32 %v11184_v40, %v9867_v32  ;;  %v10124_v50 = vor.u32 %v11248_v25, %v10123_v26 }
 0x857   :  { %19822 = vst [vmem:[#allocation242_spill] sm:$0xff] %v15970_v27  ;;  %5583 = vmatmul.bf16.gmra.mxu1 %v19823_v56 }
 0x858   :  { %5672 = vmatmul.bf16.gmra.mxu2 %v19825_v8  ;;  %v15985_v62 = vadd.f32 %v5808_v2, %v5720_v19  ;;  %6395 = vmatpush.bf16.msra.mxu3 %v10124_v50  ;;  %v9611_v2 = vld [vmem:[%s18628_s1 + $0x3d8] sm:$0xf] }
 0x859   :  { %5761 = vmatmul.bf16.gmra.mxu3 %v19826_v18  ;;  %6306 = vmatpush.bf16.msra.mxu2 %v9868_v30  ;;  %v11120_v19 = vld [vmem:[%s18628_s1 + $0x3f4] sm:$0xf0] }
 0x85a   :  { %19827 = vst [vmem:[#allocation243_spill] sm:$0xff] %v15985_v62  ;;  %v9612_v40 = vor.u32 %v11120_v19, %v9611_v2  ;;  %v19832_v62 = vld [vmem:[#allocation91_spill] sm:$0xff]  ;;  %v19834_v2 = vld [vmem:[#allocation89_spill] sm:$0xff] }
 0x85b   :  { %v5633_v20 = vpop.f32.mrf.mxu2  ;;  %v5813_v18 = vpop.f32.mrf.mxu0 }
 0x85c   :  { %v5722_v58 = vpop.f32.mrf.mxu3  ;;  %v5634_v14 = vadd.f32 %v5633_v20, %v15768_v39  ;;  %v5546_v13 = vpop.f32.mrf.mxu1  ;;  %6217 = vmatpush.bf16.msra.mxu1 %v9612_v40  ;;  %v19831_v20 = vld [vmem:[#allocation112_spill] sm:$0xff] }
 0x85d   :  { %v15992_v56 = vadd.f32 %v5546_v13, %v19828_v35 }
 0x85e   :  { %v5723_v8 = vadd.f32 %v5722_v58, %v5634_v14 }
 0x85f   :  { %19829 = vst [vmem:[#allocation197_spill] sm:$0xff] %v15992_v56 }
 0x860   :  { %v16002_v26 = vadd.f32 %v5811_v43, %v5723_v8 }
 0x863   :  { %v5635_v30 = vpop.f32.mrf.mxu2  ;;  %v5816_v58 = vpop.f32.mrf.mxu0 }
 0x864   :  { %v5724_v25 = vpop.f32.mrf.mxu3  ;;  %v5636_v35 = vadd.f32 %v5635_v30, %v15768_v39  ;;  %v5549_v14 = vpop.f32.mrf.mxu1 }
 0x865   :  { %v16006_v13 = vadd.f32 %v5549_v14, %v15586_v63 }
 0x866   :  { %v5725_v50 = vadd.f32 %v5724_v25, %v5636_v35  ;;  %5855 = vmatmul.bf16.gmra.mxu0 %v19832_v62 }
 0x867   :  { %19830 = vst [vmem:[#allocation244_spill] sm:$0xff] %v16006_v13  ;;  %5588 = vmatmul.bf16.gmra.mxu1 %v19831_v20  ;;  %v19837_v20 = vld [vmem:[#allocation21_spill] sm:$0xff] }
 0x868   :  { %5677 = vmatmul.bf16.gmra.mxu2 %v19833_v3  ;;  %v16012_v43 = vadd.f32 %v5813_v18, %v5725_v50 }
 0x869   :  { %5766 = vmatmul.bf16.gmra.mxu3 %v19834_v2 }
 0x86b   :  { %v5638_v8 = vpop.f32.mrf.mxu2  ;;  %v5818_v32 = vpop.f32.mrf.mxu0 }
 0x86c   :  { %v5727_v19 = vpop.f32.mrf.mxu3  ;;  %v5639_v40 = vadd.f32 %v5638_v8, %v15768_v39  ;;  %v5551_v30 = vpop.f32.mrf.mxu1 }
 0x86d   :  { %v16016_v63 = vadd.f32 %v5551_v30, %v15603_v41  ;;  %v19838_v41 = vld [vmem:[#allocation19_spill] sm:$0xff] }
 0x86e   :  { %v5728_v25 = vadd.f32 %v5727_v19, %v5639_v40  ;;  %v11240_v40 = vld [vmem:[%s18628_s1 + $0x7b4] sm:$0xf0] }
 0x86f   :  { %19835 = vst [vmem:[#allocation245_spill] sm:$0xff] %v16016_v63 }
 0x870   :  { %v16020_v14 = vadd.f32 %v5816_v58, %v5728_v25  ;;  %v9835_v58 = vld [vmem:[%s18628_s1 + $0x598] sm:$0xf] }
 0x873   :  { %v5640_v27 = vpop.f32.mrf.mxu2  ;;  %v5821_v62 = vpop.f32.mrf.mxu0 }
 0x874   :  { %v5729_v56 = vpop.f32.mrf.mxu3  ;;  %v5641_v18 = vadd.f32 %v5640_v27, %v15768_v39  ;;  %v5554_v50 = vpop.f32.mrf.mxu1  ;;  %v11176_v27 = vld [vmem:[%s18628_s1 + $0x5b4] sm:$0xf0] }
 0x875   :  { %v16024_v2 = vadd.f32 %v5554_v50, %v15616_v42  ;;  %v10091_v42 = vld [vmem:[%s18628_s1 + $0x798] sm:$0xf]  ;;  %v9836_v19 = vor.u32 %v11176_v27, %v9835_v58 }
 0x876   :  { %v5730_v8 = vadd.f32 %v5729_v56, %v5641_v18  ;;  %6136 = vmatmul.bf16.vlgmr.msrb.gmra.mxu0 %v19765_v10  ;;  %v10092_v30 = vor.u32 %v11240_v40, %v10091_v42 }
 0x877   :  { %19836 = vst [vmem:[#allocation246_spill] sm:$0xff] %v16024_v2  ;;  %5869 = vmatmul.bf16.vlgmr.msrb.gmra.mxu1 %v19837_v20  ;;  %6307 = vmatpush.bf16.msra.mxu2 %v9836_v19 }
 0x878   :  { %5958 = vmatmul.bf16.vlgmr.msrb.gmra.mxu2 %v19838_v41  ;;  %v16039_v56 = vadd.f32 %v5818_v32, %v5730_v8  ;;  %6396 = vmatpush.bf16.msra.mxu3 %v10092_v30  ;;  %v9579_v32 = vld [vmem:[%s18628_s1 + $0x398] sm:$0xf] }
 0x879   :  { %6047 = vmatmul.bf16.vlgmr.msrb.gmra.mxu3 %v19764_v38  ;;  %v11112_v8 = vld [vmem:[%s18628_s1 + $0x3b4] sm:$0xf0]  ;;  %v19842_v38 = vld [vmem:[#allocation23_spill] sm:$0xff] }
 0x87a   :  { %v9580_v27 = vor.u32 %v11112_v8, %v9579_v32 }
 0x87b   :  { %v5643_v25 = vpop.f32.mrf.mxu2  ;;  %v5823_v13 = vpop.f32.mrf.mxu0 }
 0x87c   :  { %v5732_v18 = vpop.f32.mrf.mxu3  ;;  %v5644_v50 = vadd.f32 %v5643_v25, %v15768_v39  ;;  %v5556_v35 = vpop.f32.mrf.mxu1  ;;  %6218 = vmatpush.bf16.msra.mxu1 %v9580_v27 }
 0x87d   :  { %v16046_v63 = vadd.f32 %v5556_v35, %v15624_v22 }
 0x87e   :  { %v5733_v10 = vadd.f32 %v5732_v18, %v5644_v50  ;;  %v19841_v50 = vld [vmem:[#allocation25_spill] sm:$0xff] }
 0x87f   :  { %19839 = vst [vmem:[#allocation247_spill] sm:$0xff] %v16046_v63 }
 0x880   :  { %v16056_v42 = vadd.f32 %v5821_v62, %v5733_v10 }
 0x883   :  { %v5645_v19 = vpop.f32.mrf.mxu2  ;;  %v5826_v30 = vpop.f32.mrf.mxu0 }
 0x884   :  { %v5734_v40 = vpop.f32.mrf.mxu3  ;;  %v5646_v22 = vadd.f32 %v5645_v19, %v15768_v39  ;;  %v5559_v35 = vpop.f32.mrf.mxu1 }
 0x885   :  { %v16060_v25 = vadd.f32 %v5559_v35, %v15628_v59 }
 0x886   :  { %v5735_v18 = vadd.f32 %v5734_v40, %v5646_v22  ;;  %6141 = vmatmul.bf16.gmra.mxu0 %v19767_v53 }
 0x887   :  { %19840 = vst [vmem:[#allocation248_spill] sm:$0xff] %v16060_v25  ;;  %5874 = vmatmul.bf16.gmra.mxu1 %v19841_v50 }
 0x888   :  { %5963 = vmatmul.bf16.gmra.mxu2 %v19842_v38  ;;  %v16066_v10 = vadd.f32 %v5823_v13, %v5735_v18 }
 0x889   :  { %6052 = vmatmul.bf16.gmra.mxu3 %v19766_v7  ;;  %v19845_v7 = vld [vmem:[#allocation29_spill] sm:$0xff] }
 0x88b   :  { %v5648_v62 = vpop.f32.mrf.mxu2  ;;  %v5828_v19 = vpop.f32.mrf.mxu0 }
 0x88c   :  { %v5737_v32 = vpop.f32.mrf.mxu3  ;;  %v5649_v8 = vadd.f32 %v5648_v62, %v15768_v39  ;;  %v5561_v27 = vpop.f32.mrf.mxu1 }
 0x88d   :  { %v16070_v59 = vadd.f32 %v5561_v27, %v15645_v54  ;;  %v19846_v54 = vld [vmem:[#allocation27_spill] sm:$0xff] }
 0x88e   :  { %v5738_v40 = vadd.f32 %v5737_v32, %v5649_v8  ;;  %v11232_v8 = vld [vmem:[%s18628_s1 + $0x774] sm:$0xf0] }
 0x88f   :  { %19843 = vst [vmem:[#allocation249_spill] sm:$0xff] %v16070_v59 }
 0x890   :  { %v16074_v35 = vadd.f32 %v5826_v30, %v5738_v40  ;;  %v9803_v30 = vld [vmem:[%s18628_s1 + $0x558] sm:$0xf] }
 0x893   :  { %v5650_v58 = vpop.f32.mrf.mxu2  ;;  %v5831_v63 = vpop.f32.mrf.mxu0 }
 0x894   :  { %v5739_v2 = vpop.f32.mrf.mxu3  ;;  %v5651_v13 = vadd.f32 %v5650_v58, %v15768_v39  ;;  %v5564_v18 = vpop.f32.mrf.mxu1  ;;  %v11168_v58 = vld [vmem:[%s18628_s1 + $0x574] sm:$0xf0] }
 0x895   :  { %v16078_v53 = vadd.f32 %v5564_v18, %v15658_v45  ;;  %v10059_v45 = vld [vmem:[%s18628_s1 + $0x758] sm:$0xf]  ;;  %v9804_v32 = vor.u32 %v11168_v58, %v9803_v30 }
 0x896   :  { %v5740_v62 = vadd.f32 %v5739_v2, %v5651_v13  ;;  %6146 = vmatmul.bf16.gmra.mxu0 %v19769_v28  ;;  %v10060_v27 = vor.u32 %v11232_v8, %v10059_v45 }
 0x897   :  { %19844 = vst [vmem:[#allocation250_spill] sm:$0xff] %v16078_v53  ;;  %5879 = vmatmul.bf16.gmra.mxu1 %v19845_v7  ;;  %6308 = vmatpush.bf16.msra.mxu2 %v9804_v32 }
 0x898   :  { %5968 = vmatmul.bf16.gmra.mxu2 %v19846_v54  ;;  %v16093_v2 = vadd.f32 %v5828_v19, %v5740_v62  ;;  %6397 = vmatpush.bf16.msra.mxu3 %v10060_v27  ;;  %v9547_v19 = vld [vmem:[%s18628_s1 + $0x358] sm:$0xf] }
 0x899   :  { %6057 = vmatmul.bf16.gmra.mxu3 %v19768_v36  ;;  %v11104_v62 = vld [vmem:[%s18628_s1 + $0x374] sm:$0xf0]  ;;  %v19850_v36 = vld [vmem:[#allocation31_spill] sm:$0xff] }
 0x89a   :  { %v9548_v58 = vor.u32 %v11104_v62, %v9547_v19 }
 0x89b   :  { %v5653_v40 = vpop.f32.mrf.mxu2  ;;  %v5833_v25 = vpop.f32.mrf.mxu0 }
 0x89c   :  { %v5742_v13 = vpop.f32.mrf.mxu3  ;;  %v5654_v18 = vadd.f32 %v5653_v40, %v15768_v39  ;;  %v5566_v22 = vpop.f32.mrf.mxu1  ;;  %6219 = vmatpush.bf16.msra.mxu1 %v9548_v58 }
 0x89d   :  { %v16100_v59 = vadd.f32 %v5566_v22, %v15666_v16 }
 0x89e   :  { %v5743_v28 = vadd.f32 %v5742_v13, %v5654_v18  ;;  %v19849_v18 = vld [vmem:[#allocation33_spill] sm:$0xff] }
 0x89f   :  { %19847 = vst [vmem:[#allocation251_spill] sm:$0xff] %v16100_v59 }
 0x8a0   :  { %v16110_v45 = vadd.f32 %v5831_v63, %v5743_v28 }
 0x8a3   :  { %v5655_v32 = vpop.f32.mrf.mxu2  ;;  %v5836_v27 = vpop.f32.mrf.mxu0 }
 0x8a4   :  { %v5744_v8 = vpop.f32.mrf.mxu3  ;;  %v5656_v16 = vadd.f32 %v5655_v32, %v15768_v39  ;;  %v5569_v22 = vpop.f32.mrf.mxu1 }
 0x8a5   :  { %v16114_v40 = vadd.f32 %v5569_v22, %v15670_v37 }
 0x8a6   :  { %v5745_v13 = vadd.f32 %v5744_v8, %v5656_v16  ;;  %6151 = vmatmul.bf16.gmra.mxu0 %v19771_v60 }
 0x8a7   :  { %19848 = vst [vmem:[#allocation252_spill] sm:$0xff] %v16114_v40  ;;  %5884 = vmatmul.bf16.gmra.mxu1 %v19849_v18 }
 0x8a8   :  { %5973 = vmatmul.bf16.gmra.mxu2 %v19850_v36  ;;  %v16120_v28 = vadd.f32 %v5833_v25, %v5745_v13 }
 0x8a9   :  { %6062 = vmatmul.bf16.gmra.mxu3 %v19770_v47  ;;  %v19853_v47 = vld [vmem:[#allocation37_spill] sm:$0xff] }
 0x8ab   :  { %v5658_v63 = vpop.f32.mrf.mxu2  ;;  %v5838_v32 = vpop.f32.mrf.mxu0 }
 0x8ac   :  { %v5747_v19 = vpop.f32.mrf.mxu3  ;;  %v5659_v62 = vadd.f32 %v5658_v63, %v15768_v39  ;;  %v5571_v58 = vpop.f32.mrf.mxu1 }
 0x8ad   :  { %v16124_v37 = vadd.f32 %v5571_v58, %v15687_v48  ;;  %v19854_v48 = vld [vmem:[#allocation35_spill] sm:$0xff] }
 0x8ae   :  { %v5748_v8 = vadd.f32 %v5747_v19, %v5659_v62  ;;  %v11224_v62 = vld [vmem:[%s18628_s1 + $0x734] sm:$0xf0] }
 0x8af   :  { %19851 = vst [vmem:[#allocation253_spill] sm:$0xff] %v16124_v37 }
 0x8b0   :  { %v16128_v22 = vadd.f32 %v5836_v27, %v5748_v8  ;;  %v9771_v27 = vld [vmem:[%s18628_s1 + $0x518] sm:$0xf] }
 0x8b3   :  { %v5660_v30 = vpop.f32.mrf.mxu2  ;;  %v5841_v59 = vpop.f32.mrf.mxu0 }
 0x8b4   :  { %v5749_v53 = vpop.f32.mrf.mxu3  ;;  %v5661_v25 = vadd.f32 %v5660_v30, %v15768_v39  ;;  %v5574_v13 = vpop.f32.mrf.mxu1  ;;  %v11160_v30 = vld [vmem:[%s18628_s1 + $0x534] sm:$0xf0] }
 0x8b5   :  { %v16132_v60 = vadd.f32 %v5574_v13, %v15700_v31  ;;  %v9772_v19 = vor.u32 %v11160_v30, %v9771_v27 }
 0x8b6   :  { %v5750_v63 = vadd.f32 %v5749_v53, %v5661_v25  ;;  %6156 = vmatmul.bf16.gmra.mxu0 %v19773_v24  ;;  %v10027_v53 = vld [vmem:[%s18628_s1 + $0x718] sm:$0xf] }
 0x8b7   :  { %19852 = vst [vmem:[#allocation254_spill] sm:$0xff] %v16132_v60  ;;  %5889 = vmatmul.bf16.gmra.mxu1 %v19853_v47  ;;  %v10028_v58 = vor.u32 %v11224_v62, %v10027_v53  ;;  %6309 = vmatpush.bf16.msra.mxu2 %v9772_v19 }
 0x8b8   :  { %5978 = vmatmul.bf16.gmra.mxu2 %v19854_v48  ;;  %v16147_v31 = vadd.f32 %v5838_v32, %v5750_v63  ;;  %v9515_v32 = vld [vmem:[%s18628_s1 + $0x318] sm:$0xf] }
 0x8b9   :  { %6067 = vmatmul.bf16.gmra.mxu3 %v19772_v52  ;;  %v11096_v63 = vld [vmem:[%s18628_s1 + $0x334] sm:$0xf0]  ;;  %v19858_v52 = vld [vmem:[#allocation39_spill] sm:$0xff] }
 0x8ba   :  { %6398 = vmatpush.bf16.msra.mxu3 %v10028_v58  ;;  %v9516_v30 = vor.u32 %v11096_v63, %v9515_v32  ;;  %v19859_v32 = vld [vmem:[#allocation98_spill] sm:$0xff] }
 0x8bb   :  { %v5663_v8 = vpop.f32.mrf.mxu2  ;;  %v5843_v40 = vpop.f32.mrf.mxu0 }
 0x8bc   :  { %v5752_v25 = vpop.f32.mrf.mxu3  ;;  %v5664_v13 = vadd.f32 %v5663_v8, %v15768_v39  ;;  %v5576_v16 = vpop.f32.mrf.mxu1  ;;  %6220 = vmatpush.bf16.msra.mxu1 %v9516_v30 }
 0x8bd   :  { %v16154_v37 = vadd.f32 %v5576_v16, %v15708_v5 }
 0x8be   :  { %v5753_v24 = vadd.f32 %v5752_v25, %v5664_v13  ;;  %v19857_v13 = vld [vmem:[#allocation41_spill] sm:$0xff] }
 0x8bf   :  { %19855 = vst [vmem:[#allocation255_spill] sm:$0xff] %v16154_v37 }
 0x8c0   :  { %v16164_v53 = vadd.f32 %v5841_v59, %v5753_v24 }
 0x8c3   :  { %v5665_v19 = vpop.f32.mrf.mxu2  ;;  %v5846_v58 = vpop.f32.mrf.mxu0 }
 0x8c4   :  { %v5754_v62 = vpop.f32.mrf.mxu3  ;;  %v5666_v5 = vadd.f32 %v5665_v19, %v15768_v39  ;;  %v5579_v16 = vpop.f32.mrf.mxu1 }
 0x8c5   :  { %v16168_v8 = vadd.f32 %v5579_v16, %v15712_v4 }
 0x8c6   :  { %v5755_v25 = vadd.f32 %v5754_v62, %v5666_v5  ;;  %6161 = vmatmul.bf16.gmra.mxu0 %v19775_v0 }
 0x8c7   :  { %19856 = vst [vmem:[#allocation256_spill] sm:$0xff] %v16168_v8  ;;  %5894 = vmatmul.bf16.gmra.mxu1 %v19857_v13 }
 0x8c8   :  { %5983 = vmatmul.bf16.gmra.mxu2 %v19858_v52  ;;  %v16174_v24 = vadd.f32 %v5843_v40, %v5755_v25  ;;  %v19863_v52 = vld [vmem:[#allocation46_spill] sm:$0xff] }
 0x8c9   :  { %6072 = vmatmul.bf16.gmra.mxu3 %v19859_v32  ;;  %v19861_v32 = vld [vmem:[#allocation198_spill] sm:$0xff] }
 0x8cb   :  { %v5668_v59 = vpop.f32.mrf.mxu2  ;;  %v5848_v27 = vpop.f32.mrf.mxu0 }
 0x8cc   :  { %v5757_v63 = vpop.f32.mrf.mxu3  ;;  %v5669_v30 = vadd.f32 %v5668_v59, %v15768_v39  ;;  %v5581_v19 = vpop.f32.mrf.mxu1 }
 0x8cd   :  { %v16178_v4 = vadd.f32 %v5581_v19, %v15729_v61  ;;  %v19864_v61 = vld [vmem:[#allocation11_spill] sm:$0xff] }
 0x8ce   :  { %v5758_v62 = vadd.f32 %v5757_v63, %v5669_v30  ;;  %v19865_v63 = vld [vmem:[#allocation43_spill] sm:$0xff]  ;;  %v19866_v30 = vld [vmem:[#allocation44_spill] sm:$0xff] }
 0x8cf   :  { %19860 = vst [vmem:[#allocation257_spill] sm:$0xff] %v16178_v4 }
 0x8d0   :  { %v16182_v16 = vadd.f32 %v5846_v58, %v5758_v62  ;;  %v9739_v58 = vld [vmem:[%s18628_s1 + $0x4d8] sm:$0xf] }
 0x8d1   :  { %v11216_v62 = vld [vmem:[%s18628_s1 + $0x6f4] sm:$0xf0] }
 0x8d3   :  { %v5670_v60 = vpop.f32.mrf.mxu2  ;;  %v5851_v0 = vpop.f32.mrf.mxu0 }
 0x8d4   :  { %v5759_v37 = vpop.f32.mrf.mxu3  ;;  %v5671_v40 = vadd.f32 %v5670_v60, %v15768_v39  ;;  %v5584_v25 = vpop.f32.mrf.mxu1  ;;  %v11152_v60 = vld [vmem:[%s18628_s1 + $0x4f4] sm:$0xf0] }
 0x8d5   :  { %v16186_v13 = vadd.f32 %v5584_v25, %v19861_v32  ;;  %v9740_v19 = vor.u32 %v11152_v60, %v9739_v58  ;;  %v10379_v58 = vld [vmem:[%s18628_s1 + $0x9d8] sm:$0xf] }
 0x8d6   :  { %v5760_v59 = vadd.f32 %v5759_v37, %v5671_v40  ;;  %6166 = vmatmul.bf16.gmra.mxu0 %v19864_v61  ;;  %v9995_v37 = vld [vmem:[%s18628_s1 + $0x6d8] sm:$0xf] }
 0x8d7   :  { %19862 = vst [vmem:[#allocation198_spill] sm:$0xff] %v16186_v13  ;;  %5899 = vmatmul.bf16.gmra.mxu1 %v19863_v52  ;;  %v9996_v40 = vor.u32 %v11216_v62, %v9995_v37  ;;  %6310 = vmatpush.bf16.msra.mxu2 %v9740_v19  ;;  %v19871_v13 = vld [vmem:[#allocation49_spill] sm:$0xff] }
 0x8d8   :  { %5988 = vmatmul.bf16.gmra.mxu2 %v19865_v63  ;;  %v16201_v32 = vadd.f32 %v5848_v27, %v5760_v59  ;;  %v9483_v27 = vld [vmem:[%s18628_s1 + $0x2d8] sm:$0xf] }
 0x8d9   :  { %6077 = vmatmul.bf16.gmra.mxu3 %v19866_v30  ;;  %v11088_v59 = vld [vmem:[%s18628_s1 + $0x2f4] sm:$0xf0] }
 0x8da   :  { %6399 = vmatpush.bf16.msra.mxu3 %v9996_v40  ;;  %v9484_v37 = vor.u32 %v11088_v59, %v9483_v27  ;;  %v19869_v27 = vld [vmem:[#allocation52_spill] sm:$0xff]  ;;  %v19870_v59 = vld [vmem:[#allocation15_spill] sm:$0xff] }
 0x8db   :  { %v5673_v25 = vpop.f32.mrf.mxu2  ;;  %v5853_v61 = vpop.f32.mrf.mxu0 }
 0x8dc   :  { %v5762_v5 = vpop.f32.mrf.mxu3  ;;  %v5674_v8 = vadd.f32 %v5673_v25, %v15768_v39  ;;  %v5586_v4 = vpop.f32.mrf.mxu1  ;;  %6221 = vmatpush.bf16.msra.mxu1 %v9484_v37 }
 0x8dd   :  { %v16208_v30 = vadd.f32 %v5586_v4, %v15756_v1  ;;  %v11312_v1 = vld [vmem:[%s18628_s1 + $0x9f4] sm:$0xf0] }
 0x8de   :  { %v5763_v52 = vadd.f32 %v5762_v5, %v5674_v8  ;;  %v10380_v8 = vor.u32 %v11312_v1, %v10379_v58 }
 0x8df   :  { %19867 = vst [vmem:[#allocation258_spill] sm:$0xff] %v16208_v30 }
 0x8e0   :  { %v16224_v4 = vadd.f32 %v5851_v0, %v5763_v52  ;;  %6484 = vmatpush.bf16.msra.mxu0 %v10380_v8  ;;  %v19872_v52 = vld [vmem:[#allocation47_spill] sm:$0xff] }
 0x8e3   :  { %v5675_v5 = vpop.f32.mrf.mxu2  ;;  %v5856_v25 = vpop.f32.mrf.mxu0 }
 0x8e4   :  { %v5764_v19 = vpop.f32.mrf.mxu3  ;;  %v5676_v62 = vadd.f32 %v5675_v5, %v15768_v39  ;;  %v5589_v40 = vpop.f32.mrf.mxu1 }
 0x8e5   :  { %v16228_v63 = vadd.f32 %v5589_v40, %v15760_v23 }
 0x8e6   :  { %v5765_v60 = vadd.f32 %v5764_v19, %v5676_v62  ;;  %6171 = vmatmul.bf16.gmra.mxu0 %v19870_v59 }
 0x8e7   :  { %19868 = vst [vmem:[#allocation259_spill] sm:$0xff] %v16228_v63  ;;  %5904 = vmatmul.bf16.gmra.mxu1 %v19869_v27  ;;  %v19876_v63 = vld [vmem:[#allocation211_spill] sm:$0xff] }
 0x8e8   :  { %5993 = vmatmul.bf16.gmra.mxu2 %v19871_v13  ;;  %v16234_v0 = vadd.f32 %v5853_v61, %v5765_v60  ;;  %v19874_v13 = vld [vmem:[#allocation58_spill] sm:$0xff] }
 0x8e9   :  { %6082 = vmatmul.bf16.gmra.mxu3 %v19872_v52 }
 0x8eb   :  { %v5678_v58 = vpop.f32.mrf.mxu2  ;;  %v5858_v5 = vpop.f32.mrf.mxu0 }
 0x8ec   :  { %v5767_v37 = vpop.f32.mrf.mxu3  ;;  %v5679_v1 = vadd.f32 %v5678_v58, %v15768_v39  ;;  %v5591_v8 = vpop.f32.mrf.mxu1 }
 0x8ed   :  { %v16238_v23 = vadd.f32 %v5591_v8, %v15781_v6  ;;  %v19875_v6 = vld [vmem:[#allocation55_spill] sm:$0xff] }
 0x8ee   :  { %v5768_v19 = vadd.f32 %v5767_v37, %v5679_v1  ;;  %v11208_v37 = vld [vmem:[%s18628_s1 + $0x6b4] sm:$0xf0] }
 0x8ef   :  { %19873 = vst [vmem:[#allocation260_spill] sm:$0xff] %v16238_v23 }
 0x8f0   :  { %v16242_v40 = vadd.f32 %v5856_v25, %v5768_v19  ;;  %v9707_v25 = vld [vmem:[%s18628_s1 + $0x498] sm:$0xf] }
 0x8f3   :  { %v5680_v30 = vpop.f32.mrf.mxu2  ;;  %v16245_v52 = vpop.f32.mrf.mxu0 }
 0x8f4   :  { %v5769_v59 = vpop.f32.mrf.mxu3  ;;  %v5681_v61 = vadd.f32 %v5680_v30, %v15768_v39  ;;  %v5870_v60 = vpop.f32.mrf.mxu1  ;;  %v11144_v39 = vld [vmem:[%s18628_s1 + $0x4b4] sm:$0xf0] }
 0x8f5   :  { %v5871_v58 = vadd.f32 %v5870_v60, %v15804_v44  ;;  %v9963_v44 = vld [vmem:[%s18628_s1 + $0x698] sm:$0xf] }
 0x8f6   :  { %v5770_v27 = vadd.f32 %v5769_v59, %v5681_v61  ;;  %6176 = vmatmul.bf16.gmra.mxu0 %v19791_v21  ;;  %v9708_v59 = vor.u32 %v11144_v39, %v9707_v25  ;;  %v9964_v1 = vor.u32 %v11208_v37, %v9963_v44  ;;  %v11304_v39 = vld [vmem:[%s18628_s1 + $0x9b4] sm:$0xf0] }
 0x8f7   :  { %5909 = vmatmul.bf16.gmra.mxu1 %v19874_v13 }
 0x8f8   :  { %5998 = vmatmul.bf16.gmra.mxu2 %v19875_v6  ;;  %v16261_v30 = vadd.f32 %v5858_v5, %v5770_v27  ;;  %6400 = vmatpush.bf16.msra.mxu3 %v9964_v1  ;;  %v9451_v27 = vld [vmem:[%s18628_s1 + $0x298] sm:$0xf] }
 0x8f9   :  { %6087 = vmatmul.bf16.gmra.mxu3 %v19788_v17  ;;  %6311 = vmatpush.bf16.msra.mxu2 %v9708_v59  ;;  %v11080_v5 = vld [vmem:[%s18628_s1 + $0x2b4] sm:$0xf0] }
 0x8fa   :  { %v9452_v25 = vor.u32 %v11080_v5, %v9451_v27  ;;  %v19881_v27 = vld [vmem:[#allocation8_spill] sm:$0xff] }
 0x8fb   :  { %v5959_v8 = vpop.f32.mrf.mxu2  ;;  %v16266_v62 = vpop.f32.mrf.mxu0 }
 0x8fc   :  { %v6048_v19 = vpop.f32.mrf.mxu3  ;;  %v5960_v61 = vadd.f32 %v5959_v8, %v5871_v58  ;;  %v5872_v60 = vpop.f32.mrf.mxu1  ;;  %v10347_v58 = vld [vmem:[%s18628_s1 + $0x998] sm:$0xf]  ;;  %6222 = vmatpush.bf16.msra.mxu1 %v9452_v25  ;;  %v19883_v25 = vld [vmem:[#allocation59_spill] sm:$0xff] }
 0x8fd   :  { %v5873_v23 = vadd.f32 %v5872_v60, %v19876_v63  ;;  %v10348_v63 = vor.u32 %v11304_v39, %v10347_v58  ;;  %v19880_v60 = vld [vmem:[#allocation63_spill] sm:$0xff]  ;;  %v19882_v58 = vld [vmem:[#allocation61_spill] sm:$0xff] }
 0x8fe   :  { %v16269_v21 = vadd.f32 %v6048_v19, %v5960_v61 }
 0x8ff   :  { %6485 = vmatpush.bf16.msra.mxu0 %v10348_v63 }
 0x900   :  { %19877 = vst [vmem:[#allocation211_spill] sm:$0xff] %v16269_v21 }
 0x903   :  { %v5961_v44 = vpop.f32.mrf.mxu2  ;;  %v16283_v8 = vpop.f32.mrf.mxu0 }
 0x904   :  { %v6050_v59 = vpop.f32.mrf.mxu3  ;;  %v5962_v37 = vadd.f32 %v5961_v44, %v5873_v23  ;;  %v5875_v1 = vpop.f32.mrf.mxu1  ;;  %19878 = vst [vmem:[#allocation261_spill] sm:$0xff] %v16283_v8 }
 0x905   :  { %v5876_v19 = vadd.f32 %v5875_v1, %v15822_v55 }
 0x906   :  { %v16286_v61 = vadd.f32 %v6050_v59, %v5962_v37  ;;  %6181 = vmatmul.bf16.gmra.mxu0 %v19881_v27 }
 0x907   :  { %5914 = vmatmul.bf16.gmra.mxu1 %v19880_v60 }
 0x908   :  { %19879 = vst [vmem:[#allocation262_spill] sm:$0xff] %v16286_v61  ;;  %6003 = vmatmul.bf16.gmra.mxu2 %v19882_v58  ;;  %v19886_v61 = vld [vmem:[#allocation67_spill] sm:$0xff] }
 0x909   :  { %6092 = vmatmul.bf16.gmra.mxu3 %v19883_v25 }
 0x90b   :  { %v5964_v39 = vpop.f32.mrf.mxu2  ;;  %v16294_v17 = vpop.f32.mrf.mxu0 }
 0x90c   :  { %v6053_v23 = vpop.f32.mrf.mxu3  ;;  %v5965_v63 = vadd.f32 %v5964_v39, %v5876_v19  ;;  %v5877_v44 = vpop.f32.mrf.mxu1  ;;  %v19888_v39 = vld [vmem:[#allocation100_spill] sm:$0xff] }
 0x90d   :  { %v5878_v55 = vadd.f32 %v5877_v44, %v15841_v15  ;;  %v19887_v15 = vld [vmem:[#allocation65_spill] sm:$0xff] }
 0x90e   :  { %v16297_v59 = vadd.f32 %v6053_v23, %v5965_v63  ;;  %v9675_v23 = vld [vmem:[%s18628_s1 + $0x458] sm:$0xf] }
 0x90f   :  { %v11200_v63 = vld [vmem:[%s18628_s1 + $0x674] sm:$0xf0] }
 0x910   :  { %19884 = vst [vmem:[#allocation263_spill] sm:$0xff] %v16297_v59 }
 0x913   :  { %v5966_v37 = vpop.f32.mrf.mxu2  ;;  %v16299_v8 = vpop.f32.mrf.mxu0 }
 0x914   :  { %v6055_v1 = vpop.f32.mrf.mxu3  ;;  %v5967_v27 = vadd.f32 %v5966_v37, %v5878_v55  ;;  %v5880_v60 = vpop.f32.mrf.mxu1 }
 0x915   :  { %v5881_v5 = vadd.f32 %v5880_v60, %v15864_v34  ;;  %v11136_v34 = vld [vmem:[%s18628_s1 + $0x474] sm:$0xf0] }
 0x916   :  { %v16302_v21 = vadd.f32 %v6055_v1, %v5967_v27  ;;  %6186 = vmatmul.bf16.gmra.mxu0 %v19804_v11  ;;  %v9931_v60 = vld [vmem:[%s18628_s1 + $0x658] sm:$0xf]  ;;  %v9676_v27 = vor.u32 %v11136_v34, %v9675_v23 }
 0x917   :  { %5919 = vmatmul.bf16.gmra.mxu1 %v19886_v61  ;;  %v9932_v44 = vor.u32 %v11200_v63, %v9931_v60  ;;  %v9419_v23 = vld [vmem:[%s18628_s1 + $0x258] sm:$0xf] }
 0x918   :  { %19885 = vst [vmem:[#allocation264_spill] sm:$0xff] %v16302_v21  ;;  %6008 = vmatmul.bf16.gmra.mxu2 %v19887_v15  ;;  %v19890_v21 = vld [vmem:[#allocation235_spill] sm:$0xff]  ;;  %v11072_v34 = vld [vmem:[%s18628_s1 + $0x274] sm:$0xf0] }
 0x919   :  { %6097 = vmatmul.bf16.gmra.mxu3 %v19888_v39  ;;  %6312 = vmatpush.bf16.msra.mxu2 %v9676_v27  ;;  %v9420_v60 = vor.u32 %v11072_v34, %v9419_v23  ;;  %v11296_v27 = vld [vmem:[%s18628_s1 + $0x974] sm:$0xf0]  ;;  %v19895_v23 = vld [vmem:[#allocation16_spill] sm:$0xff] }
 0x91a   :  { %6401 = vmatpush.bf16.msra.mxu3 %v9932_v44 }
 0x91b   :  { %v5969_v55 = vpop.f32.mrf.mxu2  ;;  %v16322_v59 = vpop.f32.mrf.mxu0  ;;  %6223 = vmatpush.bf16.msra.mxu1 %v9420_v60  ;;  %v19897_v60 = vld [vmem:[#allocation102_spill] sm:$0xff] }
 0x91c   :  { %v6058_v37 = vpop.f32.mrf.mxu3  ;;  %v5970_v1 = vadd.f32 %v5969_v55, %v5881_v5  ;;  %v5882_v19 = vpop.f32.mrf.mxu1  ;;  %19889 = vst [vmem:[#allocation265_spill] sm:$0xff] %v16322_v59  ;;  %v10315_v5 = vld [vmem:[%s18628_s1 + $0x958] sm:$0xf] }
 0x91d   :  { %v5883_v11 = vadd.f32 %v5882_v19, %v19890_v21  ;;  %v10316_v21 = vor.u32 %v11296_v27, %v10315_v5  ;;  %v19894_v59 = vld [vmem:[#allocation73_spill] sm:$0xff]  ;;  %v19896_v5 = vld [vmem:[#allocation71_spill] sm:$0xff] }
 0x91e   :  { %v16325_v39 = vadd.f32 %v6058_v37, %v5970_v1 }
 0x91f   :  { %6486 = vmatpush.bf16.msra.mxu0 %v10316_v21 }
 0x920   :  { %19891 = vst [vmem:[#allocation235_spill] sm:$0xff] %v16325_v39 }
 0x923   :  { %v5971_v19 = vpop.f32.mrf.mxu2  ;;  %v16339_v37 = vpop.f32.mrf.mxu0 }
 0x924   :  { %v6060_v63 = vpop.f32.mrf.mxu3  ;;  %v5972_v44 = vadd.f32 %v5971_v19, %v5883_v11  ;;  %v5885_v55 = vpop.f32.mrf.mxu1  ;;  %19892 = vst [vmem:[#allocation266_spill] sm:$0xff] %v16339_v37 }
 0x925   :  { %v5886_v1 = vadd.f32 %v5885_v55, %v15882_v33 }
 0x926   :  { %v16342_v25 = vadd.f32 %v6060_v63, %v5972_v44  ;;  %6191 = vmatmul.bf16.gmra.mxu0 %v19895_v23 }
 0x927   :  { %5924 = vmatmul.bf16.gmra.mxu1 %v19894_v59 }
 0x928   :  { %19893 = vst [vmem:[#allocation267_spill] sm:$0xff] %v16342_v25  ;;  %6013 = vmatmul.bf16.gmra.mxu2 %v19896_v5  ;;  %v19900_v25 = vld [vmem:[#allocation77_spill] sm:$0xff] }
 0x929   :  { %6102 = vmatmul.bf16.gmra.mxu3 %v19897_v60 }
 0x92b   :  { %v5974_v27 = vpop.f32.mrf.mxu2  ;;  %v16350_v37 = vpop.f32.mrf.mxu0 }
 0x92c   :  { %v6063_v11 = vpop.f32.mrf.mxu3  ;;  %v5975_v21 = vadd.f32 %v5974_v27, %v5886_v1  ;;  %v5887_v19 = vpop.f32.mrf.mxu1  ;;  %v9643_v27 = vld [vmem:[%s18628_s1 + $0x418] sm:$0xf] }
 0x92d   :  { %v5888_v33 = vadd.f32 %v5887_v19, %v15901_v49  ;;  %v19901_v49 = vld [vmem:[#allocation75_spill] sm:$0xff] }
 0x92e   :  { %v16353_v63 = vadd.f32 %v6063_v11, %v5975_v21  ;;  %v11192_v11 = vld [vmem:[%s18628_s1 + $0x634] sm:$0xf0] }
 0x930   :  { %19898 = vst [vmem:[#allocation268_spill] sm:$0xff] %v16353_v63 }
 0x933   :  { %v5976_v44 = vpop.f32.mrf.mxu2  ;;  %v16355_v61 = vpop.f32.mrf.mxu0 }
 0x934   :  { %v6065_v55 = vpop.f32.mrf.mxu3  ;;  %v5977_v23 = vadd.f32 %v5976_v44, %v5888_v33  ;;  %v5890_v59 = vpop.f32.mrf.mxu1 }
 0x935   :  { %v5891_v34 = vadd.f32 %v5890_v59, %v15924_v51  ;;  %v11128_v51 = vld [vmem:[%s18628_s1 + $0x434] sm:$0xf0] }
 0x936   :  { %v16358_v39 = vadd.f32 %v6065_v55, %v5977_v23  ;;  %6196 = vmatmul.bf16.gmra.mxu0 %v19816_v29  ;;  %v9899_v59 = vld [vmem:[%s18628_s1 + $0x618] sm:$0xf]  ;;  %v9644_v23 = vor.u32 %v11128_v51, %v9643_v27 }
 0x937   :  { %5929 = vmatmul.bf16.gmra.mxu1 %v19900_v25  ;;  %v9900_v21 = vor.u32 %v11192_v11, %v9899_v59  ;;  %v9387_v27 = vld [vmem:[%s18628_s1 + $0x218] sm:$0xf] }
 0x938   :  { %19899 = vst [vmem:[#allocation269_spill] sm:$0xff] %v16358_v39  ;;  %6018 = vmatmul.bf16.gmra.mxu2 %v19901_v49  ;;  %v11064_v51 = vld [vmem:[%s18628_s1 + $0x234] sm:$0xf0] }
 0x939   :  { %6107 = vmatmul.bf16.gmra.mxu3 %v19815_v57  ;;  %6313 = vmatpush.bf16.msra.mxu2 %v9644_v23  ;;  %v9388_v59 = vor.u32 %v11064_v51, %v9387_v27  ;;  %v11288_v23 = vld [vmem:[%s18628_s1 + $0x934] sm:$0xf0] }
 0x93a   :  { %6402 = vmatpush.bf16.msra.mxu3 %v9900_v21  ;;  %v10251_v27 = vld [vmem:[%s18628_s1 + $0x8d8] sm:$0xf] }
 0x93b   :  { %v5979_v19 = vpop.f32.mrf.mxu2  ;;  %v16378_v1 = vpop.f32.mrf.mxu0  ;;  %6224 = vmatpush.bf16.msra.mxu1 %v9388_v59  ;;  %v11280_v51 = vld [vmem:[%s18628_s1 + $0x8f4] sm:$0xf0]  ;;  %v19908_v59 = vld [vmem:[#allocation243_spill] sm:$0xff] }
 0x93c   :  { %v6068_v33 = vpop.f32.mrf.mxu3  ;;  %v5980_v44 = vadd.f32 %v5979_v19, %v5891_v34  ;;  %v5892_v55 = vpop.f32.mrf.mxu1  ;;  %v10283_v34 = vld [vmem:[%s18628_s1 + $0x918] sm:$0xf] }
 0x93d   :  { %v5893_v63 = vadd.f32 %v5892_v55, %v15940_v12  ;;  %v10284_v12 = vor.u32 %v11288_v23, %v10283_v34  ;;  %v19904_v34 = vld [vmem:[#allocation82_spill] sm:$0xff]  ;;  %v19905_v23 = vld [vmem:[#allocation80_spill] sm:$0xff] }
 0x93e   :  { %v16381_v39 = vadd.f32 %v6068_v33, %v5980_v44 }
 0x93f   :  { %6487 = vmatpush.bf16.msra.mxu0 %v10284_v12  ;;  %v10219_v12 = vld [vmem:[%s18628_s1 + $0x898] sm:$0xf] }
 0x940   :  { %19902 = vst [vmem:[#allocation270_spill] sm:$0xff] %v16381_v39 }
 0x943   :  { %v5981_v11 = vpop.f32.mrf.mxu2  ;;  %v16395_v44 = vpop.f32.mrf.mxu0 }
 0x944   :  { %v6070_v21 = vpop.f32.mrf.mxu3  ;;  %v5982_v19 = vadd.f32 %v5981_v11, %v5893_v63  ;;  %v5895_v33 = vpop.f32.mrf.mxu1  ;;  %v10252_v63 = vor.u32 %v11280_v51, %v10251_v27  ;;  %v11272_v11 = vld [vmem:[%s18628_s1 + $0x8b4] sm:$0xf0] }
 0x945   :  { %v5896_v55 = vadd.f32 %v5895_v33, %v15960_v46  ;;  %v19906_v46 = vld [vmem:[#allocation107_spill] sm:$0xff]  ;;  %v10220_v33 = vor.u32 %v11272_v11, %v10219_v12 }
 0x946   :  { %v16398_v29 = vadd.f32 %v6070_v21, %v5982_v19  ;;  %6201 = vmatmul.bf16.gmra.mxu0 %v19820_v9 }
 0x947   :  { %5934 = vmatmul.bf16.gmra.mxu1 %v19904_v34  ;;  %6488 = vmatpush.bf16.msra.mxu0 %v10252_v63  ;;  %v10187_v63 = vld [vmem:[%s18628_s1 + $0x858] sm:$0xf] }
 0x948   :  { %19903 = vst [vmem:[#allocation271_spill] sm:$0xff] %v16398_v29  ;;  %6023 = vmatmul.bf16.gmra.mxu2 %v19905_v23  ;;  %v19914_v34 = vld [vmem:[#allocation109_spill] sm:$0xff] }
 0x949   :  { %6112 = vmatmul.bf16.gmra.mxu3 %v19906_v46  ;;  %v11264_v46 = vld [vmem:[%s18628_s1 + $0x874] sm:$0xf0] }
 0x94a   :  { %v10188_v57 = vor.u32 %v11264_v46, %v10187_v63  ;;  %v19912_v63 = vld [vmem:[#allocation13_spill] sm:$0xff] }
 0x94b   :  { %v5984_v21 = vpop.f32.mrf.mxu2  ;;  %v16418_v9 = vpop.f32.mrf.mxu0  ;;  %6489 = vmatpush.bf16.msra.mxu0 %v10220_v33 }
 0x94c   :  { %v6073_v19 = vpop.f32.mrf.mxu3  ;;  %v5985_v27 = vadd.f32 %v5984_v21, %v5896_v55  ;;  %v5897_v51 = vpop.f32.mrf.mxu1  ;;  %19907 = vst [vmem:[#allocation272_spill] sm:$0xff] %v16418_v9  ;;  %v10155_v55 = vld [vmem:[%s18628_s1 + $0x818] sm:$0xf]  ;;  %v19913_v9 = vld [vmem:[#allocation86_spill] sm:$0xff] }
 0x94d   :  { %v5898_v39 = vadd.f32 %v5897_v51, %v19908_v59  ;;  %v11256_v59 = vld [vmem:[%s18628_s1 + $0x834] sm:$0xf0] }
 0x94e   :  { %v16421_v29 = vadd.f32 %v6073_v19, %v5985_v27  ;;  %v10156_v21 = vor.u32 %v11256_v59, %v10155_v55  ;;  %v11116_v55 = vld [vmem:[%s18628_s1 + $0x3dc] sm:$0xf] }
 0x94f   :  { %6490 = vmatpush.bf16.msra.mxu0 %v10188_v57  ;;  %v19911_v57 = vld [vmem:[#allocation88_spill] sm:$0xff] }
 0x950   :  { %19909 = vst [vmem:[#allocation243_spill] sm:$0xff] %v16421_v29 }
 0x953   :  { %v5986_v12 = vpop.f32.mrf.mxu2  ;;  %v16435_v27 = vpop.f32.mrf.mxu0  ;;  %6491 = vmatpush.bf16.msra.mxu0 %v10156_v21 }
 0x954   :  { %v6075_v11 = vpop.f32.mrf.mxu3  ;;  %v5987_v19 = vadd.f32 %v5986_v12, %v5898_v39  ;;  %v5900_v33 = vpop.f32.mrf.mxu1  ;;  %v11052_v39 = vld [vmem:[%s18628_s1 + $0x1dc] sm:$0xf] }
 0x955   :  { %v5901_v51 = vadd.f32 %v5900_v33, %v16002_v26  ;;  %v9357_v26 = vld [vmem:[%s18628_s1 + $0x1f8] sm:$0xf0] }
 0x956   :  { %v16438_v46 = vadd.f32 %v6075_v11, %v5987_v19  ;;  %6206 = vmatmul.bf16.gmra.mxu0 %v19912_v63  ;;  %v9360_v59 = vor.u32 %v11052_v39, %v9357_v26  ;;  %v9613_v12 = vld [vmem:[%s18628_s1 + $0x3f8] sm:$0xf0]  ;;  %v10635_v39 = vld [vmem:[%s18628_s1 + $0xbd8] sm:$0xf] }
 0x957   :  { %5939 = vmatmul.bf16.gmra.mxu1 %v19911_v57  ;;  %v9616_v11 = vor.u32 %v11116_v55, %v9613_v12  ;;  %v11376_v26 = vld [vmem:[%s18628_s1 + $0xbf4] sm:$0xf0] }
 0x958   :  { %19910 = vst [vmem:[#allocation273_spill] sm:$0xff] %v16438_v46  ;;  %6028 = vmatmul.bf16.gmra.mxu2 %v19913_v9  ;;  %v10636_v55 = vor.u32 %v11376_v26, %v10635_v39  ;;  %v19921_v39 = vld [vmem:[#allocation112_spill] sm:$0xff] }
 0x959   :  { %6117 = vmatmul.bf16.gmra.mxu3 %v19914_v34  ;;  %6662 = vmatpush.bf16.msrb.mxu2 %v9360_v59 }
 0x95a   :  { %6751 = vmatpush.bf16.msrb.mxu3 %v9616_v11  ;;  %6573 = vmatpush.bf16.msrb.mxu1 %v10636_v55  ;;  %v19919_v11 = vld [vmem:[#allocation92_spill] sm:$0xff] }
 0x95b   :  { %v5989_v21 = vpop.f32.mrf.mxu2  ;;  %v16458_v29 = vpop.f32.mrf.mxu0 }
 0x95c   :  { %v6078_v19 = vpop.f32.mrf.mxu3  ;;  %v5990_v33 = vadd.f32 %v5989_v21, %v5901_v51  ;;  %v5902_v60 = vpop.f32.mrf.mxu1  ;;  %19915 = vst [vmem:[#allocation274_spill] sm:$0xff] %v16458_v29 }
 0x95d   :  { %v5903_v46 = vadd.f32 %v5902_v60, %v16012_v43 }
 0x95e   :  { %v16461_v63 = vadd.f32 %v6078_v19, %v5990_v33  ;;  %v19920_v33 = vld [vmem:[#allocation90_spill] sm:$0xff] }
 0x960   :  { %19916 = vst [vmem:[#allocation275_spill] sm:$0xff] %v16461_v63 }
 0x963   :  { %v5991_v59 = vpop.f32.mrf.mxu2  ;;  %v16469_v34 = vpop.f32.mrf.mxu0 }
 0x964   :  { %v6080_v51 = vpop.f32.mrf.mxu3  ;;  %v5992_v12 = vadd.f32 %v5991_v59, %v5903_v46  ;;  %v5905_v21 = vpop.f32.mrf.mxu1  ;;  %19917 = vst [vmem:[#allocation276_spill] sm:$0xff] %v16469_v34 }
 0x965   :  { %v5906_v43 = vadd.f32 %v5905_v21, %v16020_v14 }
 0x966   :  { %v16472_v60 = vadd.f32 %v6080_v51, %v5992_v12  ;;  %6211 = vmatmul.bf16.gmra.mxu0 %v19833_v3 }
 0x967   :  { %5944 = vmatmul.bf16.gmra.mxu1 %v19919_v11 }
 0x968   :  { %19918 = vst [vmem:[#allocation277_spill] sm:$0xff] %v16472_v60  ;;  %6033 = vmatmul.bf16.gmra.mxu2 %v19920_v33  ;;  %v19924_v60 = vld [vmem:[#allocation18_spill] sm:$0xff] }
 0x969   :  { %6122 = vmatmul.bf16.gmra.mxu3 %v19921_v39 }
 0x96b   :  { %v5994_v26 = vpop.f32.mrf.mxu2  ;;  %v16480_v34 = vpop.f32.mrf.mxu0 }
 0x96c   :  { %v6083_v46 = vpop.f32.mrf.mxu3  ;;  %v5995_v55 = vadd.f32 %v5994_v26, %v5906_v43  ;;  %v5907_v59 = vpop.f32.mrf.mxu1  ;;  %v11044_v26 = vld [vmem:[%s18628_s1 + $0x19c] sm:$0xf] }
 0x96d   :  { %v5908_v14 = vadd.f32 %v5907_v59, %v16039_v56  ;;  %v19925_v56 = vld [vmem:[#allocation20_spill] sm:$0xff] }
 0x96e   :  { %v16483_v51 = vadd.f32 %v6083_v46, %v5995_v55  ;;  %v9581_v46 = vld [vmem:[%s18628_s1 + $0x3b8] sm:$0xf0] }
 0x970   :  { %19922 = vst [vmem:[#allocation278_spill] sm:$0xff] %v16483_v51 }
 0x973   :  { %v5996_v12 = vpop.f32.mrf.mxu2  ;;  %v16485_v29 = vpop.f32.mrf.mxu0 }
 0x974   :  { %v6085_v21 = vpop.f32.mrf.mxu3  ;;  %v5997_v3 = vadd.f32 %v5996_v12, %v5908_v14  ;;  %v5910_v11 = vpop.f32.mrf.mxu1 }
 0x975   :  { %v5911_v19 = vadd.f32 %v5910_v11, %v16056_v42  ;;  %v11108_v42 = vld [vmem:[%s18628_s1 + $0x39c] sm:$0xf] }
 0x976   :  { %v16488_v63 = vadd.f32 %v6085_v21, %v5997_v3  ;;  %6492 = vmatmul.bf16.vlgmr.msra.gmra.mxu0 %v19838_v41  ;;  %v9325_v3 = vld [vmem:[%s18628_s1 + $0x1b8] sm:$0xf0]  ;;  %v9584_v55 = vor.u32 %v11108_v42, %v9581_v46 }
 0x977   :  { %6225 = vmatmul.bf16.vlgmr.msra.gmra.mxu1 %v19924_v60  ;;  %v9328_v11 = vor.u32 %v11044_v26, %v9325_v3  ;;  %v10603_v26 = vld [vmem:[%s18628_s1 + $0xb98] sm:$0xf] }
 0x978   :  { %19923 = vst [vmem:[#allocation279_spill] sm:$0xff] %v16488_v63  ;;  %6314 = vmatmul.bf16.vlgmr.msra.gmra.mxu2 %v19925_v56  ;;  %6752 = vmatpush.bf16.msrb.mxu3 %v9584_v55  ;;  %v11368_v3 = vld [vmem:[%s18628_s1 + $0xbb4] sm:$0xf0] }
 0x979   :  { %6403 = vmatmul.bf16.vlgmr.msra.gmra.mxu3 %v19837_v20  ;;  %6663 = vmatpush.bf16.msrb.mxu2 %v9328_v11  ;;  %v10604_v42 = vor.u32 %v11368_v3, %v10603_v26 }
 0x97b   :  { %v5999_v59 = vpop.f32.mrf.mxu2  ;;  %v16508_v43 = vpop.f32.mrf.mxu0  ;;  %6574 = vmatpush.bf16.msrb.mxu1 %v10604_v42 }
 0x97c   :  { %v6088_v14 = vpop.f32.mrf.mxu3  ;;  %v6000_v12 = vadd.f32 %v5999_v59, %v5911_v19  ;;  %v5912_v21 = vpop.f32.mrf.mxu1 }
 0x97d   :  { %v5913_v51 = vadd.f32 %v5912_v21, %v16066_v10  ;;  %v19929_v21 = vld [vmem:[#allocation24_spill] sm:$0xff] }
 0x97e   :  { %v16511_v63 = vadd.f32 %v6088_v14, %v6000_v12  ;;  %v19928_v14 = vld [vmem:[#allocation22_spill] sm:$0xff] }
 0x980   :  { %19926 = vst [vmem:[#allocation18_spill] sm:$0xff] %v16511_v63 }
 0x983   :  { %v6001_v11 = vpop.f32.mrf.mxu2  ;;  %v16519_v41 = vpop.f32.mrf.mxu0 }
 0x984   :  { %v6090_v19 = vpop.f32.mrf.mxu3  ;;  %v6002_v46 = vadd.f32 %v6001_v11, %v5913_v51  ;;  %v5915_v59 = vpop.f32.mrf.mxu1 }
 0x985   :  { %v5916_v10 = vadd.f32 %v5915_v59, %v16074_v35 }
 0x986   :  { %v16522_v55 = vadd.f32 %v6090_v19, %v6002_v46  ;;  %6497 = vmatmul.bf16.gmra.mxu0 %v19842_v38 }
 0x987   :  { %6230 = vmatmul.bf16.gmra.mxu1 %v19928_v14 }
 0x988   :  { %19927 = vst [vmem:[#allocation20_spill] sm:$0xff] %v16522_v55  ;;  %6319 = vmatmul.bf16.gmra.mxu2 %v19929_v21  ;;  %v19932_v55 = vld [vmem:[#allocation26_spill] sm:$0xff] }
 0x989   :  { %6408 = vmatmul.bf16.gmra.mxu3 %v19841_v50 }
 0x98b   :  { %v6004_v26 = vpop.f32.mrf.mxu2  ;;  %v16530_v11 = vpop.f32.mrf.mxu0 }
 0x98c   :  { %v6093_v51 = vpop.f32.mrf.mxu3  ;;  %v6005_v3 = vadd.f32 %v6004_v26, %v5916_v10  ;;  %v5917_v42 = vpop.f32.mrf.mxu1  ;;  %v11036_v26 = vld [vmem:[%s18628_s1 + $0x15c] sm:$0xf] }
 0x98d   :  { %v5918_v35 = vadd.f32 %v5917_v42, %v16093_v2  ;;  %v19933_v2 = vld [vmem:[#allocation28_spill] sm:$0xff] }
 0x98e   :  { %v16533_v19 = vadd.f32 %v6093_v51, %v6005_v3  ;;  %v9549_v51 = vld [vmem:[%s18628_s1 + $0x378] sm:$0xf0] }
 0x990   :  { %19930 = vst [vmem:[#allocation22_spill] sm:$0xff] %v16533_v19 }
 0x993   :  { %v6006_v46 = vpop.f32.mrf.mxu2  ;;  %v16535_v39 = vpop.f32.mrf.mxu0 }
 0x994   :  { %v6095_v59 = vpop.f32.mrf.mxu3  ;;  %v6007_v38 = vadd.f32 %v6006_v46, %v5918_v35  ;;  %v5920_v20 = vpop.f32.mrf.mxu1 }
 0x995   :  { %v5921_v12 = vadd.f32 %v5920_v20, %v16110_v45  ;;  %v11100_v20 = vld [vmem:[%s18628_s1 + $0x35c] sm:$0xf] }
 0x996   :  { %v16538_v63 = vadd.f32 %v6095_v59, %v6007_v38  ;;  %6502 = vmatmul.bf16.gmra.mxu0 %v19846_v54  ;;  %v9293_v38 = vld [vmem:[%s18628_s1 + $0x178] sm:$0xf0]  ;;  %v9552_v3 = vor.u32 %v11100_v20, %v9549_v51 }
 0x997   :  { %6235 = vmatmul.bf16.gmra.mxu1 %v19932_v55  ;;  %v9296_v45 = vor.u32 %v11036_v26, %v9293_v38  ;;  %v10571_v26 = vld [vmem:[%s18628_s1 + $0xb58] sm:$0xf] }
 0x998   :  { %19931 = vst [vmem:[#allocation24_spill] sm:$0xff] %v16538_v63  ;;  %6324 = vmatmul.bf16.gmra.mxu2 %v19933_v2  ;;  %6753 = vmatpush.bf16.msrb.mxu3 %v9552_v3  ;;  %v11360_v38 = vld [vmem:[%s18628_s1 + $0xb74] sm:$0xf0] }
 0x999   :  { %6413 = vmatmul.bf16.gmra.mxu3 %v19845_v7  ;;  %6664 = vmatpush.bf16.msrb.mxu2 %v9296_v45  ;;  %v10572_v20 = vor.u32 %v11360_v38, %v10571_v26 }
 0x99b   :  { %v6009_v42 = vpop.f32.mrf.mxu2  ;;  %v16558_v10 = vpop.f32.mrf.mxu0  ;;  %6575 = vmatpush.bf16.msrb.mxu1 %v10572_v20 }
 0x99c   :  { %v6098_v35 = vpop.f32.mrf.mxu3  ;;  %v6010_v46 = vadd.f32 %v6009_v42, %v5921_v12  ;;  %v5922_v59 = vpop.f32.mrf.mxu1 }
 0x99d   :  { %v5923_v19 = vadd.f32 %v5922_v59, %v16120_v28  ;;  %v19937_v59 = vld [vmem:[#allocation32_spill] sm:$0xff] }
 0x99e   :  { %v16561_v63 = vadd.f32 %v6098_v35, %v6010_v46  ;;  %v19936_v35 = vld [vmem:[#allocation30_spill] sm:$0xff] }
 0x9a0   :  { %19934 = vst [vmem:[#allocation26_spill] sm:$0xff] %v16561_v63 }
 0x9a3   :  { %v6011_v45 = vpop.f32.mrf.mxu2  ;;  %v16569_v54 = vpop.f32.mrf.mxu0 }
 0x9a4   :  { %v6100_v12 = vpop.f32.mrf.mxu3  ;;  %v6012_v51 = vadd.f32 %v6011_v45, %v5923_v19  ;;  %v5925_v42 = vpop.f32.mrf.mxu1 }
 0x9a5   :  { %v5926_v28 = vadd.f32 %v5925_v42, %v16128_v22 }
 0x9a6   :  { %v16572_v3 = vadd.f32 %v6100_v12, %v6012_v51  ;;  %6507 = vmatmul.bf16.gmra.mxu0 %v19850_v36 }
 0x9a7   :  { %6240 = vmatmul.bf16.gmra.mxu1 %v19936_v35 }
 0x9a8   :  { %19935 = vst [vmem:[#allocation28_spill] sm:$0xff] %v16572_v3  ;;  %6329 = vmatmul.bf16.gmra.mxu2 %v19937_v59  ;;  %v19940_v3 = vld [vmem:[#allocation34_spill] sm:$0xff] }
 0x9a9   :  { %6418 = vmatmul.bf16.gmra.mxu3 %v19849_v18 }
 0x9ab   :  { %v6014_v26 = vpop.f32.mrf.mxu2  ;;  %v16580_v45 = vpop.f32.mrf.mxu0 }
 0x9ac   :  { %v6103_v19 = vpop.f32.mrf.mxu3  ;;  %v6015_v38 = vadd.f32 %v6014_v26, %v5926_v28  ;;  %v5927_v20 = vpop.f32.mrf.mxu1  ;;  %v11028_v26 = vld [vmem:[%s18628_s1 + $0x11c] sm:$0xf] }
 0x9ad   :  { %v5928_v22 = vadd.f32 %v5927_v20, %v16147_v31  ;;  %v19941_v31 = vld [vmem:[#allocation36_spill] sm:$0xff] }
 0x9ae   :  { %v16583_v12 = vadd.f32 %v6103_v19, %v6015_v38  ;;  %v9517_v19 = vld [vmem:[%s18628_s1 + $0x338] sm:$0xf0] }
 0x9b0   :  { %19938 = vst [vmem:[#allocation30_spill] sm:$0xff] %v16583_v12 }
 0x9b3   :  { %v6016_v51 = vpop.f32.mrf.mxu2  ;;  %v16585_v50 = vpop.f32.mrf.mxu0 }
 0x9b4   :  { %v6105_v42 = vpop.f32.mrf.mxu3  ;;  %v6017_v36 = vadd.f32 %v6016_v51, %v5928_v22  ;;  %v5930_v7 = vpop.f32.mrf.mxu1 }
 0x9b5   :  { %v5931_v46 = vadd.f32 %v5930_v7, %v16164_v53  ;;  %v9261_v7 = vld [vmem:[%s18628_s1 + $0x138] sm:$0xf0] }
 0x9b6   :  { %v16588_v63 = vadd.f32 %v6105_v42, %v6017_v36  ;;  %6512 = vmatmul.bf16.gmra.mxu0 %v19854_v48  ;;  %v11092_v36 = vld [vmem:[%s18628_s1 + $0x31c] sm:$0xf]  ;;  %v9264_v53 = vor.u32 %v11028_v26, %v9261_v7  ;;  %v10539_v26 = vld [vmem:[%s18628_s1 + $0xb18] sm:$0xf] }
 0x9b7   :  { %6245 = vmatmul.bf16.gmra.mxu1 %v19940_v3  ;;  %v9520_v38 = vor.u32 %v11092_v36, %v9517_v19  ;;  %v11352_v7 = vld [vmem:[%s18628_s1 + $0xb34] sm:$0xf0] }
 0x9b8   :  { %19939 = vst [vmem:[#allocation32_spill] sm:$0xff] %v16588_v63  ;;  %6334 = vmatmul.bf16.gmra.mxu2 %v19941_v31  ;;  %v10540_v36 = vor.u32 %v11352_v7, %v10539_v26  ;;  %v19948_v26 = vld [vmem:[#allocation41_spill] sm:$0xff] }
 0x9b9   :  { %6423 = vmatmul.bf16.gmra.mxu3 %v19853_v47  ;;  %6665 = vmatpush.bf16.msrb.mxu2 %v9264_v53  ;;  %v19947_v47 = vld [vmem:[#allocation40_spill] sm:$0xff] }
 0x9ba   :  { %6754 = vmatpush.bf16.msrb.mxu3 %v9520_v38  ;;  %6576 = vmatpush.bf16.msrb.mxu1 %v10540_v36 }
 0x9bb   :  { %v6019_v20 = vpop.f32.mrf.mxu2  ;;  %v16608_v28 = vpop.f32.mrf.mxu0 }
 0x9bc   :  { %v6108_v22 = vpop.f32.mrf.mxu3  ;;  %v6020_v51 = vadd.f32 %v6019_v20, %v5931_v46  ;;  %v5932_v42 = vpop.f32.mrf.mxu1 }
 0x9bd   :  { %v5933_v12 = vadd.f32 %v5932_v42, %v16174_v24 }
 0x9be   :  { %v16611_v63 = vadd.f32 %v6108_v22, %v6020_v51  ;;  %v19945_v22 = vld [vmem:[#allocation38_spill] sm:$0xff]  ;;  %v19946_v51 = vld [vmem:[#allocation39_spill] sm:$0xff] }
 0x9c0   :  { %19942 = vst [vmem:[#allocation34_spill] sm:$0xff] %v16611_v63 }
 0x9c3   :  { %v6021_v53 = vpop.f32.mrf.mxu2  ;;  %v16619_v48 = vpop.f32.mrf.mxu0 }
 0x9c4   :  { %v6110_v46 = vpop.f32.mrf.mxu3  ;;  %v6022_v19 = vadd.f32 %v6021_v53, %v5933_v12  ;;  %v5935_v20 = vpop.f32.mrf.mxu1  ;;  %19943 = vst [vmem:[#allocation36_spill] sm:$0xff] %v16619_v48 }
 0x9c5   :  { %v5936_v24 = vadd.f32 %v5935_v20, %v16182_v16 }
 0x9c6   :  { %v16622_v38 = vadd.f32 %v6110_v46, %v6022_v19  ;;  %6517 = vmatmul.bf16.gmra.mxu0 %v19946_v51 }
 0x9c7   :  { %6250 = vmatmul.bf16.gmra.mxu1 %v19945_v22 }
 0x9c8   :  { %19944 = vst [vmem:[#allocation280_spill] sm:$0xff] %v16622_v38  ;;  %6339 = vmatmul.bf16.gmra.mxu2 %v19947_v47  ;;  %v19951_v38 = vld [vmem:[#allocation42_spill] sm:$0xff] }
 0x9c9   :  { %6428 = vmatmul.bf16.gmra.mxu3 %v19948_v26 }
 0x9cb   :  { %v6024_v7 = vpop.f32.mrf.mxu2  ;;  %v16630_v18 = vpop.f32.mrf.mxu0 }
 0x9cc   :  { %v6113_v12 = vpop.f32.mrf.mxu3  ;;  %v6025_v36 = vadd.f32 %v6024_v7, %v5936_v24  ;;  %v5937_v53 = vpop.f32.mrf.mxu1  ;;  %v19952_v24 = vld [vmem:[#allocation43_spill] sm:$0xff] }
 0x9cd   :  { %v5938_v16 = vadd.f32 %v5937_v53, %v16201_v32  ;;  %v19953_v32 = vld [vmem:[#allocation45_spill] sm:$0xff] }
 0x9ce   :  { %v16633_v46 = vadd.f32 %v6113_v12, %v6025_v36  ;;  %v19954_v12 = vld [vmem:[#allocation46_spill] sm:$0xff]  ;;  %v11020_v36 = vld [vmem:[%s18628_s1 + $0xdc] sm:$0xf] }
 0x9cf   :  { %v9485_v53 = vld [vmem:[%s18628_s1 + $0x2f8] sm:$0xf0] }
 0x9d0   :  { %19949 = vst [vmem:[#allocation40_spill] sm:$0xff] %v16633_v46 }
 0x9d3   :  { %v6026_v19 = vpop.f32.mrf.mxu2  ;;  %v16635_v48 = vpop.f32.mrf.mxu0 }
 0x9d4   :  { %v6115_v20 = vpop.f32.mrf.mxu3  ;;  %v6027_v51 = vadd.f32 %v6026_v19, %v5938_v16  ;;  %v5940_v22 = vpop.f32.mrf.mxu1 }
 0x9d5   :  { %v5941_v42 = vadd.f32 %v5940_v22, %v16224_v4  ;;  %v9229_v4 = vld [vmem:[%s18628_s1 + $0xf8] sm:$0xf0] }
 0x9d6   :  { %v16638_v63 = vadd.f32 %v6115_v20, %v6027_v51  ;;  %6522 = vmatmul.bf16.gmra.mxu0 %v19952_v24  ;;  %v11084_v22 = vld [vmem:[%s18628_s1 + $0x2dc] sm:$0xf]  ;;  %v9232_v51 = vor.u32 %v11020_v36, %v9229_v4  ;;  %v10507_v36 = vld [vmem:[%s18628_s1 + $0xad8] sm:$0xf] }
 0x9d7   :  { %6255 = vmatmul.bf16.gmra.mxu1 %v19951_v38  ;;  %v9488_v16 = vor.u32 %v11084_v22, %v9485_v53  ;;  %v11344_v4 = vld [vmem:[%s18628_s1 + $0xaf4] sm:$0xf0] }
 0x9d8   :  { %19950 = vst [vmem:[#allocation281_spill] sm:$0xff] %v16638_v63  ;;  %6344 = vmatmul.bf16.gmra.mxu2 %v19953_v32  ;;  %v10508_v22 = vor.u32 %v11344_v4, %v10507_v36  ;;  %v19960_v36 = vld [vmem:[#allocation49_spill] sm:$0xff] }
 0x9d9   :  { %6433 = vmatmul.bf16.gmra.mxu3 %v19954_v12  ;;  %6666 = vmatpush.bf16.msrb.mxu2 %v9232_v51  ;;  %v9869_v51 = vld [vmem:[%s18628_s1 + $0x5f8] sm:$0xf0] }
 0x9da   :  { %6755 = vmatpush.bf16.msrb.mxu3 %v9488_v16  ;;  %6577 = vmatpush.bf16.msrb.mxu1 %v10508_v22  ;;  %v19962_v22 = vld [vmem:[#allocation52_spill] sm:$0xff] }
 0x9db   :  { %v6029_v19 = vpop.f32.mrf.mxu2  ;;  %v16658_v63 = vpop.f32.mrf.mxu0 }
 0x9dc   :  { %v6118_v20 = vpop.f32.mrf.mxu3  ;;  %v6030_v7 = vadd.f32 %v6029_v19, %v5941_v42  ;;  %v5942_v46 = vpop.f32.mrf.mxu1  ;;  %19955 = vst [vmem:[#allocation42_spill] sm:$0xff] %v16658_v63  ;;  %v11180_v42 = vld [vmem:[%s18628_s1 + $0x5dc] sm:$0xf]  ;;  %v19959_v63 = vld [vmem:[#allocation48_spill] sm:$0xff] }
 0x9dd   :  { %v5943_v24 = vadd.f32 %v5942_v46, %v16234_v0  ;;  %v9872_v0 = vor.u32 %v11180_v42, %v9869_v51  ;;  %v19961_v42 = vld [vmem:[#allocation51_spill] sm:$0xff] }
 0x9de   :  { %v16661_v12 = vadd.f32 %v6118_v20, %v6030_v7 }
 0x9df   :  { %6840 = vmatpush.bf16.msrb.mxu0 %v9872_v0 }
 0x9e0   :  { %19956 = vst [vmem:[#allocation45_spill] sm:$0xff] %v16661_v12 }
 0x9e3   :  { %v6031_v46 = vpop.f32.mrf.mxu2  ;;  %v16675_v19 = vpop.f32.mrf.mxu0 }
 0x9e4   :  { %v6120_v7 = vpop.f32.mrf.mxu3  ;;  %v6032_v53 = vadd.f32 %v6031_v46, %v5943_v24  ;;  %v5945_v16 = vpop.f32.mrf.mxu1  ;;  %19957 = vst [vmem:[#allocation282_spill] sm:$0xff] %v16675_v19 }
 0x9e5   :  { %v5946_v20 = vadd.f32 %v5945_v16, %v16242_v40 }
 0x9e6   :  { %v16678_v26 = vadd.f32 %v6120_v7, %v6032_v53  ;;  %6527 = vmatmul.bf16.gmra.mxu0 %v19960_v36  ;;  %v16694_v53 = vld [vmem:[%s18630_s2] sm:$0xff] }
 0x9e7   :  { %6260 = vmatmul.bf16.gmra.mxu1 %v19959_v63  ;;  %19965 = vst [vmem:[#allocation285_spill] sm:$0xff] %v16694_v53  ;;  %v16697_v16 = vperm.slane %v16694_v53, 6 }
 0x9e8   :  { %19958 = vst [vmem:[#allocation283_spill] sm:$0xff] %v16678_v26  ;;  %6349 = vmatmul.bf16.gmra.mxu2 %v19961_v42 }
 0x9e9   :  { %6438 = vmatmul.bf16.gmra.mxu3 %v19962_v22  ;;  %v6138_v4 = vadd.f32 %v16245_v52, %v16697_v16  ;;  %v11012_v52 = vld [vmem:[%s18628_s1 + $0x9c] sm:$0xf] }
 0x9eb   :  { %v6034_v51 = vpop.f32.mrf.mxu2  ;;  %v16686_v19 = vpop.f32.mrf.mxu0 }
 0x9ec   :  { %v6123_v24 = vpop.f32.mrf.mxu3  ;;  %v6035_v0 = vadd.f32 %v6034_v51, %v5946_v20  ;;  %v5947_v46 = vpop.f32.mrf.mxu1  ;;  %19963 = vst [vmem:[#allocation51_spill] sm:$0xff] %v16686_v19 }
 0x9ed   :  { %v5948_v40 = vadd.f32 %v5947_v46, %v16261_v30  ;;  %v19968_v46 = vld [vmem:[#allocation57_spill] sm:$0xff] }
 0x9ee   :  { %v16689_v7 = vadd.f32 %v6123_v24, %v6035_v0  ;;  %v19967_v24 = vld [vmem:[#allocation54_spill] sm:$0xff] }
 0x9f0   :  { %19964 = vst [vmem:[#allocation284_spill] sm:$0xff] %v16689_v7 }
 0x9f3   :  { %v6036_v12 = vpop.f32.mrf.mxu2  ;;  %v6493_v36 = vpop.f32.mrf.mxu0 }
 0x9f4   :  { %v6125_v20 = vpop.f32.mrf.mxu3  ;;  %v6037_v51 = vadd.f32 %v6036_v12, %v5948_v40  ;;  %v6226_v26 = vpop.f32.mrf.mxu1  ;;  %v11076_v12 = vld [vmem:[%s18628_s1 + $0x29c] sm:$0xf] }
 0x9f5   :  { %v6227_v22 = vadd.f32 %v6226_v26, %v6138_v4  ;;  %v9197_v26 = vld [vmem:[%s18628_s1 + $0xb8] sm:$0xf0] }
 0x9f6   :  { %v16701_v30 = vadd.f32 %v6125_v20, %v6037_v51  ;;  %6532 = vmatmul.bf16.gmra.mxu0 %v19875_v6  ;;  %v9200_v4 = vor.u32 %v11012_v52, %v9197_v26  ;;  %v9453_v40 = vld [vmem:[%s18628_s1 + $0x2b8] sm:$0xf0]  ;;  %v6140_v51 = vadd.f32 %v16266_v62, %v16697_v16  ;;  %v10475_v52 = vld [vmem:[%s18628_s1 + $0xa98] sm:$0xf] }
 0x9f7   :  { %6265 = vmatmul.bf16.gmra.mxu1 %v19967_v24  ;;  %v9456_v20 = vor.u32 %v11076_v12, %v9453_v40  ;;  %v11336_v26 = vld [vmem:[%s18628_s1 + $0xab4] sm:$0xf0]  ;;  %v11172_v62 = vld [vmem:[%s18628_s1 + $0x59c] sm:$0xf] }
 0x9f8   :  { %19966 = vst [vmem:[#allocation286_spill] sm:$0xff] %v16701_v30  ;;  %6354 = vmatmul.bf16.gmra.mxu2 %v19968_v46  ;;  %v10476_v12 = vor.u32 %v11336_v26, %v10475_v52  ;;  %v19970_v52 = vld [vmem:[#allocation60_spill] sm:$0xff]  ;;  %v19971_v26 = vld [vmem:[#allocation62_spill] sm:$0xff] }
 0x9f9   :  { %6443 = vmatmul.bf16.gmra.mxu3 %v19874_v13  ;;  %6667 = vmatpush.bf16.msrb.mxu2 %v9200_v4 }
 0x9fa   :  { %6756 = vmatpush.bf16.msrb.mxu3 %v9456_v20  ;;  %6578 = vmatpush.bf16.msrb.mxu1 %v10476_v12 }
 0x9fb   :  { %v6315_v0 = vpop.f32.mrf.mxu2  ;;  %v6495_v13 = vpop.f32.mrf.mxu0 }
 0x9fc   :  { %v6404_v7 = vpop.f32.mrf.mxu3  ;;  %v6316_v30 = vadd.f32 %v6315_v0, %v6227_v22  ;;  %v6228_v6 = vpop.f32.mrf.mxu1  ;;  %v9837_v22 = vld [vmem:[%s18628_s1 + $0x5b8] sm:$0xf0] }
 0x9fd   :  { %v6229_v24 = vadd.f32 %v6228_v6, %v6140_v51  ;;  %v9840_v0 = vor.u32 %v11172_v62, %v9837_v22  ;;  %v6145_v62 = vadd.f32 %v16294_v17, %v16697_v16  ;;  %v19973_v17 = vld [vmem:[#allocation64_spill] sm:$0xff] }
 0x9fe   :  { %v6405_v53 = vadd.f32 %v6404_v7, %v6316_v30  ;;  %v19969_v7 = vld [vmem:[#allocation261_spill] sm:$0xff] }
 0x9ff   :  { %6841 = vmatpush.bf16.msrb.mxu0 %v9840_v0  ;;  %v6143_v30 = vadd.f32 %v19969_v7, %v16697_v16 }
 0xa00   :  { %v16735_v6 = vadd.f32 %v6493_v36, %v6405_v53  ;;  %v19972_v36 = vld [vmem:[#allocation63_spill] sm:$0xff] }
 0xa03   :  { %v6317_v4 = vpop.f32.mrf.mxu2  ;;  %v6498_v46 = vpop.f32.mrf.mxu0 }
 0xa04   :  { %v6406_v40 = vpop.f32.mrf.mxu3  ;;  %v6318_v20 = vadd.f32 %v6317_v4, %v6229_v24  ;;  %v6231_v51 = vpop.f32.mrf.mxu1 }
 0xa05   :  { %v6232_v19 = vadd.f32 %v6231_v51, %v6143_v30 }
 0xa06   :  { %v6407_v63 = vadd.f32 %v6406_v40, %v6318_v20  ;;  %6537 = vmatmul.bf16.gmra.mxu0 %v19882_v58  ;;  %v6148_v20 = vadd.f32 %v16299_v8, %v16697_v16  ;;  %v9165_v8 = vld [vmem:[%s18628_s1 + $0x78] sm:$0xf0] }
 0xa07   :  { %6270 = vmatmul.bf16.gmra.mxu1 %v19970_v52 }
 0xa08   :  { %6359 = vmatmul.bf16.gmra.mxu2 %v19971_v26  ;;  %v16743_v53 = vadd.f32 %v6495_v13, %v6407_v63 }
 0xa09   :  { %6448 = vmatmul.bf16.gmra.mxu3 %v19972_v36 }
 0xa0b   :  { %v6320_v12 = vpop.f32.mrf.mxu2  ;;  %v6500_v7 = vpop.f32.mrf.mxu0 }
 0xa0c   :  { %v6409_v22 = vpop.f32.mrf.mxu3  ;;  %v6321_v24 = vadd.f32 %v6320_v12, %v6232_v19  ;;  %v6233_v0 = vpop.f32.mrf.mxu1  ;;  %v19974_v19 = vld [vmem:[#allocation66_spill] sm:$0xff] }
 0xa0d   :  { %v6234_v30 = vadd.f32 %v6233_v0, %v6145_v62  ;;  %v19975_v62 = vld [vmem:[#allocation67_spill] sm:$0xff]  ;;  %v19976_v0 = vld [vmem:[#allocation265_spill] sm:$0xff] }
 0xa0e   :  { %v6410_v4 = vadd.f32 %v6409_v22, %v6321_v24  ;;  %v9421_v22 = vld [vmem:[%s18628_s1 + $0x278] sm:$0xf0] }
 0xa10   :  { %v16747_v40 = vadd.f32 %v6498_v46, %v6410_v4  ;;  %v11004_v46 = vld [vmem:[%s18628_s1 + $0x5c] sm:$0xf] }
 0xa11   :  { %v9168_v12 = vor.u32 %v11004_v46, %v9165_v8  ;;  %v11164_v46 = vld [vmem:[%s18628_s1 + $0x55c] sm:$0xf] }
 0xa13   :  { %v6322_v51 = vpop.f32.mrf.mxu2  ;;  %v6503_v63 = vpop.f32.mrf.mxu0  ;;  %6668 = vmatpush.bf16.msrb.mxu2 %v9168_v12 }
 0xa14   :  { %v6411_v58 = vpop.f32.mrf.mxu3  ;;  %v6323_v36 = vadd.f32 %v6322_v51, %v6234_v30  ;;  %v6236_v13 = vpop.f32.mrf.mxu1  ;;  %v6150_v30 = vadd.f32 %v19976_v0, %v16697_v16 }
 0xa15   :  { %v6237_v52 = vadd.f32 %v6236_v13, %v6148_v20 }
 0xa16   :  { %v6412_v26 = vadd.f32 %v6411_v58, %v6323_v36  ;;  %6542 = vmatmul.bf16.gmra.mxu0 %v19887_v15  ;;  %v11068_v58 = vld [vmem:[%s18628_s1 + $0x25c] sm:$0xf] }
 0xa17   :  { %6275 = vmatmul.bf16.gmra.mxu1 %v19973_v17  ;;  %v9424_v24 = vor.u32 %v11068_v58, %v9421_v22  ;;  %v19977_v22 = vld [vmem:[#allocation266_spill] sm:$0xff] }
 0xa18   :  { %6364 = vmatmul.bf16.gmra.mxu2 %v19974_v19  ;;  %v16764_v36 = vadd.f32 %v6500_v7, %v6412_v26  ;;  %v10443_v26 = vld [vmem:[%s18628_s1 + $0xa58] sm:$0xf] }
 0xa19   :  { %6453 = vmatmul.bf16.gmra.mxu3 %v19975_v62  ;;  %v11328_v7 = vld [vmem:[%s18628_s1 + $0xa74] sm:$0xf0] }
 0xa1a   :  { %6757 = vmatpush.bf16.msrb.mxu3 %v9424_v24  ;;  %v10444_v8 = vor.u32 %v11328_v7, %v10443_v26  ;;  %v6153_v24 = vadd.f32 %v19977_v22, %v16697_v16  ;;  %v19978_v26 = vld [vmem:[#allocation70_spill] sm:$0xff]  ;;  %v19979_v7 = vld [vmem:[#allocation72_spill] sm:$0xff] }
 0xa1b   :  { %v6325_v4 = vpop.f32.mrf.mxu2  ;;  %v6505_v15 = vpop.f32.mrf.mxu0 }
 0xa1c   :  { %v6414_v20 = vpop.f32.mrf.mxu3  ;;  %v6326_v51 = vadd.f32 %v6325_v4, %v6237_v52  ;;  %v6238_v13 = vpop.f32.mrf.mxu1  ;;  %v9805_v52 = vld [vmem:[%s18628_s1 + $0x578] sm:$0xf0]  ;;  %6579 = vmatpush.bf16.msrb.mxu1 %v10444_v8 }
 0xa1d   :  { %v6239_v62 = vadd.f32 %v6238_v13, %v6150_v30  ;;  %v9808_v58 = vor.u32 %v11164_v46, %v9805_v52  ;;  %v6155_v46 = vadd.f32 %v16350_v37, %v16697_v16  ;;  %v19981_v37 = vld [vmem:[#allocation74_spill] sm:$0xff] }
 0xa1e   :  { %v6415_v17 = vadd.f32 %v6414_v20, %v6326_v51 }
 0xa1f   :  { %6842 = vmatpush.bf16.msrb.mxu0 %v9808_v58 }
 0xa20   :  { %v16783_v12 = vadd.f32 %v6503_v63, %v6415_v17  ;;  %v19980_v63 = vld [vmem:[#allocation73_spill] sm:$0xff] }
 0xa23   :  { %v6327_v0 = vpop.f32.mrf.mxu2  ;;  %v6508_v51 = vpop.f32.mrf.mxu0 }
 0xa24   :  { %v6416_v30 = vpop.f32.mrf.mxu3  ;;  %v6328_v4 = vadd.f32 %v6327_v0, %v6239_v62  ;;  %v6241_v20 = vpop.f32.mrf.mxu1 }
 0xa25   :  { %v6242_v13 = vadd.f32 %v6241_v20, %v6153_v24 }
 0xa26   :  { %v6417_v19 = vadd.f32 %v6416_v30, %v6328_v4  ;;  %6547 = vmatmul.bf16.gmra.mxu0 %v19896_v5  ;;  %v6158_v4 = vadd.f32 %v16355_v61, %v16697_v16  ;;  %v9133_v61 = vld [vmem:[%s18628_s1 + $0x38] sm:$0xf0] }
 0xa27   :  { %6280 = vmatmul.bf16.gmra.mxu1 %v19978_v26 }
 0xa28   :  { %6369 = vmatmul.bf16.gmra.mxu2 %v19979_v7  ;;  %v16791_v17 = vadd.f32 %v6505_v15, %v6417_v19 }
 0xa29   :  { %6458 = vmatmul.bf16.gmra.mxu3 %v19980_v63 }
 0xa2b   :  { %v6330_v8 = vpop.f32.mrf.mxu2  ;;  %v6510_v22 = vpop.f32.mrf.mxu0 }
 0xa2c   :  { %v6419_v52 = vpop.f32.mrf.mxu3  ;;  %v6331_v62 = vadd.f32 %v6330_v8, %v6242_v13  ;;  %v6243_v58 = vpop.f32.mrf.mxu1  ;;  %v19982_v13 = vld [vmem:[#allocation76_spill] sm:$0xff]  ;;  %v9389_v8 = vld [vmem:[%s18628_s1 + $0x238] sm:$0xf0] }
 0xa2d   :  { %v6244_v24 = vadd.f32 %v6243_v58, %v6155_v46 }
 0xa2e   :  { %v6420_v0 = vadd.f32 %v6419_v52, %v6331_v62  ;;  %v6160_v62 = vadd.f32 %v16378_v1, %v16697_v16  ;;  %v11156_v1 = vld [vmem:[%s18628_s1 + $0x51c] sm:$0xf] }
 0xa30   :  { %v16795_v30 = vadd.f32 %v6508_v51, %v6420_v0  ;;  %v10996_v51 = vld [vmem:[%s18628_s1 + $0x1c] sm:$0xf] }
 0xa31   :  { %v9136_v46 = vor.u32 %v10996_v51, %v9133_v61 }
 0xa33   :  { %v6332_v20 = vpop.f32.mrf.mxu2  ;;  %v6513_v19 = vpop.f32.mrf.mxu0  ;;  %6669 = vmatpush.bf16.msrb.mxu2 %v9136_v46  ;;  %v6163_v46 = vadd.f32 %v16395_v44, %v16697_v16 }
 0xa34   :  { %v6421_v5 = vpop.f32.mrf.mxu3  ;;  %v6333_v63 = vadd.f32 %v6332_v20, %v6244_v24  ;;  %v6246_v15 = vpop.f32.mrf.mxu1 }
 0xa35   :  { %v6247_v26 = vadd.f32 %v6246_v15, %v6158_v4 }
 0xa36   :  { %v6422_v7 = vadd.f32 %v6421_v5, %v6333_v63  ;;  %6552 = vmatmul.bf16.gmra.mxu0 %v19901_v49  ;;  %v11060_v5 = vld [vmem:[%s18628_s1 + $0x21c] sm:$0xf] }
 0xa37   :  { %6285 = vmatmul.bf16.gmra.mxu1 %v19981_v37  ;;  %v9392_v52 = vor.u32 %v11060_v5, %v9389_v8 }
 0xa38   :  { %6374 = vmatmul.bf16.gmra.mxu2 %v19982_v13  ;;  %v16812_v63 = vadd.f32 %v6510_v22, %v6422_v7  ;;  %v10411_v7 = vld [vmem:[%s18628_s1 + $0xa18] sm:$0xf] }
 0xa39   :  { %6463 = vmatmul.bf16.gmra.mxu3 %v19900_v25  ;;  %v11320_v22 = vld [vmem:[%s18628_s1 + $0xa34] sm:$0xf0] }
 0xa3a   :  { %6758 = vmatpush.bf16.msrb.mxu3 %v9392_v52  ;;  %v10412_v51 = vor.u32 %v11320_v22, %v10411_v7  ;;  %v11148_v7 = vld [vmem:[%s18628_s1 + $0x4dc] sm:$0xf] }
 0xa3b   :  { %v6335_v58 = vpop.f32.mrf.mxu2  ;;  %v6515_v20 = vpop.f32.mrf.mxu0  ;;  %v19984_v22 = vld [vmem:[#allocation81_spill] sm:$0xff] }
 0xa3c   :  { %v6424_v24 = vpop.f32.mrf.mxu3  ;;  %v6336_v0 = vadd.f32 %v6335_v58, %v6247_v26  ;;  %v6248_v4 = vpop.f32.mrf.mxu1  ;;  %v9773_v26 = vld [vmem:[%s18628_s1 + $0x538] sm:$0xf0]  ;;  %6580 = vmatpush.bf16.msrb.mxu1 %v10412_v51 }
 0xa3d   :  { %v6249_v15 = vadd.f32 %v6248_v4, %v6160_v62  ;;  %v9776_v61 = vor.u32 %v11156_v1, %v9773_v26  ;;  %v11140_v51 = vld [vmem:[%s18628_s1 + $0x49c] sm:$0xf] }
 0xa3e   :  { %v6425_v49 = vadd.f32 %v6424_v24, %v6336_v0  ;;  %v9709_v26 = vld [vmem:[%s18628_s1 + $0x4b8] sm:$0xf0] }
 0xa3f   :  { %6843 = vmatpush.bf16.msrb.mxu0 %v9776_v61  ;;  %v19986_v61 = vld [vmem:[#allocation272_spill] sm:$0xff] }
 0xa40   :  { %v16831_v5 = vadd.f32 %v6513_v19, %v6425_v49  ;;  %v9741_v49 = vld [vmem:[%s18628_s1 + $0x4f8] sm:$0xf0]  ;;  %v19983_v19 = vld [vmem:[#allocation79_spill] sm:$0xff] }
 0xa41   :  { %v9744_v44 = vor.u32 %v11148_v7, %v9741_v49 }
 0xa43   :  { %v6337_v8 = vpop.f32.mrf.mxu2  ;;  %v6518_v24 = vpop.f32.mrf.mxu0  ;;  %6844 = vmatpush.bf16.msrb.mxu0 %v9744_v44  ;;  %v11132_v44 = vld [vmem:[%s18628_s1 + $0x45c] sm:$0xf] }
 0xa44   :  { %v6426_v52 = vpop.f32.mrf.mxu3  ;;  %v6338_v62 = vadd.f32 %v6337_v8, %v6249_v15  ;;  %v6251_v58 = vpop.f32.mrf.mxu1  ;;  %v19985_v15 = vld [vmem:[#allocation82_spill] sm:$0xff] }
 0xa45   :  { %v6252_v0 = vadd.f32 %v6251_v58, %v6163_v46  ;;  %v6165_v46 = vadd.f32 %v19986_v61, %v16697_v16 }
 0xa46   :  { %v6427_v4 = vadd.f32 %v6426_v52, %v6338_v62  ;;  %6557 = vmatmul.bf16.gmra.mxu0 %v19905_v23  ;;  %v9712_v62 = vor.u32 %v11140_v51, %v9709_v26  ;;  %v9677_v23 = vld [vmem:[%s18628_s1 + $0x478] sm:$0xf0]  ;;  %v6168_v26 = vadd.f32 %v16435_v27, %v16697_v16 }
 0xa47   :  { %6290 = vmatmul.bf16.gmra.mxu1 %v19983_v19  ;;  %v9645_v51 = vld [vmem:[%s18628_s1 + $0x438] sm:$0xf0] }
 0xa48   :  { %6379 = vmatmul.bf16.gmra.mxu2 %v19984_v22  ;;  %v16845_v1 = vadd.f32 %v6515_v20, %v6427_v4  ;;  %6845 = vmatpush.bf16.msrb.mxu0 %v9712_v62  ;;  %v11308_v27 = vld [vmem:[%s18628_s1 + $0x9dc] sm:$0xf] }
 0xa49   :  { %6468 = vmatmul.bf16.gmra.mxu3 %v19985_v15  ;;  %v9680_v15 = vor.u32 %v11132_v44, %v9677_v23 }
 0xa4b   :  { %v6340_v8 = vpop.f32.mrf.mxu2  ;;  %v6520_v49 = vpop.f32.mrf.mxu0 }
 0xa4c   :  { %v6429_v52 = vpop.f32.mrf.mxu3  ;;  %v6341_v58 = vadd.f32 %v6340_v8, %v6252_v0  ;;  %v6253_v7 = vpop.f32.mrf.mxu1  ;;  %6846 = vmatpush.bf16.msrb.mxu0 %v9680_v15  ;;  %v11124_v0 = vld [vmem:[%s18628_s1 + $0x41c] sm:$0xf] }
 0xa4d   :  { %v6254_v20 = vadd.f32 %v6253_v7, %v6165_v46  ;;  %v9648_v8 = vor.u32 %v11124_v0, %v9645_v51  ;;  %v19988_v7 = vld [vmem:[#allocation87_spill] sm:$0xff]  ;;  %v10637_v51 = vld [vmem:[%s18628_s1 + $0xbf8] sm:$0xf0] }
 0xa4e   :  { %v6430_v4 = vadd.f32 %v6429_v52, %v6341_v58  ;;  %v19987_v58 = vld [vmem:[#allocation85_spill] sm:$0xff] }
 0xa50   :  { %v16861_v25 = vadd.f32 %v6518_v24, %v6430_v4  ;;  %6847 = vmatpush.bf16.msrb.mxu0 %v9648_v8  ;;  %v11372_v4 = vld [vmem:[%s18628_s1 + $0xbdc] sm:$0xf] }
 0xa53   :  { %v6342_v61 = vpop.f32.mrf.mxu2  ;;  %v6523_v23 = vpop.f32.mrf.mxu0 }
 0xa54   :  { %v6431_v46 = vpop.f32.mrf.mxu3  ;;  %v6343_v52 = vadd.f32 %v6342_v61, %v6254_v20  ;;  %v6256_v62 = vpop.f32.mrf.mxu1  ;;  %v10381_v20 = vld [vmem:[%s18628_s1 + $0x9f8] sm:$0xf0]  ;;  %v19989_v61 = vld [vmem:[#allocation274_spill] sm:$0xff] }
 0xa55   :  { %v6257_v24 = vadd.f32 %v6256_v62, %v6168_v26  ;;  %v10384_v0 = vor.u32 %v11308_v27, %v10381_v20  ;;  %v10640_v26 = vor.u32 %v11372_v4, %v10637_v51  ;;  %v19990_v4 = vld [vmem:[#allocation276_spill] sm:$0xff] }
 0xa56   :  { %v6432_v15 = vadd.f32 %v6431_v46, %v6343_v52  ;;  %6562 = vmatmul.bf16.gmra.mxu0 %v19913_v9  ;;  %v6170_v46 = vadd.f32 %v19989_v61, %v16697_v16 }
 0xa57   :  { %6295 = vmatmul.bf16.gmra.mxu1 %v19987_v58  ;;  %7018 = vmatpush.bf16.msra.mxu2 %v10384_v0 }
 0xa58   :  { %6384 = vmatmul.bf16.gmra.mxu2 %v19988_v7  ;;  %v16884_v44 = vadd.f32 %v6520_v49, %v6432_v15  ;;  %7107 = vmatpush.bf16.msra.mxu3 %v10640_v26  ;;  %v11244_v49 = vld [vmem:[%s18628_s1 + $0x7dc] sm:$0xf] }
 0xa59   :  { %6473 = vmatmul.bf16.gmra.mxu3 %v19911_v57  ;;  %v10125_v15 = vld [vmem:[%s18628_s1 + $0x7f8] sm:$0xf0] }
 0xa5a   :  { %v10128_v27 = vor.u32 %v11244_v49, %v10125_v15  ;;  %v19993_v49 = vld [vmem:[#allocation92_spill] sm:$0xff] }
 0xa5b   :  { %v6345_v8 = vpop.f32.mrf.mxu2  ;;  %v6525_v57 = vpop.f32.mrf.mxu0 }
 0xa5c   :  { %v6434_v52 = vpop.f32.mrf.mxu3  ;;  %v6346_v62 = vadd.f32 %v6345_v8, %v6257_v24  ;;  %v6258_v9 = vpop.f32.mrf.mxu1  ;;  %6929 = vmatpush.bf16.msra.mxu1 %v10128_v27  ;;  %v6173_v24 = vadd.f32 %v19990_v4, %v16697_v16 }
 0xa5d   :  { %v6259_v58 = vadd.f32 %v6258_v9, %v6170_v46 }
 0xa5e   :  { %v6435_v7 = vadd.f32 %v6434_v52, %v6346_v62  ;;  %v19991_v52 = vld [vmem:[#allocation89_spill] sm:$0xff]  ;;  %v19992_v62 = vld [vmem:[#allocation91_spill] sm:$0xff] }
 0xa60   :  { %v16897_v20 = vadd.f32 %v6523_v23, %v6435_v7  ;;  %v6175_v7 = vadd.f32 %v16480_v34, %v16697_v16  ;;  %v19995_v34 = vld [vmem:[#allocation93_spill] sm:$0xff] }
 0xa63   :  { %v6347_v0 = vpop.f32.mrf.mxu2  ;;  %v6528_v61 = vpop.f32.mrf.mxu0 }
 0xa64   :  { %v6436_v51 = vpop.f32.mrf.mxu3  ;;  %v6348_v26 = vadd.f32 %v6347_v0, %v6259_v58  ;;  %v6261_v9 = vpop.f32.mrf.mxu1 }
 0xa65   :  { %v6262_v46 = vadd.f32 %v6261_v9, %v6173_v24  ;;  %v6178_v9 = vadd.f32 %v16485_v29, %v16697_v16  ;;  %v10349_v29 = vld [vmem:[%s18628_s1 + $0x9b8] sm:$0xf0] }
 0xa66   :  { %v6437_v8 = vadd.f32 %v6436_v51, %v6348_v26  ;;  %6567 = vmatmul.bf16.gmra.mxu0 %v19920_v33 }
 0xa67   :  { %6300 = vmatmul.bf16.gmra.mxu1 %v19991_v52 }
 0xa68   :  { %6389 = vmatmul.bf16.gmra.mxu2 %v19992_v62  ;;  %v16905_v23 = vadd.f32 %v6525_v57, %v6437_v8 }
 0xa69   :  { %6478 = vmatmul.bf16.gmra.mxu3 %v19993_v49 }
 0xa6a   :  { %19994 = vst [vmem:[#allocation261_spill] sm:$0xff] %v16905_v23 }
 0xa6b   :  { %v6350_v15 = vpop.f32.mrf.mxu2  ;;  %v6530_v0 = vpop.f32.mrf.mxu0 }
 0xa6c   :  { %v6439_v27 = vpop.f32.mrf.mxu3  ;;  %v6351_v58 = vadd.f32 %v6350_v15, %v6262_v46  ;;  %v6263_v4 = vpop.f32.mrf.mxu1  ;;  %v19996_v46 = vld [vmem:[#allocation2_spill] sm:$0xff] }
 0xa6d   :  { %v6264_v24 = vadd.f32 %v6263_v4, %v6175_v7  ;;  %v6180_v7 = vadd.f32 %v16508_v43, %v16697_v16  ;;  %v6183_v43 = vadd.f32 %v16519_v41, %v16697_v16  ;;  %v6185_v41 = vadd.f32 %v16530_v11, %v16697_v16  ;;  %v19999_v11 = vld [vmem:[#allocation95_spill] sm:$0xff] }
 0xa6e   :  { %v6440_v51 = vadd.f32 %v6439_v27, %v6351_v58 }
 0xa70   :  { %v16909_v26 = vadd.f32 %v6528_v61, %v6440_v51  ;;  %v11300_v61 = vld [vmem:[%s18628_s1 + $0x99c] sm:$0xf] }
 0xa73   :  { %v6352_v33 = vpop.f32.mrf.mxu2  ;;  %v6533_v8 = vpop.f32.mrf.mxu0 }
 0xa74   :  { %v6441_v52 = vpop.f32.mrf.mxu3  ;;  %v6353_v49 = vadd.f32 %v6352_v33, %v6264_v24  ;;  %v6266_v57 = vpop.f32.mrf.mxu1  ;;  %v11364_v33 = vld [vmem:[%s18628_s1 + $0xb9c] sm:$0xf] }
 0xa75   :  { %v6267_v62 = vadd.f32 %v6266_v57, %v6178_v9 }
 0xa76   :  { %v6442_v23 = vadd.f32 %v6441_v52, %v6353_v49  ;;  %6848 = vmatmul.bf16.vlgmr.msrb.gmra.mxu0 %v19925_v56  ;;  %v10352_v49 = vor.u32 %v11300_v61, %v10349_v29  ;;  %v10605_v56 = vld [vmem:[%s18628_s1 + $0xbb8] sm:$0xf0] }
 0xa77   :  { %6581 = vmatmul.bf16.vlgmr.msrb.gmra.mxu1 %v19995_v34 }
 0xa78   :  { %6670 = vmatmul.bf16.vlgmr.msrb.gmra.mxu2 %v19996_v46  ;;  %v16926_v52 = vadd.f32 %v6530_v0, %v6442_v23  ;;  %v11236_v23 = vld [vmem:[%s18628_s1 + $0x79c] sm:$0xf] }
 0xa79   :  { %6759 = vmatmul.bf16.vlgmr.msrb.gmra.mxu3 %v19924_v60  ;;  %v10608_v60 = vor.u32 %v11364_v33, %v10605_v56  ;;  %7019 = vmatpush.bf16.msra.mxu2 %v10352_v49  ;;  %v10093_v0 = vld [vmem:[%s18628_s1 + $0x7b8] sm:$0xf0] }
 0xa7a   :  { %v10096_v57 = vor.u32 %v11236_v23, %v10093_v0 }
 0xa7b   :  { %v6355_v15 = vpop.f32.mrf.mxu2  ;;  %v6535_v24 = vpop.f32.mrf.mxu0  ;;  %7108 = vmatpush.bf16.msra.mxu3 %v10608_v60 }
 0xa7c   :  { %v6444_v27 = vpop.f32.mrf.mxu3  ;;  %v6356_v58 = vadd.f32 %v6355_v15, %v6267_v62  ;;  %v6268_v4 = vpop.f32.mrf.mxu1  ;;  %6930 = vmatpush.bf16.msra.mxu1 %v10096_v57  ;;  %v19998_v15 = vld [vmem:[#allocation6_spill] sm:$0xff] }
 0xa7d   :  { %v6269_v51 = vadd.f32 %v6268_v4, %v6180_v7  ;;  %v19997_v7 = vld [vmem:[#allocation94_spill] sm:$0xff] }
 0xa7e   :  { %v6445_v9 = vadd.f32 %v6444_v27, %v6356_v58 }
 0xa80   :  { %v16939_v46 = vadd.f32 %v6533_v8, %v6445_v9 }
 0xa83   :  { %v6357_v62 = vpop.f32.mrf.mxu2  ;;  %v6538_v49 = vpop.f32.mrf.mxu0 }
 0xa84   :  { %v6446_v61 = vpop.f32.mrf.mxu3  ;;  %v6358_v29 = vadd.f32 %v6357_v62, %v6269_v51  ;;  %v6271_v33 = vpop.f32.mrf.mxu1 }
 0xa85   :  { %v6272_v56 = vadd.f32 %v6271_v33, %v6183_v43 }
 0xa86   :  { %v6447_v60 = vadd.f32 %v6446_v61, %v6358_v29  ;;  %6853 = vmatmul.bf16.gmra.mxu0 %v19929_v21  ;;  %v6188_v21 = vadd.f32 %v16535_v39, %v16697_v16  ;;  %v10317_v39 = vld [vmem:[%s18628_s1 + $0x978] sm:$0xf0] }
 0xa87   :  { %6586 = vmatmul.bf16.gmra.mxu1 %v19997_v7 }
 0xa88   :  { %6675 = vmatmul.bf16.gmra.mxu2 %v19998_v15  ;;  %v16947_v8 = vadd.f32 %v6535_v24, %v6447_v60  ;;  %v11356_v60 = vld [vmem:[%s18628_s1 + $0xb5c] sm:$0xf] }
 0xa89   :  { %6764 = vmatmul.bf16.gmra.mxu3 %v19928_v14 }
 0xa8b   :  { %v6360_v27 = vpop.f32.mrf.mxu2  ;;  %v6540_v9 = vpop.f32.mrf.mxu0 }
 0xa8c   :  { %v6449_v58 = vpop.f32.mrf.mxu3  ;;  %v6361_v4 = vadd.f32 %v6360_v27, %v6272_v56  ;;  %v6273_v51 = vpop.f32.mrf.mxu1  ;;  %v20000_v56 = vld [vmem:[#allocation10_spill] sm:$0xff]  ;;  %v6190_v27 = vadd.f32 %v16558_v10, %v16697_v16  ;;  %v6193_v10 = vadd.f32 %v16569_v54, %v16697_v16  ;;  %v6195_v54 = vadd.f32 %v16580_v45, %v16697_v16  ;;  %v20003_v45 = vld [vmem:[#allocation97_spill] sm:$0xff] }
 0xa8d   :  { %v6274_v23 = vadd.f32 %v6273_v51, %v6185_v41 }
 0xa8e   :  { %v6450_v0 = vadd.f32 %v6449_v58, %v6361_v4 }
 0xa90   :  { %v16951_v57 = vadd.f32 %v6538_v49, %v6450_v0  ;;  %v11292_v49 = vld [vmem:[%s18628_s1 + $0x95c] sm:$0xf] }
 0xa91   :  { %v10320_v41 = vor.u32 %v11292_v49, %v10317_v39 }
 0xa93   :  { %v6362_v43 = vpop.f32.mrf.mxu2  ;;  %v6543_v61 = vpop.f32.mrf.mxu0  ;;  %7020 = vmatpush.bf16.msra.mxu2 %v10320_v41 }
 0xa94   :  { %v6451_v62 = vpop.f32.mrf.mxu3  ;;  %v6363_v14 = vadd.f32 %v6362_v43, %v6274_v23  ;;  %v6276_v24 = vpop.f32.mrf.mxu1 }
 0xa95   :  { %v6277_v29 = vadd.f32 %v6276_v24, %v6188_v21 }
 0xa96   :  { %v6452_v33 = vadd.f32 %v6451_v62, %v6363_v14  ;;  %6858 = vmatmul.bf16.gmra.mxu0 %v19933_v2  ;;  %v10573_v2 = vld [vmem:[%s18628_s1 + $0xb78] sm:$0xf0] }
 0xa97   :  { %6591 = vmatmul.bf16.gmra.mxu1 %v19999_v11  ;;  %v10061_v62 = vld [vmem:[%s18628_s1 + $0x778] sm:$0xf0] }
 0xa98   :  { %6680 = vmatmul.bf16.gmra.mxu2 %v20000_v56  ;;  %v16968_v15 = vadd.f32 %v6540_v9, %v6452_v33  ;;  %v11228_v9 = vld [vmem:[%s18628_s1 + $0x75c] sm:$0xf] }
 0xa99   :  { %6769 = vmatmul.bf16.gmra.mxu3 %v19932_v55  ;;  %v10576_v55 = vor.u32 %v11356_v60, %v10573_v2  ;;  %v10064_v14 = vor.u32 %v11228_v9, %v10061_v62  ;;  %v20001_v2 = vld [vmem:[#allocation96_spill] sm:$0xff] }
 0xa9b   :  { %v6365_v58 = vpop.f32.mrf.mxu2  ;;  %v6545_v0 = vpop.f32.mrf.mxu0  ;;  %7109 = vmatpush.bf16.msra.mxu3 %v10576_v55  ;;  %6931 = vmatpush.bf16.msra.mxu1 %v10064_v14  ;;  %v20002_v55 = vld [vmem:[#allocation14_spill] sm:$0xff] }
 0xa9c   :  { %v6454_v4 = vpop.f32.mrf.mxu3  ;;  %v6366_v51 = vadd.f32 %v6365_v58, %v6277_v29  ;;  %v6278_v23 = vpop.f32.mrf.mxu1 }
 0xa9d   :  { %v6279_v21 = vadd.f32 %v6278_v23, %v6190_v27 }
 0xa9e   :  { %v6455_v43 = vadd.f32 %v6454_v4, %v6366_v51 }
 0xaa0   :  { %v16981_v24 = vadd.f32 %v6543_v61, %v6455_v43 }
 0xaa3   :  { %v6367_v29 = vpop.f32.mrf.mxu2  ;;  %v6548_v39 = vpop.f32.mrf.mxu0 }
 0xaa4   :  { %v6456_v33 = vpop.f32.mrf.mxu3  ;;  %v6368_v56 = vadd.f32 %v6367_v29, %v6279_v21  ;;  %v6281_v49 = vpop.f32.mrf.mxu1 }
 0xaa5   :  { %v6282_v60 = vadd.f32 %v6281_v49, %v6193_v10  ;;  %v11284_v49 = vld [vmem:[%s18628_s1 + $0x91c] sm:$0xf] }
 0xaa6   :  { %v6457_v41 = vadd.f32 %v6456_v33, %v6368_v56  ;;  %6863 = vmatmul.bf16.gmra.mxu0 %v19937_v59  ;;  %v6198_v59 = vadd.f32 %v16585_v50, %v16697_v16  ;;  %v20004_v56 = vld [vmem:[#allocation3_spill] sm:$0xff]  ;;  %v10285_v50 = vld [vmem:[%s18628_s1 + $0x938] sm:$0xf0] }
 0xaa7   :  { %6596 = vmatmul.bf16.gmra.mxu1 %v20001_v2 }
 0xaa8   :  { %6685 = vmatmul.bf16.gmra.mxu2 %v20002_v55  ;;  %v16989_v61 = vadd.f32 %v6545_v0, %v6457_v41  ;;  %v10288_v41 = vor.u32 %v11284_v49, %v10285_v50  ;;  %v6200_v55 = vadd.f32 %v16608_v28, %v16697_v16  ;;  %v20005_v28 = vld [vmem:[#allocation36_spill] sm:$0xff] }
 0xaa9   :  { %6774 = vmatmul.bf16.gmra.mxu3 %v19936_v35 }
 0xaaa   :  { %7021 = vmatpush.bf16.msra.mxu2 %v10288_v41  ;;  %v20006_v41 = vld [vmem:[#allocation98_spill] sm:$0xff] }
 0xaab   :  { %v6370_v27 = vpop.f32.mrf.mxu2  ;;  %v6550_v23 = vpop.f32.mrf.mxu0 }
 0xaac   :  { %v6459_v58 = vpop.f32.mrf.mxu3  ;;  %v6371_v4 = vadd.f32 %v6370_v27, %v6282_v60  ;;  %v6283_v51 = vpop.f32.mrf.mxu1 }
 0xaad   :  { %v6284_v21 = vadd.f32 %v6283_v51, %v6195_v54 }
 0xaae   :  { %v6460_v43 = vadd.f32 %v6459_v58, %v6371_v4 }
 0xab0   :  { %v16993_v9 = vadd.f32 %v6548_v39, %v6460_v43  ;;  %v11348_v39 = vld [vmem:[%s18628_s1 + $0xb1c] sm:$0xf] }
 0xab3   :  { %v6372_v62 = vpop.f32.mrf.mxu2  ;;  %v6553_v10 = vpop.f32.mrf.mxu0 }
 0xab4   :  { %v6461_v14 = vpop.f32.mrf.mxu3  ;;  %v6373_v35 = vadd.f32 %v6372_v62, %v6284_v21  ;;  %v6286_v0 = vpop.f32.mrf.mxu1 }
 0xab5   :  { %v6287_v29 = vadd.f32 %v6286_v0, %v6198_v59  ;;  %v10029_v59 = vld [vmem:[%s18628_s1 + $0x738] sm:$0xf0] }
 0xab6   :  { %v6462_v33 = vadd.f32 %v6461_v14, %v6373_v35  ;;  %6868 = vmatmul.bf16.gmra.mxu0 %v19941_v31  ;;  %v10541_v31 = vld [vmem:[%s18628_s1 + $0xb38] sm:$0xf0]  ;;  %v6203_v35 = vadd.f32 %v20005_v28, %v16697_v16 }
 0xab7   :  { %6601 = vmatmul.bf16.gmra.mxu1 %v20003_v45 }
 0xab8   :  { %6690 = vmatmul.bf16.gmra.mxu2 %v20004_v56  ;;  %v17010_v60 = vadd.f32 %v6550_v23, %v6462_v33  ;;  %v11220_v23 = vld [vmem:[%s18628_s1 + $0x71c] sm:$0xf] }
 0xab9   :  { %6779 = vmatmul.bf16.gmra.mxu3 %v19940_v3  ;;  %v10544_v3 = vor.u32 %v11348_v39, %v10541_v31  ;;  %v10032_v62 = vor.u32 %v11220_v23, %v10029_v59  ;;  %v20007_v31 = vld [vmem:[#allocation7_spill] sm:$0xff] }
 0xabb   :  { %v6375_v54 = vpop.f32.mrf.mxu2  ;;  %v6555_v51 = vpop.f32.mrf.mxu0  ;;  %7110 = vmatpush.bf16.msra.mxu3 %v10544_v3  ;;  %6932 = vmatpush.bf16.msra.mxu1 %v10032_v62  ;;  %v20008_v3 = vld [vmem:[#allocation38_spill] sm:$0xff] }
 0xabc   :  { %v6464_v27 = vpop.f32.mrf.mxu3  ;;  %v6376_v58 = vadd.f32 %v6375_v54, %v6287_v29  ;;  %v6288_v4 = vpop.f32.mrf.mxu1 }
 0xabd   :  { %v6289_v21 = vadd.f32 %v6288_v4, %v6200_v55  ;;  %v6205_v55 = vadd.f32 %v16630_v18, %v16697_v16  ;;  %v20009_v18 = vld [vmem:[#allocation44_spill] sm:$0xff] }
 0xabe   :  { %v6465_v43 = vadd.f32 %v6464_v27, %v6376_v58 }
 0xac0   :  { %v17023_v14 = vadd.f32 %v6553_v10, %v6465_v43 }
 0xac3   :  { %v6377_v0 = vpop.f32.mrf.mxu2  ;;  %v6558_v49 = vpop.f32.mrf.mxu0 }
 0xac4   :  { %v6466_v29 = vpop.f32.mrf.mxu3  ;;  %v6378_v33 = vadd.f32 %v6377_v0, %v6289_v21  ;;  %v6291_v56 = vpop.f32.mrf.mxu1 }
 0xac5   :  { %v6292_v50 = vadd.f32 %v6291_v56, %v6203_v35  ;;  %v20010_v56 = vld [vmem:[#allocation11_spill] sm:$0xff] }
 0xac6   :  { %v6467_v39 = vadd.f32 %v6466_v29, %v6378_v33  ;;  %6873 = vmatmul.bf16.gmra.mxu0 %v19947_v47  ;;  %v6208_v47 = vadd.f32 %v16635_v48, %v16697_v16  ;;  %v10253_v48 = vld [vmem:[%s18628_s1 + $0x8f8] sm:$0xf0] }
 0xac7   :  { %6606 = vmatmul.bf16.gmra.mxu1 %v20006_v41 }
 0xac8   :  { %6695 = vmatmul.bf16.gmra.mxu2 %v20007_v31  ;;  %v17031_v10 = vadd.f32 %v6555_v51, %v6467_v39 }
 0xac9   :  { %6784 = vmatmul.bf16.gmra.mxu3 %v20008_v3  ;;  %v20011_v3 = vld [vmem:[#allocation42_spill] sm:$0xff] }
 0xacb   :  { %v6380_v54 = vpop.f32.mrf.mxu2  ;;  %v6560_v21 = vpop.f32.mrf.mxu0 }
 0xacc   :  { %v6469_v27 = vpop.f32.mrf.mxu3  ;;  %v6381_v58 = vadd.f32 %v6380_v54, %v6292_v50  ;;  %v6293_v4 = vpop.f32.mrf.mxu1  ;;  %v11340_v50 = vld [vmem:[%s18628_s1 + $0xadc] sm:$0xf] }
 0xacd   :  { %v6294_v43 = vadd.f32 %v6293_v4, %v6205_v55  ;;  %v6210_v55 = vadd.f32 %v20011_v3, %v16697_v16  ;;  %v20013_v3 = vld [vmem:[#allocation47_spill] sm:$0xff] }
 0xace   :  { %v6470_v23 = vadd.f32 %v6469_v27, %v6381_v58 }
 0xad0   :  { %v17035_v59 = vadd.f32 %v6558_v49, %v6470_v23  ;;  %v11276_v49 = vld [vmem:[%s18628_s1 + $0x8dc] sm:$0xf] }
 0xad1   :  { %v10256_v31 = vor.u32 %v11276_v49, %v10253_v48 }
 0xad3   :  { %v6382_v62 = vpop.f32.mrf.mxu2  ;;  %v6563_v0 = vpop.f32.mrf.mxu0  ;;  %7022 = vmatpush.bf16.msra.mxu2 %v10256_v31 }
 0xad4   :  { %v6471_v28 = vpop.f32.mrf.mxu3  ;;  %v6383_v35 = vadd.f32 %v6382_v62, %v6294_v43  ;;  %v6296_v51 = vpop.f32.mrf.mxu1  ;;  %v9997_v62 = vld [vmem:[%s18628_s1 + $0x6f8] sm:$0xf0] }
 0xad5   :  { %v6297_v29 = vadd.f32 %v6296_v51, %v6208_v47 }
 0xad6   :  { %v6472_v33 = vadd.f32 %v6471_v28, %v6383_v35  ;;  %6878 = vmatmul.bf16.gmra.mxu0 %v19953_v32  ;;  %v10509_v32 = vld [vmem:[%s18628_s1 + $0xaf8] sm:$0xf0] }
 0xad7   :  { %6611 = vmatmul.bf16.gmra.mxu1 %v20009_v18  ;;  %v11384_v35 = vld [vmem:[%s18631_s3 + $0x38] sm:$0xff] }
 0xad8   :  { %6700 = vmatmul.bf16.gmra.mxu2 %v20010_v56  ;;  %v17052_v39 = vadd.f32 %v6560_v21, %v6472_v33  ;;  %v11212_v21 = vld [vmem:[%s18628_s1 + $0x6dc] sm:$0xf]  ;;  %7840 = vmatpush.bf16.msra.mxu0 %v11384_v35 }
 0xad9   :  { %6789 = vmatmul.bf16.gmra.mxu3 %v19951_v38  ;;  %v10512_v38 = vor.u32 %v11340_v50, %v10509_v32  ;;  %v10000_v28 = vor.u32 %v11212_v21, %v9997_v62 }
 0xadb   :  { %v6385_v54 = vpop.f32.mrf.mxu2  ;;  %v6565_v43 = vpop.f32.mrf.mxu0  ;;  %7111 = vmatpush.bf16.msra.mxu3 %v10512_v38  ;;  %6933 = vmatpush.bf16.msra.mxu1 %v10000_v28 }
 0xadc   :  { %v6474_v27 = vpop.f32.mrf.mxu3  ;;  %v6386_v58 = vadd.f32 %v6385_v54, %v6297_v29  ;;  %v6298_v4 = vpop.f32.mrf.mxu1  ;;  %v20012_v29 = vld [vmem:[#allocation282_spill] sm:$0xff] }
 0xadd   :  { %v6299_v23 = vadd.f32 %v6298_v4, %v6210_v55  ;;  %v6213_v33 = vadd.f32 %v20012_v29, %v16697_v16  ;;  %v20014_v55 = vld [vmem:[#allocation15_spill] sm:$0xff] }
 0xade   :  { %v6475_v47 = vadd.f32 %v6474_v27, %v6386_v58  ;;  %v20016_v27 = vld [vmem:[#allocation51_spill] sm:$0xff] }
 0xadf   :  { %v6215_v58 = vadd.f32 %v20016_v27, %v16697_v16  ;;  %v20019_v16 = vld [vmem:[#allocation57_spill] sm:$0xff] }
 0xae0   :  { %v17068_v51 = vadd.f32 %v6563_v0, %v6475_v47  ;;  %v20015_v0 = vld [vmem:[#allocation48_spill] sm:$0xff]  ;;  %v11268_v27 = vld [vmem:[%s18628_s1 + $0x89c] sm:$0xf] }
 0xae3   :  { %v6387_v56 = vpop.f32.mrf.mxu2  ;;  %v6568_v31 = vpop.f32.mrf.mxu0 }
 0xae4   :  { %v6476_v49 = vpop.f32.mrf.mxu3  ;;  %v6388_v48 = vadd.f32 %v6387_v56, %v6299_v23  ;;  %v6301_v50 = vpop.f32.mrf.mxu1 }
 0xae5   :  { %v6302_v32 = vadd.f32 %v6301_v50, %v6213_v33 }
 0xae6   :  { %v6477_v38 = vadd.f32 %v6476_v49, %v6388_v48  ;;  %6883 = vmatmul.bf16.gmra.mxu0 %v19961_v42 }
 0xae7   :  { %6616 = vmatmul.bf16.gmra.mxu1 %v20013_v3 }
 0xae8   :  { %6705 = vmatmul.bf16.gmra.mxu2 %v20014_v55  ;;  %v17076_v54 = vadd.f32 %v6565_v43, %v6477_v38  ;;  %v20018_v38 = vld [vmem:[#allocation50_spill] sm:$0xff] }
 0xae9   :  { %6794 = vmatmul.bf16.gmra.mxu3 %v20015_v0  ;;  %v20021_v0 = vld [vmem:[#allocation4_spill] sm:$0xff] }
 0xaeb   :  { %v6390_v4 = vpop.f32.mrf.mxu2  ;;  %v6570_v62 = vpop.f32.mrf.mxu0 }
 0xaec   :  { %v6479_v47 = vpop.f32.mrf.mxu3  ;;  %v6391_v23 = vadd.f32 %v6390_v4, %v6302_v32  ;;  %v6303_v21 = vpop.f32.mrf.mxu1  ;;  %v20020_v32 = vld [vmem:[#allocation285_spill] sm:$0xff] }
 0xaed   :  { %v6304_v28 = vadd.f32 %v6303_v21, %v6215_v58  ;;  %v17088_v55 = vperm.slane %v20020_v32, 7  ;;  %v11332_v58 = vld [vmem:[%s18628_s1 + $0xa9c] sm:$0xf] }
 0xaee   :  { %v6480_v35 = vadd.f32 %v6479_v47, %v6391_v23  ;;  %v10477_v23 = vld [vmem:[%s18628_s1 + $0xab8] sm:$0xf0] }
 0xaef   :  { %v10480_v21 = vor.u32 %v11332_v58, %v10477_v23 }
 0xaf0   :  { %v17080_v29 = vadd.f32 %v6568_v31, %v6480_v35  ;;  %v20022_v31 = vld [vmem:[#allocation54_spill] sm:$0xff] }
 0xaf1   :  { %7112 = vmatpush.bf16.msra.mxu3 %v10480_v21 }
 0xaf3   :  { %v6392_v33 = vpop.f32.mrf.mxu2  ;;  %v6849_v48 = vpop.f32.mrf.mxu0 }
 0xaf4   :  { %v6481_v42 = vpop.f32.mrf.mxu3  ;;  %v6393_v56 = vadd.f32 %v6392_v33, %v6304_v28  ;;  %v6582_v49 = vpop.f32.mrf.mxu1 }
 0xaf5   :  { %v17083_v43 = vadd.f32 %v6582_v49, %v16735_v6  ;;  %v10221_v6 = vld [vmem:[%s18628_s1 + $0x8b8] sm:$0xf0] }
 0xaf6   :  { %v6482_v50 = vadd.f32 %v6481_v42, %v6393_v56  ;;  %6888 = vmatmul.bf16.gmra.mxu0 %v20019_v16  ;;  %v10224_v47 = vor.u32 %v11268_v27, %v10221_v6 }
 0xaf7   :  { %20017 = vst [vmem:[#allocation265_spill] sm:$0xff] %v17083_v43  ;;  %6621 = vmatmul.bf16.gmra.mxu1 %v20018_v38  ;;  %v20031_v43 = vld [vmem:[#allocation100_spill] sm:$0xff] }
 0xaf8   :  { %6710 = vmatmul.bf16.gmra.mxu2 %v20021_v0  ;;  %v17101_v4 = vadd.f32 %v6570_v62, %v6482_v50  ;;  %v11204_v62 = vld [vmem:[%s18628_s1 + $0x69c] sm:$0xf] }
 0xaf9   :  { %6799 = vmatmul.bf16.gmra.mxu3 %v20022_v31  ;;  %7023 = vmatpush.bf16.msra.mxu2 %v10224_v47  ;;  %v9965_v50 = vld [vmem:[%s18628_s1 + $0x6b8] sm:$0xf0]  ;;  %v11383_v31 = vld [vmem:[%s18631_s3 + $0x30] sm:$0xff] }
 0xafa   :  { %v9968_v0 = vor.u32 %v11204_v62, %v9965_v50  ;;  %7841 = vmatpush.bf16.msra.mxu0 %v11383_v31 }
 0xafb   :  { %v6671_v28 = vpop.f32.mrf.mxu2  ;;  %v6851_v56 = vpop.f32.mrf.mxu0 }
 0xafc   :  { %v6760_v35 = vpop.f32.mrf.mxu3  ;;  %v6672_v33 = vadd.f32 %v6671_v28, %v17088_v55  ;;  %v6584_v42 = vpop.f32.mrf.mxu1  ;;  %6934 = vmatpush.bf16.msra.mxu1 %v9968_v0 }
 0xafd   :  { %v17108_v49 = vadd.f32 %v6584_v42, %v16743_v53  ;;  %v20027_v42 = vld [vmem:[#allocation8_spill] sm:$0xff] }
 0xafe   :  { %v6761_v16 = vadd.f32 %v6760_v35, %v6672_v33  ;;  %v20025_v35 = vld [vmem:[#allocation59_spill] sm:$0xff]  ;;  %v20026_v33 = vld [vmem:[#allocation62_spill] sm:$0xff] }
 0xaff   :  { %20023 = vst [vmem:[#allocation266_spill] sm:$0xff] %v17108_v49 }
 0xb00   :  { %v17121_v27 = vadd.f32 %v6849_v48, %v6761_v16  ;;  %v20028_v48 = vld [vmem:[#allocation60_spill] sm:$0xff] }
 0xb03   :  { %v6673_v53 = vpop.f32.mrf.mxu2  ;;  %v6854_v23 = vpop.f32.mrf.mxu0 }
 0xb04   :  { %v6762_v6 = vpop.f32.mrf.mxu3  ;;  %v6674_v58 = vadd.f32 %v6673_v53, %v17088_v55  ;;  %v6587_v47 = vpop.f32.mrf.mxu1 }
 0xb05   :  { %v17125_v21 = vadd.f32 %v6587_v47, %v16747_v40 }
 0xb06   :  { %v6763_v28 = vadd.f32 %v6762_v6, %v6674_v58  ;;  %6893 = vmatmul.bf16.gmra.mxu0 %v20026_v33 }
 0xb07   :  { %20024 = vst [vmem:[#allocation74_spill] sm:$0xff] %v17125_v21  ;;  %6626 = vmatmul.bf16.gmra.mxu1 %v20025_v35 }
 0xb08   :  { %6715 = vmatmul.bf16.gmra.mxu2 %v20027_v42  ;;  %v17131_v16 = vadd.f32 %v6851_v56, %v6763_v28 }
 0xb09   :  { %6804 = vmatmul.bf16.gmra.mxu3 %v20028_v48 }
 0xb0b   :  { %v6676_v62 = vpop.f32.mrf.mxu2  ;;  %v6856_v53 = vpop.f32.mrf.mxu0 }
 0xb0c   :  { %v6765_v50 = vpop.f32.mrf.mxu3  ;;  %v6677_v0 = vadd.f32 %v6676_v62, %v17088_v55  ;;  %v6589_v31 = vpop.f32.mrf.mxu1 }
 0xb0d   :  { %v17135_v40 = vadd.f32 %v6589_v31, %v16764_v36  ;;  %v20032_v36 = vld [vmem:[#allocation66_spill] sm:$0xff]  ;;  %v10189_v31 = vld [vmem:[%s18628_s1 + $0x878] sm:$0xf0] }
 0xb0e   :  { %v6766_v6 = vadd.f32 %v6765_v50, %v6677_v0  ;;  %v20033_v50 = vld [vmem:[#allocation12_spill] sm:$0xff] }
 0xb0f   :  { %20029 = vst [vmem:[#allocation76_spill] sm:$0xff] %v17135_v40  ;;  %v20034_v0 = vld [vmem:[#allocation64_spill] sm:$0xff] }
 0xb10   :  { %v17139_v47 = vadd.f32 %v6854_v23, %v6766_v6  ;;  %v11260_v23 = vld [vmem:[%s18628_s1 + $0x85c] sm:$0xf] }
 0xb13   :  { %v6678_v33 = vpop.f32.mrf.mxu2  ;;  %v6859_v48 = vpop.f32.mrf.mxu0 }
 0xb14   :  { %v6767_v42 = vpop.f32.mrf.mxu3  ;;  %v6679_v56 = vadd.f32 %v6678_v33, %v17088_v55  ;;  %v6592_v28 = vpop.f32.mrf.mxu1  ;;  %v10192_v33 = vor.u32 %v11260_v23, %v10189_v31  ;;  %v20037_v23 = vld [vmem:[#allocation102_spill] sm:$0xff] }
 0xb15   :  { %v17143_v32 = vadd.f32 %v6592_v28, %v16783_v12  ;;  %v11324_v12 = vld [vmem:[%s18628_s1 + $0xa5c] sm:$0xf] }
 0xb16   :  { %v6768_v62 = vadd.f32 %v6767_v42, %v6679_v56  ;;  %6898 = vmatmul.bf16.gmra.mxu0 %v20032_v36  ;;  %v10445_v42 = vld [vmem:[%s18628_s1 + $0xa78] sm:$0xf0]  ;;  %7024 = vmatpush.bf16.msra.mxu2 %v10192_v33 }
 0xb17   :  { %20030 = vst [vmem:[#allocation79_spill] sm:$0xff] %v17143_v32  ;;  %6631 = vmatmul.bf16.gmra.mxu1 %v20031_v43  ;;  %v10448_v56 = vor.u32 %v11324_v12, %v10445_v42  ;;  %v11382_v12 = vld [vmem:[%s18631_s3 + $0x28] sm:$0xff] }
 0xb18   :  { %6720 = vmatmul.bf16.gmra.mxu2 %v20033_v50  ;;  %v17158_v6 = vadd.f32 %v6856_v53, %v6768_v62  ;;  %v11196_v53 = vld [vmem:[%s18628_s1 + $0x65c] sm:$0xf]  ;;  %7842 = vmatpush.bf16.msra.mxu0 %v11382_v12 }
 0xb19   :  { %6809 = vmatmul.bf16.gmra.mxu3 %v20034_v0  ;;  %v9933_v62 = vld [vmem:[%s18628_s1 + $0x678] sm:$0xf0] }
 0xb1a   :  { %7113 = vmatpush.bf16.msra.mxu3 %v10448_v56  ;;  %v9936_v31 = vor.u32 %v11196_v53, %v9933_v62  ;;  %v20038_v53 = vld [vmem:[#allocation72_spill] sm:$0xff] }
 0xb1b   :  { %v6681_v28 = vpop.f32.mrf.mxu2  ;;  %v6861_v58 = vpop.f32.mrf.mxu0  ;;  %v20039_v62 = vld [vmem:[#allocation16_spill] sm:$0xff] }
 0xb1c   :  { %v6770_v36 = vpop.f32.mrf.mxu3  ;;  %v6682_v50 = vadd.f32 %v6681_v28, %v17088_v55  ;;  %v6594_v0 = vpop.f32.mrf.mxu1  ;;  %6935 = vmatpush.bf16.msra.mxu1 %v9936_v31 }
 0xb1d   :  { %v17165_v21 = vadd.f32 %v6594_v0, %v16791_v17 }
 0xb1e   :  { %v6771_v40 = vadd.f32 %v6770_v36, %v6682_v50 }
 0xb1f   :  { %20035 = vst [vmem:[#allocation81_spill] sm:$0xff] %v17165_v21 }
 0xb20   :  { %v17178_v33 = vadd.f32 %v6859_v48, %v6771_v40  ;;  %v20040_v40 = vld [vmem:[#allocation70_spill] sm:$0xff] }
 0xb23   :  { %v6683_v17 = vpop.f32.mrf.mxu2  ;;  %v6864_v36 = vpop.f32.mrf.mxu0 }
 0xb24   :  { %v6772_v42 = vpop.f32.mrf.mxu3  ;;  %v6684_v56 = vadd.f32 %v6683_v17, %v17088_v55  ;;  %v6597_v28 = vpop.f32.mrf.mxu1 }
 0xb25   :  { %v17182_v50 = vadd.f32 %v6597_v28, %v16795_v30 }
 0xb26   :  { %v6773_v0 = vadd.f32 %v6772_v42, %v6684_v56  ;;  %6903 = vmatmul.bf16.gmra.mxu0 %v20038_v53 }
 0xb27   :  { %20036 = vst [vmem:[#allocation272_spill] sm:$0xff] %v17182_v50  ;;  %6636 = vmatmul.bf16.gmra.mxu1 %v20037_v23  ;;  %v20043_v23 = vld [vmem:[#allocation105_spill] sm:$0xff] }
 0xb28   :  { %6725 = vmatmul.bf16.gmra.mxu2 %v20039_v62  ;;  %v17188_v48 = vadd.f32 %v6861_v58, %v6773_v0  ;;  %v20060_v50 = vld [vmem:[#allocation17_spill] sm:$0xff] }
 0xb29   :  { %6814 = vmatmul.bf16.gmra.mxu3 %v20040_v40 }
 0xb2b   :  { %v6686_v31 = vpop.f32.mrf.mxu2  ;;  %v6866_v21 = vpop.f32.mrf.mxu0 }
 0xb2c   :  { %v6775_v12 = vpop.f32.mrf.mxu3  ;;  %v6687_v17 = vadd.f32 %v6686_v31, %v17088_v55  ;;  %v6599_v32 = vpop.f32.mrf.mxu1 }
 0xb2d   :  { %v17192_v30 = vadd.f32 %v6599_v32, %v16812_v63  ;;  %v20044_v63 = vld [vmem:[#allocation5_spill] sm:$0xff] }
 0xb2e   :  { %v6776_v42 = vadd.f32 %v6775_v12, %v6687_v17  ;;  %v11252_v32 = vld [vmem:[%s18628_s1 + $0x81c] sm:$0xf] }
 0xb2f   :  { %20041 = vst [vmem:[#allocation274_spill] sm:$0xff] %v17192_v30 }
 0xb30   :  { %v17196_v28 = vadd.f32 %v6864_v36, %v6776_v42  ;;  %v10157_v36 = vld [vmem:[%s18628_s1 + $0x838] sm:$0xf0] }
 0xb31   :  { %v10160_v17 = vor.u32 %v11252_v32, %v10157_v36  ;;  %v20047_v32 = vld [vmem:[#allocation107_spill] sm:$0xff] }
 0xb33   :  { %v6688_v53 = vpop.f32.mrf.mxu2  ;;  %v6869_v40 = vpop.f32.mrf.mxu0  ;;  %7025 = vmatpush.bf16.msra.mxu2 %v10160_v17 }
 0xb34   :  { %v6777_v62 = vpop.f32.mrf.mxu3  ;;  %v6689_v58 = vadd.f32 %v6688_v53, %v17088_v55  ;;  %v6602_v0 = vpop.f32.mrf.mxu1 }
 0xb35   :  { %v17200_v49 = vadd.f32 %v6602_v0, %v16831_v5  ;;  %v11316_v5 = vld [vmem:[%s18628_s1 + $0xa1c] sm:$0xf] }
 0xb36   :  { %v6778_v31 = vadd.f32 %v6777_v62, %v6689_v58  ;;  %6908 = vmatmul.bf16.gmra.mxu0 %v19982_v13  ;;  %v10413_v13 = vld [vmem:[%s18628_s1 + $0xa38] sm:$0xf0] }
 0xb37   :  { %20042 = vst [vmem:[#allocation276_spill] sm:$0xff] %v17200_v49  ;;  %6641 = vmatmul.bf16.gmra.mxu1 %v20043_v23 }
 0xb38   :  { %6730 = vmatmul.bf16.gmra.mxu2 %v20044_v63  ;;  %v17215_v12 = vadd.f32 %v6866_v21, %v6778_v31  ;;  %v11188_v21 = vld [vmem:[%s18628_s1 + $0x61c] sm:$0xf] }
 0xb39   :  { %6819 = vmatmul.bf16.gmra.mxu3 %v19981_v37  ;;  %v10416_v37 = vor.u32 %v11316_v5, %v10413_v13  ;;  %v9901_v31 = vld [vmem:[%s18628_s1 + $0x638] sm:$0xf0]  ;;  %v11381_v5 = vld [vmem:[%s18631_s3 + $0x20] sm:$0xff] }
 0xb3a   :  { %v9904_v36 = vor.u32 %v11188_v21, %v9901_v31  ;;  %7843 = vmatpush.bf16.msra.mxu0 %v11381_v5 }
 0xb3b   :  { %v6691_v42 = vpop.f32.mrf.mxu2  ;;  %v6871_v0 = vpop.f32.mrf.mxu0  ;;  %7114 = vmatpush.bf16.msra.mxu3 %v10416_v37 }
 0xb3c   :  { %v6780_v53 = vpop.f32.mrf.mxu3  ;;  %v6692_v62 = vadd.f32 %v6691_v42, %v17088_v55  ;;  %v6604_v58 = vpop.f32.mrf.mxu1  ;;  %6936 = vmatpush.bf16.msra.mxu1 %v9904_v36 }
 0xb3d   :  { %v17222_v63 = vadd.f32 %v6604_v58, %v16845_v1 }
 0xb3e   :  { %v6781_v56 = vadd.f32 %v6780_v53, %v6692_v62 }
 0xb3f   :  { %20045 = vst [vmem:[#allocation93_spill] sm:$0xff] %v17222_v63 }
 0xb40   :  { %v17235_v17 = vadd.f32 %v6869_v40, %v6781_v56  ;;  %v11380_v56 = vld [vmem:[%s18631_s3 + $0x18] sm:$0xff] }
 0xb41   :  { %v20048_v40 = vld [vmem:[#allocation9_spill] sm:$0xff]  ;;  %7844 = vmatpush.bf16.msra.mxu0 %v11380_v56 }
 0xb43   :  { %v6693_v1 = vpop.f32.mrf.mxu2  ;;  %v6874_v53 = vpop.f32.mrf.mxu0 }
 0xb44   :  { %v6782_v13 = vpop.f32.mrf.mxu3  ;;  %v6694_v37 = vadd.f32 %v6693_v1, %v17088_v55  ;;  %v6607_v42 = vpop.f32.mrf.mxu1 }
 0xb45   :  { %v17239_v62 = vadd.f32 %v6607_v42, %v16861_v25  ;;  %v11379_v25 = vld [vmem:[%s18631_s3 + $0x10] sm:$0xff] }
 0xb46   :  { %v6783_v58 = vadd.f32 %v6782_v13, %v6694_v37  ;;  %6913 = vmatmul.bf16.gmra.mxu0 %v19984_v22 }
 0xb47   :  { %20046 = vst [vmem:[#allocation2_spill] sm:$0xff] %v17239_v62  ;;  %6646 = vmatmul.bf16.gmra.mxu1 %v20047_v32  ;;  %7845 = vmatpush.bf16.msra.mxu0 %v11379_v25 }
 0xb48   :  { %6735 = vmatmul.bf16.gmra.mxu2 %v20048_v40  ;;  %v17248_v21 = vadd.f32 %v6871_v0, %v6783_v58  ;;  %v11378_v0 = vld [vmem:[%s18631_s3 + $0x8] sm:$0xff]  ;;  %v11377_v40 = vld [vmem:[%s18631_s3] sm:$0xff] }
 0xb49   :  { %6824 = vmatmul.bf16.gmra.mxu3 %v19983_v19  ;;  %v11400_v19 = vld [vmem:[%s18631_s3 + $0xb8] sm:$0xff] }
 0xb4a   :  { %8018 = vmatpush.bf16.msrb.mxu2 %v11400_v19 }
 0xb4b   :  { %v6696_v31 = vpop.f32.mrf.mxu2  ;;  %v6876_v1 = vpop.f32.mrf.mxu0  ;;  %7846 = vmatpush.bf16.msra.mxu0 %v11378_v0  ;;  %v20054_v0 = vld [vmem:[#allocation85_spill] sm:$0xff] }
 0xb4c   :  { %v6785_v36 = vpop.f32.mrf.mxu3  ;;  %v6697_v5 = vadd.f32 %v6696_v31, %v17088_v55  ;;  %v6609_v22 = vpop.f32.mrf.mxu1 }
 0xb4d   :  { %v17255_v13 = vadd.f32 %v6609_v22, %v16884_v44  ;;  %v20051_v22 = vld [vmem:[#allocation109_spill] sm:$0xff] }
 0xb4e   :  { %v6786_v37 = vadd.f32 %v6785_v36, %v6697_v5 }
 0xb4f   :  { %20049 = vst [vmem:[#allocation94_spill] sm:$0xff] %v17255_v13  ;;  %7847 = vmatpush.bf16.msra.mxu0 %v11377_v40  ;;  %v11392_v13 = vld [vmem:[%s18631_s3 + $0x78] sm:$0xff] }
 0xb50   :  { %v17262_v42 = vadd.f32 %v6874_v53, %v6786_v37  ;;  %v20052_v53 = vld [vmem:[#allocation87_spill] sm:$0xff]  ;;  %v20053_v37 = vld [vmem:[#allocation13_spill] sm:$0xff]  ;;  %7929 = vmatpush.bf16.msrb.mxu1 %v11392_v13 }
 0xb53   :  { %v6698_v58 = vpop.f32.mrf.mxu2  ;;  %v6879_v36 = vpop.f32.mrf.mxu0 }
 0xb54   :  { %v6787_v56 = vpop.f32.mrf.mxu3  ;;  %v6699_v44 = vadd.f32 %v6698_v58, %v17088_v55  ;;  %v6612_v31 = vpop.f32.mrf.mxu1  ;;  %v11408_v58 = vld [vmem:[%s18631_s3 + $0xf8] sm:$0xff] }
 0xb55   :  { %v17269_v25 = vadd.f32 %v6612_v31, %v16897_v20  ;;  %8107 = vmatpush.bf16.msrb.mxu3 %v11408_v58 }
 0xb56   :  { %v6788_v5 = vadd.f32 %v6787_v56, %v6699_v44  ;;  %6918 = vmatmul.bf16.gmra.mxu0 %v20052_v53 }
 0xb57   :  { %20050 = vst [vmem:[#allocation6_spill] sm:$0xff] %v17269_v25  ;;  %6651 = vmatmul.bf16.gmra.mxu1 %v20051_v22 }
 0xb58   :  { %6740 = vmatmul.bf16.gmra.mxu2 %v20053_v37  ;;  %v17281_v20 = vadd.f32 %v6876_v1, %v6788_v5  ;;  %v20055_v37 = vld [vmem:[#allocation261_spill] sm:$0xff] }
 0xb59   :  { %6829 = vmatmul.bf16.gmra.mxu3 %v20054_v0  ;;  %v20061_v1 = vld [vmem:[#allocation89_spill] sm:$0xff] }
 0xb5b   :  { %v6701_v56 = vpop.f32.mrf.mxu2  ;;  %v6881_v53 = vpop.f32.mrf.mxu0 }
 0xb5c   :  { %v6790_v40 = vpop.f32.mrf.mxu3  ;;  %v6702_v44 = vadd.f32 %v6701_v56, %v17088_v55  ;;  %v6614_v31 = vpop.f32.mrf.mxu1 }
 0xb5d   :  { %v17285_v0 = vadd.f32 %v6614_v31, %v20055_v37  ;;  %v20059_v37 = vld [vmem:[#allocation91_spill] sm:$0xff] }
 0xb5e   :  { %v6791_v62 = vadd.f32 %v6790_v40, %v6702_v44  ;;  %v20058_v44 = vld [vmem:[#allocation112_spill] sm:$0xff] }
 0xb5f   :  { %20056 = vst [vmem:[#allocation95_spill] sm:$0xff] %v17285_v0 }
 0xb60   :  { %v17292_v19 = vadd.f32 %v6879_v36, %v6791_v62 }
 0xb63   :  { %v6703_v5 = vpop.f32.mrf.mxu2  ;;  %v6884_v63 = vpop.f32.mrf.mxu0 }
 0xb64   :  { %v6792_v58 = vpop.f32.mrf.mxu3  ;;  %v6704_v56 = vadd.f32 %v6703_v5, %v17088_v55  ;;  %v6617_v49 = vpop.f32.mrf.mxu1 }
 0xb65   :  { %v17296_v31 = vadd.f32 %v6617_v49, %v16909_v26 }
 0xb66   :  { %v6793_v40 = vadd.f32 %v6792_v58, %v6704_v56  ;;  %6923 = vmatmul.bf16.gmra.mxu0 %v20059_v37  ;;  %v20073_v58 = vld [vmem:[#allocation99_spill] sm:$0xff] }
 0xb67   :  { %20057 = vst [vmem:[#allocation10_spill] sm:$0xff] %v17296_v31  ;;  %6656 = vmatmul.bf16.gmra.mxu1 %v20058_v44  ;;  %v20064_v44 = vld [vmem:[#allocation21_spill] sm:$0xff] }
 0xb68   :  { %6745 = vmatmul.bf16.gmra.mxu2 %v20060_v50  ;;  %v17302_v62 = vadd.f32 %v6881_v53, %v6793_v40 }
 0xb69   :  { %6834 = vmatmul.bf16.gmra.mxu3 %v20061_v1 }
 0xb6b   :  { %v6706_v13 = vpop.f32.mrf.mxu2  ;;  %v6886_v0 = vpop.f32.mrf.mxu0 }
 0xb6c   :  { %v6795_v36 = vpop.f32.mrf.mxu3  ;;  %v6707_v5 = vadd.f32 %v6706_v13, %v17088_v55  ;;  %v6619_v25 = vpop.f32.mrf.mxu1 }
 0xb6d   :  { %v17306_v26 = vadd.f32 %v6619_v25, %v16926_v52  ;;  %v20065_v52 = vld [vmem:[#allocation56_spill] sm:$0xff]  ;;  %v20066_v25 = vld [vmem:[#allocation53_spill] sm:$0xff] }
 0xb6e   :  { %v6796_v49 = vadd.f32 %v6795_v36, %v6707_v5  ;;  %v20067_v36 = vpack.c.bf16 %v20065_v52, %v20066_v25  ;;  %v20068_v5 = vld [vmem:[#allocation19_spill] sm:$0xff]  ;;  %v11391_v25 = vld [vmem:[%s18631_s3 + $0x70] sm:$0xff] }
 0xb6f   :  { %20062 = vst [vmem:[#allocation96_spill] sm:$0xff] %v17306_v26  ;;  %7930 = vmatpush.bf16.msrb.mxu1 %v11391_v25  ;;  %v20168_v26 = vld [vmem:[#allocation202_spill] sm:$0xff] }
 0xb70   :  { %v17310_v56 = vadd.f32 %v6884_v63, %v6796_v49  ;;  %v11399_v63 = vld [vmem:[%s18631_s3 + $0xb0] sm:$0xff] }
 0xb71   :  { %8019 = vmatpush.bf16.msrb.mxu2 %v11399_v63 }
 0xb73   :  { %v6708_v50 = vpop.f32.mrf.mxu2  ;;  %v6889_v40 = vpop.f32.mrf.mxu0 }
 0xb74   :  { %v6797_v37 = vpop.f32.mrf.mxu3  ;;  %v6709_v53 = vadd.f32 %v6708_v50, %v17088_v55  ;;  %v6622_v1 = vpop.f32.mrf.mxu1 }
 0xb75   :  { %v17314_v30 = vadd.f32 %v6622_v1, %v16939_v46  ;;  %v11407_v46 = vld [vmem:[%s18631_s3 + $0xf0] sm:$0xff] }
 0xb76   :  { %v6798_v13 = vadd.f32 %v6797_v37, %v6709_v53  ;;  %7848 = vmatmul.bf16.vlgmr.msra.gmra.mxu0 %v20067_v36  ;;  %8108 = vmatpush.bf16.msrb.mxu3 %v11407_v46 }
 0xb77   :  { %20063 = vst [vmem:[#allocation14_spill] sm:$0xff] %v17314_v30  ;;  %6937 = vmatmul.bf16.vlgmr.msra.gmra.mxu1 %v20064_v44 }
 0xb78   :  { %7026 = vmatmul.bf16.vlgmr.msra.gmra.mxu2 %v20068_v5  ;;  %v17328_v49 = vadd.f32 %v6886_v0, %v6798_v13  ;;  %v20075_v0 = vld [vmem:[#allocation23_spill] sm:$0xff] }
 0xb79   :  { %7115 = vmatmul.bf16.vlgmr.msra.gmra.mxu3 %v19995_v34 }
 0xb7b   :  { %v6711_v44 = vpop.f32.mrf.mxu2  ;;  %v6891_v1 = vpop.f32.mrf.mxu0 }
 0xb7c   :  { %v6800_v50 = vpop.f32.mrf.mxu3  ;;  %v6712_v37 = vadd.f32 %v6711_v44, %v17088_v55  ;;  %v6624_v53 = vpop.f32.mrf.mxu1 }
 0xb7d   :  { %v17332_v34 = vadd.f32 %v6624_v53, %v16947_v8  ;;  %v20072_v53 = vld [vmem:[#allocation68_spill] sm:$0xff] }
 0xb7e   :  { %v6801_v52 = vadd.f32 %v6800_v50, %v6712_v37  ;;  %v20071_v37 = vld [vmem:[#allocation25_spill] sm:$0xff]  ;;  %v20074_v31 = vpack.c.bf16 %v20072_v53, %v20073_v58  ;;  %v20087_v58 = vld [vmem:[#allocation103_spill] sm:$0xff] }
 0xb7f   :  { %20069 = vst [vmem:[#allocation97_spill] sm:$0xff] %v17332_v34  ;;  %v20165_v34 = vld [vmem:[#allocation132_spill] sm:$0xff] }
 0xb80   :  { %v17339_v13 = vadd.f32 %v6889_v40, %v6801_v52 }
 0xb83   :  { %v6713_v36 = vpop.f32.mrf.mxu2  ;;  %v6894_v44 = vpop.f32.mrf.mxu0 }
 0xb84   :  { %v6802_v5 = vpop.f32.mrf.mxu3  ;;  %v6714_v63 = vadd.f32 %v6713_v36, %v17088_v55  ;;  %v6627_v46 = vpop.f32.mrf.mxu1 }
 0xb85   :  { %v17343_v8 = vadd.f32 %v6627_v46, %v16951_v57 }
 0xb86   :  { %v6803_v50 = vadd.f32 %v6802_v5, %v6714_v63  ;;  %7853 = vmatmul.bf16.gmra.mxu0 %v20074_v31 }
 0xb87   :  { %20070 = vst [vmem:[#allocation3_spill] sm:$0xff] %v17343_v8  ;;  %6942 = vmatmul.bf16.gmra.mxu1 %v20071_v37 }
 0xb88   :  { %7031 = vmatmul.bf16.gmra.mxu2 %v20075_v0  ;;  %v17351_v40 = vadd.f32 %v6891_v1, %v6803_v50 }
 0xb89   :  { %7120 = vmatmul.bf16.gmra.mxu3 %v19997_v7 }
 0xb8b   :  { %v6716_v52 = vpop.f32.mrf.mxu2  ;;  %v6896_v57 = vpop.f32.mrf.mxu0 }
 0xb8c   :  { %v6805_v25 = vpop.f32.mrf.mxu3  ;;  %v6717_v36 = vadd.f32 %v6716_v52, %v17088_v55  ;;  %v6629_v30 = vpop.f32.mrf.mxu1  ;;  %v20078_v52 = vld [vmem:[#allocation29_spill] sm:$0xff] }
 0xb8d   :  { %v17355_v5 = vadd.f32 %v6629_v30, %v16968_v15  ;;  %v20079_v15 = vld [vmem:[#allocation101_spill] sm:$0xff] }
 0xb8e   :  { %v6806_v63 = vadd.f32 %v6805_v25, %v6717_v36  ;;  %v20080_v30 = vld [vmem:[#allocation69_spill] sm:$0xff]  ;;  %v20082_v36 = vld [vmem:[#allocation27_spill] sm:$0xff] }
 0xb8f   :  { %20076 = vst [vmem:[#allocation36_spill] sm:$0xff] %v17355_v5  ;;  %v20081_v25 = vpack.c.bf16 %v20079_v15, %v20080_v30  ;;  %v11390_v30 = vld [vmem:[%s18631_s3 + $0x68] sm:$0xff] }
 0xb90   :  { %v17359_v31 = vadd.f32 %v6894_v44, %v6806_v63  ;;  %v11398_v44 = vld [vmem:[%s18631_s3 + $0xa8] sm:$0xff]  ;;  %7931 = vmatpush.bf16.msrb.mxu1 %v11390_v30 }
 0xb91   :  { %8020 = vmatpush.bf16.msrb.mxu2 %v11398_v44 }
 0xb93   :  { %v6718_v0 = vpop.f32.mrf.mxu2  ;;  %v6899_v50 = vpop.f32.mrf.mxu0 }
 0xb94   :  { %v6807_v46 = vpop.f32.mrf.mxu3  ;;  %v6719_v7 = vadd.f32 %v6718_v0, %v17088_v55  ;;  %v6632_v1 = vpop.f32.mrf.mxu1 }
 0xb95   :  { %v17363_v37 = vadd.f32 %v6632_v1, %v16981_v24  ;;  %v11406_v24 = vld [vmem:[%s18631_s3 + $0xe8] sm:$0xff] }
 0xb96   :  { %v6808_v53 = vadd.f32 %v6807_v46, %v6719_v7  ;;  %7858 = vmatmul.bf16.gmra.mxu0 %v20081_v25  ;;  %8109 = vmatpush.bf16.msrb.mxu3 %v11406_v24 }
 0xb97   :  { %20077 = vst [vmem:[#allocation98_spill] sm:$0xff] %v17363_v37  ;;  %6947 = vmatmul.bf16.gmra.mxu1 %v20078_v52 }
 0xb98   :  { %7036 = vmatmul.bf16.gmra.mxu2 %v20082_v36  ;;  %v17377_v63 = vadd.f32 %v6896_v57, %v6808_v53  ;;  %v20089_v57 = vld [vmem:[#allocation31_spill] sm:$0xff] }
 0xb99   :  { %7125 = vmatmul.bf16.gmra.mxu3 %v19999_v11 }
 0xb9b   :  { %v6721_v0 = vpop.f32.mrf.mxu2  ;;  %v6901_v52 = vpop.f32.mrf.mxu0 }
 0xb9c   :  { %v6810_v46 = vpop.f32.mrf.mxu3  ;;  %v6722_v7 = vadd.f32 %v6721_v0, %v17088_v55  ;;  %v6634_v1 = vpop.f32.mrf.mxu1 }
 0xb9d   :  { %v17381_v11 = vadd.f32 %v6634_v1, %v16989_v61  ;;  %v20086_v1 = vld [vmem:[#allocation104_spill] sm:$0xff] }
 0xb9e   :  { %v6811_v15 = vadd.f32 %v6810_v46, %v6722_v7  ;;  %v20085_v7 = vld [vmem:[#allocation33_spill] sm:$0xff]  ;;  %v20088_v8 = vpack.c.bf16 %v20086_v1, %v20087_v58  ;;  %v20101_v58 = vld [vmem:[#allocation84_spill] sm:$0xff] }
 0xb9f   :  { %20083 = vst [vmem:[#allocation7_spill] sm:$0xff] %v17381_v11 }
 0xba0   :  { %v17388_v53 = vadd.f32 %v6899_v50, %v6811_v15 }
 0xba3   :  { %v6723_v25 = vpop.f32.mrf.mxu2  ;;  %v6904_v0 = vpop.f32.mrf.mxu0 }
 0xba4   :  { %v6812_v36 = vpop.f32.mrf.mxu3  ;;  %v6724_v44 = vadd.f32 %v6723_v25, %v17088_v55  ;;  %v6637_v24 = vpop.f32.mrf.mxu1 }
 0xba5   :  { %v17392_v61 = vadd.f32 %v6637_v24, %v16993_v9 }
 0xba6   :  { %v6813_v46 = vadd.f32 %v6812_v36, %v6724_v44  ;;  %7863 = vmatmul.bf16.gmra.mxu0 %v20088_v8 }
 0xba7   :  { %20084 = vst [vmem:[#allocation38_spill] sm:$0xff] %v17392_v61  ;;  %6952 = vmatmul.bf16.gmra.mxu1 %v20085_v7 }
 0xba8   :  { %7041 = vmatmul.bf16.gmra.mxu2 %v20089_v57  ;;  %v17400_v50 = vadd.f32 %v6901_v52, %v6813_v46 }
 0xba9   :  { %7130 = vmatmul.bf16.gmra.mxu3 %v20001_v2 }
 0xbab   :  { %v6726_v15 = vpop.f32.mrf.mxu2  ;;  %v6906_v9 = vpop.f32.mrf.mxu0 }
 0xbac   :  { %v6815_v30 = vpop.f32.mrf.mxu3  ;;  %v6727_v25 = vadd.f32 %v6726_v15, %v17088_v55  ;;  %v6639_v37 = vpop.f32.mrf.mxu1  ;;  %v20092_v15 = vld [vmem:[#allocation37_spill] sm:$0xff] }
 0xbad   :  { %v17404_v36 = vadd.f32 %v6639_v37, %v17010_v60  ;;  %v20093_v60 = vld [vmem:[#allocation83_spill] sm:$0xff]  ;;  %v20094_v37 = vld [vmem:[#allocation78_spill] sm:$0xff] }
 0xbae   :  { %v6816_v44 = vadd.f32 %v6815_v30, %v6727_v25  ;;  %v20095_v30 = vpack.c.bf16 %v20093_v60, %v20094_v37  ;;  %v20096_v25 = vld [vmem:[#allocation35_spill] sm:$0xff]  ;;  %v11389_v37 = vld [vmem:[%s18631_s3 + $0x60] sm:$0xff] }
 0xbaf   :  { %20090 = vst [vmem:[#allocation44_spill] sm:$0xff] %v17404_v36  ;;  %7932 = vmatpush.bf16.msrb.mxu1 %v11389_v37  ;;  %v20161_v36 = vld [vmem:[#allocation112_spill] sm:$0xff] }
 0xbb0   :  { %v17408_v8 = vadd.f32 %v6904_v0, %v6816_v44  ;;  %v11397_v0 = vld [vmem:[%s18631_s3 + $0xa0] sm:$0xff] }
 0xbb1   :  { %8021 = vmatpush.bf16.msrb.mxu2 %v11397_v0 }
 0xbb3   :  { %v6728_v57 = vpop.f32.mrf.mxu2  ;;  %v6909_v46 = vpop.f32.mrf.mxu0 }
 0xbb4   :  { %v6817_v24 = vpop.f32.mrf.mxu3  ;;  %v6729_v2 = vadd.f32 %v6728_v57, %v17088_v55  ;;  %v6642_v52 = vpop.f32.mrf.mxu1 }
 0xbb5   :  { %v17412_v7 = vadd.f32 %v6642_v52, %v17023_v14  ;;  %v11405_v14 = vld [vmem:[%s18631_s3 + $0xe0] sm:$0xff] }
 0xbb6   :  { %v6818_v1 = vadd.f32 %v6817_v24, %v6729_v2  ;;  %7868 = vmatmul.bf16.gmra.mxu0 %v20095_v30  ;;  %8110 = vmatpush.bf16.msrb.mxu3 %v11405_v14 }
 0xbb7   :  { %20091 = vst [vmem:[#allocation11_spill] sm:$0xff] %v17412_v7  ;;  %6957 = vmatmul.bf16.gmra.mxu1 %v20092_v15 }
 0xbb8   :  { %7046 = vmatmul.bf16.gmra.mxu2 %v20096_v25  ;;  %v17426_v44 = vadd.f32 %v6906_v9, %v6818_v1  ;;  %v20103_v9 = vld [vmem:[#allocation39_spill] sm:$0xff] }
 0xbb9   :  { %7135 = vmatmul.bf16.gmra.mxu3 %v20003_v45 }
 0xbbb   :  { %v6731_v57 = vpop.f32.mrf.mxu2  ;;  %v6911_v15 = vpop.f32.mrf.mxu0 }
 0xbbc   :  { %v6820_v24 = vpop.f32.mrf.mxu3  ;;  %v6732_v2 = vadd.f32 %v6731_v57, %v17088_v55  ;;  %v6644_v52 = vpop.f32.mrf.mxu1 }
 0xbbd   :  { %v17430_v45 = vadd.f32 %v6644_v52, %v17031_v10  ;;  %v20100_v52 = vld [vmem:[#allocation108_spill] sm:$0xff] }
 0xbbe   :  { %v6821_v60 = vadd.f32 %v6820_v24, %v6732_v2  ;;  %v20099_v2 = vld [vmem:[#allocation41_spill] sm:$0xff]  ;;  %v20102_v61 = vpack.c.bf16 %v20100_v52, %v20101_v58  ;;  %v20114_v58 = vld [vmem:[#allocation114_spill] sm:$0xff] }
 0xbbf   :  { %20097 = vst [vmem:[#allocation42_spill] sm:$0xff] %v17430_v45  ;;  %v20154_v45 = vld [vmem:[#allocation86_spill] sm:$0xff] }
 0xbc0   :  { %v17437_v1 = vadd.f32 %v6909_v46, %v6821_v60 }
 0xbc3   :  { %v6733_v30 = vpop.f32.mrf.mxu2  ;;  %v6914_v57 = vpop.f32.mrf.mxu0 }
 0xbc4   :  { %v6822_v25 = vpop.f32.mrf.mxu3  ;;  %v6734_v0 = vadd.f32 %v6733_v30, %v17088_v55  ;;  %v6647_v14 = vpop.f32.mrf.mxu1 }
 0xbc5   :  { %v17441_v10 = vadd.f32 %v6647_v14, %v17035_v59 }
 0xbc6   :  { %v6823_v24 = vadd.f32 %v6822_v25, %v6734_v0  ;;  %7873 = vmatmul.bf16.gmra.mxu0 %v20102_v61 }
 0xbc7   :  { %20098 = vst [vmem:[#allocation282_spill] sm:$0xff] %v17441_v10  ;;  %6962 = vmatmul.bf16.gmra.mxu1 %v20099_v2  ;;  %v20115_v10 = vld [vmem:[#allocation113_spill] sm:$0xff] }
 0xbc8   :  { %7051 = vmatmul.bf16.gmra.mxu2 %v20103_v9  ;;  %v17449_v46 = vadd.f32 %v6911_v15, %v6823_v24 }
 0xbc9   :  { %7140 = vmatmul.bf16.gmra.mxu3 %v20006_v41 }
 0xbcb   :  { %v6736_v60 = vpop.f32.mrf.mxu2  ;;  %v6916_v59 = vpop.f32.mrf.mxu0 }
 0xbcc   :  { %v6825_v37 = vpop.f32.mrf.mxu3  ;;  %v6737_v30 = vadd.f32 %v6736_v60, %v17088_v55  ;;  %v6649_v7 = vpop.f32.mrf.mxu1  ;;  %v20106_v60 = vld [vmem:[#allocation46_spill] sm:$0xff] }
 0xbcd   :  { %v17453_v25 = vadd.f32 %v6649_v7, %v17052_v39  ;;  %v20107_v39 = vld [vmem:[#allocation111_spill] sm:$0xff]  ;;  %v20108_v7 = vld [vmem:[#allocation110_spill] sm:$0xff] }
 0xbce   :  { %v6826_v0 = vadd.f32 %v6825_v37, %v6737_v30  ;;  %v20109_v37 = vpack.c.bf16 %v20107_v39, %v20108_v7  ;;  %v20110_v30 = vld [vmem:[#allocation43_spill] sm:$0xff]  ;;  %v11388_v7 = vld [vmem:[%s18631_s3 + $0x58] sm:$0xff] }
 0xbcf   :  { %20104 = vst [vmem:[#allocation47_spill] sm:$0xff] %v17453_v25  ;;  %7933 = vmatpush.bf16.msrb.mxu1 %v11388_v7  ;;  %v20116_v25 = vpack.c.bf16 %v20114_v58, %v20115_v10  ;;  %v20117_v7 = vld [vmem:[#allocation49_spill] sm:$0xff] }
 0xbd0   :  { %v17457_v61 = vadd.f32 %v6914_v57, %v6826_v0  ;;  %v11396_v57 = vld [vmem:[%s18631_s3 + $0x98] sm:$0xff] }
 0xbd1   :  { %8022 = vmatpush.bf16.msrb.mxu2 %v11396_v57 }
 0xbd3   :  { %v6738_v9 = vpop.f32.mrf.mxu2  ;;  %v6919_v24 = vpop.f32.mrf.mxu0 }
 0xbd4   :  { %v6827_v14 = vpop.f32.mrf.mxu3  ;;  %v6739_v41 = vadd.f32 %v6738_v9, %v17088_v55  ;;  %v6652_v15 = vpop.f32.mrf.mxu1 }
 0xbd5   :  { %v17461_v2 = vadd.f32 %v6652_v15, %v17068_v51  ;;  %v11404_v51 = vld [vmem:[%s18631_s3 + $0xd8] sm:$0xff] }
 0xbd6   :  { %v6828_v52 = vadd.f32 %v6827_v14, %v6739_v41  ;;  %7878 = vmatmul.bf16.gmra.mxu0 %v20109_v37  ;;  %8111 = vmatpush.bf16.msrb.mxu3 %v11404_v51 }
 0xbd7   :  { %20105 = vst [vmem:[#allocation15_spill] sm:$0xff] %v17461_v2  ;;  %6967 = vmatmul.bf16.gmra.mxu1 %v20106_v60 }
 0xbd8   :  { %7056 = vmatmul.bf16.gmra.mxu2 %v20110_v30  ;;  %v17475_v0 = vadd.f32 %v6916_v59, %v6828_v52  ;;  %v11416_v59 = vld [vmem:[%s18631_s3 + $0x138] sm:$0xff] }
 0xbd9   :  { %7145 = vmatmul.bf16.gmra.mxu3 %v20009_v18  ;;  %8196 = vmatpush.bf16.msrb.mxu0 %v11416_v59 }
 0xbdb   :  { %v6741_v9 = vpop.f32.mrf.mxu2  ;;  %v6921_v60 = vpop.f32.mrf.mxu0 }
 0xbdc   :  { %v6830_v14 = vpop.f32.mrf.mxu3  ;;  %v6742_v41 = vadd.f32 %v6741_v9, %v17088_v55  ;;  %v6654_v15 = vpop.f32.mrf.mxu1 }
 0xbdd   :  { %v17479_v18 = vadd.f32 %v6654_v15, %v17076_v54  ;;  %v20113_v15 = vld [vmem:[#allocation52_spill] sm:$0xff] }
 0xbde   :  { %v6831_v39 = vadd.f32 %v6830_v14, %v6742_v41 }
 0xbdf   :  { %20111 = vst [vmem:[#allocation48_spill] sm:$0xff] %v17479_v18 }
 0xbe0   :  { %v17489_v37 = vadd.f32 %v6919_v24, %v6831_v39 }
 0xbe3   :  { %v6743_v30 = vpop.f32.mrf.mxu2  ;;  %v6924_v9 = vpop.f32.mrf.mxu0 }
 0xbe4   :  { %v6832_v57 = vpop.f32.mrf.mxu3  ;;  %v6744_v54 = vadd.f32 %v6743_v30, %v17088_v55  ;;  %v6657_v51 = vpop.f32.mrf.mxu1 }
 0xbe5   :  { %v17493_v14 = vadd.f32 %v6657_v51, %v17080_v29 }
 0xbe6   :  { %v6833_v41 = vadd.f32 %v6832_v57, %v6744_v54  ;;  %7883 = vmatmul.bf16.gmra.mxu0 %v20116_v25 }
 0xbe7   :  { %20112 = vst [vmem:[#allocation51_spill] sm:$0xff] %v17493_v14  ;;  %6972 = vmatmul.bf16.gmra.mxu1 %v20113_v15 }
 0xbe8   :  { %7061 = vmatmul.bf16.gmra.mxu2 %v20117_v7  ;;  %v17501_v24 = vadd.f32 %v6921_v60, %v6833_v41 }
 0xbe9   :  { %7150 = vmatmul.bf16.gmra.mxu3 %v20013_v3 }
 0xbeb   :  { %v6746_v39 = vpop.f32.mrf.mxu2  ;;  %v6926_v29 = vpop.f32.mrf.mxu0 }
 0xbec   :  { %v6835_v59 = vpop.f32.mrf.mxu3  ;;  %v6747_v30 = vadd.f32 %v6746_v39, %v17088_v55  ;;  %v6659_v52 = vpop.f32.mrf.mxu1  ;;  %v20119_v39 = vld [vmem:[#allocation58_spill] sm:$0xff] }
 0xbed   :  { %v17505_v57 = vadd.f32 %v6659_v52, %v17101_v4  ;;  %v20120_v4 = vld [vmem:[#allocation116_spill] sm:$0xff]  ;;  %v20121_v52 = vld [vmem:[#allocation115_spill] sm:$0xff] }
 0xbee   :  { %v6836_v54 = vadd.f32 %v6835_v59, %v6747_v30  ;;  %v20122_v59 = vpack.c.bf16 %v20120_v4, %v20121_v52  ;;  %v20123_v30 = vld [vmem:[#allocation55_spill] sm:$0xff]  ;;  %v11387_v4 = vld [vmem:[%s18631_s3 + $0x50] sm:$0xff] }
 0xbef   :  { %20118 = vst [vmem:[#allocation50_spill] sm:$0xff] %v17505_v57  ;;  %7934 = vmatpush.bf16.msrb.mxu1 %v11387_v4  ;;  %v20128_v4 = vld [vmem:[#allocation61_spill] sm:$0xff] }
 0xbf0   :  { %v17509_v25 = vadd.f32 %v6924_v9, %v6836_v54  ;;  %v11403_v9 = vld [vmem:[%s18631_s3 + $0xd0] sm:$0xff] }
 0xbf1   :  { %8112 = vmatpush.bf16.msrb.mxu3 %v11403_v9  ;;  %v20124_v9 = vld [vmem:[#allocation63_spill] sm:$0xff] }
 0xbf3   :  { %v6748_v58 = vpop.f32.mrf.mxu2  ;;  %v17512_v41 = vpop.f32.mrf.mxu0 }
 0xbf4   :  { %v6837_v51 = vpop.f32.mrf.mxu3  ;;  %v6749_v3 = vadd.f32 %v6748_v58, %v17088_v55  ;;  %v6938_v60 = vpop.f32.mrf.mxu1  ;;  %v11395_v55 = vld [vmem:[%s18631_s3 + $0x90] sm:$0xff] }
 0xbf5   :  { %v6939_v15 = vadd.f32 %v6938_v60, %v17121_v27  ;;  %8023 = vmatpush.bf16.msrb.mxu2 %v11395_v55 }
 0xbf6   :  { %v6838_v7 = vadd.f32 %v6837_v51, %v6749_v3  ;;  %7888 = vmatmul.bf16.gmra.mxu0 %v20122_v59 }
 0xbf7   :  { %6977 = vmatmul.bf16.gmra.mxu1 %v20119_v39 }
 0xbf8   :  { %7066 = vmatmul.bf16.gmra.mxu2 %v20123_v30  ;;  %v17527_v27 = vadd.f32 %v6926_v29, %v6838_v7  ;;  %v11415_v29 = vld [vmem:[%s18631_s3 + $0x130] sm:$0xff] }
 0xbf9   :  { %7155 = vmatmul.bf16.gmra.mxu3 %v20018_v38  ;;  %8197 = vmatpush.bf16.msrb.mxu0 %v11415_v29 }
 0xbfb   :  { %v7027_v54 = vpop.f32.mrf.mxu2  ;;  %v17529_v60 = vpop.f32.mrf.mxu0 }
 0xbfc   :  { %v7116_v58 = vpop.f32.mrf.mxu3  ;;  %v7028_v51 = vadd.f32 %v7027_v54, %v6939_v15  ;;  %v6940_v3 = vpop.f32.mrf.mxu1  ;;  %v20125_v54 = vld [vmem:[#allocation118_spill] sm:$0xff] }
 0xbfd   :  { %v6941_v38 = vadd.f32 %v6940_v3, %v17131_v16 }
 0xbfe   :  { %v17532_v39 = vadd.f32 %v7116_v58, %v7028_v51  ;;  %v20126_v58 = vld [vmem:[#allocation117_spill] sm:$0xff] }
 0xbff   :  { %v20127_v51 = vpack.c.bf16 %v20125_v54, %v20126_v58 }
 0xc03   :  { %v7029_v7 = vpop.f32.mrf.mxu2  ;;  %v17540_v30 = vpop.f32.mrf.mxu0 }
 0xc04   :  { %v7118_v52 = vpop.f32.mrf.mxu3  ;;  %v7030_v15 = vadd.f32 %v7029_v7, %v6941_v38  ;;  %v6943_v59 = vpop.f32.mrf.mxu1 }
 0xc05   :  { %v6944_v16 = vadd.f32 %v6943_v59, %v17139_v47 }
 0xc06   :  { %v17543_v55 = vadd.f32 %v7118_v52, %v7030_v15  ;;  %7893 = vmatmul.bf16.gmra.mxu0 %v20127_v51 }
 0xc07   :  { %6982 = vmatmul.bf16.gmra.mxu1 %v20124_v9 }
 0xc08   :  { %7071 = vmatmul.bf16.gmra.mxu2 %v20128_v4 }
 0xc09   :  { %7160 = vmatmul.bf16.gmra.mxu3 %v20025_v35  ;;  %v20129_v35 = vld [vmem:[#allocation67_spill] sm:$0xff] }
 0xc0b   :  { %v7032_v38 = vpop.f32.mrf.mxu2  ;;  %v17553_v47 = vpop.f32.mrf.mxu0 }
 0xc0c   :  { %v7121_v29 = vpop.f32.mrf.mxu3  ;;  %v7033_v7 = vadd.f32 %v7032_v38, %v6944_v16  ;;  %v6945_v10 = vpop.f32.mrf.mxu1  ;;  %v20130_v16 = vld [vmem:[#allocation120_spill] sm:$0xff]  ;;  %v20131_v38 = vld [vmem:[#allocation119_spill] sm:$0xff] }
 0xc0d   :  { %v6946_v52 = vadd.f32 %v6945_v10, %v17158_v6  ;;  %v20132_v14 = vpack.c.bf16 %v20130_v16, %v20131_v38  ;;  %v20133_v10 = vld [vmem:[#allocation65_spill] sm:$0xff]  ;;  %v20139_v6 = vld [vmem:[#allocation102_spill] sm:$0xff] }
 0xc0e   :  { %v17556_v15 = vadd.f32 %v7121_v29, %v7033_v7  ;;  %v11394_v29 = vld [vmem:[%s18631_s3 + $0x88] sm:$0xff] }
 0xc0f   :  { %8024 = vmatpush.bf16.msrb.mxu2 %v11394_v29 }
 0xc13   :  { %v7034_v59 = vpop.f32.mrf.mxu2  ;;  %v17558_v51 = vpop.f32.mrf.mxu0 }
 0xc14   :  { %v7123_v9 = vpop.f32.mrf.mxu3  ;;  %v7035_v54 = vadd.f32 %v7034_v59, %v6946_v52  ;;  %v6948_v58 = vpop.f32.mrf.mxu1 }
 0xc15   :  { %v6949_v4 = vadd.f32 %v6948_v58, %v17178_v33  ;;  %v11402_v33 = vld [vmem:[%s18631_s3 + $0xc8] sm:$0xff] }
 0xc16   :  { %v17561_v3 = vadd.f32 %v7123_v9, %v7035_v54  ;;  %7898 = vmatmul.bf16.gmra.mxu0 %v20132_v14  ;;  %8113 = vmatpush.bf16.msrb.mxu3 %v11402_v33 }
 0xc17   :  { %6987 = vmatmul.bf16.gmra.mxu1 %v20129_v35  ;;  %v11414_v35 = vld [vmem:[%s18631_s3 + $0x128] sm:$0xff] }
 0xc18   :  { %7076 = vmatmul.bf16.gmra.mxu2 %v20133_v10  ;;  %8198 = vmatpush.bf16.msrb.mxu0 %v11414_v35  ;;  %v20138_v35 = vld [vmem:[#allocation71_spill] sm:$0xff] }
 0xc19   :  { %7165 = vmatmul.bf16.gmra.mxu3 %v20031_v43  ;;  %v11386_v43 = vld [vmem:[%s18631_s3 + $0x48] sm:$0xff] }
 0xc1a   :  { %7935 = vmatpush.bf16.msrb.mxu1 %v11386_v43 }
 0xc1b   :  { %v7037_v7 = vpop.f32.mrf.mxu2  ;;  %v17577_v9 = vpop.f32.mrf.mxu0 }
 0xc1c   :  { %v7126_v52 = vpop.f32.mrf.mxu3  ;;  %v7038_v14 = vadd.f32 %v7037_v7, %v6949_v4  ;;  %v6950_v59 = vpop.f32.mrf.mxu1  ;;  %v20134_v7 = vld [vmem:[#allocation73_spill] sm:$0xff] }
 0xc1d   :  { %v6951_v54 = vadd.f32 %v6950_v59, %v17188_v48 }
 0xc1e   :  { %v17580_v58 = vadd.f32 %v7126_v52, %v7038_v14  ;;  %v20135_v52 = vld [vmem:[#allocation122_spill] sm:$0xff]  ;;  %v20136_v14 = vld [vmem:[#allocation121_spill] sm:$0xff] }
 0xc1f   :  { %v20137_v59 = vpack.c.bf16 %v20135_v52, %v20136_v14 }
 0xc23   :  { %v7039_v16 = vpop.f32.mrf.mxu2  ;;  %v17588_v29 = vpop.f32.mrf.mxu0 }
 0xc24   :  { %v7128_v38 = vpop.f32.mrf.mxu3  ;;  %v7040_v4 = vadd.f32 %v7039_v16, %v6951_v54  ;;  %v6953_v10 = vpop.f32.mrf.mxu1 }
 0xc25   :  { %v6954_v48 = vadd.f32 %v6953_v10, %v17196_v28 }
 0xc26   :  { %v17591_v33 = vadd.f32 %v7128_v38, %v7040_v4  ;;  %7903 = vmatmul.bf16.gmra.mxu0 %v20137_v59 }
 0xc27   :  { %6992 = vmatmul.bf16.gmra.mxu1 %v20134_v7 }
 0xc28   :  { %7081 = vmatmul.bf16.gmra.mxu2 %v20138_v35 }
 0xc29   :  { %7170 = vmatmul.bf16.gmra.mxu3 %v20139_v6  ;;  %v20140_v6 = vld [vmem:[#allocation77_spill] sm:$0xff] }
 0xc2b   :  { %v7042_v54 = vpop.f32.mrf.mxu2  ;;  %v17601_v28 = vpop.f32.mrf.mxu0 }
 0xc2c   :  { %v7131_v16 = vpop.f32.mrf.mxu3  ;;  %v7043_v57 = vadd.f32 %v7042_v54, %v6954_v48  ;;  %v6955_v2 = vpop.f32.mrf.mxu1  ;;  %v20141_v48 = vld [vmem:[#allocation124_spill] sm:$0xff]  ;;  %v20142_v54 = vld [vmem:[#allocation123_spill] sm:$0xff] }
 0xc2d   :  { %v6956_v38 = vadd.f32 %v6955_v2, %v17215_v12  ;;  %v20143_v18 = vpack.c.bf16 %v20141_v48, %v20142_v54  ;;  %v20144_v2 = vld [vmem:[#allocation75_spill] sm:$0xff]  ;;  %v20156_v12 = vld [vmem:[#allocation92_spill] sm:$0xff] }
 0xc2e   :  { %v17604_v4 = vadd.f32 %v7131_v16, %v7043_v57  ;;  %v11393_v57 = vld [vmem:[%s18631_s3 + $0x80] sm:$0xff] }
 0xc2f   :  { %8025 = vmatpush.bf16.msrb.mxu2 %v11393_v57 }
 0xc33   :  { %v7044_v10 = vpop.f32.mrf.mxu2  ;;  %v17606_v59 = vpop.f32.mrf.mxu0 }
 0xc34   :  { %v7133_v7 = vpop.f32.mrf.mxu3  ;;  %v7045_v52 = vadd.f32 %v7044_v10, %v6956_v38  ;;  %v6958_v14 = vpop.f32.mrf.mxu1 }
 0xc35   :  { %v6959_v35 = vadd.f32 %v6958_v14, %v17235_v17  ;;  %v11401_v17 = vld [vmem:[%s18631_s3 + $0xc0] sm:$0xff] }
 0xc36   :  { %v17609_v43 = vadd.f32 %v7133_v7, %v7045_v52  ;;  %7908 = vmatmul.bf16.gmra.mxu0 %v20143_v18  ;;  %8114 = vmatpush.bf16.msrb.mxu3 %v11401_v17 }
 0xc37   :  { %6997 = vmatmul.bf16.gmra.mxu1 %v20140_v6  ;;  %v11413_v6 = vld [vmem:[%s18631_s3 + $0x120] sm:$0xff] }
 0xc38   :  { %7086 = vmatmul.bf16.gmra.mxu2 %v20144_v2  ;;  %8199 = vmatpush.bf16.msrb.mxu0 %v11413_v6  ;;  %v20149_v6 = vld [vmem:[#allocation80_spill] sm:$0xff] }
 0xc39   :  { %7175 = vmatmul.bf16.gmra.mxu3 %v20043_v23  ;;  %v11385_v23 = vld [vmem:[%s18631_s3 + $0x40] sm:$0xff] }
 0xc3a   :  { %7936 = vmatpush.bf16.msrb.mxu1 %v11385_v23  ;;  %v11412_v23 = vld [vmem:[%s18631_s3 + $0x118] sm:$0xff] }
 0xc3b   :  { %v7047_v16 = vpop.f32.mrf.mxu2  ;;  %v17625_v7 = vpop.f32.mrf.mxu0 }
 0xc3c   :  { %v7136_v38 = vpop.f32.mrf.mxu3  ;;  %v7048_v18 = vadd.f32 %v7047_v16, %v6959_v35  ;;  %v6960_v10 = vpop.f32.mrf.mxu1  ;;  %v20145_v16 = vld [vmem:[#allocation82_spill] sm:$0xff]  ;;  %8200 = vmatpush.bf16.msrb.mxu0 %v11412_v23 }
 0xc3d   :  { %v6961_v52 = vadd.f32 %v6960_v10, %v17248_v21 }
 0xc3e   :  { %v17628_v14 = vadd.f32 %v7136_v38, %v7048_v18  ;;  %v20146_v38 = vld [vmem:[#allocation126_spill] sm:$0xff]  ;;  %v20147_v18 = vld [vmem:[#allocation125_spill] sm:$0xff] }
 0xc3f   :  { %v20148_v10 = vpack.c.bf16 %v20146_v38, %v20147_v18 }
 0xc43   :  { %v7049_v48 = vpop.f32.mrf.mxu2  ;;  %v17636_v57 = vpop.f32.mrf.mxu0 }
 0xc44   :  { %v7138_v54 = vpop.f32.mrf.mxu3  ;;  %v7050_v35 = vadd.f32 %v7049_v48, %v6961_v52  ;;  %v6963_v2 = vpop.f32.mrf.mxu1 }
 0xc45   :  { %v6964_v21 = vadd.f32 %v6963_v2, %v17262_v42 }
 0xc46   :  { %v17639_v17 = vadd.f32 %v7138_v54, %v7050_v35  ;;  %7913 = vmatmul.bf16.gmra.mxu0 %v20148_v10  ;;  %v11411_v54 = vld [vmem:[%s18631_s3 + $0x110] sm:$0xff] }
 0xc47   :  { %7002 = vmatmul.bf16.gmra.mxu1 %v20145_v16  ;;  %8201 = vmatpush.bf16.msrb.mxu0 %v11411_v54  ;;  %v20150_v54 = vld [vmem:[#allocation88_spill] sm:$0xff] }
 0xc48   :  { %7091 = vmatmul.bf16.gmra.mxu2 %v20149_v6  ;;  %v11409_v6 = vld [vmem:[%s18631_s3 + $0x100] sm:$0xff] }
 0xc49   :  { %7180 = vmatmul.bf16.gmra.mxu3 %v20047_v32  ;;  %v11410_v32 = vld [vmem:[%s18631_s3 + $0x108] sm:$0xff] }
 0xc4b   :  { %v7052_v42 = vpop.f32.mrf.mxu2  ;;  %v17655_v16 = vpop.f32.mrf.mxu0  ;;  %8202 = vmatpush.bf16.msrb.mxu0 %v11410_v32 }
 0xc4c   :  { %v7141_v48 = vpop.f32.mrf.mxu3  ;;  %v7053_v35 = vadd.f32 %v7052_v42, %v6964_v21  ;;  %v6965_v2 = vpop.f32.mrf.mxu1 }
 0xc4d   :  { %v6966_v38 = vadd.f32 %v6965_v2, %v17281_v20  ;;  %v20152_v2 = vld [vmem:[#allocation127_spill] sm:$0xff] }
 0xc4e   :  { %v17658_v18 = vadd.f32 %v7141_v48, %v7053_v35  ;;  %v20151_v35 = vld [vmem:[#allocation128_spill] sm:$0xff] }
 0xc4f   :  { %8203 = vmatpush.bf16.msrb.mxu0 %v11409_v6  ;;  %v20153_v32 = vpack.c.bf16 %v20151_v35, %v20152_v2 }
 0xc53   :  { %v7054_v10 = vpop.f32.mrf.mxu2  ;;  %v17666_v52 = vpop.f32.mrf.mxu0 }
 0xc54   :  { %v7143_v23 = vpop.f32.mrf.mxu3  ;;  %v7055_v21 = vadd.f32 %v7054_v10, %v6966_v38  ;;  %v6968_v42 = vpop.f32.mrf.mxu1  ;;  %v11440_v38 = vld [vmem:[%s18631_s3 + $0x1f8] sm:$0xff] }
 0xc55   :  { %v6969_v20 = vadd.f32 %v6968_v42, %v17292_v19  ;;  %v11432_v19 = vld [vmem:[%s18631_s3 + $0x1b8] sm:$0xff]  ;;  %8463 = vmatpush.bf16.msra.mxu3 %v11440_v38 }
 0xc56   :  { %v17669_v48 = vadd.f32 %v7143_v23, %v7055_v21  ;;  %7918 = vmatmul.bf16.gmra.mxu0 %v20153_v32  ;;  %8374 = vmatpush.bf16.msra.mxu2 %v11432_v19 }
 0xc57   :  { %7007 = vmatmul.bf16.gmra.mxu1 %v20150_v54 }
 0xc58   :  { %7096 = vmatmul.bf16.gmra.mxu2 %v20154_v45 }
 0xc59   :  { %7185 = vmatmul.bf16.gmra.mxu3 %v20051_v22  ;;  %v11424_v22 = vld [vmem:[%s18631_s3 + $0x178] sm:$0xff] }
 0xc5a   :  { %8285 = vmatpush.bf16.msra.mxu1 %v11424_v22  ;;  %v20160_v22 = vld [vmem:[#allocation90_spill] sm:$0xff] }
 0xc5b   :  { %v7057_v10 = vpop.f32.mrf.mxu2  ;;  %v17685_v42 = vpop.f32.mrf.mxu0 }
 0xc5c   :  { %v7146_v23 = vpop.f32.mrf.mxu3  ;;  %v7058_v6 = vadd.f32 %v7057_v10, %v6969_v20  ;;  %v6970_v21 = vpop.f32.mrf.mxu1 }
 0xc5d   :  { %v6971_v45 = vadd.f32 %v6970_v21, %v17302_v62  ;;  %v20157_v62 = vld [vmem:[#allocation130_spill] sm:$0xff] }
 0xc5e   :  { %v17688_v54 = vadd.f32 %v7146_v23, %v7058_v6  ;;  %v20158_v23 = vld [vmem:[#allocation129_spill] sm:$0xff] }
 0xc5f   :  { %v20159_v6 = vpack.c.bf16 %v20157_v62, %v20158_v23 }
 0xc60   :  { %20155 = vst [vmem:[#allocation57_spill] sm:$0xff] %v17688_v54 }
 0xc63   :  { %v7059_v35 = vpop.f32.mrf.mxu2  ;;  %v17693_v38 = vpop.f32.mrf.mxu0 }
 0xc64   :  { %v7148_v2 = vpop.f32.mrf.mxu3  ;;  %v7060_v32 = vadd.f32 %v7059_v35, %v6971_v45  ;;  %v6973_v19 = vpop.f32.mrf.mxu1 }
 0xc65   :  { %v6974_v20 = vadd.f32 %v6973_v19, %v17310_v56 }
 0xc66   :  { %v17696_v10 = vadd.f32 %v7148_v2, %v7060_v32  ;;  %7923 = vmatmul.bf16.gmra.mxu0 %v20159_v6 }
 0xc67   :  { %7012 = vmatmul.bf16.gmra.mxu1 %v20156_v12 }
 0xc68   :  { %7101 = vmatmul.bf16.gmra.mxu2 %v20160_v22 }
 0xc69   :  { %7190 = vmatmul.bf16.gmra.mxu3 %v20161_v36  ;;  %v20164_v36 = vld [vmem:[#allocation134_spill] sm:$0xff] }
 0xc6b   :  { %v7062_v45 = vpop.f32.mrf.mxu2  ;;  %v17706_v56 = vpop.f32.mrf.mxu0 }
 0xc6c   :  { %v7151_v35 = vpop.f32.mrf.mxu3  ;;  %v7063_v11 = vadd.f32 %v7062_v45, %v6974_v20  ;;  %v6975_v5 = vpop.f32.mrf.mxu1  ;;  %v20166_v20 = vpack.c.bf16 %v20164_v36, %v20165_v34  ;;  %v20167_v45 = vld [vmem:[#allocation203_spill] sm:$0xff]  ;;  %v11431_v34 = vld [vmem:[%s18631_s3 + $0x1b0] sm:$0xff] }
 0xc6d   :  { %v6976_v2 = vadd.f32 %v6975_v5, %v17328_v49  ;;  %v20169_v54 = vpack.c.bf16 %v20167_v45, %v20168_v26  ;;  %v20170_v5 = vld [vmem:[#allocation144_spill] sm:$0xff]  ;;  %8375 = vmatpush.bf16.msra.mxu2 %v11431_v34  ;;  %v20184_v49 = vld [vmem:[#allocation165_spill] sm:$0xff] }
 0xc6e   :  { %v17709_v12 = vadd.f32 %v7151_v35, %v7063_v11  ;;  %v20171_v11 = vld [vmem:[#allocation139_spill] sm:$0xff]  ;;  %v11439_v26 = vld [vmem:[%s18631_s3 + $0x1f0] sm:$0xff] }
 0xc6f   :  { %v20172_v35 = vpack.c.bf16 %v20170_v5, %v20171_v11  ;;  %8464 = vmatpush.bf16.msra.mxu3 %v11439_v26  ;;  %v11423_v5 = vld [vmem:[%s18631_s3 + $0x170] sm:$0xff] }
 0xc70   :  { %20162 = vst [vmem:[#allocation285_spill] sm:$0xff] %v17709_v12  ;;  %8286 = vmatpush.bf16.msra.mxu1 %v11423_v5  ;;  %v20178_v26 = vld [vmem:[#allocation136_spill] sm:$0xff]  ;;  %v20187_v12 = vld [vmem:[#allocation201_spill] sm:$0xff] }
 0xc73   :  { %v7064_v32 = vpop.f32.mrf.mxu2  ;;  %v17711_v6 = vpop.f32.mrf.mxu0 }
 0xc74   :  { %v7153_v19 = vpop.f32.mrf.mxu3  ;;  %v7065_v62 = vadd.f32 %v7064_v32, %v6976_v2  ;;  %v6978_v23 = vpop.f32.mrf.mxu1  ;;  %v20173_v2 = vld [vmem:[#allocation199_spill] sm:$0xff]  ;;  %v20174_v32 = vld [vmem:[#allocation149_spill] sm:$0xff] }
 0xc75   :  { %v6979_v22 = vadd.f32 %v6978_v23, %v17339_v13  ;;  %v20175_v13 = vpack.c.bf16 %v20173_v2, %v20174_v32 }
 0xc76   :  { %v17714_v21 = vadd.f32 %v7153_v19, %v7065_v62  ;;  %8204 = vmatmul.bf16.vlgmr.msrb.gmra.mxu0 %v20169_v54 }
 0xc77   :  { %7937 = vmatmul.bf16.vlgmr.msrb.gmra.mxu1 %v20166_v20 }
 0xc78   :  { %20163 = vst [vmem:[#allocation4_spill] sm:$0xff] %v17714_v21  ;;  %8026 = vmatmul.bf16.vlgmr.msrb.gmra.mxu2 %v20172_v35  ;;  %v20188_v21 = vld [vmem:[#allocation200_spill] sm:$0xff] }
 0xc79   :  { %8115 = vmatmul.bf16.vlgmr.msrb.gmra.mxu3 %v20175_v13 }
 0xc7b   :  { %v7067_v54 = vpop.f32.mrf.mxu2  ;;  %v17736_v36 = vpop.f32.mrf.mxu0 }
 0xc7c   :  { %v7156_v19 = vpop.f32.mrf.mxu3  ;;  %v7068_v62 = vadd.f32 %v7067_v54, %v6979_v22  ;;  %v6980_v23 = vpop.f32.mrf.mxu1  ;;  %v20179_v54 = vld [vmem:[#allocation135_spill] sm:$0xff] }
 0xc7d   :  { %v6981_v20 = vadd.f32 %v6980_v23, %v17351_v40  ;;  %v20180_v40 = vpack.c.bf16 %v20178_v26, %v20179_v54 }
 0xc7e   :  { %v17739_v45 = vadd.f32 %v7156_v19, %v7068_v62  ;;  %v20181_v19 = vld [vmem:[#allocation213_spill] sm:$0xff] }
 0xc7f   :  { %v20182_v62 = vld [vmem:[#allocation209_spill] sm:$0xff] }
 0xc80   :  { %20176 = vst [vmem:[#allocation54_spill] sm:$0xff] %v17739_v45  ;;  %v20183_v23 = vpack.c.bf16 %v20181_v19, %v20182_v62 }
 0xc83   :  { %v7069_v11 = vpop.f32.mrf.mxu2  ;;  %v17744_v13 = vpop.f32.mrf.mxu0 }
 0xc84   :  { %v7158_v35 = vpop.f32.mrf.mxu3  ;;  %v7070_v2 = vadd.f32 %v7069_v11, %v6981_v20  ;;  %v6983_v32 = vpop.f32.mrf.mxu1  ;;  %v20185_v20 = vld [vmem:[#allocation147_spill] sm:$0xff] }
 0xc85   :  { %v6984_v22 = vadd.f32 %v6983_v32, %v17359_v31  ;;  %v20186_v11 = vpack.c.bf16 %v20184_v49, %v20185_v20  ;;  %v20189_v31 = vpack.c.bf16 %v20187_v12, %v20188_v21  ;;  %v20192_v12 = vld [vmem:[#allocation140_spill] sm:$0xff] }
 0xc86   :  { %v17747_v34 = vadd.f32 %v7158_v35, %v7070_v2  ;;  %8209 = vmatmul.bf16.gmra.mxu0 %v20183_v23 }
 0xc87   :  { %7942 = vmatmul.bf16.gmra.mxu1 %v20180_v40 }
 0xc88   :  { %20177 = vst [vmem:[#allocation59_spill] sm:$0xff] %v17747_v34  ;;  %8031 = vmatmul.bf16.gmra.mxu2 %v20186_v11  ;;  %v20193_v11 = vld [vmem:[#allocation138_spill] sm:$0xff] }
 0xc89   :  { %8120 = vmatmul.bf16.gmra.mxu3 %v20189_v31  ;;  %v20195_v31 = vld [vmem:[#allocation231_spill] sm:$0xff] }
 0xc8b   :  { %v7072_v35 = vpop.f32.mrf.mxu2  ;;  %v17763_v54 = vpop.f32.mrf.mxu0 }
 0xc8c   :  { %v7161_v2 = vpop.f32.mrf.mxu3  ;;  %v7073_v32 = vadd.f32 %v7072_v35, %v6984_v22  ;;  %v6985_v26 = vpop.f32.mrf.mxu1  ;;  %v20194_v22 = vpack.c.bf16 %v20192_v12, %v20193_v11  ;;  %v20196_v35 = vld [vmem:[#allocation229_spill] sm:$0xff] }
 0xc8d   :  { %v6986_v40 = vadd.f32 %v6985_v26, %v17377_v63  ;;  %v20197_v34 = vpack.c.bf16 %v20195_v31, %v20196_v35  ;;  %v20212_v63 = vld [vmem:[#allocation173_spill] sm:$0xff] }
 0xc8e   :  { %v17766_v19 = vadd.f32 %v7161_v2, %v7073_v32  ;;  %v20198_v2 = vld [vmem:[#allocation169_spill] sm:$0xff]  ;;  %v20199_v32 = vld [vmem:[#allocation167_spill] sm:$0xff] }
 0xc8f   :  { %v20200_v26 = vpack.c.bf16 %v20198_v2, %v20199_v32  ;;  %v11422_v2 = vld [vmem:[%s18631_s3 + $0x168] sm:$0xff] }
 0xc90   :  { %20190 = vst [vmem:[#allocation62_spill] sm:$0xff] %v17766_v19  ;;  %8287 = vmatpush.bf16.msra.mxu1 %v11422_v2  ;;  %v20215_v19 = vld [vmem:[#allocation206_spill] sm:$0xff] }
 0xc93   :  { %v7074_v62 = vpop.f32.mrf.mxu2  ;;  %v17768_v49 = vpop.f32.mrf.mxu0 }
 0xc94   :  { %v7163_v23 = vpop.f32.mrf.mxu3  ;;  %v7075_v5 = vadd.f32 %v7074_v62, %v6986_v40  ;;  %v6988_v45 = vpop.f32.mrf.mxu1  ;;  %v20201_v40 = vld [vmem:[#allocation204_spill] sm:$0xff]  ;;  %v20202_v62 = vld [vmem:[#allocation131_spill] sm:$0xff] }
 0xc95   :  { %v6989_v20 = vadd.f32 %v6988_v45, %v17388_v53  ;;  %v20203_v53 = vpack.c.bf16 %v20201_v40, %v20202_v62  ;;  %v11430_v45 = vld [vmem:[%s18631_s3 + $0x1a8] sm:$0xff] }
 0xc96   :  { %v17771_v21 = vadd.f32 %v7163_v23, %v7075_v5  ;;  %8214 = vmatmul.bf16.gmra.mxu0 %v20197_v34  ;;  %v11438_v5 = vld [vmem:[%s18631_s3 + $0x1e8] sm:$0xff]  ;;  %8376 = vmatpush.bf16.msra.mxu2 %v11430_v45 }
 0xc97   :  { %7947 = vmatmul.bf16.gmra.mxu1 %v20194_v22  ;;  %8465 = vmatpush.bf16.msra.mxu3 %v11438_v5  ;;  %v20206_v5 = vld [vmem:[#allocation141_spill] sm:$0xff] }
 0xc98   :  { %20191 = vst [vmem:[#allocation8_spill] sm:$0xff] %v17771_v21  ;;  %8036 = vmatmul.bf16.gmra.mxu2 %v20200_v26  ;;  %v20216_v21 = vld [vmem:[#allocation205_spill] sm:$0xff] }
 0xc99   :  { %8125 = vmatmul.bf16.gmra.mxu3 %v20203_v53 }
 0xc9b   :  { %v7077_v34 = vpop.f32.mrf.mxu2  ;;  %v17793_v22 = vpop.f32.mrf.mxu0 }
 0xc9c   :  { %v7166_v23 = vpop.f32.mrf.mxu3  ;;  %v7078_v12 = vadd.f32 %v7077_v34, %v6989_v20  ;;  %v6990_v11 = vpop.f32.mrf.mxu1  ;;  %v20207_v34 = vld [vmem:[#allocation106_spill] sm:$0xff] }
 0xc9d   :  { %v6991_v31 = vadd.f32 %v6990_v11, %v17400_v50  ;;  %v20208_v50 = vpack.c.bf16 %v20206_v5, %v20207_v34 }
 0xc9e   :  { %v17796_v35 = vadd.f32 %v7166_v23, %v7078_v12  ;;  %v20209_v23 = vld [vmem:[#allocation237_spill] sm:$0xff] }
 0xc9f   :  { %v20210_v12 = vld [vmem:[#allocation233_spill] sm:$0xff] }
 0xca0   :  { %20204 = vst [vmem:[#allocation60_spill] sm:$0xff] %v17796_v35  ;;  %v20211_v11 = vpack.c.bf16 %v20209_v23, %v20210_v12 }
 0xca3   :  { %v7079_v32 = vpop.f32.mrf.mxu2  ;;  %v17801_v53 = vpop.f32.mrf.mxu0 }
 0xca4   :  { %v7168_v26 = vpop.f32.mrf.mxu3  ;;  %v7080_v40 = vadd.f32 %v7079_v32, %v6991_v31  ;;  %v6993_v62 = vpop.f32.mrf.mxu1  ;;  %v20213_v31 = vld [vmem:[#allocation171_spill] sm:$0xff] }
 0xca5   :  { %v6994_v20 = vadd.f32 %v6993_v62, %v17408_v8  ;;  %v20214_v32 = vpack.c.bf16 %v20212_v63, %v20213_v31  ;;  %v20217_v8 = vpack.c.bf16 %v20215_v19, %v20216_v21  ;;  %v20220_v21 = vld [vmem:[#allocation143_spill] sm:$0xff] }
 0xca6   :  { %v17804_v45 = vadd.f32 %v7168_v26, %v7080_v40  ;;  %8219 = vmatmul.bf16.gmra.mxu0 %v20211_v11 }
 0xca7   :  { %7952 = vmatmul.bf16.gmra.mxu1 %v20208_v50 }
 0xca8   :  { %20205 = vst [vmem:[#allocation100_spill] sm:$0xff] %v17804_v45  ;;  %8041 = vmatmul.bf16.gmra.mxu2 %v20214_v32  ;;  %v20221_v32 = vld [vmem:[#allocation142_spill] sm:$0xff] }
 0xca9   :  { %8130 = vmatmul.bf16.gmra.mxu3 %v20217_v8  ;;  %v20223_v8 = vld [vmem:[#allocation239_spill] sm:$0xff] }
 0xcab   :  { %v7082_v26 = vpop.f32.mrf.mxu2  ;;  %v17820_v34 = vpop.f32.mrf.mxu0 }
 0xcac   :  { %v7171_v40 = vpop.f32.mrf.mxu3  ;;  %v7083_v62 = vadd.f32 %v7082_v26, %v6994_v20  ;;  %v6995_v5 = vpop.f32.mrf.mxu1  ;;  %v20222_v20 = vpack.c.bf16 %v20220_v21, %v20221_v32  ;;  %v20224_v26 = vld [vmem:[#allocation238_spill] sm:$0xff] }
 0xcad   :  { %v6996_v50 = vadd.f32 %v6995_v5, %v17426_v44  ;;  %v20225_v45 = vpack.c.bf16 %v20223_v8, %v20224_v26  ;;  %v20240_v44 = vld [vmem:[#allocation177_spill] sm:$0xff] }
 0xcae   :  { %v17823_v23 = vadd.f32 %v7171_v40, %v7083_v62  ;;  %v20226_v40 = vld [vmem:[#allocation175_spill] sm:$0xff]  ;;  %v20227_v62 = vld [vmem:[#allocation174_spill] sm:$0xff] }
 0xcaf   :  { %v20228_v5 = vpack.c.bf16 %v20226_v40, %v20227_v62  ;;  %v11421_v40 = vld [vmem:[%s18631_s3 + $0x160] sm:$0xff] }
 0xcb0   :  { %20218 = vst [vmem:[#allocation66_spill] sm:$0xff] %v17823_v23  ;;  %8288 = vmatpush.bf16.msra.mxu1 %v11421_v40  ;;  %v20243_v23 = vld [vmem:[#allocation210_spill] sm:$0xff] }
 0xcb3   :  { %v7084_v12 = vpop.f32.mrf.mxu2  ;;  %v17825_v63 = vpop.f32.mrf.mxu0 }
 0xcb4   :  { %v7173_v11 = vpop.f32.mrf.mxu3  ;;  %v7085_v2 = vadd.f32 %v7084_v12, %v6996_v50  ;;  %v6998_v35 = vpop.f32.mrf.mxu1  ;;  %v20229_v50 = vld [vmem:[#allocation208_spill] sm:$0xff]  ;;  %v20230_v12 = vld [vmem:[#allocation207_spill] sm:$0xff] }
 0xcb5   :  { %v6999_v31 = vadd.f32 %v6998_v35, %v17437_v1  ;;  %v20231_v1 = vpack.c.bf16 %v20229_v50, %v20230_v12  ;;  %v11429_v35 = vld [vmem:[%s18631_s3 + $0x1a0] sm:$0xff] }
 0xcb6   :  { %v17828_v19 = vadd.f32 %v7173_v11, %v7085_v2  ;;  %8224 = vmatmul.bf16.gmra.mxu0 %v20225_v45  ;;  %v11437_v2 = vld [vmem:[%s18631_s3 + $0x1e0] sm:$0xff]  ;;  %8377 = vmatpush.bf16.msra.mxu2 %v11429_v35 }
 0xcb7   :  { %7957 = vmatmul.bf16.gmra.mxu1 %v20222_v20  ;;  %8466 = vmatpush.bf16.msra.mxu3 %v11437_v2  ;;  %v20234_v2 = vld [vmem:[#allocation146_spill] sm:$0xff] }
 0xcb8   :  { %20219 = vst [vmem:[#allocation12_spill] sm:$0xff] %v17828_v19  ;;  %8046 = vmatmul.bf16.gmra.mxu2 %v20228_v5  ;;  %v20244_v19 = vld [vmem:[#allocation179_spill] sm:$0xff] }
 0xcb9   :  { %8135 = vmatmul.bf16.gmra.mxu3 %v20231_v1 }
 0xcbb   :  { %v7087_v45 = vpop.f32.mrf.mxu2  ;;  %v17850_v20 = vpop.f32.mrf.mxu0 }
 0xcbc   :  { %v7176_v11 = vpop.f32.mrf.mxu3  ;;  %v7088_v21 = vadd.f32 %v7087_v45, %v6999_v31  ;;  %v7000_v32 = vpop.f32.mrf.mxu1  ;;  %v20235_v45 = vld [vmem:[#allocation145_spill] sm:$0xff] }
 0xcbd   :  { %v7001_v8 = vadd.f32 %v7000_v32, %v17449_v46  ;;  %v20236_v46 = vpack.c.bf16 %v20234_v2, %v20235_v45 }
 0xcbe   :  { %v17853_v26 = vadd.f32 %v7176_v11, %v7088_v21  ;;  %v20237_v11 = vld [vmem:[#allocation241_spill] sm:$0xff]  ;;  %v20238_v21 = vld [vmem:[#allocation240_spill] sm:$0xff] }
 0xcbf   :  { %v20239_v32 = vpack.c.bf16 %v20237_v11, %v20238_v21 }
 0xcc0   :  { %20232 = vst [vmem:[#allocation64_spill] sm:$0xff] %v17853_v26 }
 0xcc3   :  { %v7089_v62 = vpop.f32.mrf.mxu2  ;;  %v17858_v1 = vpop.f32.mrf.mxu0 }
 0xcc4   :  { %v7178_v5 = vpop.f32.mrf.mxu3  ;;  %v7090_v50 = vadd.f32 %v7089_v62, %v7001_v8  ;;  %v7003_v12 = vpop.f32.mrf.mxu1  ;;  %v20241_v8 = vld [vmem:[#allocation176_spill] sm:$0xff] }
 0xcc5   :  { %v7004_v31 = vadd.f32 %v7003_v12, %v17457_v61  ;;  %v20242_v62 = vpack.c.bf16 %v20240_v44, %v20241_v8  ;;  %v20245_v61 = vpack.c.bf16 %v20243_v23, %v20244_v19  ;;  %v20248_v19 = vld [vmem:[#allocation150_spill] sm:$0xff] }
 0xcc6   :  { %v17861_v35 = vadd.f32 %v7178_v5, %v7090_v50  ;;  %8229 = vmatmul.bf16.gmra.mxu0 %v20239_v32 }
 0xcc7   :  { %7962 = vmatmul.bf16.gmra.mxu1 %v20236_v46 }
 0xcc8   :  { %20233 = vst [vmem:[#allocation72_spill] sm:$0xff] %v17861_v35  ;;  %8051 = vmatmul.bf16.gmra.mxu2 %v20242_v62  ;;  %v20249_v62 = vld [vmem:[#allocation148_spill] sm:$0xff] }
 0xcc9   :  { %8140 = vmatmul.bf16.gmra.mxu3 %v20245_v61  ;;  %v20251_v61 = vld [vmem:[#allocation197_spill] sm:$0xff] }
 0xccb   :  { %v7092_v5 = vpop.f32.mrf.mxu2  ;;  %v17877_v45 = vpop.f32.mrf.mxu0 }
 0xccc   :  { %v7181_v50 = vpop.f32.mrf.mxu3  ;;  %v7093_v12 = vadd.f32 %v7092_v5, %v7004_v31  ;;  %v7005_v2 = vpop.f32.mrf.mxu1  ;;  %v20250_v31 = vpack.c.bf16 %v20248_v19, %v20249_v62  ;;  %v20252_v5 = vld [vmem:[#allocation242_spill] sm:$0xff] }
 0xccd   :  { %v7006_v46 = vadd.f32 %v7005_v2, %v17475_v0  ;;  %v20253_v35 = vpack.c.bf16 %v20251_v61, %v20252_v5 }
 0xcce   :  { %v17880_v11 = vadd.f32 %v7181_v50, %v7093_v12  ;;  %v20254_v50 = vld [vmem:[#allocation133_spill] sm:$0xff]  ;;  %v20255_v12 = vld [vmem:[#allocation178_spill] sm:$0xff] }
 0xccf   :  { %v20256_v2 = vpack.c.bf16 %v20254_v50, %v20255_v12  ;;  %v11420_v50 = vld [vmem:[%s18631_s3 + $0x158] sm:$0xff] }
 0xcd0   :  { %20246 = vst [vmem:[#allocation16_spill] sm:$0xff] %v17880_v11  ;;  %v8567_v12 = vld [vmem:[%s18633_s5 + $0x78] sm:$0xff]  ;;  %8289 = vmatpush.bf16.msra.mxu1 %v11420_v50  ;;  %v20271_v11 = vld [vmem:[#allocation216_spill] sm:$0xff]  ;;  %v20281_v50 = vld [vmem:[#allocation246_spill] sm:$0xff] }
 0xcd1   :  { %8572 = vmatpush.msra.mxu0 %v8567_v12  ;;  %v20268_v12 = vld [vmem:[#allocation181_spill] sm:$0xff] }
 0xcd3   :  { %v7094_v21 = vpop.f32.mrf.mxu2  ;;  %v17882_v44 = vpop.f32.mrf.mxu0 }
 0xcd4   :  { %v7183_v32 = vpop.f32.mrf.mxu3  ;;  %v7095_v40 = vadd.f32 %v7094_v21, %v7006_v46  ;;  %v7008_v26 = vpop.f32.mrf.mxu1  ;;  %v20257_v46 = vld [vmem:[#allocation214_spill] sm:$0xff]  ;;  %v20258_v21 = vld [vmem:[#allocation212_spill] sm:$0xff] }
 0xcd5   :  { %v7009_v8 = vadd.f32 %v7008_v26, %v17489_v37  ;;  %v20259_v37 = vpack.c.bf16 %v20257_v46, %v20258_v21  ;;  %v11428_v26 = vld [vmem:[%s18631_s3 + $0x198] sm:$0xff] }
 0xcd6   :  { %v17885_v23 = vadd.f32 %v7183_v32, %v7095_v40  ;;  %8234 = vmatmul.bf16.gmra.mxu0 %v20253_v35  ;;  %v11436_v40 = vld [vmem:[%s18631_s3 + $0x1d8] sm:$0xff]  ;;  %8378 = vmatpush.bf16.msra.mxu2 %v11428_v26 }
 0xcd7   :  { %7967 = vmatmul.bf16.gmra.mxu1 %v20250_v31  ;;  %8467 = vmatpush.bf16.msra.mxu3 %v11436_v40  ;;  %v20262_v40 = vld [vmem:[#allocation152_spill] sm:$0xff] }
 0xcd8   :  { %20247 = vst [vmem:[#allocation70_spill] sm:$0xff] %v17885_v23  ;;  %8056 = vmatmul.bf16.gmra.mxu2 %v20256_v2  ;;  %v20272_v23 = vld [vmem:[#allocation215_spill] sm:$0xff] }
 0xcd9   :  { %8145 = vmatmul.bf16.gmra.mxu3 %v20259_v37 }
 0xcdb   :  { %v7097_v35 = vpop.f32.mrf.mxu2  ;;  %v17907_v31 = vpop.f32.mrf.mxu0 }
 0xcdc   :  { %v7186_v32 = vpop.f32.mrf.mxu3  ;;  %v7098_v19 = vadd.f32 %v7097_v35, %v7009_v8  ;;  %v7010_v62 = vpop.f32.mrf.mxu1  ;;  %v20263_v35 = vld [vmem:[#allocation151_spill] sm:$0xff] }
 0xcdd   :  { %v7011_v61 = vadd.f32 %v7010_v62, %v17501_v24  ;;  %v20266_v62 = vld [vmem:[#allocation244_spill] sm:$0xff] }
 0xcde   :  { %v17910_v5 = vadd.f32 %v7186_v32, %v7098_v19  ;;  %v20264_v32 = vpack.c.bf16 %v20262_v40, %v20263_v35  ;;  %v20265_v19 = vld [vmem:[#allocation245_spill] sm:$0xff] }
 0xcdf   :  { %v20267_v0 = vpack.c.bf16 %v20265_v19, %v20266_v62  ;;  %v8566_v19 = vld [vmem:[%s18633_s5 + $0x70] sm:$0xff]  ;;  %v17948_v62 = vld [vmem:[%s18632_s4] ss:$0 sm:$0xff] }
 0xce0   :  { %20260 = vst [vmem:[#allocation105_spill] sm:$0xff] %v17910_v5  ;;  %8573 = vmatpush.msra.mxu0 %v8566_v19  ;;  %v20293_v19 = vld [vmem:[#allocation249_spill] sm:$0xff] }
 0xce3   :  { %v7099_v2 = vpop.f32.mrf.mxu2  ;;  %v17918_v37 = vpop.f32.mrf.mxu0 }
 0xce4   :  { %v7188_v46 = vpop.f32.mrf.mxu3  ;;  %v7100_v8 = vadd.f32 %v7099_v2, %v7011_v61  ;;  %v7013_v21 = vpop.f32.mrf.mxu1  ;;  %v20269_v61 = vld [vmem:[#allocation180_spill] sm:$0xff] }
 0xce5   :  { %v7014_v24 = vadd.f32 %v7013_v21, %v17509_v25  ;;  %v20270_v2 = vpack.c.bf16 %v20268_v12, %v20269_v61  ;;  %v20273_v25 = vpack.c.bf16 %v20271_v11, %v20272_v23  ;;  %v7850_v11 = vadd.f32 %v17948_v62, %v17512_v41  ;;  %v20283_v41 = vld [vmem:[#allocation183_spill] sm:$0xff] }
 0xce6   :  { %v17921_v26 = vadd.f32 %v7188_v46, %v7100_v8  ;;  %8239 = vmatmul.bf16.gmra.mxu0 %v20267_v0 }
 0xce7   :  { %7972 = vmatmul.bf16.gmra.mxu1 %v20264_v32 }
 0xce8   :  { %20261 = vst [vmem:[#allocation5_spill] sm:$0xff] %v17921_v26  ;;  %8061 = vmatmul.bf16.gmra.mxu2 %v20270_v2  ;;  %v20284_v26 = vld [vmem:[#allocation182_spill] sm:$0xff] }
 0xce9   :  { %8150 = vmatmul.bf16.gmra.mxu3 %v20273_v25 }
 0xceb   :  { %v7102_v46 = vpop.f32.mrf.mxu2  ;;  %v17937_v35 = vpop.f32.mrf.mxu0 }
 0xcec   :  { %v7191_v8 = vpop.f32.mrf.mxu3  ;;  %v7103_v21 = vadd.f32 %v7102_v46, %v7014_v24  ;;  %v7015_v40 = vpop.f32.mrf.mxu1  ;;  %20274 = vst [vmem:[#allocation107_spill] sm:$0xff] %v17937_v35  ;;  %v20277_v46 = vld [vmem:[#allocation154_spill] sm:$0xff]  ;;  %v20285_v35 = vpack.c.bf16 %v20283_v41, %v20284_v26  ;;  %v8565_v41 = vld [vmem:[%s18633_s5 + $0x68] sm:$0xff] }
 0xced   :  { %v7016_v32 = vadd.f32 %v7015_v40, %v17527_v27  ;;  %v20280_v40 = vld [vmem:[#allocation247_spill] sm:$0xff]  ;;  %8574 = vmatpush.msra.mxu0 %v8565_v41 }
 0xcee   :  { %v17940_v0 = vadd.f32 %v7191_v8, %v7103_v21  ;;  %v20278_v8 = vld [vmem:[#allocation153_spill] sm:$0xff]  ;;  %v20282_v5 = vpack.c.bf16 %v20280_v40, %v20281_v50  ;;  %v11435_v50 = vld [vmem:[%s18631_s3 + $0x1d0] sm:$0xff] }
 0xcef   :  { %v20279_v21 = vpack.c.bf16 %v20277_v46, %v20278_v8  ;;  %8468 = vmatpush.bf16.msra.mxu3 %v11435_v50  ;;  %v11419_v40 = vld [vmem:[%s18631_s3 + $0x150] sm:$0xff] }
 0xcf0   :  { %20275 = vst [vmem:[#allocation9_spill] sm:$0xff] %v17940_v0  ;;  %8290 = vmatpush.bf16.msra.mxu1 %v11419_v40  ;;  %v20294_v0 = vld [vmem:[#allocation248_spill] sm:$0xff] }
 0xcf1   :  { %v20295_v41 = vpack.c.bf16 %v20293_v19, %v20294_v0 }
 0xcf3   :  { %v7104_v23 = vpop.f32.mrf.mxu2  ;;  %v8205_v27 = vpop.f32.mrf.mxu0 }
 0xcf4   :  { %v7193_v24 = vpop.f32.mrf.mxu3  ;;  %v7105_v12 = vadd.f32 %v7104_v23, %v7016_v32  ;;  %v7938_v61 = vpop.f32.mrf.mxu1  ;;  %v20286_v32 = vld [vmem:[#allocation218_spill] sm:$0xff]  ;;  %v20287_v23 = vld [vmem:[#allocation217_spill] sm:$0xff] }
 0xcf5   :  { %v7939_v2 = vadd.f32 %v7938_v61, %v7850_v11  ;;  %v20288_v11 = vpack.c.bf16 %v20286_v32, %v20287_v23 }
 0xcf6   :  { %v17952_v25 = vadd.f32 %v7193_v24, %v7105_v12  ;;  %8244 = vmatmul.bf16.gmra.mxu0 %v20282_v5  ;;  %v11427_v24 = vld [vmem:[%s18631_s3 + $0x190] sm:$0xff]  ;;  %v7852_v5 = vadd.f32 %v17948_v62, %v17529_v60  ;;  %v7855_v60 = vadd.f32 %v17948_v62, %v17540_v30 }
 0xcf7   :  { %7977 = vmatmul.bf16.gmra.mxu1 %v20279_v21  ;;  %8379 = vmatpush.bf16.msra.mxu2 %v11427_v24  ;;  %v20299_v30 = vld [vmem:[#allocation220_spill] sm:$0xff] }
 0xcf8   :  { %20276 = vst [vmem:[#allocation109_spill] sm:$0xff] %v17952_v25  ;;  %8066 = vmatmul.bf16.gmra.mxu2 %v20285_v35  ;;  %v20300_v25 = vld [vmem:[#allocation219_spill] sm:$0xff] }
 0xcf9   :  { %8155 = vmatmul.bf16.gmra.mxu3 %v20288_v11 }
 0xcfb   :  { %v8027_v12 = vpop.f32.mrf.mxu2  ;;  %v8207_v46 = vpop.f32.mrf.mxu0 }
 0xcfc   :  { %v8116_v26 = vpop.f32.mrf.mxu3  ;;  %v8028_v35 = vadd.f32 %v8027_v12, %v7939_v2  ;;  %v7940_v61 = vpop.f32.mrf.mxu1 }
 0xcfd   :  { %v7941_v8 = vadd.f32 %v7940_v61, %v7852_v5 }
 0xcfe   :  { %v8117_v21 = vadd.f32 %v8116_v26, %v8028_v35  ;;  %v20290_v26 = vld [vmem:[#allocation156_spill] sm:$0xff]  ;;  %v20291_v35 = vld [vmem:[#allocation155_spill] sm:$0xff] }
 0xcff   :  { %v20292_v61 = vpack.c.bf16 %v20290_v26, %v20291_v35  ;;  %v8564_v35 = vld [vmem:[%s18633_s5 + $0x60] sm:$0xff] }
 0xd00   :  { %v17982_v32 = vadd.f32 %v8205_v27, %v8117_v21  ;;  %v20296_v27 = vld [vmem:[#allocation185_spill] sm:$0xff]  ;;  %v20297_v21 = vld [vmem:[#allocation184_spill] sm:$0xff]  ;;  %8575 = vmatpush.msra.mxu0 %v8564_v35 }
 0xd01   :  { %v20298_v40 = vpack.c.bf16 %v20296_v27, %v20297_v21  ;;  %v20302_v27 = vld [vmem:[#allocation158_spill] sm:$0xff]  ;;  %v20303_v21 = vld [vmem:[#allocation157_spill] sm:$0xff] }
 0xd02   :  { %20289 = vst [vmem:[#allocation87_spill] sm:$0xff] %v17982_v32  ;;  %v20301_v32 = vpack.c.bf16 %v20299_v30, %v20300_v25  ;;  %v7860_v25 = vadd.f32 %v17948_v62, %v17558_v51  ;;  %v20305_v30 = vld [vmem:[#allocation251_spill] sm:$0xff]  ;;  %v20311_v51 = vld [vmem:[#allocation222_spill] sm:$0xff] }
 0xd03   :  { %v8029_v2 = vpop.f32.mrf.mxu2  ;;  %v8210_v50 = vpop.f32.mrf.mxu0 }
 0xd04   :  { %v8118_v23 = vpop.f32.mrf.mxu3  ;;  %v8030_v11 = vadd.f32 %v8029_v2, %v7941_v8  ;;  %v7943_v24 = vpop.f32.mrf.mxu1 }
 0xd05   :  { %v7944_v5 = vadd.f32 %v7943_v24, %v7855_v60  ;;  %v7857_v60 = vadd.f32 %v17948_v62, %v17553_v47 }
 0xd06   :  { %v8119_v12 = vadd.f32 %v8118_v23, %v8030_v11  ;;  %8249 = vmatmul.bf16.gmra.mxu0 %v20295_v41 }
 0xd07   :  { %7982 = vmatmul.bf16.gmra.mxu1 %v20292_v61 }
 0xd08   :  { %8071 = vmatmul.bf16.gmra.mxu2 %v20298_v40  ;;  %v17998_v8 = vadd.f32 %v8207_v46, %v8119_v12  ;;  %v20304_v40 = vpack.c.bf16 %v20302_v27, %v20303_v21 }
 0xd09   :  { %8160 = vmatmul.bf16.gmra.mxu3 %v20301_v32 }
 0xd0b   :  { %v8032_v2 = vpop.f32.mrf.mxu2  ;;  %v8212_v19 = vpop.f32.mrf.mxu0 }
 0xd0c   :  { %v8121_v23 = vpop.f32.mrf.mxu3  ;;  %v8033_v11 = vadd.f32 %v8032_v2, %v7944_v5  ;;  %v7945_v24 = vpop.f32.mrf.mxu1 }
 0xd0d   :  { %v7946_v26 = vadd.f32 %v7945_v24, %v7857_v60  ;;  %v20306_v60 = vld [vmem:[#allocation250_spill] sm:$0xff] }
 0xd0e   :  { %v8122_v0 = vadd.f32 %v8121_v23, %v8033_v11  ;;  %v20307_v2 = vpack.c.bf16 %v20305_v30, %v20306_v60  ;;  %v20309_v11 = vld [vmem:[#allocation186_spill] sm:$0xff]  ;;  %v11418_v60 = vld [vmem:[%s18631_s3 + $0x148] sm:$0xff] }
 0xd0f   :  { %8291 = vmatpush.bf16.msra.mxu1 %v11418_v60 }
 0xd10   :  { %v18005_v61 = vadd.f32 %v8210_v50, %v8122_v0  ;;  %v20308_v50 = vld [vmem:[#allocation187_spill] sm:$0xff]  ;;  %v20312_v0 = vld [vmem:[#allocation221_spill] sm:$0xff] }
 0xd11   :  { %v20310_v24 = vpack.c.bf16 %v20308_v50, %v20309_v11  ;;  %v20313_v35 = vpack.c.bf16 %v20311_v51, %v20312_v0 }
 0xd13   :  { %v8034_v46 = vpop.f32.mrf.mxu2  ;;  %v8215_v23 = vpop.f32.mrf.mxu0 }
 0xd14   :  { %v8123_v32 = vpop.f32.mrf.mxu3  ;;  %v8035_v47 = vadd.f32 %v8034_v46, %v7946_v26  ;;  %v7948_v12 = vpop.f32.mrf.mxu1  ;;  %v11426_v26 = vld [vmem:[%s18631_s3 + $0x188] sm:$0xff] }
 0xd15   :  { %v7949_v41 = vadd.f32 %v7948_v12, %v7860_v25  ;;  %v11434_v25 = vld [vmem:[%s18631_s3 + $0x1c8] sm:$0xff]  ;;  %8380 = vmatpush.bf16.msra.mxu2 %v11426_v26 }
 0xd16   :  { %v8124_v5 = vadd.f32 %v8123_v32, %v8035_v47  ;;  %8254 = vmatmul.bf16.gmra.mxu0 %v20307_v2  ;;  %8469 = vmatpush.bf16.msra.mxu3 %v11434_v25  ;;  %v7862_v32 = vadd.f32 %v17948_v62, %v17577_v9  ;;  %v7865_v9 = vadd.f32 %v17948_v62, %v17588_v29  ;;  %v20315_v26 = vld [vmem:[#allocation159_spill] sm:$0xff] }
 0xd17   :  { %7987 = vmatmul.bf16.gmra.mxu1 %v20304_v40  ;;  %v20324_v29 = vld [vmem:[#allocation223_spill] sm:$0xff] }
 0xd18   :  { %8076 = vmatmul.bf16.gmra.mxu2 %v20310_v24  ;;  %v18027_v46 = vadd.f32 %v8212_v19, %v8124_v5  ;;  %v8563_v19 = vld [vmem:[%s18633_s5 + $0x58] sm:$0xff] }
 0xd19   :  { %8165 = vmatmul.bf16.gmra.mxu3 %v20313_v35  ;;  %8576 = vmatpush.msra.mxu0 %v8563_v19  ;;  %v20314_v35 = vld [vmem:[#allocation160_spill] sm:$0xff]  ;;  %v7867_v19 = vadd.f32 %v17948_v62, %v17601_v28 }
 0xd1a   :  { %v20316_v25 = vpack.c.bf16 %v20314_v35, %v20315_v26 }
 0xd1b   :  { %v8037_v47 = vpop.f32.mrf.mxu2  ;;  %v8217_v2 = vpop.f32.mrf.mxu0 }
 0xd1c   :  { %v8126_v12 = vpop.f32.mrf.mxu3  ;;  %v8038_v27 = vadd.f32 %v8037_v47, %v7949_v41  ;;  %v7950_v21 = vpop.f32.mrf.mxu1  ;;  %v20318_v47 = vld [vmem:[#allocation252_spill] sm:$0xff] }
 0xd1d   :  { %v7951_v40 = vadd.f32 %v7950_v21, %v7862_v32  ;;  %v20317_v32 = vld [vmem:[#allocation253_spill] sm:$0xff] }
 0xd1e   :  { %v8127_v30 = vadd.f32 %v8126_v12, %v8038_v27  ;;  %v20319_v12 = vpack.c.bf16 %v20317_v32, %v20318_v47  ;;  %v20321_v27 = vld [vmem:[#allocation188_spill] sm:$0xff] }
 0xd20   :  { %v18037_v5 = vadd.f32 %v8215_v23, %v8127_v30  ;;  %v20320_v23 = vld [vmem:[#allocation189_spill] sm:$0xff]  ;;  %v20323_v30 = vld [vmem:[#allocation224_spill] sm:$0xff] }
 0xd21   :  { %v20322_v21 = vpack.c.bf16 %v20320_v23, %v20321_v27  ;;  %v20325_v60 = vpack.c.bf16 %v20323_v30, %v20324_v29  ;;  %v20327_v30 = vld [vmem:[#allocation161_spill] sm:$0xff] }
 0xd23   :  { %v8039_v41 = vpop.f32.mrf.mxu2 }
 0xd24   :  { %v8128_v50 = vpop.f32.mrf.mxu3  ;;  %v8040_v11 = vadd.f32 %v8039_v41, %v7951_v40  ;;  %v7953_v24 = vpop.f32.mrf.mxu1 }
 0xd25   :  { %v7954_v51 = vadd.f32 %v7953_v24, %v7865_v9  ;;  %v8220_v24 = vpop.f32.mrf.mxu0 }
 0xd26   :  { %v8129_v0 = vadd.f32 %v8128_v50, %v8040_v11  ;;  %8259 = vmatmul.bf16.gmra.mxu0 %v20319_v12 }
 0xd27   :  { %7992 = vmatmul.bf16.gmra.mxu1 %v20316_v25  ;;  %v8562_v25 = vld [vmem:[%s18633_s5 + $0x50] sm:$0xff] }
 0xd28   :  { %8081 = vmatmul.bf16.gmra.mxu2 %v20322_v21  ;;  %v18053_v40 = vadd.f32 %v8217_v2, %v8129_v0  ;;  %8577 = vmatpush.msra.mxu0 %v8562_v25  ;;  %v7870_v2 = vadd.f32 %v17948_v62, %v17606_v59  ;;  %v20326_v21 = vld [vmem:[#allocation162_spill] sm:$0xff] }
 0xd29   :  { %8170 = vmatmul.bf16.gmra.mxu3 %v20325_v60  ;;  %v20328_v29 = vpack.c.bf16 %v20326_v21, %v20327_v30  ;;  %v20329_v60 = vld [vmem:[#allocation255_spill] sm:$0xff]  ;;  %v20335_v59 = vld [vmem:[#allocation226_spill] sm:$0xff] }
 0xd2a   :  { %v11433_v25 = vld [vmem:[%s18631_s3 + $0x1c0] sm:$0xff] }
 0xd2b   :  { %v8042_v9 = vpop.f32.mrf.mxu2  ;;  %8470 = vmatpush.bf16.msra.mxu3 %v11433_v25 }
 0xd2c   :  { %v8131_v41 = vpop.f32.mrf.mxu3  ;;  %v8043_v50 = vadd.f32 %v8042_v9, %v7954_v51  ;;  %v7955_v11 = vpop.f32.mrf.mxu1 }
 0xd2d   :  { %v7956_v35 = vadd.f32 %v7955_v11, %v7867_v19  ;;  %v8222_v27 = vpop.f32.mrf.mxu0  ;;  %v20330_v19 = vld [vmem:[#allocation254_spill] sm:$0xff] }
 0xd2e   :  { %v8132_v26 = vadd.f32 %v8131_v41, %v8043_v50  ;;  %v20331_v9 = vpack.c.bf16 %v20329_v60, %v20330_v19  ;;  %v20332_v41 = vld [vmem:[#allocation191_spill] sm:$0xff]  ;;  %v20333_v50 = vld [vmem:[#allocation190_spill] sm:$0xff] }
 0xd2f   :  { %v20334_v11 = vpack.c.bf16 %v20332_v41, %v20333_v50  ;;  %v11417_v60 = vld [vmem:[%s18631_s3 + $0x140] sm:$0xff] }
 0xd30   :  { %v18060_v32 = vadd.f32 %v8220_v24, %v8132_v26  ;;  %v20336_v24 = vld [vmem:[#allocation225_spill] sm:$0xff]  ;;  %8292 = vmatpush.bf16.msra.mxu1 %v11417_v60 }
 0xd31   :  { %v20337_v26 = vpack.c.bf16 %v20335_v59, %v20336_v24  ;;  %v20339_v59 = vld [vmem:[#allocation163_spill] sm:$0xff] }
 0xd33   :  { %v8044_v0 = vpop.f32.mrf.mxu2 }
 0xd34   :  { %v8133_v47 = vpop.f32.mrf.mxu3  ;;  %v8045_v28 = vadd.f32 %v8044_v0, %v7956_v35  ;;  %v7958_v12 = vpop.f32.mrf.mxu1  ;;  %v11425_v35 = vld [vmem:[%s18631_s3 + $0x180] sm:$0xff]  ;;  %v7872_v0 = vadd.f32 %v17948_v62, %v17625_v7  ;;  %v7875_v7 = vadd.f32 %v17948_v62, %v17636_v57  ;;  %v20347_v57 = vld [vmem:[#allocation228_spill] sm:$0xff] }
 0xd35   :  { %v7959_v23 = vadd.f32 %v7958_v12, %v7870_v2  ;;  %8381 = vmatpush.bf16.msra.mxu2 %v11425_v35  ;;  %v20342_v35 = vld [vmem:[#allocation256_spill] sm:$0xff] }
 0xd36   :  { %v8134_v51 = vadd.f32 %v8133_v47, %v8045_v28  ;;  %8264 = vmatmul.bf16.gmra.mxu0 %v20331_v9 }
 0xd37   :  { %7997 = vmatmul.bf16.gmra.mxu1 %v20328_v29 }
 0xd38   :  { %8086 = vmatmul.bf16.gmra.mxu2 %v20334_v11  ;;  %v18082_v2 = vadd.f32 %v8222_v27, %v8134_v51  ;;  %v8561_v51 = vld [vmem:[%s18633_s5 + $0x48] sm:$0xff]  ;;  %v20338_v11 = vld [vmem:[#allocation164_spill] sm:$0xff] }
 0xd39   :  { %8175 = vmatmul.bf16.gmra.mxu3 %v20337_v26  ;;  %8578 = vmatpush.msra.mxu0 %v8561_v51  ;;  %v20340_v24 = vpack.c.bf16 %v20338_v11, %v20339_v59  ;;  %v20341_v26 = vld [vmem:[#allocation257_spill] sm:$0xff]  ;;  %v7880_v11 = vadd.f32 %v17948_v62, %v17666_v52  ;;  %v20359_v52 = vld [vmem:[#allocation232_spill] sm:$0xff] }
 0xd3a   :  { %v20343_v25 = vpack.c.bf16 %v20341_v26, %v20342_v35 }
 0xd3b   :  { %v8047_v47 = vpop.f32.mrf.mxu2 }
 0xd3c   :  { %v8136_v28 = vpop.f32.mrf.mxu3  ;;  %v8048_v12 = vadd.f32 %v8047_v47, %v7959_v23  ;;  %v7960_v21 = vpop.f32.mrf.mxu1  ;;  %v20345_v47 = vld [vmem:[#allocation192_spill] sm:$0xff] }
 0xd3d   :  { %v7961_v30 = vadd.f32 %v7960_v21, %v7872_v0  ;;  %v20344_v0 = vld [vmem:[#allocation193_spill] sm:$0xff] }
 0xd3e   :  { %v18086_v29 = vadd.f32 %v8136_v28, %v8048_v12  ;;  %v20346_v28 = vpack.c.bf16 %v20344_v0, %v20345_v47  ;;  %v20348_v12 = vld [vmem:[#allocation227_spill] sm:$0xff]  ;;  %v20351_v0 = vld [vmem:[#allocation166_spill] sm:$0xff] }
 0xd3f   :  { %v20349_v21 = vpack.c.bf16 %v20347_v57, %v20348_v12  ;;  %v20354_v57 = vld [vmem:[#allocation198_spill] sm:$0xff] }
 0xd43   :  { %v8049_v27 = vpop.f32.mrf.mxu2 }
 0xd44   :  { %v8138_v19 = vpop.f32.mrf.mxu3  ;;  %v8050_v23 = vadd.f32 %v8049_v27, %v7961_v30  ;;  %v7963_v9 = vpop.f32.mrf.mxu1  ;;  %v7877_v30 = vadd.f32 %v17948_v62, %v17655_v16 }
 0xd45   :  { %v7964_v41 = vadd.f32 %v7963_v9, %v7875_v7  ;;  %v8560_v9 = vld [vmem:[%s18633_s5 + $0x40] sm:$0xff] }
 0xd46   :  { %v18096_v50 = vadd.f32 %v8138_v19, %v8050_v23  ;;  %8269 = vmatmul.bf16.gmra.mxu0 %v20343_v25 }
 0xd47   :  { %8002 = vmatmul.bf16.gmra.mxu1 %v20340_v24  ;;  %8579 = vmatpush.msra.mxu0 %v8560_v9 }
 0xd48   :  { %8091 = vmatmul.bf16.gmra.mxu2 %v20346_v28  ;;  %v20353_v28 = vld [vmem:[#allocation258_spill] sm:$0xff] }
 0xd49   :  { %8180 = vmatmul.bf16.gmra.mxu3 %v20349_v21  ;;  %v20355_v12 = vpack.c.bf16 %v20353_v28, %v20354_v57  ;;  %v20356_v21 = vld [vmem:[#allocation194_spill] sm:$0xff] }
 0xd4b   :  { %v8052_v60 = vpop.f32.mrf.mxu2 }
 0xd4c   :  { %v8141_v51 = vpop.f32.mrf.mxu3  ;;  %v8053_v7 = vadd.f32 %v8052_v60, %v7964_v41  ;;  %v7965_v27 = vpop.f32.mrf.mxu1  ;;  %v20350_v41 = vld [vmem:[#allocation168_spill] sm:$0xff] }
 0xd4d   :  { %v7966_v19 = vadd.f32 %v7965_v27, %v7877_v30  ;;  %v20352_v47 = vpack.c.bf16 %v20350_v41, %v20351_v0  ;;  %v20357_v30 = vld [vmem:[#allocation137_spill] sm:$0xff]  ;;  %v7882_v27 = vadd.f32 %v17948_v62, %v17685_v42  ;;  %v7885_v41 = vadd.f32 %v17948_v62, %v17693_v38  ;;  %v20371_v38 = vld [vmem:[#allocation236_spill] sm:$0xff] }
 0xd4e   :  { %v18112_v23 = vadd.f32 %v8141_v51, %v8053_v7  ;;  %v20358_v60 = vpack.c.bf16 %v20356_v21, %v20357_v30  ;;  %v20360_v51 = vld [vmem:[#allocation230_spill] sm:$0xff] }
 0xd4f   :  { %v20361_v7 = vpack.c.bf16 %v20359_v52, %v20360_v51  ;;  %v20363_v21 = vld [vmem:[#allocation170_spill] sm:$0xff]  ;;  %v20366_v52 = vld [vmem:[#allocation259_spill] sm:$0xff] }
 0xd53   :  { %v8054_v59 = vpop.f32.mrf.mxu2 }
 0xd54   :  { %v8143_v24 = vpop.f32.mrf.mxu3  ;;  %v8055_v26 = vadd.f32 %v8054_v59, %v7966_v19  ;;  %v7968_v35 = vpop.f32.mrf.mxu1 }
 0xd55   :  { %v7969_v16 = vadd.f32 %v7968_v35, %v7880_v11  ;;  %v8559_v35 = vld [vmem:[%s18633_s5 + $0x38] sm:$0xff] }
 0xd56   :  { %v18119_v25 = vadd.f32 %v8143_v24, %v8055_v26  ;;  %8274 = vmatmul.bf16.gmra.mxu0 %v20355_v12 }
 0xd57   :  { %8007 = vmatmul.bf16.gmra.mxu1 %v20352_v47  ;;  %8580 = vmatpush.msra.mxu0 %v8559_v35 }
 0xd58   :  { %8096 = vmatmul.bf16.gmra.mxu2 %v20358_v60  ;;  %v20365_v60 = vld [vmem:[#allocation260_spill] sm:$0xff] }
 0xd59   :  { %8185 = vmatmul.bf16.gmra.mxu3 %v20361_v7  ;;  %v20367_v51 = vpack.c.bf16 %v20365_v60, %v20366_v52  ;;  %v20368_v7 = vld [vmem:[#allocation196_spill] sm:$0xff] }
 0xd5b   :  { %v8057_v19 = vpop.f32.mrf.mxu2 }
 0xd5c   :  { %v8146_v9 = vpop.f32.mrf.mxu3  ;;  %v8058_v11 = vadd.f32 %v8057_v19, %v7969_v16  ;;  %v7970_v59 = vpop.f32.mrf.mxu1  ;;  %v20362_v16 = vld [vmem:[#allocation172_spill] sm:$0xff] }
 0xd5d   :  { %v7971_v24 = vadd.f32 %v7970_v59, %v7882_v27  ;;  %v20364_v30 = vpack.c.bf16 %v20362_v16, %v20363_v21  ;;  %v20369_v27 = vld [vmem:[#allocation195_spill] sm:$0xff]  ;;  %v7887_v59 = vadd.f32 %v17948_v62, %v17706_v56  ;;  %v7890_v16 = vadd.f32 %v17948_v62, %v17711_v6 }
 0xd5e   :  { %v18135_v26 = vadd.f32 %v8146_v9, %v8058_v11  ;;  %v20370_v19 = vpack.c.bf16 %v20368_v7, %v20369_v27  ;;  %v20372_v9 = vld [vmem:[#allocation234_spill] sm:$0xff]  ;;  %v20375_v7 = vld [vmem:[#allocation211_spill] sm:$0xff]  ;;  %v7892_v6 = vadd.f32 %v17948_v62, %v17736_v36 }
 0xd5f   :  { %v20373_v11 = vpack.c.bf16 %v20371_v38, %v20372_v9  ;;  %v20378_v38 = vld [vmem:[#allocation265_spill] sm:$0xff] }
 0xd63   :  { %v8059_v0 = vpop.f32.mrf.mxu2 }
 0xd64   :  { %v8148_v47 = vpop.f32.mrf.mxu3  ;;  %v8060_v28 = vadd.f32 %v8059_v0, %v7971_v24  ;;  %v7973_v57 = vpop.f32.mrf.mxu1 }
 0xd65   :  { %v7974_v42 = vadd.f32 %v7973_v57, %v7885_v41  ;;  %v8558_v57 = vld [vmem:[%s18633_s5 + $0x30] sm:$0xff] }
 0xd66   :  { %v18142_v12 = vadd.f32 %v8148_v47, %v8060_v28  ;;  %8279 = vmatmul.bf16.gmra.mxu0 %v20367_v51 }
 0xd67   :  { %8012 = vmatmul.bf16.gmra.mxu1 %v20364_v30  ;;  %8581 = vmatpush.msra.mxu0 %v8558_v57  ;;  %v8557_v57 = vld [vmem:[%s18633_s5 + $0x28] sm:$0xff] }
 0xd68   :  { %8101 = vmatmul.bf16.gmra.mxu2 %v20370_v19  ;;  %v20377_v19 = vld [vmem:[#allocation266_spill] sm:$0xff] }
 0xd69   :  { %8190 = vmatmul.bf16.gmra.mxu3 %v20373_v11  ;;  %v20379_v9 = vpack.c.bf16 %v20377_v19, %v20378_v38  ;;  %v20380_v11 = vpack.c.bf16 %v17543_v55, %v17532_v39  ;;  %8582 = vmatpush.msra.mxu0 %v8557_v57  ;;  %v20387_v38 = vpack.c.bf16 %v17561_v3, %v17556_v15 }
 0xd6a   :  { %v7900_v3 = vadd.f32 %v17948_v62, %v17768_v49  ;;  %v20394_v49 = vpack.c.bf16 %v17591_v33, %v17580_v58  ;;  %v7905_v58 = vadd.f32 %v17948_v62, %v17801_v53  ;;  %v7907_v53 = vadd.f32 %v17948_v62, %v17820_v34 }
 0xd6b   :  { %v8062_v24 = vpop.f32.mrf.mxu2 }
 0xd6c   :  { %v8151_v35 = vpop.f32.mrf.mxu3  ;;  %v8063_v41 = vadd.f32 %v8062_v24, %v7974_v42  ;;  %v7975_v0 = vpop.f32.mrf.mxu1  ;;  %v20374_v42 = vld [vmem:[#allocation262_spill] sm:$0xff] }
 0xd6d   :  { %v7976_v47 = vadd.f32 %v7975_v0, %v7887_v59  ;;  %v20376_v27 = vpack.c.bf16 %v20374_v42, %v20375_v7  ;;  %v20384_v7 = vld [vmem:[#allocation76_spill] sm:$0xff] }
 0xd6e   :  { %v18158_v28 = vadd.f32 %v8151_v35, %v8063_v41 }
 0xd73   :  { %v8064_v21 = vpop.f32.mrf.mxu2 }
 0xd74   :  { %v8153_v30 = vpop.f32.mrf.mxu3  ;;  %v8065_v60 = vadd.f32 %v8064_v21, %v7976_v47  ;;  %v7978_v52 = vpop.f32.mrf.mxu1 }
 0xd75   :  { %v7979_v56 = vadd.f32 %v7978_v52, %v7890_v16  ;;  %v7895_v16 = vadd.f32 %v17948_v62, %v17744_v13  ;;  %v20381_v52 = vld [vmem:[#allocation264_spill] sm:$0xff]  ;;  %v7897_v13 = vadd.f32 %v17948_v62, %v17763_v54 }
 0xd76   :  { %v18165_v51 = vadd.f32 %v8153_v30, %v8065_v60 }
 0xd77   :  { %8293 = vmatmul.bf16.vlgmr.msra.gmra.mxu1 %v20376_v27  ;;  %v20385_v27 = vld [vmem:[#allocation74_spill] sm:$0xff] }
 0xd78   :  { %8382 = vmatmul.bf16.vlgmr.msra.gmra.mxu2 %v20379_v9  ;;  %v20386_v19 = vpack.c.bf16 %v20384_v7, %v20385_v27  ;;  %v7902_v27 = vadd.f32 %v17948_v62, %v17793_v22 }
 0xd79   :  { %8471 = vmatmul.bf16.vlgmr.msra.gmra.mxu3 %v20380_v11 }
 0xd7b   :  { %v8067_v59 = vpop.f32.mrf.mxu2 }
 0xd7c   :  { %v8156_v24 = vpop.f32.mrf.mxu3  ;;  %v8068_v35 = vadd.f32 %v8067_v59, %v7979_v56  ;;  %v7980_v41 = vpop.f32.mrf.mxu1  ;;  %v20382_v56 = vld [vmem:[#allocation263_spill] sm:$0xff] }
 0xd7d   :  { %v7981_v0 = vadd.f32 %v7980_v41, %v7892_v6  ;;  %v20383_v42 = vpack.c.bf16 %v20381_v52, %v20382_v56  ;;  %v20391_v56 = vld [vmem:[#allocation81_spill] sm:$0xff] }
 0xd7e   :  { %v18178_v47 = vadd.f32 %v8156_v24, %v8068_v35  ;;  %v18198_v35 = vpop.f32.mrf.mxu0 }
 0xd83   :  { %v8069_v39 = vpop.f32.mrf.mxu2 }
 0xd84   :  { %v8158_v55 = vpop.f32.mrf.mxu3  ;;  %v8070_v21 = vadd.f32 %v8069_v39, %v7981_v0  ;;  %v7983_v30 = vpop.f32.mrf.mxu1  ;;  %v8556_v0 = vld [vmem:[%s18633_s5 + $0x20] sm:$0xff] }
 0xd85   :  { %v7984_v36 = vadd.f32 %v7983_v30, %v7895_v16  ;;  %8583 = vmatpush.msra.mxu0 %v8556_v0  ;;  %v20389_v30 = vld [vmem:[#allocation235_spill] sm:$0xff] }
 0xd86   :  { %v18185_v60 = vadd.f32 %v8158_v55, %v8070_v21  ;;  %v20388_v21 = vld [vmem:[#allocation267_spill] sm:$0xff]  ;;  %v18212_v52 = vpop.f32.mrf.mxu0 }
 0xd87   :  { %8298 = vmatmul.bf16.gmra.mxu1 %v20383_v42  ;;  %v20392_v42 = vld [vmem:[#allocation79_spill] sm:$0xff] }
 0xd88   :  { %8387 = vmatmul.bf16.gmra.mxu2 %v20386_v19  ;;  %v20393_v7 = vpack.c.bf16 %v20391_v56, %v20392_v42  ;;  %v20401_v56 = vpack.c.bf16 %v17609_v43, %v17604_v4  ;;  %v7910_v43 = vadd.f32 %v17948_v62, %v17825_v63  ;;  %v20408_v63 = vpack.c.bf16 %v17639_v17, %v17628_v14 }
 0xd89   :  { %8476 = vmatmul.bf16.gmra.mxu3 %v20387_v38  ;;  %v7915_v14 = vadd.f32 %v17948_v62, %v17858_v1 }
 0xd8b   :  { %v8072_v9 = vpop.f32.mrf.mxu2 }
 0xd8c   :  { %v8161_v11 = vpop.f32.mrf.mxu3  ;;  %v8073_v6 = vadd.f32 %v8072_v9, %v7984_v36  ;;  %v7985_v59 = vpop.f32.mrf.mxu1  ;;  %v20390_v36 = vpack.c.bf16 %v20388_v21, %v20389_v30  ;;  %v20398_v21 = vld [vmem:[#allocation274_spill] sm:$0xff]  ;;  %v20399_v30 = vld [vmem:[#allocation272_spill] sm:$0xff] }
 0xd8d   :  { %v7986_v24 = vadd.f32 %v7985_v59, %v7897_v13  ;;  %v8555_v59 = vld [vmem:[%s18633_s5 + $0x18] sm:$0xff] }
 0xd8e   :  { %v18200_v41 = vadd.f32 %v8161_v11, %v8073_v6  ;;  %8584 = vmatpush.msra.mxu0 %v8555_v59 }
 0xd93   :  { %v8074_v15 = vpop.f32.mrf.mxu2 }
 0xd94   :  { %v8163_v57 = vpop.f32.mrf.mxu3  ;;  %v8075_v54 = vadd.f32 %v8074_v15, %v7986_v24  ;;  %v7988_v16 = vpop.f32.mrf.mxu1 }
 0xd95   :  { %v7989_v39 = vadd.f32 %v7988_v16, %v7900_v3  ;;  %v18227_v24 = vpop.f32.mrf.mxu0  ;;  %v20396_v16 = vld [vmem:[#allocation268_spill] sm:$0xff] }
 0xd96   :  { %v18207_v55 = vadd.f32 %v8163_v57, %v8075_v54  ;;  %v20395_v54 = vld [vmem:[#allocation269_spill] sm:$0xff] }
 0xd97   :  { %8303 = vmatmul.bf16.gmra.mxu1 %v20390_v36  ;;  %v20400_v36 = vpack.c.bf16 %v20398_v21, %v20399_v30  ;;  %v7912_v21 = vadd.f32 %v17948_v62, %v17850_v20 }
 0xd98   :  { %8392 = vmatmul.bf16.gmra.mxu2 %v20393_v7 }
 0xd99   :  { %8481 = vmatmul.bf16.gmra.mxu3 %v20394_v49 }
 0xd9b   :  { %v8077_v19 = vpop.f32.mrf.mxu2 }
 0xd9c   :  { %v8166_v38 = vpop.f32.mrf.mxu3  ;;  %v8078_v13 = vadd.f32 %v8077_v19, %v7989_v39  ;;  %v7990_v9 = vpop.f32.mrf.mxu1  ;;  %v20397_v39 = vpack.c.bf16 %v20395_v54, %v20396_v16  ;;  %v20405_v54 = vld [vmem:[#allocation93_spill] sm:$0xff]  ;;  %v20406_v16 = vld [vmem:[#allocation276_spill] sm:$0xff] }
 0xd9d   :  { %v7991_v11 = vadd.f32 %v7990_v9, %v7902_v27  ;;  %v18244_v49 = vpop.f32.mrf.mxu0  ;;  %v8554_v9 = vld [vmem:[%s18633_s5 + $0x10] sm:$0xff] }
 0xd9e   :  { %v18222_v6 = vadd.f32 %v8166_v38, %v8078_v13  ;;  %8585 = vmatpush.msra.mxu0 %v8554_v9 }
 0xda3   :  { %v8079_v33 = vpop.f32.mrf.mxu2 }
 0xda4   :  { %v8168_v0 = vpop.f32.mrf.mxu3  ;;  %v8080_v22 = vadd.f32 %v8079_v33, %v7991_v11  ;;  %v7993_v3 = vpop.f32.mrf.mxu1 }
 0xda5   :  { %v7994_v15 = vadd.f32 %v7993_v3, %v7905_v58  ;;  %v18253_v33 = vpop.f32.mrf.mxu0  ;;  %v20403_v3 = vld [vmem:[#allocation270_spill] sm:$0xff] }
 0xda6   :  { %v18231_v57 = vadd.f32 %v8168_v0, %v8080_v22  ;;  %v20402_v22 = vld [vmem:[#allocation271_spill] sm:$0xff] }
 0xda7   :  { %8308 = vmatmul.bf16.gmra.mxu1 %v20397_v39  ;;  %v20407_v39 = vpack.c.bf16 %v20405_v54, %v20406_v16  ;;  %v7917_v54 = vadd.f32 %v17948_v62, %v17877_v45 }
 0xda8   :  { %8397 = vmatmul.bf16.gmra.mxu2 %v20400_v36 }
 0xda9   :  { %8486 = vmatmul.bf16.gmra.mxu3 %v20401_v56 }
 0xdab   :  { %v8082_v42 = vpop.f32.mrf.mxu2 }
 0xdac   :  { %v8171_v7 = vpop.f32.mrf.mxu3  ;;  %v8083_v27 = vadd.f32 %v8082_v42, %v7994_v15  ;;  %v7995_v19 = vpop.f32.mrf.mxu1  ;;  %v20404_v15 = vpack.c.bf16 %v20402_v22, %v20403_v3  ;;  %v20413_v22 = vld [vmem:[#allocation2_spill] sm:$0xff] }
 0xdad   :  { %v7996_v38 = vadd.f32 %v7995_v19, %v7907_v53  ;;  %v18273_v19 = vpop.f32.mrf.mxu0 }
 0xdae   :  { %v18246_v13 = vadd.f32 %v8171_v7, %v8083_v27  ;;  %v8553_v27 = vld [vmem:[%s18633_s5 + $0x8] sm:$0xff] }
 0xdaf   :  { %8586 = vmatpush.msra.mxu0 %v8553_v27 }
 0xdb3   :  { %v8084_v4 = vpop.f32.mrf.mxu2 }
 0xdb4   :  { %v8173_v11 = vpop.f32.mrf.mxu3  ;;  %v8085_v34 = vadd.f32 %v8084_v4, %v7996_v38  ;;  %v7998_v59 = vpop.f32.mrf.mxu1 }
 0xdb5   :  { %v7999_v58 = vadd.f32 %v7998_v59, %v7910_v43  ;;  %v18288_v1 = vpop.f32.mrf.mxu0 }
 0xdb6   :  { %v18255_v0 = vadd.f32 %v8173_v11, %v8085_v34  ;;  %v20409_v11 = vld [vmem:[#allocation273_spill] sm:$0xff]  ;;  %v20410_v34 = vld [vmem:[#allocation243_spill] sm:$0xff] }
 0xdb7   :  { %8313 = vmatmul.bf16.gmra.mxu1 %v20404_v15  ;;  %v20411_v59 = vpack.c.bf16 %v20409_v11, %v20410_v34  ;;  %v20415_v15 = vpack.c.bf16 %v17669_v48, %v17658_v18  ;;  %v7920_v18 = vadd.f32 %v17948_v62, %v17882_v44  ;;  %v20420_v11 = vld [vmem:[#allocation6_spill] sm:$0xff] }
 0xdb8   :  { %8402 = vmatmul.bf16.gmra.mxu2 %v20407_v39 }
 0xdb9   :  { %8491 = vmatmul.bf16.gmra.mxu3 %v20408_v63 }
 0xdbb   :  { %v8087_v30 = vpop.f32.mrf.mxu2 }
 0xdbc   :  { %v8176_v36 = vpop.f32.mrf.mxu3  ;;  %v8088_v56 = vadd.f32 %v8087_v30, %v7999_v58  ;;  %v8000_v53 = vpop.f32.mrf.mxu1  ;;  %v20412_v58 = vld [vmem:[#allocation94_spill] sm:$0xff] }
 0xdbd   :  { %v8001_v42 = vadd.f32 %v8000_v53, %v7912_v21  ;;  %v20414_v3 = vpack.c.bf16 %v20412_v58, %v20413_v22  ;;  %v7922_v58 = vadd.f32 %v17948_v62, %v17907_v31  ;;  %v20424_v31 = vld [vmem:[#allocation279_spill] sm:$0xff] }
 0xdbe   :  { %v18268_v7 = vadd.f32 %v8176_v36, %v8088_v56  ;;  %v8552_v56 = vld [vmem:[%s18633_s5] sm:$0xff] }
 0xdbf   :  { %8587 = vmatpush.msra.mxu0 %v8552_v56 }
 0xdc3   :  { %v8089_v17 = vpop.f32.mrf.mxu2 }
 0xdc4   :  { %v8178_v38 = vpop.f32.mrf.mxu3  ;;  %v8090_v20 = vadd.f32 %v8089_v17, %v8001_v42  ;;  %v8003_v9 = vpop.f32.mrf.mxu1 }
 0xdc5   :  { %v8004_v43 = vadd.f32 %v8003_v9, %v7915_v14  ;;  %v18299_v42 = vpop.f32.mrf.mxu0 }
 0xdc6   :  { %v18277_v4 = vadd.f32 %v8178_v38, %v8090_v20  ;;  %v20416_v38 = vld [vmem:[#allocation277_spill] sm:$0xff]  ;;  %v20417_v20 = vld [vmem:[#allocation275_spill] sm:$0xff] }
 0xdc7   :  { %8318 = vmatmul.bf16.gmra.mxu1 %v20411_v59  ;;  %v20418_v9 = vpack.c.bf16 %v20416_v38, %v20417_v20  ;;  %v20422_v59 = vld [vmem:[#allocation57_spill] sm:$0xff]  ;;  %v20427_v38 = vld [vmem:[#allocation96_spill] sm:$0xff]  ;;  %v20428_v20 = vld [vmem:[#allocation10_spill] sm:$0xff] }
 0xdc8   :  { %8407 = vmatmul.bf16.gmra.mxu2 %v20414_v3  ;;  %v20423_v44 = vpack.c.bf16 %v17696_v10, %v20422_v59 }
 0xdc9   :  { %8496 = vmatmul.bf16.gmra.mxu3 %v20415_v15 }
 0xdcb   :  { %v8092_v16 = vpop.f32.mrf.mxu2 }
 0xdcc   :  { %v8181_v39 = vpop.f32.mrf.mxu3  ;;  %v8093_v63 = vadd.f32 %v8092_v16, %v8004_v43  ;;  %v8005_v21 = vpop.f32.mrf.mxu1  ;;  %v20419_v43 = vld [vmem:[#allocation95_spill] sm:$0xff] }
 0xdcd   :  { %v8006_v30 = vadd.f32 %v8005_v21, %v7917_v54  ;;  %v20421_v34 = vpack.c.bf16 %v20419_v43, %v20420_v11  ;;  %v7925_v21 = vadd.f32 %v17948_v62, %v17918_v37  ;;  %v20430_v43 = vld [vmem:[#allocation4_spill] sm:$0xff]  ;;  %v20431_v11 = vld [vmem:[#allocation285_spill] sm:$0xff] }
 0xdce   :  { %v18292_v36 = vadd.f32 %v8181_v39, %v8093_v63  ;;  %v18314_v39 = vpop.f32.mrf.mxu0  ;;  %v20432_v37 = vpack.c.bf16 %v20430_v43, %v20431_v11  ;;  %v20443_v11 = vld [vmem:[#allocation87_spill] sm:$0xff] }
 0xdd3   :  { %v8094_v48 = vpop.f32.mrf.mxu2 }
 0xdd4   :  { %v8183_v53 = vpop.f32.mrf.mxu3  ;;  %v8095_v45 = vadd.f32 %v8094_v48, %v8006_v30  ;;  %v8008_v27 = vpop.f32.mrf.mxu1 }
 0xdd5   :  { %v8009_v14 = vadd.f32 %v8008_v27, %v7920_v18 }
 0xdd6   :  { %v18301_v17 = vadd.f32 %v8183_v53, %v8095_v45  ;;  %v20425_v45 = vld [vmem:[#allocation278_spill] sm:$0xff] }
 0xdd7   :  { %8323 = vmatmul.bf16.gmra.mxu1 %v20418_v9  ;;  %v20426_v27 = vpack.c.bf16 %v20424_v31, %v20425_v45  ;;  %v20429_v9 = vpack.c.bf16 %v20427_v38, %v20428_v20  ;;  %v20434_v31 = vld [vmem:[#allocation20_spill] sm:$0xff]  ;;  %v20435_v45 = vld [vmem:[#allocation18_spill] sm:$0xff] }
 0xdd8   :  { %8412 = vmatmul.bf16.gmra.mxu2 %v20421_v34  ;;  %v20433_v34 = vld [vmem:[#allocation107_spill] sm:$0xff]  ;;  %v20438_v38 = vld [vmem:[#allocation14_spill] sm:$0xff] }
 0xdd9   :  { %8501 = vmatmul.bf16.gmra.mxu3 %v20423_v44  ;;  %v7927_v59 = vadd.f32 %v17948_v62, %v20433_v34  ;;  %v20437_v62 = vld [vmem:[#allocation97_spill] sm:$0xff] }
 0xdda   :  { %v20439_v20 = vpack.c.bf16 %v20437_v62, %v20438_v38  ;;  %v20444_v62 = vld [vmem:[#allocation24_spill] sm:$0xff]  ;;  %v20445_v38 = vld [vmem:[#allocation22_spill] sm:$0xff] }
 0xddb   :  { %v8097_v22 = vpop.f32.mrf.mxu2 }
 0xddc   :  { %v8186_v3 = vpop.f32.mrf.mxu3  ;;  %v8098_v15 = vadd.f32 %v8097_v22, %v8009_v14  ;;  %v8010_v54 = vpop.f32.mrf.mxu1 }
 0xddd   :  { %v8011_v16 = vadd.f32 %v8010_v54, %v7922_v58  ;;  %v18325_v14 = vpop.f32.mrf.mxu0 }
 0xdde   :  { %v18316_v63 = vadd.f32 %v8186_v3, %v8098_v15 }
 0xde3   :  { %v8099_v30 = vpop.f32.mrf.mxu2 }
 0xde4   :  { %v8188_v56 = vpop.f32.mrf.mxu3  ;;  %v8100_v18 = vadd.f32 %v8099_v30, %v8011_v16  ;;  %v8013_v10 = vpop.f32.mrf.mxu1 }
 0xde5   :  { %v8014_v48 = vadd.f32 %v8013_v10, %v7925_v21  ;;  %v18337_v16 = vpop.f32.mrf.mxu0 }
 0xde6   :  { %v18320_v53 = vadd.f32 %v8188_v56, %v8100_v18 }
 0xde7   :  { %8328 = vmatmul.bf16.gmra.mxu1 %v20426_v27  ;;  %v20436_v27 = vpack.c.bf16 %v20434_v31, %v20435_v45 }
 0xde8   :  { %8417 = vmatmul.bf16.gmra.mxu2 %v20429_v9  ;;  %v20441_v9 = vld [vmem:[#allocation54_spill] sm:$0xff] }
 0xde9   :  { %8506 = vmatmul.bf16.gmra.mxu3 %v20432_v37 }
 0xdeb   :  { %v8102_v44 = vpop.f32.mrf.mxu2 }
 0xdec   :  { %v8191_v58 = vpop.f32.mrf.mxu3  ;;  %v8103_v22 = vadd.f32 %v8102_v44, %v8014_v48  ;;  %v8015_v3 = vpop.f32.mrf.mxu1  ;;  %v20440_v48 = vld [vmem:[#allocation59_spill] sm:$0xff] }
 0xded   :  { %v8016_v15 = vadd.f32 %v8015_v3, %v7927_v59  ;;  %v20442_v43 = vpack.c.bf16 %v20440_v48, %v20441_v9  ;;  %v18351_v44 = vpop.f32.mrf.mxu0  ;;  %v20448_v48 = vld [vmem:[#allocation3_spill] sm:$0xff] }
 0xdee   :  { %v18335_v54 = vadd.f32 %v8191_v58, %v8103_v22 }
 0xdf3   :  { %v8104_v21 = vpop.f32.mrf.mxu2 }
 0xdf4   :  { %v8193_v30 = vpop.f32.mrf.mxu3  ;;  %v8105_v56 = vadd.f32 %v8104_v21, %v8016_v15  ;;  %v8294_v18 = vpop.f32.mrf.mxu1 }
 0xdf5   :  { %v8295_v37 = vadd.f32 %v8294_v18, %v20443_v11  ;;  %v18354_v45 = vpop.f32.mrf.mxu0  ;;  %v20446_v18 = vpack.c.bf16 %v20444_v62, %v20445_v38  ;;  %v20451_v11 = vld [vmem:[#allocation62_spill] sm:$0xff] }
 0xdf6   :  { %v18339_v10 = vadd.f32 %v8193_v30, %v8105_v56 }
 0xdf7   :  { %8333 = vmatmul.bf16.gmra.mxu1 %v20436_v27 }
 0xdf8   :  { %8422 = vmatmul.bf16.gmra.mxu2 %v20439_v20  ;;  %v20447_v20 = vld [vmem:[#allocation36_spill] sm:$0xff] }
 0xdf9   :  { %8511 = vmatmul.bf16.gmra.mxu3 %v20442_v43  ;;  %v20449_v9 = vpack.c.bf16 %v20447_v20, %v20448_v48  ;;  %v20450_v43 = vld [vmem:[#allocation8_spill] sm:$0xff]  ;;  %v20454_v48 = vld [vmem:[#allocation26_spill] sm:$0xff] }
 0xdfa   :  { %v20453_v20 = vld [vmem:[#allocation28_spill] sm:$0xff] }
 0xdfb   :  { %v8383_v34 = vpop.f32.mrf.mxu2 }
 0xdfc   :  { %v8472_v59 = vpop.f32.mrf.mxu3  ;;  %v8384_v58 = vadd.f32 %v8383_v34, %v8295_v37  ;;  %v8296_v22 = vpop.f32.mrf.mxu1  ;;  %v20452_v37 = vpack.c.bf16 %v20450_v43, %v20451_v11  ;;  %v20459_v43 = vld [vmem:[#allocation100_spill] sm:$0xff] }
 0xdfd   :  { %v8297_v15 = vadd.f32 %v8296_v22, %v17998_v8  ;;  %v20460_v11 = vld [vmem:[#allocation60_spill] sm:$0xff] }
 0xdfe   :  { %v8473_v3 = vadd.f32 %v8472_v59, %v8384_v58 }
 0xe00   :  { %8588 = vmatmul.f32.vlgmr.msra.gmra.mxu0 %v8473_v3 }
 0xe03   :  { %v8385_v21 = vpop.f32.mrf.mxu2 }
 0xe04   :  { %v8474_v30 = vpop.f32.mrf.mxu3  ;;  %v8386_v56 = vadd.f32 %v8385_v21, %v8297_v15  ;;  %v8299_v31 = vpop.f32.mrf.mxu1 }
 0xe05   :  { %v8300_v8 = vadd.f32 %v8299_v31, %v18005_v61  ;;  %v18366_v15 = vpop.f32.mrf.mxu0  ;;  %v20456_v61 = vld [vmem:[#allocation7_spill] sm:$0xff]  ;;  %v20457_v31 = vld [vmem:[#allocation98_spill] sm:$0xff] }
 0xe06   :  { %v8475_v27 = vadd.f32 %v8474_v30, %v8386_v56 }
 0xe07   :  { %8338 = vmatmul.bf16.gmra.mxu1 %v20446_v18 }
 0xe08   :  { %8427 = vmatmul.bf16.gmra.mxu2 %v20449_v9  ;;  %8591 = vmatmul.f32.gmra.mxu0 %v8475_v27  ;;  %v20455_v27 = vpack.c.bf16 %v20453_v20, %v20454_v48  ;;  %v20458_v9 = vpack.c.bf16 %v20456_v61, %v20457_v31  ;;  %v20463_v61 = vld [vmem:[#allocation30_spill] sm:$0xff] }
 0xe09   :  { %8516 = vmatmul.bf16.gmra.mxu3 %v20452_v37  ;;  %v20461_v37 = vpack.c.bf16 %v20459_v43, %v20460_v11  ;;  %v20468_v43 = vld [vmem:[#allocation12_spill] sm:$0xff]  ;;  %v20469_v11 = vld [vmem:[#allocation66_spill] sm:$0xff] }
 0xe0b   :  { %v8388_v34 = vpop.f32.mrf.mxu2 }
 0xe0c   :  { %v8477_v59 = vpop.f32.mrf.mxu3  ;;  %v8389_v58 = vadd.f32 %v8388_v34, %v8300_v8  ;;  %v8301_v22 = vpop.f32.mrf.mxu1 }
 0xe0d   :  { %v8302_v21 = vadd.f32 %v8301_v22, %v18027_v46  ;;  %v18378_v8 = vpop.f32.mrf.mxu0 }
 0xe0e   :  { %v8478_v3 = vadd.f32 %v8477_v59, %v8389_v58 }
 0xe10   :  { %8594 = vmatmul.f32.gmra.mxu0 %v8478_v3 }
 0xe13   :  { %v8390_v30 = vpop.f32.mrf.mxu2 }
 0xe14   :  { %v8479_v56 = vpop.f32.mrf.mxu3  ;;  %v8391_v62 = vadd.f32 %v8390_v30, %v8302_v21  ;;  %v8304_v38 = vpop.f32.mrf.mxu1 }
 0xe15   :  { %v8305_v46 = vadd.f32 %v8304_v38, %v18037_v5  ;;  %v20465_v5 = vld [vmem:[#allocation44_spill] sm:$0xff]  ;;  %v20466_v38 = vld [vmem:[#allocation38_spill] sm:$0xff] }
 0xe16   :  { %v8480_v18 = vadd.f32 %v8479_v56, %v8391_v62  ;;  %v18382_v62 = vpop.f32.mrf.mxu0 }
 0xe17   :  { %8343 = vmatmul.bf16.gmra.mxu1 %v20455_v27 }
 0xe18   :  { %8432 = vmatmul.bf16.gmra.mxu2 %v20458_v9  ;;  %8597 = vmatmul.f32.gmra.mxu0 %v8480_v18  ;;  %v20462_v18 = vld [vmem:[#allocation32_spill] sm:$0xff]  ;;  %v20467_v9 = vpack.c.bf16 %v20465_v5, %v20466_v38  ;;  %v20472_v5 = vld [vmem:[#allocation34_spill] sm:$0xff] }
 0xe19   :  { %8521 = vmatmul.bf16.gmra.mxu3 %v20461_v37  ;;  %v20464_v31 = vpack.c.bf16 %v20462_v18, %v20463_v61  ;;  %v20470_v37 = vpack.c.bf16 %v20468_v43, %v20469_v11  ;;  %v20474_v38 = vld [vmem:[#allocation42_spill] sm:$0xff]  ;;  %v20477_v11 = vld [vmem:[#allocation72_spill] sm:$0xff] }
 0xe1b   :  { %v8393_v34 = vpop.f32.mrf.mxu2 }
 0xe1c   :  { %v8482_v59 = vpop.f32.mrf.mxu3  ;;  %v8394_v58 = vadd.f32 %v8393_v34, %v8305_v46  ;;  %v8306_v22 = vpop.f32.mrf.mxu1 }
 0xe1d   :  { %v8307_v21 = vadd.f32 %v8306_v22, %v18053_v40 }
 0xe1e   :  { %v8483_v3 = vadd.f32 %v8482_v59, %v8394_v58  ;;  %v18394_v22 = vpop.f32.mrf.mxu0 }
 0xe20   :  { %8600 = vmatmul.f32.gmra.mxu0 %v8483_v3 }
 0xe23   :  { %v8395_v30 = vpop.f32.mrf.mxu2 }
 0xe24   :  { %v8484_v56 = vpop.f32.mrf.mxu3  ;;  %v8396_v20 = vadd.f32 %v8395_v30, %v8307_v21  ;;  %v8309_v48 = vpop.f32.mrf.mxu1 }
 0xe25   :  { %v8310_v40 = vadd.f32 %v8309_v48, %v18060_v32  ;;  %v8226_v48 = vadd.f32 %v18198_v35, %v18086_v29 }
 0xe26   :  { %v8485_v27 = vadd.f32 %v8484_v56, %v8396_v20  ;;  %v18400_v32 = vpop.f32.mrf.mxu0 }
 0xe27   :  { %8348 = vmatmul.bf16.gmra.mxu1 %v20464_v31  ;;  %v20471_v31 = vld [vmem:[#allocation280_spill] sm:$0xff] }
 0xe28   :  { %8437 = vmatmul.bf16.gmra.mxu2 %v20467_v9  ;;  %8603 = vmatmul.f32.gmra.mxu0 %v8485_v27  ;;  %v20473_v27 = vpack.c.bf16 %v20471_v31, %v20472_v5  ;;  %v20475_v9 = vld [vmem:[#allocation11_spill] sm:$0xff] }
 0xe29   :  { %8526 = vmatmul.bf16.gmra.mxu3 %v20470_v37  ;;  %v20476_v43 = vpack.c.bf16 %v20474_v38, %v20475_v9  ;;  %v20483_v38 = vld [vmem:[#allocation47_spill] sm:$0xff]  ;;  %v20484_v9 = vld [vmem:[#allocation282_spill] sm:$0xff] }
 0xe2b   :  { %v8398_v46 = vpop.f32.mrf.mxu2 }
 0xe2c   :  { %v8487_v34 = vpop.f32.mrf.mxu3  ;;  %v8399_v59 = vadd.f32 %v8398_v46, %v8310_v40  ;;  %v8311_v58 = vpop.f32.mrf.mxu1 }
 0xe2d   :  { %v8312_v21 = vadd.f32 %v8311_v58, %v18082_v2  ;;  %v20478_v2 = vld [vmem:[#allocation64_spill] sm:$0xff] }
 0xe2e   :  { %v8488_v3 = vadd.f32 %v8487_v34, %v8399_v59  ;;  %v20479_v37 = vpack.c.bf16 %v20477_v11, %v20478_v2  ;;  %v18412_v29 = vpop.f32.mrf.mxu0 }
 0xe30   :  { %8606 = vmatmul.f32.gmra.mxu0 %v8488_v3 }
 0xe33   :  { %v8400_v30 = vpop.f32.mrf.mxu2 }
 0xe34   :  { %v8489_v56 = vpop.f32.mrf.mxu3  ;;  %v8401_v20 = vadd.f32 %v8400_v30, %v8312_v21  ;;  %v8314_v18 = vpop.f32.mrf.mxu1  ;;  %v8228_v21 = vadd.f32 %v18212_v52, %v18096_v50  ;;  %v20486_v50 = vld [vmem:[#allocation70_spill] sm:$0xff]  ;;  %v20487_v52 = vld [vmem:[#allocation16_spill] sm:$0xff] }
 0xe35   :  { %v8315_v40 = vadd.f32 %v8314_v18, %v8226_v48  ;;  %v8231_v48 = vadd.f32 %v18227_v24, %v18112_v23  ;;  %v20488_v11 = vpack.c.bf16 %v20486_v50, %v20487_v52  ;;  %v8233_v23 = vadd.f32 %v18244_v49, %v18119_v25  ;;  %v20495_v25 = vld [vmem:[#allocation5_spill] sm:$0xff] }
 0xe36   :  { %v8490_v61 = vadd.f32 %v8489_v56, %v8401_v20  ;;  %v20496_v49 = vld [vmem:[#allocation105_spill] sm:$0xff] }
 0xe37   :  { %8353 = vmatmul.bf16.gmra.mxu1 %v20473_v27  ;;  %v20480_v27 = vld [vmem:[#allocation281_spill] sm:$0xff] }
 0xe38   :  { %8442 = vmatmul.bf16.gmra.mxu2 %v20476_v43  ;;  %8609 = vmatmul.f32.gmra.mxu0 %v8490_v61  ;;  %v20481_v61 = vld [vmem:[#allocation40_spill] sm:$0xff]  ;;  %v20485_v43 = vpack.c.bf16 %v20483_v38, %v20484_v9  ;;  %v20497_v9 = vpack.c.bf16 %v20495_v25, %v20496_v49 }
 0xe39   :  { %8531 = vmatmul.bf16.gmra.mxu3 %v20479_v37  ;;  %v20482_v18 = vpack.c.bf16 %v20480_v27, %v20481_v61  ;;  %v8236_v61 = vadd.f32 %v18253_v33, %v18135_v26  ;;  %v8238_v26 = vadd.f32 %v18273_v19, %v18142_v12  ;;  %v20505_v12 = vld [vmem:[#allocation9_spill] sm:$0xff] }
 0xe3b   :  { %v8403_v46 = vpop.f32.mrf.mxu2 }
 0xe3c   :  { %v8492_v34 = vpop.f32.mrf.mxu3  ;;  %v8404_v59 = vadd.f32 %v8403_v46, %v8315_v40  ;;  %v8316_v58 = vpop.f32.mrf.mxu1 }
 0xe3d   :  { %v8317_v35 = vadd.f32 %v8316_v58, %v8228_v21  ;;  %v18425_v46 = vpop.f32.mrf.mxu0 }
 0xe3e   :  { %v8493_v3 = vadd.f32 %v8492_v34, %v8404_v59 }
 0xe40   :  { %8612 = vmatmul.f32.gmra.mxu0 %v8493_v3 }
 0xe43   :  { %v8405_v30 = vpop.f32.mrf.mxu2 }
 0xe44   :  { %v8494_v56 = vpop.f32.mrf.mxu3  ;;  %v8406_v20 = vadd.f32 %v8405_v30, %v8317_v35  ;;  %v8319_v31 = vpop.f32.mrf.mxu1 }
 0xe45   :  { %v8320_v2 = vadd.f32 %v8319_v31, %v8231_v48  ;;  %v20489_v31 = vld [vmem:[#allocation283_spill] sm:$0xff] }
 0xe46   :  { %v8495_v5 = vadd.f32 %v8494_v56, %v8406_v20  ;;  %v18429_v56 = vpop.f32.mrf.mxu0  ;;  %v20493_v48 = vld [vmem:[#allocation15_spill] sm:$0xff] }
 0xe47   :  { %8358 = vmatmul.bf16.gmra.mxu1 %v20482_v18  ;;  %v20492_v18 = vld [vmem:[#allocation48_spill] sm:$0xff] }
 0xe48   :  { %8447 = vmatmul.bf16.gmra.mxu2 %v20485_v43  ;;  %8615 = vmatmul.f32.gmra.mxu0 %v8495_v5  ;;  %v20490_v5 = vld [vmem:[#allocation45_spill] sm:$0xff]  ;;  %v20494_v38 = vpack.c.bf16 %v20492_v18, %v20493_v48 }
 0xe49   :  { %8536 = vmatmul.bf16.gmra.mxu3 %v20488_v11  ;;  %v20491_v27 = vpack.c.bf16 %v20489_v31, %v20490_v5  ;;  %v20502_v31 = vld [vmem:[#allocation51_spill] sm:$0xff] }
 0xe4b   :  { %v8408_v37 = vpop.f32.mrf.mxu2 }
 0xe4c   :  { %v8497_v40 = vpop.f32.mrf.mxu3  ;;  %v8409_v34 = vadd.f32 %v8408_v37, %v8320_v2  ;;  %v8321_v59 = vpop.f32.mrf.mxu1 }
 0xe4d   :  { %v8322_v24 = vadd.f32 %v8321_v59, %v8233_v23 }
 0xe4e   :  { %v8498_v58 = vadd.f32 %v8497_v40, %v8409_v34  ;;  %v18442_v40 = vpop.f32.mrf.mxu0 }
 0xe50   :  { %8618 = vmatmul.f32.gmra.mxu0 %v8498_v58 }
 0xe53   :  { %v8410_v3 = vpop.f32.mrf.mxu2 }
 0xe54   :  { %v8499_v21 = vpop.f32.mrf.mxu3  ;;  %v8411_v35 = vadd.f32 %v8410_v3, %v8322_v24  ;;  %v8324_v30 = vpop.f32.mrf.mxu1  ;;  %v20498_v3 = vld [vmem:[#allocation286_spill] sm:$0xff] }
 0xe55   :  { %v8325_v43 = vadd.f32 %v8324_v30, %v8236_v61  ;;  %v8241_v30 = vadd.f32 %v18288_v1, %v18158_v28  ;;  %v8243_v28 = vadd.f32 %v18299_v42, %v18165_v51 }
 0xe56   :  { %v8500_v20 = vadd.f32 %v8499_v21, %v8411_v35  ;;  %v20499_v21 = vld [vmem:[#allocation284_spill] sm:$0xff]  ;;  %v18457_v61 = vpop.f32.mrf.mxu0 }
 0xe57   :  { %8363 = vmatmul.bf16.gmra.mxu1 %v20491_v27  ;;  %v20500_v35 = vpack.c.bf16 %v20498_v3, %v20499_v21  ;;  %v20504_v27 = vld [vmem:[#allocation109_spill] sm:$0xff]  ;;  %v8248_v21 = vadd.f32 %v18325_v14, %v18185_v60 }
 0xe58   :  { %8452 = vmatmul.bf16.gmra.mxu2 %v20494_v38  ;;  %8621 = vmatmul.f32.gmra.mxu0 %v8500_v20  ;;  %v20501_v20 = vld [vmem:[#allocation50_spill] sm:$0xff]  ;;  %v20506_v19 = vpack.c.bf16 %v20504_v27, %v20505_v12  ;;  %v8251_v12 = vadd.f32 %v18337_v16, %v18200_v41 }
 0xe59   :  { %8541 = vmatmul.bf16.gmra.mxu3 %v20497_v9  ;;  %v20503_v5 = vpack.c.bf16 %v20501_v20, %v20502_v31 }
 0xe5b   :  { %v8413_v50 = vpop.f32.mrf.mxu2 }
 0xe5c   :  { %v8502_v52 = vpop.f32.mrf.mxu3  ;;  %v8414_v11 = vadd.f32 %v8413_v50, %v8325_v43  ;;  %v8326_v2 = vpop.f32.mrf.mxu1 }
 0xe5d   :  { %v8327_v33 = vadd.f32 %v8326_v2, %v8238_v26  ;;  %v8246_v26 = vadd.f32 %v18314_v39, %v18178_v47 }
 0xe5e   :  { %v8503_v37 = vadd.f32 %v8502_v52, %v8414_v11  ;;  %v18461_v2 = vpop.f32.mrf.mxu0 }
 0xe60   :  { %8624 = vmatmul.f32.gmra.mxu0 %v8503_v37 }
 0xe63   :  { %v8415_v34 = vpop.f32.mrf.mxu2 }
 0xe64   :  { %v8504_v59 = vpop.f32.mrf.mxu3  ;;  %v8416_v58 = vadd.f32 %v8415_v34, %v8327_v33  ;;  %v8329_v23 = vpop.f32.mrf.mxu1  ;;  %v18468_v34 = vld [vmem:[%s18634_s6] ss:$0 sm:$0xff] }
 0xe65   :  { %v8330_v18 = vadd.f32 %v8329_v23, %v8241_v30 }
 0xe66   :  { %v8505_v24 = vadd.f32 %v8504_v59, %v8416_v58 }
 0xe67   :  { %8368 = vmatmul.bf16.gmra.mxu1 %v20500_v35 }
 0xe68   :  { %8457 = vmatmul.bf16.gmra.mxu2 %v20503_v5  ;;  %8627 = vmatmul.f32.gmra.mxu0 %v8505_v24 }
 0xe69   :  { %8546 = vmatmul.bf16.gmra.mxu3 %v20506_v19 }
 0xe6b   :  { %v8418_v48 = vpop.f32.mrf.mxu2 }
 0xe6c   :  { %v8507_v38 = vpop.f32.mrf.mxu3  ;;  %v8419_v25 = vadd.f32 %v8418_v48, %v8330_v18  ;;  %v8331_v49 = vpop.f32.mrf.mxu1 }
 0xe6d   :  { %v8332_v1 = vadd.f32 %v8331_v49, %v8243_v28 }
 0xe6e   :  { %v8508_v9 = vadd.f32 %v8507_v38, %v8419_v25 }
 0xe70   :  { %8630 = vmatmul.f32.gmra.mxu0 %v8508_v9  ;;  %v8253_v9 = vadd.f32 %v18351_v44, %v18207_v55 }
 0xe73   :  { %v8420_v43 = vpop.f32.mrf.mxu2 }
 0xe74   :  { %v8509_v50 = vpop.f32.mrf.mxu3  ;;  %v8421_v52 = vadd.f32 %v8420_v43, %v8332_v1  ;;  %v8334_v11 = vpop.f32.mrf.mxu1 }
 0xe75   :  { %v8335_v33 = vadd.f32 %v8334_v11, %v8246_v26 }
 0xe76   :  { %v8510_v37 = vadd.f32 %v8509_v50, %v8421_v52 }
 0xe78   :  { %8633 = vmatmul.f32.gmra.mxu0 %v8510_v37  ;;  %v8256_v37 = vadd.f32 %v18354_v45, %v18222_v6 }
 0xe7b   :  { %v8423_v51 = vpop.f32.mrf.mxu2 }
 0xe7c   :  { %v8512_v42 = vpop.f32.mrf.mxu3  ;;  %v8424_v59 = vadd.f32 %v8423_v51, %v8335_v33  ;;  %v8336_v58 = vpop.f32.mrf.mxu1 }
 0xe7d   :  { %v8589_v23 = vpop.f32.mrf.mxu0  ;;  %v8337_v47 = vadd.f32 %v8336_v58, %v8248_v21 }
 0xe7e   :  { %v8513_v24 = vadd.f32 %v8512_v42, %v8424_v59  ;;  %v8590_v3 = vadd.f32 %v18468_v34, %v8589_v23  ;;  %v8258_v23 = vadd.f32 %v18366_v15, %v18231_v57 }
 0xe80   :  { %8685 = vst [vmem:[%s18635_s7] sm:$0xff] %v8590_v3  ;;  %8636 = vmatmul.f32.gmra.mxu0 %v8513_v24 }
 0xe83   :  { %v8425_v39 = vpop.f32.mrf.mxu2 }
 0xe84   :  { %v8514_v35 = vpop.f32.mrf.mxu3  ;;  %v8426_v30 = vadd.f32 %v8425_v39, %v8337_v47  ;;  %v8339_v20 = vpop.f32.mrf.mxu1 }
 0xe85   :  { %v8592_v5 = vpop.f32.mrf.mxu0  ;;  %v8340_v60 = vadd.f32 %v8339_v20, %v8251_v12 }
 0xe86   :  { %v8515_v31 = vadd.f32 %v8514_v35, %v8426_v30  ;;  %v8593_v27 = vadd.f32 %v18468_v34, %v8592_v5  ;;  %v8261_v30 = vadd.f32 %v18378_v8, %v18246_v13 }
 0xe88   :  { %8686 = vst [vmem:[%s18635_s7 + $0x8] sm:$0xff] %v8593_v27  ;;  %8639 = vmatmul.f32.gmra.mxu0 %v8515_v31 }
 0xe8b   :  { %v8428_v14 = vpop.f32.mrf.mxu2 }
 0xe8c   :  { %v8517_v19 = vpop.f32.mrf.mxu3  ;;  %v8429_v18 = vadd.f32 %v8428_v14, %v8340_v60  ;;  %v8341_v48 = vpop.f32.mrf.mxu1  ;;  %v8263_v14 = vadd.f32 %v18382_v62, %v18255_v0 }
 0xe8d   :  { %v8595_v25 = vpop.f32.mrf.mxu0  ;;  %v8342_v41 = vadd.f32 %v8341_v48, %v8253_v9  ;;  %v8266_v9 = vadd.f32 %v18394_v22, %v18268_v7 }
 0xe8e   :  { %v8518_v38 = vadd.f32 %v8517_v19, %v8429_v18  ;;  %v8596_v49 = vadd.f32 %v18468_v34, %v8595_v25 }
 0xe90   :  { %8687 = vst [vmem:[%s18635_s7 + $0x10] sm:$0xff] %v8596_v49  ;;  %8642 = vmatmul.f32.gmra.mxu0 %v8518_v38 }
 0xe93   :  { %v8430_v16 = vpop.f32.mrf.mxu2 }
 0xe94   :  { %v8519_v28 = vpop.f32.mrf.mxu3  ;;  %v8431_v1 = vadd.f32 %v8430_v16, %v8342_v41  ;;  %v8344_v43 = vpop.f32.mrf.mxu1 }
 0xe95   :  { %v8598_v52 = vpop.f32.mrf.mxu0  ;;  %v8345_v55 = vadd.f32 %v8344_v43, %v8256_v37 }
 0xe96   :  { %v8520_v50 = vadd.f32 %v8519_v28, %v8431_v1  ;;  %v8599_v11 = vadd.f32 %v18468_v34, %v8598_v52  ;;  %v8268_v52 = vadd.f32 %v18400_v32, %v18277_v4 }
 0xe98   :  { %8688 = vst [vmem:[%s18635_s7 + $0x18] sm:$0xff] %v8599_v11  ;;  %8645 = vmatmul.f32.gmra.mxu0 %v8520_v50 }
 0xe9b   :  { %v8433_v44 = vpop.f32.mrf.mxu2 }
 0xe9c   :  { %v8522_v26 = vpop.f32.mrf.mxu3  ;;  %v8434_v33 = vadd.f32 %v8433_v44, %v8345_v55  ;;  %v8346_v51 = vpop.f32.mrf.mxu1 }
 0xe9d   :  { %v8601_v59 = vpop.f32.mrf.mxu0  ;;  %v8347_v6 = vadd.f32 %v8346_v51, %v8258_v23  ;;  %v8271_v51 = vadd.f32 %v18412_v29, %v18292_v36 }
 0xe9e   :  { %v8523_v42 = vadd.f32 %v8522_v26, %v8434_v33  ;;  %v8602_v58 = vadd.f32 %v18468_v34, %v8601_v59 }
 0xea0   :  { %8689 = vst [vmem:[%s18635_s7 + $0x20] sm:$0xff] %v8602_v58  ;;  %8648 = vmatmul.f32.gmra.mxu0 %v8523_v42 }
 0xea3   :  { %v8435_v45 = vpop.f32.mrf.mxu2 }
 0xea4   :  { %v8524_v24 = vpop.f32.mrf.mxu3  ;;  %v8436_v3 = vadd.f32 %v8435_v45, %v8347_v6  ;;  %v8349_v21 = vpop.f32.mrf.mxu1 }
 0xea5   :  { %v8604_v39 = vpop.f32.mrf.mxu0  ;;  %v8350_v57 = vadd.f32 %v8349_v21, %v8261_v30 }
 0xea6   :  { %v8525_v47 = vadd.f32 %v8524_v24, %v8436_v3  ;;  %v8605_v35 = vadd.f32 %v18468_v34, %v8604_v39  ;;  %v8273_v24 = vadd.f32 %v18425_v46, %v18301_v17 }
 0xea8   :  { %8690 = vst [vmem:[%s18635_s7 + $0x28] sm:$0xff] %v8605_v35  ;;  %8651 = vmatmul.f32.gmra.mxu0 %v8525_v47 }
 0xeab   :  { %v8438_v15 = vpop.f32.mrf.mxu2 }
 0xeac   :  { %v8527_v20 = vpop.f32.mrf.mxu3  ;;  %v8439_v31 = vadd.f32 %v8438_v15, %v8350_v57  ;;  %v8351_v5 = vpop.f32.mrf.mxu1  ;;  %v8276_v57 = vadd.f32 %v18429_v56, %v18316_v63 }
 0xead   :  { %v8607_v12 = vpop.f32.mrf.mxu0  ;;  %v8352_v13 = vadd.f32 %v8351_v5, %v8263_v14 }
 0xeae   :  { %v8528_v27 = vadd.f32 %v8527_v20, %v8439_v31  ;;  %v8608_v60 = vadd.f32 %v18468_v34, %v8607_v12 }
 0xeb0   :  { %8691 = vst [vmem:[%s18635_s7 + $0x30] sm:$0xff] %v8608_v60  ;;  %8654 = vmatmul.f32.gmra.mxu0 %v8528_v27  ;;  %v8278_v60 = vadd.f32 %v18442_v40, %v18320_v53 }
 0xeb3   :  { %v8440_v8 = vpop.f32.mrf.mxu2 }
 0xeb4   :  { %v8529_v19 = vpop.f32.mrf.mxu3  ;;  %v8441_v18 = vadd.f32 %v8440_v8, %v8352_v13  ;;  %v8354_v48 = vpop.f32.mrf.mxu1 }
 0xeb5   :  { %v8610_v25 = vpop.f32.mrf.mxu0  ;;  %v8355_v0 = vadd.f32 %v8354_v48, %v8266_v9 }
 0xeb6   :  { %v8530_v38 = vadd.f32 %v8529_v19, %v8441_v18  ;;  %v8611_v49 = vadd.f32 %v18468_v34, %v8610_v25 }
 0xeb8   :  { %8692 = vst [vmem:[%s18635_s7 + $0x38] sm:$0xff] %v8611_v49  ;;  %8657 = vmatmul.f32.gmra.mxu0 %v8530_v38  ;;  %v8281_v38 = vadd.f32 %v18457_v61, %v18335_v54 }
 0xebb   :  { %v8443_v62 = vpop.f32.mrf.mxu2 }
 0xebc   :  { %v8532_v41 = vpop.f32.mrf.mxu3  ;;  %v8444_v16 = vadd.f32 %v8443_v62, %v8355_v0  ;;  %v8356_v28 = vpop.f32.mrf.mxu1 }
 0xebd   :  { %v8613_v43 = vpop.f32.mrf.mxu0  ;;  %v8357_v7 = vadd.f32 %v8356_v28, %v8268_v52 }
 0xebe   :  { %v8533_v1 = vadd.f32 %v8532_v41, %v8444_v16  ;;  %v8614_v50 = vadd.f32 %v18468_v34, %v8613_v43  ;;  %v8283_v16 = vadd.f32 %v18461_v2, %v18339_v10 }
 0xec0   :  { %8693 = vst [vmem:[%s18635_s7 + $0x40] sm:$0xff] %v8614_v50  ;;  %8660 = vmatmul.f32.gmra.mxu0 %v8533_v1 }
 0xec3   :  { %v8445_v22 = vpop.f32.mrf.mxu2 }
 0xec4   :  { %v8534_v11 = vpop.f32.mrf.mxu3  ;;  %v8446_v37 = vadd.f32 %v8445_v22, %v8357_v7  ;;  %v8359_v55 = vpop.f32.mrf.mxu1 }
 0xec5   :  { %v8616_v26 = vpop.f32.mrf.mxu0  ;;  %v8360_v4 = vadd.f32 %v8359_v55, %v8271_v51 }
 0xec6   :  { %v8535_v44 = vadd.f32 %v8534_v11, %v8446_v37  ;;  %v8617_v33 = vadd.f32 %v18468_v34, %v8616_v26 }
 0xec8   :  { %8694 = vst [vmem:[%s18635_s7 + $0x48] sm:$0xff] %v8617_v33  ;;  %8663 = vmatmul.f32.gmra.mxu0 %v8535_v44 }
 0xecb   :  { %v8448_v32 = vpop.f32.mrf.mxu2 }
 0xecc   :  { %v8537_v42 = vpop.f32.mrf.mxu3  ;;  %v8449_v59 = vadd.f32 %v8448_v32, %v8360_v4  ;;  %v8361_v58 = vpop.f32.mrf.mxu1 }
 0xecd   :  { %v8619_v6 = vpop.f32.mrf.mxu0  ;;  %v8362_v36 = vadd.f32 %v8361_v58, %v8273_v24 }
 0xece   :  { %v8538_v23 = vadd.f32 %v8537_v42, %v8449_v59  ;;  %v8620_v45 = vadd.f32 %v18468_v34, %v8619_v6 }
 0xed0   :  { %8695 = vst [vmem:[%s18635_s7 + $0x50] sm:$0xff] %v8620_v45  ;;  %8666 = vmatmul.f32.gmra.mxu0 %v8538_v23 }
 0xed3   :  { %v8450_v29 = vpop.f32.mrf.mxu2 }
 0xed4   :  { %v8539_v3 = vpop.f32.mrf.mxu3  ;;  %v8451_v21 = vadd.f32 %v8450_v29, %v8362_v36  ;;  %v8364_v47 = vpop.f32.mrf.mxu1 }
 0xed5   :  { %v8622_v35 = vpop.f32.mrf.mxu0  ;;  %v8365_v17 = vadd.f32 %v8364_v47, %v8276_v57 }
 0xed6   :  { %v8540_v39 = vadd.f32 %v8539_v3, %v8451_v21  ;;  %v8623_v30 = vadd.f32 %v18468_v34, %v8622_v35 }
 0xed8   :  { %8696 = vst [vmem:[%s18635_s7 + $0x58] sm:$0xff] %v8623_v30  ;;  %8669 = vmatmul.f32.gmra.mxu0 %v8540_v39 }
 0xedb   :  { %v8453_v46 = vpop.f32.mrf.mxu2 }
 0xedc   :  { %v8542_v15 = vpop.f32.mrf.mxu3  ;;  %v8454_v20 = vadd.f32 %v8453_v46, %v8365_v17  ;;  %v8366_v31 = vpop.f32.mrf.mxu1 }
 0xedd   :  { %v8625_v27 = vpop.f32.mrf.mxu0  ;;  %v8367_v63 = vadd.f32 %v8366_v31, %v8278_v60 }
 0xede   :  { %v8543_v5 = vadd.f32 %v8542_v15, %v8454_v20  ;;  %v8626_v12 = vadd.f32 %v18468_v34, %v8625_v27 }
 0xee0   :  { %8697 = vst [vmem:[%s18635_s7 + $0x60] sm:$0xff] %v8626_v12  ;;  %8672 = vmatmul.f32.gmra.mxu0 %v8543_v5 }
 0xee3   :  { %v8455_v56 = vpop.f32.mrf.mxu2 }
 0xee4   :  { %v8544_v14 = vpop.f32.mrf.mxu3  ;;  %v8456_v13 = vadd.f32 %v8455_v56, %v8367_v63  ;;  %v8369_v8 = vpop.f32.mrf.mxu1 }
 0xee5   :  { %v8628_v18 = vpop.f32.mrf.mxu0  ;;  %v8370_v53 = vadd.f32 %v8369_v8, %v8281_v38 }
 0xee6   :  { %v8545_v19 = vadd.f32 %v8544_v14, %v8456_v13  ;;  %v8629_v48 = vadd.f32 %v18468_v34, %v8628_v18 }
 0xee8   :  { %8698 = vst [vmem:[%s18635_s7 + $0x68] sm:$0xff] %v8629_v48  ;;  %8675 = vmatmul.f32.gmra.mxu0 %v8545_v19 }
 0xeeb   :  { %v8458_v40 = vpop.f32.mrf.mxu2 }
 0xeec   :  { %v8547_v25 = vpop.f32.mrf.mxu3  ;;  %v8459_v49 = vadd.f32 %v8458_v40, %v8370_v53  ;;  %v8371_v62 = vpop.f32.mrf.mxu1 }
 0xeed   :  { %v8631_v0 = vpop.f32.mrf.mxu0  ;;  %v8372_v54 = vadd.f32 %v8371_v62, %v8283_v16 }
 0xeee   :  { %v8548_v9 = vadd.f32 %v8547_v25, %v8459_v49  ;;  %v8632_v41 = vadd.f32 %v18468_v34, %v8631_v0 }
 0xef0   :  { %8699 = vst [vmem:[%s18635_s7 + $0x70] sm:$0xff] %v8632_v41  ;;  %8678 = vmatmul.f32.gmra.mxu0 %v8548_v9 }
 0xef3   :  { %v8460_v61 = vpop.f32.mrf.mxu2 }
 0xef4   :  { %v8461_v28 = vadd.f32 %v8460_v61, %v8372_v54  ;;  %v8549_v1 = vpop.f32.mrf.mxu3 }
 0xef5   :  { %v8634_v50 = vpop.f32.mrf.mxu0 }
 0xef6   :  { %v8550_v43 = vadd.f32 %v8549_v1, %v8461_v28  ;;  %v8635_v52 = vadd.f32 %v18468_v34, %v8634_v50 }
 0xef8   :  { %8700 = vst [vmem:[%s18635_s7 + $0x78] sm:$0xff] %v8635_v52  ;;  %8681 = vmatmul.f32.gmra.mxu0 %v8550_v43 }
 0xefd   :  { %v8637_v7 = vpop.f32.mrf.mxu0 }
 0xefe   :  { %v8638_v10 = vadd.f32 %v18468_v34, %v8637_v7 }
 0xf00   :  { %8701 = vst [vmem:[%s18635_s7 + $0x80] sm:$0xff] %v8638_v10 }
 0xf05   :  { %v8640_v2 = vpop.f32.mrf.mxu0 }
 0xf06   :  { %v8641_v22 = vadd.f32 %v18468_v34, %v8640_v2 }
 0xf08   :  { %8702 = vst [vmem:[%s18635_s7 + $0x88] sm:$0xff] %v8641_v22 }
 0xf0d   :  { %v8643_v11 = vpop.f32.mrf.mxu0 }
 0xf0e   :  { %v8644_v37 = vadd.f32 %v18468_v34, %v8643_v11 }
 0xf10   :  { %8703 = vst [vmem:[%s18635_s7 + $0x90] sm:$0xff] %v8644_v37 }
 0xf15   :  { %v8646_v55 = vpop.f32.mrf.mxu0 }
 0xf16   :  { %v8647_v44 = vadd.f32 %v18468_v34, %v8646_v55 }
 0xf18   :  { %8704 = vst [vmem:[%s18635_s7 + $0x98] sm:$0xff] %v8647_v44 }
 0xf1d   :  { %v8649_v26 = vpop.f32.mrf.mxu0 }
 0xf1e   :  { %v8650_v33 = vadd.f32 %v18468_v34, %v8649_v26 }
 0xf20   :  { %8705 = vst [vmem:[%s18635_s7 + $0xa0] sm:$0xff] %v8650_v33 }
 0xf25   :  { %v8652_v51 = vpop.f32.mrf.mxu0 }
 0xf26   :  { %v8653_v4 = vadd.f32 %v18468_v34, %v8652_v51 }
 0xf28   :  { %8706 = vst [vmem:[%s18635_s7 + $0xa8] sm:$0xff] %v8653_v4 }
 0xf2d   :  { %v8655_v32 = vpop.f32.mrf.mxu0 }
 0xf2e   :  { %v8656_v42 = vadd.f32 %v18468_v34, %v8655_v32 }
 0xf30   :  { %8707 = vst [vmem:[%s18635_s7 + $0xb0] sm:$0xff] %v8656_v42 }
 0xf35   :  { %v8658_v59 = vpop.f32.mrf.mxu0 }
 0xf36   :  { %v8659_v58 = vadd.f32 %v18468_v34, %v8658_v59 }
 0xf38   :  { %8708 = vst [vmem:[%s18635_s7 + $0xb8] sm:$0xff] %v8659_v58 }
 0xf3d   :  { %v8661_v23 = vpop.f32.mrf.mxu0 }
 0xf3e   :  { %v8662_v6 = vadd.f32 %v18468_v34, %v8661_v23 }
 0xf40   :  { %8709 = vst [vmem:[%s18635_s7 + $0xc0] sm:$0xff] %v8662_v6 }
 0xf45   :  { %v8664_v45 = vpop.f32.mrf.mxu0 }
 0xf46   :  { %v8665_v24 = vadd.f32 %v18468_v34, %v8664_v45 }
 0xf48   :  { %8710 = vst [vmem:[%s18635_s7 + $0xc8] sm:$0xff] %v8665_v24 }
 0xf4d   :  { %v8667_v36 = vpop.f32.mrf.mxu0 }
 0xf4e   :  { %v8668_v29 = vadd.f32 %v18468_v34, %v8667_v36 }
 0xf50   :  { %8711 = vst [vmem:[%s18635_s7 + $0xd0] sm:$0xff] %v8668_v29 }
 0xf55   :  { %v8670_v3 = vpop.f32.mrf.mxu0 }
 0xf56   :  { %v8671_v21 = vadd.f32 %v18468_v34, %v8670_v3 }
 0xf58   :  { %8712 = vst [vmem:[%s18635_s7 + $0xd8] sm:$0xff] %v8671_v21 }
 0xf5d   :  { %v8673_v47 = vpop.f32.mrf.mxu0 }
 0xf5e   :  { %v8674_v39 = vadd.f32 %v18468_v34, %v8673_v47 }
 0xf60   :  { %8713 = vst [vmem:[%s18635_s7 + $0xe0] sm:$0xff] %v8674_v39 }
 0xf65   :  { %v8676_v35 = vpop.f32.mrf.mxu0 }
 0xf66   :  { %v8677_v30 = vadd.f32 %v18468_v34, %v8676_v35 }
 0xf68   :  { %8714 = vst [vmem:[%s18635_s7 + $0xe8] sm:$0xff] %v8677_v30 }
 0xf6d   :  { %v8679_v57 = vpop.f32.mrf.mxu0 }
 0xf6e   :  { %v8680_v17 = vadd.f32 %v18468_v34, %v8679_v57 }
 0xf70   :  { %8715 = vst [vmem:[%s18635_s7 + $0xf0] sm:$0xff] %v8680_v17 }
 0xf75   :  { %v8682_v46 = vpop.f32.mrf.mxu0 }
 0xf76   :  { %v8683_v15 = vadd.f32 %v18468_v34, %v8682_v46 }
 0xf78   :  { %8716 = vst [vmem:[%s18635_s7 + $0xf8] sm:$0xff] %v8683_v15 }

</bundles_post_ra>
